<compile_context>
chip_gen: v7x
topology: tpu7x:2x2x1
jax: 0.10.0
libtpu: 0.0.40
codegen_flags: <defaults>
</compile_context>

<pallas_src>
import functools
import math

import jax
import jax.numpy as jnp
import numpy as np
from jax.experimental import pallas as pl
from jax.experimental.pallas import tpu as pltpu

MEAN = 6.51286529169358
SCALE = 1.5614094578916633
_NEG = -1e30  # additive mask value (applied before the row-max subtraction)


# ---------------------------------------------------------------------------
# Fused forward kernel (one grid step = one batch block).
# ---------------------------------------------------------------------------
def _affinity_kernel(*refs, names, Bb, S, E, H, FF, LD,
                     n_self, n_cross, n_final):
    out_ref = refs[-1]
    p = dict(zip(names, refs[:-1]))

    f32, bf16 = jnp.float32, jnp.bfloat16
    Dh = E // H
    BS = Bb * S          # rows per protein half
    N = 2 * BS           # total activation rows in the slab (p1 half | p2 half)

    # ----------------------- in-kernel helpers ------------------------------
    def mm(a, w):  # bf16 MXU operands, f32 accumulation
        return jnp.dot(a.astype(bf16), w, preferred_element_type=f32)

    def layernorm(x, g, b):  # f32 statistics, eps = 1e-5 (nn.LayerNorm)
        mu = jnp.mean(x, axis=-1, keepdims=True)
        xc = x - mu
        var = jnp.mean(xc * xc, axis=-1, keepdims=True)
        return xc * jax.lax.rsqrt(var + 1e-5) * g + b

    def gelu(x):  # exact erf GELU (nn.GELU default)
        return 0.5 * x * (1.0 + jax.lax.erf(x * (1.0 / math.sqrt(2.0))))

    def heads(x, base):
        # (rows, *) -> (H*rows, Dh): head-major stacking of the Dh-wide slices.
        return jnp.concatenate(
            [x[:, base + h * Dh: base + (h + 1) * Dh] for h in range(H)], axis=0)

    def attention(q_src, q_off, kv_src, k_off, v_off, mask_ref, w_o, b_o, nq):
        qh = heads(q_src, q_off).astype(bf16)     # (H*nq, Dh), scale pre-folded
        kh = heads(kv_src, k_off).astype(bf16)    # (H*nk, Dh)
        vh = heads(kv_src, v_off).astype(bf16)
        s = jax.lax.dot_general(qh, kh, (((1,), (1,)), ((), ())),
                                preferred_element_type=f32)
        s = s + mask_ref[...]                     # block-diag mask BEFORE max
        s = s - jnp.max(s, axis=-1, keepdims=True)
        e = jnp.exp(s)
        pr = e * pl.reciprocal(jnp.sum(e, axis=-1, keepdims=True), approx=True)
        o = jnp.dot(pr.astype(bf16), vh, preferred_element_type=f32)  # (H*nq, Dh)
        att = jnp.concatenate([o[h * nq:(h + 1) * nq, :] for h in range(H)],
                              axis=1)             # (nq, E)
        return mm(att, w_o) + b_o

    def encoder_layer(x, l, mask_ref, n):
        # nn.TransformerEncoderLayer(norm_first=True, activation=relu), eval
        v = p["enc_vec"][l]                       # (8, Wv) f32 slab
        h = layernorm(x, v[0:1, :E], v[1:2, :E])
        qkv = mm(h, p["enc_w_in"][l]) + v[4:5, :3 * E]
        att = attention(qkv, 0, qkv, E, 2 * E, mask_ref,
                        p["enc_w_o"][l], v[5:6, :E], n)
        x = x + att
        h = layernorm(x, v[2:3, :E], v[3:4, :E])
        ff = jnp.maximum(mm(h, p["enc_w1"][l]) + v[6:7, :FF], 0.0)
        return x + mm(ff, p["enc_w2"][l]) + v[7:8, :E]

    def cross_module(qx, kvx, m, n):
        # CrossAttention: MHA(norm1(q), norm1(kv), norm1(kv)); norm2(q + att)
        v = p["cr_vec"][m]                        # (7, 2E) f32 slab
        qn = layernorm(qx, v[0:1, :E], v[1:2, :E])
        kn = layernorm(kvx, v[0:1, :E], v[1:2, :E])
        q2 = mm(qn, p["cr_w_q"][m]) + v[4:5, :E]
        kv = mm(kn, p["cr_w_kv"][m]) + v[5:6, :2 * E]
        att = attention(q2, 0, kv, 0, E, p["mask_cross"],
                        p["cr_w_o"][m], v[6:7, :E], n)
        return layernorm(qx + att, v[2:3, :E], v[3:4, :E])

    # ----------------------- forward pass -----------------------------------
    # shared projection; proj bias + positional embedding pre-folded into posb
    x = mm(p["x"][0], p["proj_w"][...]) + p["posb"][...]              # (N, E)

    # shared self-attention stack: both proteins in one slab, block-diag mask
    for l in range(n_self):
        x = encoder_layer(x, l, p["mask_self"], N)

    # cross-attention layers on the two halves
    p1, p2 = x[:BS, :], x[BS:, :]
    for c in range(n_cross):
        p1n = cross_module(p1, p2, 2 * c, BS)
        p2n = cross_module(p2, p1, 2 * c + 1, BS)
        p1, p2 = p1n, p2n
    x = jnp.concatenate([p1, p2], axis=0)

    # final encoder stack over the "combined" (p1||p2 per batch) sequence,
    # expressed through mask_final (no physical row re-interleave needed)
    for l in range(n_self, n_self + n_final):
        x = encoder_layer(x, l, p["mask_final"], N)

    # attention pooling (query projection + scale precomputed in the wrapper)
    pv = p["pool_vec"][...]
    kv = mm(x, p["pool_w_kv"][...]) + pv[0:1, :2 * E]
    q_pool = jnp.broadcast_to(p["pool_q"][...], (Bb, E))
    pooled = attention(q_pool, 0, kv, 0, E, p["mask_pool"],
                       p["pool_w_o"][...], pv[1:2, :E], Bb)           # (Bb, E)

    # affinity head: LN -> Linear -> GELU -> Linear -> GELU -> Linear
    hv = p["head_vec"][...]
    h = layernorm(pooled, hv[0:1, :E], hv[1:2, :E])
    h = gelu(mm(h, p["head_w1"][...]) + hv[2:3, :LD])
    h = gelu(mm(h, p["head_w2"][...]) + hv[3:4, :LD // 2])
    pred = jnp.sum(h * p["head_w3"][...], axis=-1, keepdims=True) + hv[4:5, :1]
    out_ref[0] = pred.astype(out_ref.dtype)


# ---------------------------------------------------------------------------
# Host-side packing: coalesced parameter slabs, folded scales, masks.
# ---------------------------------------------------------------------------
def _build_masks(Bb, S, H):
    """Additive (0 / -1e30) masks for head-major block-diagonal attention."""
    def mask(nb_q, sq, bq_map, nb_k, sk, bk_map):
        mq, mk = nb_q * sq, nb_k * sk
        rq, rk = np.arange(H * mq), np.arange(H * mk)
        hq, hk = rq // mq, rk // mk
        bq, bk = bq_map((rq % mq) // sq), bk_map((rk % mk) // sk)
        ok = (hq[:, None] == hk[None, :]) & (bq[:, None] == bk[None, :])
        return jnp.asarray(np.where(ok, 0.0, _NEG).astype(np.float32))

    ident = lambda b: b
    half = lambda b: b % Bb            # p1 batch b -> b ; p2 batch b -> Bb + b
    return dict(
        mask_self=mask(2 * Bb, S, ident, 2 * Bb, S, ident),
        mask_cross=mask(Bb, S, ident, Bb, S, ident),
        mask_final=mask(2 * Bb, S, half, 2 * Bb, S, half),
        mask_pool=mask(Bb, 1, ident, 2 * Bb, S, half),
    )


def _pack_inputs(params, p1e, p2e, cfg, Bb, nblk, denormalize):
    B, S, Din = p1e.shape
    E, H = cfg["embedding_dim"], cfg["num_heads"]
    FF, LD = cfg["feedforward_dim"], cfg["linear_dim"]
    Dh = E // H
    scale = 1.0 / math.sqrt(Dh)
    f32, bf16 = jnp.float32, jnp.bfloat16

    def pad_row(v, w):
        v = jnp.asarray(v, f32).reshape(-1)
        return jnp.pad(v, (0, w - v.shape[0]))

    # input slab: (nblk, 2*Bb*S, Din), half-major inside each batch block
    x = jnp.stack([p1e, p2e], axis=0).astype(f32)                   # (2,B,S,Din)
    x = x.reshape(2, nblk, Bb, S, Din).transpose(1, 0, 2, 3, 4)
    x = x.reshape(nblk, 2 * Bb * S, Din)

    # projection bias + positional embedding, pre-folded per block layout
    pos = params["pos_embedding"].reshape(2, E)
    pb = params["proj_b"].reshape(1, E)
    posb = jnp.concatenate(
        [jnp.broadcast_to(pb + pos[0:1], (Bb * S, E)),
         jnp.broadcast_to(pb + pos[1:2], (Bb * S, E))], axis=0).astype(f32)

    # encoder stacks (self + final share per-layer shapes -> one slab set)
    enc_layers = list(params["self_layers"]) + list(params["final_layers"])
    Wv = max(3 * E, FF, E)
    e_w_in, e_w_o, e_w1, e_w2, e_vec = [], [], [], [], []
    for lp in enc_layers:
        w_in = lp["attn"]["w_in"]
        w_in = jnp.concatenate([w_in[:, :E] * scale, w_in[:, E:]], axis=1)
        b_in = lp["attn"]["b_in"]
        b_in = jnp.concatenate([b_in[:E] * scale, b_in[E:]])
        e_w_in.append(w_in.astype(bf16))
        e_w_o.append(lp["attn"]["w_o"].astype(bf16))
        e_w1.append(lp["w1"].astype(bf16))
        e_w2.append(lp["w2"].astype(bf16))
        e_vec.append(jnp.stack([
            pad_row(lp["ln1_g"], Wv), pad_row(lp["ln1_b"], Wv),
            pad_row(lp["ln2_g"], Wv), pad_row(lp["ln2_b"], Wv),
            pad_row(b_in, Wv), pad_row(lp["attn"]["b_o"], Wv),
            pad_row(lp["b1"], Wv), pad_row(lp["b2"], Wv)]))

    # cross-attention modules, flattened (layer0-c1, layer0-c2, layer1-c1, ...)
    cr_mods = [m for pair in params["cross_layers"] for m in pair]
    Wc = 2 * E
    c_w_q, c_w_kv, c_w_o, c_vec = [], [], [], []
    for cp in cr_mods:
        w_in, b_in = cp["attn"]["w_in"], cp["attn"]["b_in"]
        c_w_q.append((w_in[:, :E] * scale).astype(bf16))
        c_w_kv.append(w_in[:, E:].astype(bf16))
        c_w_o.append(cp["attn"]["w_o"].astype(bf16))
        c_vec.append(jnp.stack([
            pad_row(cp["ln1_g"], Wc), pad_row(cp["ln1_b"], Wc),
            pad_row(cp["ln2_g"], Wc), pad_row(cp["ln2_b"], Wc),
            pad_row(b_in[:E] * scale, Wc), pad_row(b_in[E:], Wc),
            pad_row(cp["attn"]["b_o"], Wc)]))

    # attention pooling: precompute (scaled) query projection
    pw_in, pb_in = params["pool_attn"]["w_in"], params["pool_attn"]["b_in"]
    pq = params["pool_query"].reshape(1, E).astype(f32)
    pool_q = ((pq @ pw_in[:, :E] + pb_in[:E].reshape(1, E)) * scale).astype(f32)
    pool_vec = jnp.stack([pad_row(pb_in[E:], 2 * E),
                          pad_row(params["pool_attn"]["b_o"], 2 * E)])

    # affinity head (denormalize affine folded into the last layer)
    Wh = max(E, LD)
    w3 = params["head_w3"].reshape(1, LD // 2).astype(f32)
    b3 = params["head_b3"].astype(f32)
    if denormalize:
        w3 = w3 * SCALE
        b3 = b3 * SCALE + MEAN
    head_vec = jnp.stack([
        pad_row(params["head_ln_g"], Wh), pad_row(params["head_ln_b"], Wh),
        pad_row(params["head_b1"], Wh), pad_row(params["head_b2"], Wh),
        pad_row(b3, Wh)])

    return dict(
        x=x, posb=posb, proj_w=params["proj_w"].astype(bf16),
        enc_w_in=jnp.stack(e_w_in), enc_w_o=jnp.stack(e_w_o),
        enc_w1=jnp.stack(e_w1), enc_w2=jnp.stack(e_w2), enc_vec=jnp.stack(e_vec),
        cr_w_q=jnp.stack(c_w_q), cr_w_kv=jnp.stack(c_w_kv),
        cr_w_o=jnp.stack(c_w_o), cr_vec=jnp.stack(c_vec),
        pool_q=pool_q, pool_w_kv=pw_in[:, E:].astype(bf16),
        pool_w_o=params["pool_attn"]["w_o"].astype(bf16), pool_vec=pool_vec,
        head_w1=params["head_w1"].astype(bf16),
        head_w2=params["head_w2"].astype(bf16),
        head_w3=w3, head_vec=head_vec,
        **_build_masks(Bb, S, H),
    )


def forward(params, protein1_embedding, protein2_embedding, cfg,
            denormalize=False, num_batch_blocks=1):
    """num_batch_blocks > 1 shards independent batch elements across a
    "parallel" grid (useful on v7x's 2 TensorCores); keep 1 on v5e/v6e."""
    B, S, Din = protein1_embedding.shape
    E, H = cfg["embedding_dim"], cfg["num_heads"]
    FF, LD = cfg["feedforward_dim"], cfg["linear_dim"]
    assert B % num_batch_blocks == 0
    nblk = num_batch_blocks
    Bb = B // nblk

    kin = _pack_inputs(params, protein1_embedding, protein2_embedding, cfg,
                       Bb, nblk, denormalize)
    names = tuple(sorted(kin.keys()))
    flat = [kin[n] for n in names]

    def _const_spec(a):
        return pl.BlockSpec(a.shape, lambda i, _nd=a.ndim: (0,) * _nd)

    specs = {n: _const_spec(kin[n]) for n in names}
    specs["x"] = pl.BlockSpec((1, 2 * Bb * S, Din), lambda i: (i, 0, 0))
    in_specs = [specs[n] for n in names]

    kernel = functools.partial(
        _affinity_kernel, names=names, Bb=Bb, S=S, E=E, H=H, FF=FF, LD=LD,
        n_self=len(params["self_layers"]),
        n_cross=len(params["cross_layers"]),
        n_final=len(params["final_layers"]))

    out = pl.pallas_call(
        kernel,
        out_shape=jax.ShapeDtypeStruct((nblk, Bb, 1), jnp.float32),
        grid=(nblk,),
        in_specs=in_specs,
        out_specs=pl.BlockSpec((1, Bb, 1), lambda i: (i, 0, 0)),
        compiler_params=pltpu.CompilerParams(
            dimension_semantics=("parallel",)),
    )(*flat)
    return out.reshape(B, 1)


# ---------------------------------------------------------------------------
# Deterministic parameter initialization (shapes per the module's __init__,
# stored as (in, out) with QKV fused into (E, 3E) in_proj).
# ---------------------------------------------------------------------------
def _nrm(key, shape, scale=0.02):
    return (jax.random.normal(key, shape, jnp.float32) * scale).astype(jnp.float32)


def make_mha_params(key, E):
    ks = jax.random.split(key, 4)
    return {"w_in": _nrm(ks[0], (E, 3 * E)), "b_in": _nrm(ks[1], (3 * E,)),
            "w_o": _nrm(ks[2], (E, E)), "b_o": _nrm(ks[3], (E,))}


def make_encoder_layer_params(key, E, FF):
    ks = jax.random.split(key, 5)
    return {"ln1_g": jnp.ones((E,), jnp.float32), "ln1_b": jnp.zeros((E,), jnp.float32),
            "ln2_g": jnp.ones((E,), jnp.float32), "ln2_b": jnp.zeros((E,), jnp.float32),
            "attn": make_mha_params(ks[0], E),
            "w1": _nrm(ks[1], (E, FF)), "b1": _nrm(ks[2], (FF,)),
            "w2": _nrm(ks[3], (FF, E)), "b2": _nrm(ks[4], (E,))}


def make_cross_attention_params(key, E):
    return {"ln1_g": jnp.ones((E,), jnp.float32), "ln1_b": jnp.zeros((E,), jnp.float32),
            "ln2_g": jnp.ones((E,), jnp.float32), "ln2_b": jnp.zeros((E,), jnp.float32),
            "attn": make_mha_params(key, E)}


def make_params(key, cfg):
    Din, E = cfg["input_dim"], cfg["embedding_dim"]
    L, FF = cfg["linear_dim"], cfg["feedforward_dim"]
    ks = iter(jax.random.split(key, 64))
    return {
        "proj_w": _nrm(next(ks), (Din, E)),
        "proj_b": _nrm(next(ks), (E,)),
        "pos_embedding": jax.random.normal(next(ks), (1, 2, E), jnp.float32),
        "pool_query": jax.random.normal(next(ks), (1, 1, E), jnp.float32),
        "self_layers": [make_encoder_layer_params(next(ks), E, FF)
                        for _ in range(cfg["self_attention_layers"])],
        "cross_layers": [(make_cross_attention_params(next(ks), E),
                          make_cross_attention_params(next(ks), E))
                         for _ in range(cfg["cross_attention_layers"])],
        "final_layers": [make_encoder_layer_params(next(ks), E, FF)
                         for _ in range(cfg["num_attention_layers"])],
        "pool_attn": make_mha_params(next(ks), E),
        "head_ln_g": jnp.ones((E,), jnp.float32),
        "head_ln_b": jnp.zeros((E,), jnp.float32),
        "head_w1": _nrm(next(ks), (E, L)), "head_b1": _nrm(next(ks), (L,)),
        "head_w2": _nrm(next(ks), (L, L // 2)), "head_b2": _nrm(next(ks), (L // 2,)),
        "head_w3": _nrm(next(ks), (L // 2, 1)), "head_b3": _nrm(next(ks), (1,)),
    }


# ---------------------------------------------------------------------------
if __name__ == "__main__":
    cfg = dict(
        input_dim=64,
        embedding_dim=64,
        linear_dim=32,
        num_attention_layers=2,
        num_heads=4,
        cross_attention_layers=2,
        self_attention_layers=2,
        feedforward_dim=128,
    )
    B, S = 2, 8

    key = jax.random.PRNGKey(0)
    kp, k1, k2 = jax.random.split(key, 3)
    params = make_params(kp, cfg)

    protein1 = jax.random.normal(k1, (B, S, cfg["input_dim"]), jnp.float32)
    protein2 = jax.random.normal(k2, (B, S, cfg["input_dim"]), jnp.float32)

    fwd = jax.jit(lambda pr, a, b: forward(pr, a, b, cfg, denormalize=False))
    out = jax.block_until_ready(fwd(params, protein1, protein2))

    assert out.shape == (B, 1), out.shape
    assert bool(jnp.all(jnp.isfinite(out)))
    print("KERNEL_OK")
</pallas_src>

<mosaic_0001>
module attributes {stable_mosaic.version = 11 : i64} {
  func.func @_affinity_kernel(%arg0: i32, %arg1: memref<4x7x128xf32, #tpu.memory_space<vmem>>, %arg2: memref<4x64x128xbf16, #tpu.memory_space<vmem>>, %arg3: memref<4x64x64xbf16, #tpu.memory_space<vmem>>, %arg4: memref<4x64x64xbf16, #tpu.memory_space<vmem>>, %arg5: memref<4x8x192xf32, #tpu.memory_space<vmem>>, %arg6: memref<4x64x128xbf16, #tpu.memory_space<vmem>>, %arg7: memref<4x128x64xbf16, #tpu.memory_space<vmem>>, %arg8: memref<4x64x192xbf16, #tpu.memory_space<vmem>>, %arg9: memref<4x64x64xbf16, #tpu.memory_space<vmem>>, %arg10: memref<5x64xf32, #tpu.memory_space<vmem>>, %arg11: memref<64x32xbf16, #tpu.memory_space<vmem>>, %arg12: memref<32x16xbf16, #tpu.memory_space<vmem>>, %arg13: memref<1x16xf32, #tpu.memory_space<vmem>>, %arg14: memref<64x64xf32, #tpu.memory_space<vmem>>, %arg15: memref<128x128xf32, #tpu.memory_space<vmem>>, %arg16: memref<8x128xf32, #tpu.memory_space<vmem>>, %arg17: memref<128x128xf32, #tpu.memory_space<vmem>>, %arg18: memref<1x64xf32, #tpu.memory_space<vmem>>, %arg19: memref<2x128xf32, #tpu.memory_space<vmem>>, %arg20: memref<64x128xbf16, #tpu.memory_space<vmem>>, %arg21: memref<64x64xbf16, #tpu.memory_space<vmem>>, %arg22: memref<32x64xf32, #tpu.memory_space<vmem>>, %arg23: memref<64x64xbf16, #tpu.memory_space<vmem>>, %arg24: memref<1x32x64xf32, #tpu.memory_space<vmem>>, %arg25: memref<1x2x1xf32, #tpu.memory_space<vmem>>) attributes {dimension_semantics = [#tpu.dimension_semantics<parallel>], iteration_bounds = array<i64: 1>, scalar_prefetch = 0 : i64, scratch_operands = 0 : i64, tpu.core_type = #tpu.core_type<tc>, window_params = [{pipeline_mode = #tpu.pipeline_mode<synchronous>, transform_indices = @transform_0, window_bounds = array<i64: 4, 7, 128>}, {pipeline_mode = #tpu.pipeline_mode<synchronous>, transform_indices = @transform_1, window_bounds = array<i64: 4, 64, 128>}, {pipeline_mode = #tpu.pipeline_mode<synchronous>, transform_indices = @transform_2, window_bounds = array<i64: 4, 64, 64>}, {pipeline_mode = #tpu.pipeline_mode<synchronous>, transform_indices = @transform_3, window_bounds = array<i64: 4, 64, 64>}, {pipeline_mode = #tpu.pipeline_mode<synchronous>, transform_indices = @transform_4, window_bounds = array<i64: 4, 8, 192>}, {pipeline_mode = #tpu.pipeline_mode<synchronous>, transform_indices = @transform_5, window_bounds = array<i64: 4, 64, 128>}, {pipeline_mode = #tpu.pipeline_mode<synchronous>, transform_indices = @transform_6, window_bounds = array<i64: 4, 128, 64>}, {pipeline_mode = #tpu.pipeline_mode<synchronous>, transform_indices = @transform_7, window_bounds = array<i64: 4, 64, 192>}, {pipeline_mode = #tpu.pipeline_mode<synchronous>, transform_indices = @transform_8, window_bounds = array<i64: 4, 64, 64>}, {pipeline_mode = #tpu.pipeline_mode<synchronous>, transform_indices = @transform_9, window_bounds = array<i64: 5, 64>}, {pipeline_mode = #tpu.pipeline_mode<synchronous>, transform_indices = @transform_10, window_bounds = array<i64: 64, 32>}, {pipeline_mode = #tpu.pipeline_mode<synchronous>, transform_indices = @transform_11, window_bounds = array<i64: 32, 16>}, {pipeline_mode = #tpu.pipeline_mode<synchronous>, transform_indices = @transform_12, window_bounds = array<i64: 1, 16>}, {pipeline_mode = #tpu.pipeline_mode<synchronous>, transform_indices = @transform_13, window_bounds = array<i64: 64, 64>}, {pipeline_mode = #tpu.pipeline_mode<synchronous>, transform_indices = @transform_14, window_bounds = array<i64: 128, 128>}, {pipeline_mode = #tpu.pipeline_mode<synchronous>, transform_indices = @transform_15, window_bounds = array<i64: 8, 128>}, {pipeline_mode = #tpu.pipeline_mode<synchronous>, transform_indices = @transform_16, window_bounds = array<i64: 128, 128>}, {pipeline_mode = #tpu.pipeline_mode<synchronous>, transform_indices = @transform_17, window_bounds = array<i64: 1, 64>}, {pipeline_mode = #tpu.pipeline_mode<synchronous>, transform_indices = @transform_18, window_bounds = array<i64: 2, 128>}, {pipeline_mode = #tpu.pipeline_mode<synchronous>, transform_indices = @transform_19, window_bounds = array<i64: 64, 128>}, {pipeline_mode = #tpu.pipeline_mode<synchronous>, transform_indices = @transform_20, window_bounds = array<i64: 64, 64>}, {pipeline_mode = #tpu.pipeline_mode<synchronous>, transform_indices = @transform_21, window_bounds = array<i64: 32, 64>}, {pipeline_mode = #tpu.pipeline_mode<synchronous>, transform_indices = @transform_22, window_bounds = array<i64: 64, 64>}, {transform_indices = @transform_23, window_bounds = array<i64: 1, 32, 64>}, {transform_indices = @transform_24, window_bounds = array<i64: 1, 2, 1>}]} {
    %c0 = arith.constant 0 : index
    %c0_0 = arith.constant 0 : index
    %c0_1 = arith.constant 0 : index
    %0 = vector.load %arg24[%c0, %c0_0, %c0_1] : memref<1x32x64xf32, #tpu.memory_space<vmem>>, vector<1x32x64xf32>
    %1 = vector.shape_cast %0 : vector<1x32x64xf32> to vector<32x64xf32>
    %c0_2 = arith.constant 0 : index
    %c0_3 = arith.constant 0 : index
    %2 = vector.load %arg23[%c0_2, %c0_3] : memref<64x64xbf16, #tpu.memory_space<vmem>>, vector<64x64xbf16>
    %3 = arith.truncf %1 : vector<32x64xf32> to vector<32x64xbf16>
    %cst = arith.constant dense<0.000000e+00> : vector<32x64xf32>
    %4 = tpu.matmul %3, %2, %cst {dimension_numbers = #tpu.dot_dimension_numbers<[1], [0], [0], [1], [0, 0, 1, 1], [], []>} : vector<32x64xbf16>, vector<64x64xbf16>, vector<32x64xf32> -> vector<32x64xf32>
    %c0_4 = arith.constant 0 : index
    %c0_5 = arith.constant 0 : index
    %5 = vector.load %arg22[%c0_4, %c0_5] : memref<32x64xf32, #tpu.memory_space<vmem>>, vector<32x64xf32>
    %6 = arith.addf %4, %5 : vector<32x64xf32>
    %c0_6 = arith.constant 0 : index
    %c0_7 = arith.constant 0 : index
    %c0_8 = arith.constant 0 : index
    %7 = vector.load %arg5[%c0_6, %c0_7, %c0_8] : memref<4x8x192xf32, #tpu.memory_space<vmem>>, vector<1x8x192xf32>
    %8 = vector.shape_cast %7 : vector<1x8x192xf32> to vector<8x192xf32>
    %9 = vector.extract_strided_slice %8 {offsets = [0, 0], sizes = [1, 64], strides = [1, 1]} : vector<8x192xf32> to vector<1x64xf32>
    %10 = vector.extract_strided_slice %8 {offsets = [1, 0], sizes = [1, 64], strides = [1, 1]} : vector<8x192xf32> to vector<1x64xf32>
    %cst_9 = arith.constant dense<0.000000e+00> : vector<32xf32>
    %11 = vector.multi_reduction <add>, %6, %cst_9 [1] : vector<32x64xf32> to vector<32xf32>
    %12 = vector.shape_cast %11 : vector<32xf32> to vector<32x1xf32>
    %cst_10 = arith.constant 6.400000e+01 : f32
    %13 = vector.broadcast %cst_10 : f32 to vector<32x1xf32>
    %14 = arith.divf %12, %13 : vector<32x1xf32>
    %15 = vector.broadcast %14 : vector<32x1xf32> to vector<32x64xf32>
    %16 = arith.subf %6, %15 : vector<32x64xf32>
    %17 = arith.mulf %16, %16 : vector<32x64xf32>
    %cst_11 = arith.constant dense<0.000000e+00> : vector<32xf32>
    %18 = vector.multi_reduction <add>, %17, %cst_11 [1] : vector<32x64xf32> to vector<32xf32>
    %19 = vector.shape_cast %18 : vector<32xf32> to vector<32x1xf32>
    %cst_12 = arith.constant 6.400000e+01 : f32
    %20 = vector.broadcast %cst_12 : f32 to vector<32x1xf32>
    %21 = arith.divf %19, %20 : vector<32x1xf32>
    %cst_13 = arith.constant 9.99999974E-6 : f32
    %22 = vector.broadcast %cst_13 : f32 to vector<32x1xf32>
    %23 = arith.addf %21, %22 : vector<32x1xf32>
    %24 = math.rsqrt %23 : vector<32x1xf32>
    %25 = vector.broadcast %24 : vector<32x1xf32> to vector<32x64xf32>
    %26 = arith.mulf %16, %25 : vector<32x64xf32>
    %27 = vector.broadcast %9 : vector<1x64xf32> to vector<32x64xf32>
    %28 = arith.mulf %26, %27 : vector<32x64xf32>
    %29 = vector.broadcast %10 : vector<1x64xf32> to vector<32x64xf32>
    %30 = arith.addf %28, %29 : vector<32x64xf32>
    %c0_14 = arith.constant 0 : index
    %c0_15 = arith.constant 0 : index
    %c0_16 = arith.constant 0 : index
    %31 = vector.load %arg8[%c0_14, %c0_15, %c0_16] : memref<4x64x192xbf16, #tpu.memory_space<vmem>>, vector<1x64x192xbf16>
    %32 = vector.shape_cast %31 : vector<1x64x192xbf16> to vector<64x192xbf16>
    %33 = arith.truncf %30 : vector<32x64xf32> to vector<32x64xbf16>
    %cst_17 = arith.constant dense<0.000000e+00> : vector<32x192xf32>
    %34 = tpu.matmul %33, %32, %cst_17 {dimension_numbers = #tpu.dot_dimension_numbers<[1], [0], [0], [1], [0, 0, 1, 1], [], []>} : vector<32x64xbf16>, vector<64x192xbf16>, vector<32x192xf32> -> vector<32x192xf32>
    %35 = vector.extract_strided_slice %8 {offsets = [4, 0], sizes = [1, 192], strides = [1, 1]} : vector<8x192xf32> to vector<1x192xf32>
    %36 = vector.broadcast %35 : vector<1x192xf32> to vector<32x192xf32>
    %37 = arith.addf %34, %36 : vector<32x192xf32>
    %c0_18 = arith.constant 0 : index
    %c0_19 = arith.constant 0 : index
    %c0_20 = arith.constant 0 : index
    %38 = vector.load %arg9[%c0_18, %c0_19, %c0_20] : memref<4x64x64xbf16, #tpu.memory_space<vmem>>, vector<1x64x64xbf16>
    %39 = vector.shape_cast %38 : vector<1x64x64xbf16> to vector<64x64xbf16>
    %40 = vector.extract_strided_slice %8 {offsets = [5, 0], sizes = [1, 64], strides = [1, 1]} : vector<8x192xf32> to vector<1x64xf32>
    %41 = vector.extract_strided_slice %37 {offsets = [0, 0], sizes = [32, 16], strides = [1, 1]} : vector<32x192xf32> to vector<32x16xf32>
    %42 = vector.extract_strided_slice %37 {offsets = [0, 16], sizes = [32, 16], strides = [1, 1]} : vector<32x192xf32> to vector<32x16xf32>
    %43 = vector.extract_strided_slice %37 {offsets = [0, 32], sizes = [32, 16], strides = [1, 1]} : vector<32x192xf32> to vector<32x16xf32>
    %44 = vector.extract_strided_slice %37 {offsets = [0, 48], sizes = [32, 16], strides = [1, 1]} : vector<32x192xf32> to vector<32x16xf32>
    %45 = tpu.concatenate %41, %42, %43, %44 in 0 : vector<32x16xf32>, vector<32x16xf32>, vector<32x16xf32>, vector<32x16xf32> -> vector<128x16xf32>
    %46 = arith.truncf %45 : vector<128x16xf32> to vector<128x16xbf16>
    %47 = vector.extract_strided_slice %37 {offsets = [0, 64], sizes = [32, 16], strides = [1, 1]} : vector<32x192xf32> to vector<32x16xf32>
    %48 = vector.extract_strided_slice %37 {offsets = [0, 80], sizes = [32, 16], strides = [1, 1]} : vector<32x192xf32> to vector<32x16xf32>
    %49 = vector.extract_strided_slice %37 {offsets = [0, 96], sizes = [32, 16], strides = [1, 1]} : vector<32x192xf32> to vector<32x16xf32>
    %50 = vector.extract_strided_slice %37 {offsets = [0, 112], sizes = [32, 16], strides = [1, 1]} : vector<32x192xf32> to vector<32x16xf32>
    %51 = tpu.concatenate %47, %48, %49, %50 in 0 : vector<32x16xf32>, vector<32x16xf32>, vector<32x16xf32>, vector<32x16xf32> -> vector<128x16xf32>
    %52 = arith.truncf %51 : vector<128x16xf32> to vector<128x16xbf16>
    %53 = vector.extract_strided_slice %37 {offsets = [0, 128], sizes = [32, 16], strides = [1, 1]} : vector<32x192xf32> to vector<32x16xf32>
    %54 = vector.extract_strided_slice %37 {offsets = [0, 144], sizes = [32, 16], strides = [1, 1]} : vector<32x192xf32> to vector<32x16xf32>
    %55 = vector.extract_strided_slice %37 {offsets = [0, 160], sizes = [32, 16], strides = [1, 1]} : vector<32x192xf32> to vector<32x16xf32>
    %56 = vector.extract_strided_slice %37 {offsets = [0, 176], sizes = [32, 16], strides = [1, 1]} : vector<32x192xf32> to vector<32x16xf32>
    %57 = tpu.concatenate %53, %54, %55, %56 in 0 : vector<32x16xf32>, vector<32x16xf32>, vector<32x16xf32>, vector<32x16xf32> -> vector<128x16xf32>
    %58 = arith.truncf %57 : vector<128x16xf32> to vector<128x16xbf16>
    %cst_21 = arith.constant dense<0.000000e+00> : vector<128x128xf32>
    %59 = tpu.matmul %46, %52, %cst_21 {dimension_numbers = #tpu.dot_dimension_numbers<[1], [1], [0], [0], [0, 0, 1, 0], [], []>} : vector<128x16xbf16>, vector<128x16xbf16>, vector<128x128xf32> -> vector<128x128xf32>
    %c0_22 = arith.constant 0 : index
    %c0_23 = arith.constant 0 : index
    %60 = vector.load %arg17[%c0_22, %c0_23] : memref<128x128xf32, #tpu.memory_space<vmem>>, vector<128x128xf32>
    %61 = arith.addf %59, %60 : vector<128x128xf32>
    %cst_24 = arith.constant dense<0xFF800000> : vector<128xf32>
    %62 = vector.multi_reduction <maximumf>, %61, %cst_24 [1] : vector<128x128xf32> to vector<128xf32>
    %63 = vector.shape_cast %62 : vector<128xf32> to vector<128x1xf32>
    %64 = vector.broadcast %63 : vector<128x1xf32> to vector<128x128xf32>
    %65 = arith.subf %61, %64 : vector<128x128xf32>
    %66 = math.exp %65 : vector<128x128xf32>
    %cst_25 = arith.constant dense<0.000000e+00> : vector<128xf32>
    %67 = vector.multi_reduction <add>, %66, %cst_25 [1] : vector<128x128xf32> to vector<128xf32>
    %68 = vector.shape_cast %67 : vector<128xf32> to vector<128x1xf32>
    %69 = tpu.reciprocal %68 {approx = true} : vector<128x1xf32> -> vector<128x1xf32>
    %70 = vector.broadcast %69 : vector<128x1xf32> to vector<128x128xf32>
    %71 = arith.mulf %66, %70 : vector<128x128xf32>
    %72 = arith.truncf %71 : vector<128x128xf32> to vector<128x128xbf16>
    %cst_26 = arith.constant dense<0.000000e+00> : vector<128x16xf32>
    %73 = tpu.matmul %72, %58, %cst_26 {dimension_numbers = #tpu.dot_dimension_numbers<[1], [0], [0], [1], [0, 0, 1, 1], [], []>} : vector<128x128xbf16>, vector<128x16xbf16>, vector<128x16xf32> -> vector<128x16xf32>
    %74 = vector.extract_strided_slice %73 {offsets = [0, 0], sizes = [32, 16], strides = [1, 1]} : vector<128x16xf32> to vector<32x16xf32>
    %75 = vector.extract_strided_slice %73 {offsets = [32, 0], sizes = [32, 16], strides = [1, 1]} : vector<128x16xf32> to vector<32x16xf32>
    %76 = vector.extract_strided_slice %73 {offsets = [64, 0], sizes = [32, 16], strides = [1, 1]} : vector<128x16xf32> to vector<32x16xf32>
    %77 = vector.extract_strided_slice %73 {offsets = [96, 0], sizes = [32, 16], strides = [1, 1]} : vector<128x16xf32> to vector<32x16xf32>
    %78 = tpu.concatenate %74, %75, %76, %77 in 1 : vector<32x16xf32>, vector<32x16xf32>, vector<32x16xf32>, vector<32x16xf32> -> vector<32x64xf32>
    %79 = arith.truncf %78 : vector<32x64xf32> to vector<32x64xbf16>
    %cst_27 = arith.constant dense<0.000000e+00> : vector<32x64xf32>
    %80 = tpu.matmul %79, %39, %cst_27 {dimension_numbers = #tpu.dot_dimension_numbers<[1], [0], [0], [1], [0, 0, 1, 1], [], []>} : vector<32x64xbf16>, vector<64x64xbf16>, vector<32x64xf32> -> vector<32x64xf32>
    %81 = vector.broadcast %40 : vector<1x64xf32> to vector<32x64xf32>
    %82 = arith.addf %80, %81 : vector<32x64xf32>
    %83 = arith.addf %6, %82 : vector<32x64xf32>
    %84 = vector.extract_strided_slice %8 {offsets = [2, 0], sizes = [1, 64], strides = [1, 1]} : vector<8x192xf32> to vector<1x64xf32>
    %85 = vector.extract_strided_slice %8 {offsets = [3, 0], sizes = [1, 64], strides = [1, 1]} : vector<8x192xf32> to vector<1x64xf32>
    %cst_28 = arith.constant dense<0.000000e+00> : vector<32xf32>
    %86 = vector.multi_reduction <add>, %83, %cst_28 [1] : vector<32x64xf32> to vector<32xf32>
    %87 = vector.shape_cast %86 : vector<32xf32> to vector<32x1xf32>
    %cst_29 = arith.constant 6.400000e+01 : f32
    %88 = vector.broadcast %cst_29 : f32 to vector<32x1xf32>
    %89 = arith.divf %87, %88 : vector<32x1xf32>
    %90 = vector.broadcast %89 : vector<32x1xf32> to vector<32x64xf32>
    %91 = arith.subf %83, %90 : vector<32x64xf32>
    %92 = arith.mulf %91, %91 : vector<32x64xf32>
    %cst_30 = arith.constant dense<0.000000e+00> : vector<32xf32>
    %93 = vector.multi_reduction <add>, %92, %cst_30 [1] : vector<32x64xf32> to vector<32xf32>
    %94 = vector.shape_cast %93 : vector<32xf32> to vector<32x1xf32>
    %cst_31 = arith.constant 6.400000e+01 : f32
    %95 = vector.broadcast %cst_31 : f32 to vector<32x1xf32>
    %96 = arith.divf %94, %95 : vector<32x1xf32>
    %cst_32 = arith.constant 9.99999974E-6 : f32
    %97 = vector.broadcast %cst_32 : f32 to vector<32x1xf32>
    %98 = arith.addf %96, %97 : vector<32x1xf32>
    %99 = math.rsqrt %98 : vector<32x1xf32>
    %100 = vector.broadcast %99 : vector<32x1xf32> to vector<32x64xf32>
    %101 = arith.mulf %91, %100 : vector<32x64xf32>
    %102 = vector.broadcast %84 : vector<1x64xf32> to vector<32x64xf32>
    %103 = arith.mulf %101, %102 : vector<32x64xf32>
    %104 = vector.broadcast %85 : vector<1x64xf32> to vector<32x64xf32>
    %105 = arith.addf %103, %104 : vector<32x64xf32>
    %c0_33 = arith.constant 0 : index
    %c0_34 = arith.constant 0 : index
    %c0_35 = arith.constant 0 : index
    %106 = vector.load %arg6[%c0_33, %c0_34, %c0_35] : memref<4x64x128xbf16, #tpu.memory_space<vmem>>, vector<1x64x128xbf16>
    %107 = vector.shape_cast %106 : vector<1x64x128xbf16> to vector<64x128xbf16>
    %108 = arith.truncf %105 : vector<32x64xf32> to vector<32x64xbf16>
    %cst_36 = arith.constant dense<0.000000e+00> : vector<32x128xf32>
    %109 = tpu.matmul %108, %107, %cst_36 {dimension_numbers = #tpu.dot_dimension_numbers<[1], [0], [0], [1], [0, 0, 1, 1], [], []>} : vector<32x64xbf16>, vector<64x128xbf16>, vector<32x128xf32> -> vector<32x128xf32>
    %110 = vector.extract_strided_slice %8 {offsets = [6, 0], sizes = [1, 128], strides = [1, 1]} : vector<8x192xf32> to vector<1x128xf32>
    %111 = vector.broadcast %110 : vector<1x128xf32> to vector<32x128xf32>
    %112 = arith.addf %109, %111 : vector<32x128xf32>
    %cst_37 = arith.constant 0.000000e+00 : f32
    %113 = vector.broadcast %cst_37 : f32 to vector<32x128xf32>
    %114 = arith.maximumf %112, %113 : vector<32x128xf32>
    %c0_38 = arith.constant 0 : index
    %c0_39 = arith.constant 0 : index
    %c0_40 = arith.constant 0 : index
    %115 = vector.load %arg7[%c0_38, %c0_39, %c0_40] : memref<4x128x64xbf16, #tpu.memory_space<vmem>>, vector<1x128x64xbf16>
    %116 = vector.shape_cast %115 : vector<1x128x64xbf16> to vector<128x64xbf16>
    %117 = arith.truncf %114 : vector<32x128xf32> to vector<32x128xbf16>
    %cst_41 = arith.constant dense<0.000000e+00> : vector<32x64xf32>
    %118 = tpu.matmul %117, %116, %cst_41 {dimension_numbers = #tpu.dot_dimension_numbers<[1], [0], [0], [1], [0, 0, 1, 1], [], []>} : vector<32x128xbf16>, vector<128x64xbf16>, vector<32x64xf32> -> vector<32x64xf32>
    %119 = arith.addf %83, %118 : vector<32x64xf32>
    %120 = vector.extract_strided_slice %8 {offsets = [7, 0], sizes = [1, 64], strides = [1, 1]} : vector<8x192xf32> to vector<1x64xf32>
    %121 = vector.broadcast %120 : vector<1x64xf32> to vector<32x64xf32>
    %122 = arith.addf %119, %121 : vector<32x64xf32>
    %c1 = arith.constant 1 : index
    %c0_42 = arith.constant 0 : index
    %c0_43 = arith.constant 0 : index
    %123 = vector.load %arg5[%c1, %c0_42, %c0_43] : memref<4x8x192xf32, #tpu.memory_space<vmem>>, vector<1x8x192xf32>
    %124 = vector.shape_cast %123 : vector<1x8x192xf32> to vector<8x192xf32>
    %125 = vector.extract_strided_slice %124 {offsets = [0, 0], sizes = [1, 64], strides = [1, 1]} : vector<8x192xf32> to vector<1x64xf32>
    %126 = vector.extract_strided_slice %124 {offsets = [1, 0], sizes = [1, 64], strides = [1, 1]} : vector<8x192xf32> to vector<1x64xf32>
    %cst_44 = arith.constant dense<0.000000e+00> : vector<32xf32>
    %127 = vector.multi_reduction <add>, %122, %cst_44 [1] : vector<32x64xf32> to vector<32xf32>
    %128 = vector.shape_cast %127 : vector<32xf32> to vector<32x1xf32>
    %cst_45 = arith.constant 6.400000e+01 : f32
    %129 = vector.broadcast %cst_45 : f32 to vector<32x1xf32>
    %130 = arith.divf %128, %129 : vector<32x1xf32>
    %131 = vector.broadcast %130 : vector<32x1xf32> to vector<32x64xf32>
    %132 = arith.subf %122, %131 : vector<32x64xf32>
    %133 = arith.mulf %132, %132 : vector<32x64xf32>
    %cst_46 = arith.constant dense<0.000000e+00> : vector<32xf32>
    %134 = vector.multi_reduction <add>, %133, %cst_46 [1] : vector<32x64xf32> to vector<32xf32>
    %135 = vector.shape_cast %134 : vector<32xf32> to vector<32x1xf32>
    %cst_47 = arith.constant 6.400000e+01 : f32
    %136 = vector.broadcast %cst_47 : f32 to vector<32x1xf32>
    %137 = arith.divf %135, %136 : vector<32x1xf32>
    %cst_48 = arith.constant 9.99999974E-6 : f32
    %138 = vector.broadcast %cst_48 : f32 to vector<32x1xf32>
    %139 = arith.addf %137, %138 : vector<32x1xf32>
    %140 = math.rsqrt %139 : vector<32x1xf32>
    %141 = vector.broadcast %140 : vector<32x1xf32> to vector<32x64xf32>
    %142 = arith.mulf %132, %141 : vector<32x64xf32>
    %143 = vector.broadcast %125 : vector<1x64xf32> to vector<32x64xf32>
    %144 = arith.mulf %142, %143 : vector<32x64xf32>
    %145 = vector.broadcast %126 : vector<1x64xf32> to vector<32x64xf32>
    %146 = arith.addf %144, %145 : vector<32x64xf32>
    %c1_49 = arith.constant 1 : index
    %c0_50 = arith.constant 0 : index
    %c0_51 = arith.constant 0 : index
    %147 = vector.load %arg8[%c1_49, %c0_50, %c0_51] : memref<4x64x192xbf16, #tpu.memory_space<vmem>>, vector<1x64x192xbf16>
    %148 = vector.shape_cast %147 : vector<1x64x192xbf16> to vector<64x192xbf16>
    %149 = arith.truncf %146 : vector<32x64xf32> to vector<32x64xbf16>
    %cst_52 = arith.constant dense<0.000000e+00> : vector<32x192xf32>
    %150 = tpu.matmul %149, %148, %cst_52 {dimension_numbers = #tpu.dot_dimension_numbers<[1], [0], [0], [1], [0, 0, 1, 1], [], []>} : vector<32x64xbf16>, vector<64x192xbf16>, vector<32x192xf32> -> vector<32x192xf32>
    %151 = vector.extract_strided_slice %124 {offsets = [4, 0], sizes = [1, 192], strides = [1, 1]} : vector<8x192xf32> to vector<1x192xf32>
    %152 = vector.broadcast %151 : vector<1x192xf32> to vector<32x192xf32>
    %153 = arith.addf %150, %152 : vector<32x192xf32>
    %c1_53 = arith.constant 1 : index
    %c0_54 = arith.constant 0 : index
    %c0_55 = arith.constant 0 : index
    %154 = vector.load %arg9[%c1_53, %c0_54, %c0_55] : memref<4x64x64xbf16, #tpu.memory_space<vmem>>, vector<1x64x64xbf16>
    %155 = vector.shape_cast %154 : vector<1x64x64xbf16> to vector<64x64xbf16>
    %156 = vector.extract_strided_slice %124 {offsets = [5, 0], sizes = [1, 64], strides = [1, 1]} : vector<8x192xf32> to vector<1x64xf32>
    %157 = vector.extract_strided_slice %153 {offsets = [0, 0], sizes = [32, 16], strides = [1, 1]} : vector<32x192xf32> to vector<32x16xf32>
    %158 = vector.extract_strided_slice %153 {offsets = [0, 16], sizes = [32, 16], strides = [1, 1]} : vector<32x192xf32> to vector<32x16xf32>
    %159 = vector.extract_strided_slice %153 {offsets = [0, 32], sizes = [32, 16], strides = [1, 1]} : vector<32x192xf32> to vector<32x16xf32>
    %160 = vector.extract_strided_slice %153 {offsets = [0, 48], sizes = [32, 16], strides = [1, 1]} : vector<32x192xf32> to vector<32x16xf32>
    %161 = tpu.concatenate %157, %158, %159, %160 in 0 : vector<32x16xf32>, vector<32x16xf32>, vector<32x16xf32>, vector<32x16xf32> -> vector<128x16xf32>
    %162 = arith.truncf %161 : vector<128x16xf32> to vector<128x16xbf16>
    %163 = vector.extract_strided_slice %153 {offsets = [0, 64], sizes = [32, 16], strides = [1, 1]} : vector<32x192xf32> to vector<32x16xf32>
    %164 = vector.extract_strided_slice %153 {offsets = [0, 80], sizes = [32, 16], strides = [1, 1]} : vector<32x192xf32> to vector<32x16xf32>
    %165 = vector.extract_strided_slice %153 {offsets = [0, 96], sizes = [32, 16], strides = [1, 1]} : vector<32x192xf32> to vector<32x16xf32>
    %166 = vector.extract_strided_slice %153 {offsets = [0, 112], sizes = [32, 16], strides = [1, 1]} : vector<32x192xf32> to vector<32x16xf32>
    %167 = tpu.concatenate %163, %164, %165, %166 in 0 : vector<32x16xf32>, vector<32x16xf32>, vector<32x16xf32>, vector<32x16xf32> -> vector<128x16xf32>
    %168 = arith.truncf %167 : vector<128x16xf32> to vector<128x16xbf16>
    %169 = vector.extract_strided_slice %153 {offsets = [0, 128], sizes = [32, 16], strides = [1, 1]} : vector<32x192xf32> to vector<32x16xf32>
    %170 = vector.extract_strided_slice %153 {offsets = [0, 144], sizes = [32, 16], strides = [1, 1]} : vector<32x192xf32> to vector<32x16xf32>
    %171 = vector.extract_strided_slice %153 {offsets = [0, 160], sizes = [32, 16], strides = [1, 1]} : vector<32x192xf32> to vector<32x16xf32>
    %172 = vector.extract_strided_slice %153 {offsets = [0, 176], sizes = [32, 16], strides = [1, 1]} : vector<32x192xf32> to vector<32x16xf32>
    %173 = tpu.concatenate %169, %170, %171, %172 in 0 : vector<32x16xf32>, vector<32x16xf32>, vector<32x16xf32>, vector<32x16xf32> -> vector<128x16xf32>
    %174 = arith.truncf %173 : vector<128x16xf32> to vector<128x16xbf16>
    %cst_56 = arith.constant dense<0.000000e+00> : vector<128x128xf32>
    %175 = tpu.matmul %162, %168, %cst_56 {dimension_numbers = #tpu.dot_dimension_numbers<[1], [1], [0], [0], [0, 0, 1, 0], [], []>} : vector<128x16xbf16>, vector<128x16xbf16>, vector<128x128xf32> -> vector<128x128xf32>
    %c0_57 = arith.constant 0 : index
    %c0_58 = arith.constant 0 : index
    %176 = vector.load %arg17[%c0_57, %c0_58] : memref<128x128xf32, #tpu.memory_space<vmem>>, vector<128x128xf32>
    %177 = arith.addf %175, %176 : vector<128x128xf32>
    %cst_59 = arith.constant dense<0xFF800000> : vector<128xf32>
    %178 = vector.multi_reduction <maximumf>, %177, %cst_59 [1] : vector<128x128xf32> to vector<128xf32>
    %179 = vector.shape_cast %178 : vector<128xf32> to vector<128x1xf32>
    %180 = vector.broadcast %179 : vector<128x1xf32> to vector<128x128xf32>
    %181 = arith.subf %177, %180 : vector<128x128xf32>
    %182 = math.exp %181 : vector<128x128xf32>
    %cst_60 = arith.constant dense<0.000000e+00> : vector<128xf32>
    %183 = vector.multi_reduction <add>, %182, %cst_60 [1] : vector<128x128xf32> to vector<128xf32>
    %184 = vector.shape_cast %183 : vector<128xf32> to vector<128x1xf32>
    %185 = tpu.reciprocal %184 {approx = true} : vector<128x1xf32> -> vector<128x1xf32>
    %186 = vector.broadcast %185 : vector<128x1xf32> to vector<128x128xf32>
    %187 = arith.mulf %182, %186 : vector<128x128xf32>
    %188 = arith.truncf %187 : vector<128x128xf32> to vector<128x128xbf16>
    %cst_61 = arith.constant dense<0.000000e+00> : vector<128x16xf32>
    %189 = tpu.matmul %188, %174, %cst_61 {dimension_numbers = #tpu.dot_dimension_numbers<[1], [0], [0], [1], [0, 0, 1, 1], [], []>} : vector<128x128xbf16>, vector<128x16xbf16>, vector<128x16xf32> -> vector<128x16xf32>
    %190 = vector.extract_strided_slice %189 {offsets = [0, 0], sizes = [32, 16], strides = [1, 1]} : vector<128x16xf32> to vector<32x16xf32>
    %191 = vector.extract_strided_slice %189 {offsets = [32, 0], sizes = [32, 16], strides = [1, 1]} : vector<128x16xf32> to vector<32x16xf32>
    %192 = vector.extract_strided_slice %189 {offsets = [64, 0], sizes = [32, 16], strides = [1, 1]} : vector<128x16xf32> to vector<32x16xf32>
    %193 = vector.extract_strided_slice %189 {offsets = [96, 0], sizes = [32, 16], strides = [1, 1]} : vector<128x16xf32> to vector<32x16xf32>
    %194 = tpu.concatenate %190, %191, %192, %193 in 1 : vector<32x16xf32>, vector<32x16xf32>, vector<32x16xf32>, vector<32x16xf32> -> vector<32x64xf32>
    %195 = arith.truncf %194 : vector<32x64xf32> to vector<32x64xbf16>
    %cst_62 = arith.constant dense<0.000000e+00> : vector<32x64xf32>
    %196 = tpu.matmul %195, %155, %cst_62 {dimension_numbers = #tpu.dot_dimension_numbers<[1], [0], [0], [1], [0, 0, 1, 1], [], []>} : vector<32x64xbf16>, vector<64x64xbf16>, vector<32x64xf32> -> vector<32x64xf32>
    %197 = vector.broadcast %156 : vector<1x64xf32> to vector<32x64xf32>
    %198 = arith.addf %196, %197 : vector<32x64xf32>
    %199 = arith.addf %122, %198 : vector<32x64xf32>
    %200 = vector.extract_strided_slice %124 {offsets = [2, 0], sizes = [1, 64], strides = [1, 1]} : vector<8x192xf32> to vector<1x64xf32>
    %201 = vector.extract_strided_slice %124 {offsets = [3, 0], sizes = [1, 64], strides = [1, 1]} : vector<8x192xf32> to vector<1x64xf32>
    %cst_63 = arith.constant dense<0.000000e+00> : vector<32xf32>
    %202 = vector.multi_reduction <add>, %199, %cst_63 [1] : vector<32x64xf32> to vector<32xf32>
    %203 = vector.shape_cast %202 : vector<32xf32> to vector<32x1xf32>
    %cst_64 = arith.constant 6.400000e+01 : f32
    %204 = vector.broadcast %cst_64 : f32 to vector<32x1xf32>
    %205 = arith.divf %203, %204 : vector<32x1xf32>
    %206 = vector.broadcast %205 : vector<32x1xf32> to vector<32x64xf32>
    %207 = arith.subf %199, %206 : vector<32x64xf32>
    %208 = arith.mulf %207, %207 : vector<32x64xf32>
    %cst_65 = arith.constant dense<0.000000e+00> : vector<32xf32>
    %209 = vector.multi_reduction <add>, %208, %cst_65 [1] : vector<32x64xf32> to vector<32xf32>
    %210 = vector.shape_cast %209 : vector<32xf32> to vector<32x1xf32>
    %cst_66 = arith.constant 6.400000e+01 : f32
    %211 = vector.broadcast %cst_66 : f32 to vector<32x1xf32>
    %212 = arith.divf %210, %211 : vector<32x1xf32>
    %cst_67 = arith.constant 9.99999974E-6 : f32
    %213 = vector.broadcast %cst_67 : f32 to vector<32x1xf32>
    %214 = arith.addf %212, %213 : vector<32x1xf32>
    %215 = math.rsqrt %214 : vector<32x1xf32>
    %216 = vector.broadcast %215 : vector<32x1xf32> to vector<32x64xf32>
    %217 = arith.mulf %207, %216 : vector<32x64xf32>
    %218 = vector.broadcast %200 : vector<1x64xf32> to vector<32x64xf32>
    %219 = arith.mulf %217, %218 : vector<32x64xf32>
    %220 = vector.broadcast %201 : vector<1x64xf32> to vector<32x64xf32>
    %221 = arith.addf %219, %220 : vector<32x64xf32>
    %c1_68 = arith.constant 1 : index
    %c0_69 = arith.constant 0 : index
    %c0_70 = arith.constant 0 : index
    %222 = vector.load %arg6[%c1_68, %c0_69, %c0_70] : memref<4x64x128xbf16, #tpu.memory_space<vmem>>, vector<1x64x128xbf16>
    %223 = vector.shape_cast %222 : vector<1x64x128xbf16> to vector<64x128xbf16>
    %224 = arith.truncf %221 : vector<32x64xf32> to vector<32x64xbf16>
    %cst_71 = arith.constant dense<0.000000e+00> : vector<32x128xf32>
    %225 = tpu.matmul %224, %223, %cst_71 {dimension_numbers = #tpu.dot_dimension_numbers<[1], [0], [0], [1], [0, 0, 1, 1], [], []>} : vector<32x64xbf16>, vector<64x128xbf16>, vector<32x128xf32> -> vector<32x128xf32>
    %226 = vector.extract_strided_slice %124 {offsets = [6, 0], sizes = [1, 128], strides = [1, 1]} : vector<8x192xf32> to vector<1x128xf32>
    %227 = vector.broadcast %226 : vector<1x128xf32> to vector<32x128xf32>
    %228 = arith.addf %225, %227 : vector<32x128xf32>
    %cst_72 = arith.constant 0.000000e+00 : f32
    %229 = vector.broadcast %cst_72 : f32 to vector<32x128xf32>
    %230 = arith.maximumf %228, %229 : vector<32x128xf32>
    %c1_73 = arith.constant 1 : index
    %c0_74 = arith.constant 0 : index
    %c0_75 = arith.constant 0 : index
    %231 = vector.load %arg7[%c1_73, %c0_74, %c0_75] : memref<4x128x64xbf16, #tpu.memory_space<vmem>>, vector<1x128x64xbf16>
    %232 = vector.shape_cast %231 : vector<1x128x64xbf16> to vector<128x64xbf16>
    %233 = arith.truncf %230 : vector<32x128xf32> to vector<32x128xbf16>
    %cst_76 = arith.constant dense<0.000000e+00> : vector<32x64xf32>
    %234 = tpu.matmul %233, %232, %cst_76 {dimension_numbers = #tpu.dot_dimension_numbers<[1], [0], [0], [1], [0, 0, 1, 1], [], []>} : vector<32x128xbf16>, vector<128x64xbf16>, vector<32x64xf32> -> vector<32x64xf32>
    %235 = arith.addf %199, %234 : vector<32x64xf32>
    %236 = vector.extract_strided_slice %124 {offsets = [7, 0], sizes = [1, 64], strides = [1, 1]} : vector<8x192xf32> to vector<1x64xf32>
    %237 = vector.broadcast %236 : vector<1x64xf32> to vector<32x64xf32>
    %238 = arith.addf %235, %237 : vector<32x64xf32>
    %239 = vector.extract_strided_slice %238 {offsets = [0, 0], sizes = [16, 64], strides = [1, 1]} : vector<32x64xf32> to vector<16x64xf32>
    %240 = vector.extract_strided_slice %238 {offsets = [16, 0], sizes = [16, 64], strides = [1, 1]} : vector<32x64xf32> to vector<16x64xf32>
    %c0_77 = arith.constant 0 : index
    %c0_78 = arith.constant 0 : index
    %c0_79 = arith.constant 0 : index
    %241 = vector.load %arg1[%c0_77, %c0_78, %c0_79] : memref<4x7x128xf32, #tpu.memory_space<vmem>>, vector<1x7x128xf32>
    %242 = vector.shape_cast %241 : vector<1x7x128xf32> to vector<7x128xf32>
    %243 = vector.extract_strided_slice %242 {offsets = [0, 0], sizes = [1, 64], strides = [1, 1]} : vector<7x128xf32> to vector<1x64xf32>
    %244 = vector.extract_strided_slice %242 {offsets = [1, 0], sizes = [1, 64], strides = [1, 1]} : vector<7x128xf32> to vector<1x64xf32>
    %cst_80 = arith.constant dense<0.000000e+00> : vector<16xf32>
    %245 = vector.multi_reduction <add>, %239, %cst_80 [1] : vector<16x64xf32> to vector<16xf32>
    %246 = vector.shape_cast %245 : vector<16xf32> to vector<16x1xf32>
    %cst_81 = arith.constant 6.400000e+01 : f32
    %247 = vector.broadcast %cst_81 : f32 to vector<16x1xf32>
    %248 = arith.divf %246, %247 : vector<16x1xf32>
    %249 = vector.broadcast %248 : vector<16x1xf32> to vector<16x64xf32>
    %250 = arith.subf %239, %249 : vector<16x64xf32>
    %251 = arith.mulf %250, %250 : vector<16x64xf32>
    %cst_82 = arith.constant dense<0.000000e+00> : vector<16xf32>
    %252 = vector.multi_reduction <add>, %251, %cst_82 [1] : vector<16x64xf32> to vector<16xf32>
    %253 = vector.shape_cast %252 : vector<16xf32> to vector<16x1xf32>
    %cst_83 = arith.constant 6.400000e+01 : f32
    %254 = vector.broadcast %cst_83 : f32 to vector<16x1xf32>
    %255 = arith.divf %253, %254 : vector<16x1xf32>
    %cst_84 = arith.constant 9.99999974E-6 : f32
    %256 = vector.broadcast %cst_84 : f32 to vector<16x1xf32>
    %257 = arith.addf %255, %256 : vector<16x1xf32>
    %258 = math.rsqrt %257 : vector<16x1xf32>
    %259 = vector.broadcast %258 : vector<16x1xf32> to vector<16x64xf32>
    %260 = arith.mulf %250, %259 : vector<16x64xf32>
    %261 = vector.broadcast %243 : vector<1x64xf32> to vector<16x64xf32>
    %262 = arith.mulf %260, %261 : vector<16x64xf32>
    %263 = vector.broadcast %244 : vector<1x64xf32> to vector<16x64xf32>
    %264 = arith.addf %262, %263 : vector<16x64xf32>
    %265 = vector.extract_strided_slice %242 {offsets = [0, 0], sizes = [1, 64], strides = [1, 1]} : vector<7x128xf32> to vector<1x64xf32>
    %266 = vector.extract_strided_slice %242 {offsets = [1, 0], sizes = [1, 64], strides = [1, 1]} : vector<7x128xf32> to vector<1x64xf32>
    %cst_85 = arith.constant dense<0.000000e+00> : vector<16xf32>
    %267 = vector.multi_reduction <add>, %240, %cst_85 [1] : vector<16x64xf32> to vector<16xf32>
    %268 = vector.shape_cast %267 : vector<16xf32> to vector<16x1xf32>
    %cst_86 = arith.constant 6.400000e+01 : f32
    %269 = vector.broadcast %cst_86 : f32 to vector<16x1xf32>
    %270 = arith.divf %268, %269 : vector<16x1xf32>
    %271 = vector.broadcast %270 : vector<16x1xf32> to vector<16x64xf32>
    %272 = arith.subf %240, %271 : vector<16x64xf32>
    %273 = arith.mulf %272, %272 : vector<16x64xf32>
    %cst_87 = arith.constant dense<0.000000e+00> : vector<16xf32>
    %274 = vector.multi_reduction <add>, %273, %cst_87 [1] : vector<16x64xf32> to vector<16xf32>
    %275 = vector.shape_cast %274 : vector<16xf32> to vector<16x1xf32>
    %cst_88 = arith.constant 6.400000e+01 : f32
    %276 = vector.broadcast %cst_88 : f32 to vector<16x1xf32>
    %277 = arith.divf %275, %276 : vector<16x1xf32>
    %cst_89 = arith.constant 9.99999974E-6 : f32
    %278 = vector.broadcast %cst_89 : f32 to vector<16x1xf32>
    %279 = arith.addf %277, %278 : vector<16x1xf32>
    %280 = math.rsqrt %279 : vector<16x1xf32>
    %281 = vector.broadcast %280 : vector<16x1xf32> to vector<16x64xf32>
    %282 = arith.mulf %272, %281 : vector<16x64xf32>
    %283 = vector.broadcast %265 : vector<1x64xf32> to vector<16x64xf32>
    %284 = arith.mulf %282, %283 : vector<16x64xf32>
    %285 = vector.broadcast %266 : vector<1x64xf32> to vector<16x64xf32>
    %286 = arith.addf %284, %285 : vector<16x64xf32>
    %c0_90 = arith.constant 0 : index
    %c0_91 = arith.constant 0 : index
    %c0_92 = arith.constant 0 : index
    %287 = vector.load %arg4[%c0_90, %c0_91, %c0_92] : memref<4x64x64xbf16, #tpu.memory_space<vmem>>, vector<1x64x64xbf16>
    %288 = vector.shape_cast %287 : vector<1x64x64xbf16> to vector<64x64xbf16>
    %289 = arith.truncf %264 : vector<16x64xf32> to vector<16x64xbf16>
    %cst_93 = arith.constant dense<0.000000e+00> : vector<16x64xf32>
    %290 = tpu.matmul %289, %288, %cst_93 {dimension_numbers = #tpu.dot_dimension_numbers<[1], [0], [0], [1], [0, 0, 1, 1], [], []>} : vector<16x64xbf16>, vector<64x64xbf16>, vector<16x64xf32> -> vector<16x64xf32>
    %291 = vector.extract_strided_slice %242 {offsets = [4, 0], sizes = [1, 64], strides = [1, 1]} : vector<7x128xf32> to vector<1x64xf32>
    %292 = vector.broadcast %291 : vector<1x64xf32> to vector<16x64xf32>
    %293 = arith.addf %290, %292 : vector<16x64xf32>
    %c0_94 = arith.constant 0 : index
    %c0_95 = arith.constant 0 : index
    %c0_96 = arith.constant 0 : index
    %294 = vector.load %arg2[%c0_94, %c0_95, %c0_96] : memref<4x64x128xbf16, #tpu.memory_space<vmem>>, vector<1x64x128xbf16>
    %295 = vector.shape_cast %294 : vector<1x64x128xbf16> to vector<64x128xbf16>
    %296 = arith.truncf %286 : vector<16x64xf32> to vector<16x64xbf16>
    %cst_97 = arith.constant dense<0.000000e+00> : vector<16x128xf32>
    %297 = tpu.matmul %296, %295, %cst_97 {dimension_numbers = #tpu.dot_dimension_numbers<[1], [0], [0], [1], [0, 0, 1, 1], [], []>} : vector<16x64xbf16>, vector<64x128xbf16>, vector<16x128xf32> -> vector<16x128xf32>
    %298 = vector.extract_strided_slice %242 {offsets = [5, 0], sizes = [1, 128], strides = [1, 1]} : vector<7x128xf32> to vector<1x128xf32>
    %299 = vector.broadcast %298 : vector<1x128xf32> to vector<16x128xf32>
    %300 = arith.addf %297, %299 : vector<16x128xf32>
    %c0_98 = arith.constant 0 : index
    %c0_99 = arith.constant 0 : index
    %c0_100 = arith.constant 0 : index
    %301 = vector.load %arg3[%c0_98, %c0_99, %c0_100] : memref<4x64x64xbf16, #tpu.memory_space<vmem>>, vector<1x64x64xbf16>
    %302 = vector.shape_cast %301 : vector<1x64x64xbf16> to vector<64x64xbf16>
    %303 = vector.extract_strided_slice %242 {offsets = [6, 0], sizes = [1, 64], strides = [1, 1]} : vector<7x128xf32> to vector<1x64xf32>
    %304 = vector.extract_strided_slice %293 {offsets = [0, 0], sizes = [16, 16], strides = [1, 1]} : vector<16x64xf32> to vector<16x16xf32>
    %305 = vector.extract_strided_slice %293 {offsets = [0, 16], sizes = [16, 16], strides = [1, 1]} : vector<16x64xf32> to vector<16x16xf32>
    %306 = vector.extract_strided_slice %293 {offsets = [0, 32], sizes = [16, 16], strides = [1, 1]} : vector<16x64xf32> to vector<16x16xf32>
    %307 = vector.extract_strided_slice %293 {offsets = [0, 48], sizes = [16, 16], strides = [1, 1]} : vector<16x64xf32> to vector<16x16xf32>
    %308 = tpu.concatenate %304, %305, %306, %307 in 0 : vector<16x16xf32>, vector<16x16xf32>, vector<16x16xf32>, vector<16x16xf32> -> vector<64x16xf32>
    %309 = arith.truncf %308 : vector<64x16xf32> to vector<64x16xbf16>
    %310 = vector.extract_strided_slice %300 {offsets = [0, 0], sizes = [16, 16], strides = [1, 1]} : vector<16x128xf32> to vector<16x16xf32>
    %311 = vector.extract_strided_slice %300 {offsets = [0, 16], sizes = [16, 16], strides = [1, 1]} : vector<16x128xf32> to vector<16x16xf32>
    %312 = vector.extract_strided_slice %300 {offsets = [0, 32], sizes = [16, 16], strides = [1, 1]} : vector<16x128xf32> to vector<16x16xf32>
    %313 = vector.extract_strided_slice %300 {offsets = [0, 48], sizes = [16, 16], strides = [1, 1]} : vector<16x128xf32> to vector<16x16xf32>
    %314 = tpu.concatenate %310, %311, %312, %313 in 0 : vector<16x16xf32>, vector<16x16xf32>, vector<16x16xf32>, vector<16x16xf32> -> vector<64x16xf32>
    %315 = arith.truncf %314 : vector<64x16xf32> to vector<64x16xbf16>
    %316 = vector.extract_strided_slice %300 {offsets = [0, 64], sizes = [16, 16], strides = [1, 1]} : vector<16x128xf32> to vector<16x16xf32>
    %317 = vector.extract_strided_slice %300 {offsets = [0, 80], sizes = [16, 16], strides = [1, 1]} : vector<16x128xf32> to vector<16x16xf32>
    %318 = vector.extract_strided_slice %300 {offsets = [0, 96], sizes = [16, 16], strides = [1, 1]} : vector<16x128xf32> to vector<16x16xf32>
    %319 = vector.extract_strided_slice %300 {offsets = [0, 112], sizes = [16, 16], strides = [1, 1]} : vector<16x128xf32> to vector<16x16xf32>
    %320 = tpu.concatenate %316, %317, %318, %319 in 0 : vector<16x16xf32>, vector<16x16xf32>, vector<16x16xf32>, vector<16x16xf32> -> vector<64x16xf32>
    %321 = arith.truncf %320 : vector<64x16xf32> to vector<64x16xbf16>
    %cst_101 = arith.constant dense<0.000000e+00> : vector<64x64xf32>
    %322 = tpu.matmul %309, %315, %cst_101 {dimension_numbers = #tpu.dot_dimension_numbers<[1], [1], [0], [0], [0, 0, 1, 0], [], []>} : vector<64x16xbf16>, vector<64x16xbf16>, vector<64x64xf32> -> vector<64x64xf32>
    %c0_102 = arith.constant 0 : index
    %c0_103 = arith.constant 0 : index
    %323 = vector.load %arg14[%c0_102, %c0_103] : memref<64x64xf32, #tpu.memory_space<vmem>>, vector<64x64xf32>
    %324 = arith.addf %322, %323 : vector<64x64xf32>
    %cst_104 = arith.constant dense<0xFF800000> : vector<64xf32>
    %325 = vector.multi_reduction <maximumf>, %324, %cst_104 [1] : vector<64x64xf32> to vector<64xf32>
    %326 = vector.shape_cast %325 : vector<64xf32> to vector<64x1xf32>
    %327 = vector.broadcast %326 : vector<64x1xf32> to vector<64x64xf32>
    %328 = arith.subf %324, %327 : vector<64x64xf32>
    %329 = math.exp %328 : vector<64x64xf32>
    %cst_105 = arith.constant dense<0.000000e+00> : vector<64xf32>
    %330 = vector.multi_reduction <add>, %329, %cst_105 [1] : vector<64x64xf32> to vector<64xf32>
    %331 = vector.shape_cast %330 : vector<64xf32> to vector<64x1xf32>
    %332 = tpu.reciprocal %331 {approx = true} : vector<64x1xf32> -> vector<64x1xf32>
    %333 = vector.broadcast %332 : vector<64x1xf32> to vector<64x64xf32>
    %334 = arith.mulf %329, %333 : vector<64x64xf32>
    %335 = arith.truncf %334 : vector<64x64xf32> to vector<64x64xbf16>
    %cst_106 = arith.constant dense<0.000000e+00> : vector<64x16xf32>
    %336 = tpu.matmul %335, %321, %cst_106 {dimension_numbers = #tpu.dot_dimension_numbers<[1], [0], [0], [1], [0, 0, 1, 1], [], []>} : vector<64x64xbf16>, vector<64x16xbf16>, vector<64x16xf32> -> vector<64x16xf32>
    %337 = vector.extract_strided_slice %336 {offsets = [0, 0], sizes = [16, 16], strides = [1, 1]} : vector<64x16xf32> to vector<16x16xf32>
    %338 = vector.extract_strided_slice %336 {offsets = [16, 0], sizes = [16, 16], strides = [1, 1]} : vector<64x16xf32> to vector<16x16xf32>
    %339 = vector.extract_strided_slice %336 {offsets = [32, 0], sizes = [16, 16], strides = [1, 1]} : vector<64x16xf32> to vector<16x16xf32>
    %340 = vector.extract_strided_slice %336 {offsets = [48, 0], sizes = [16, 16], strides = [1, 1]} : vector<64x16xf32> to vector<16x16xf32>
    %341 = tpu.concatenate %337, %338, %339, %340 in 1 : vector<16x16xf32>, vector<16x16xf32>, vector<16x16xf32>, vector<16x16xf32> -> vector<16x64xf32>
    %342 = arith.truncf %341 : vector<16x64xf32> to vector<16x64xbf16>
    %cst_107 = arith.constant dense<0.000000e+00> : vector<16x64xf32>
    %343 = tpu.matmul %342, %302, %cst_107 {dimension_numbers = #tpu.dot_dimension_numbers<[1], [0], [0], [1], [0, 0, 1, 1], [], []>} : vector<16x64xbf16>, vector<64x64xbf16>, vector<16x64xf32> -> vector<16x64xf32>
    %344 = vector.broadcast %303 : vector<1x64xf32> to vector<16x64xf32>
    %345 = arith.addf %343, %344 : vector<16x64xf32>
    %346 = arith.addf %239, %345 : vector<16x64xf32>
    %347 = vector.extract_strided_slice %242 {offsets = [2, 0], sizes = [1, 64], strides = [1, 1]} : vector<7x128xf32> to vector<1x64xf32>
    %348 = vector.extract_strided_slice %242 {offsets = [3, 0], sizes = [1, 64], strides = [1, 1]} : vector<7x128xf32> to vector<1x64xf32>
    %cst_108 = arith.constant dense<0.000000e+00> : vector<16xf32>
    %349 = vector.multi_reduction <add>, %346, %cst_108 [1] : vector<16x64xf32> to vector<16xf32>
    %350 = vector.shape_cast %349 : vector<16xf32> to vector<16x1xf32>
    %cst_109 = arith.constant 6.400000e+01 : f32
    %351 = vector.broadcast %cst_109 : f32 to vector<16x1xf32>
    %352 = arith.divf %350, %351 : vector<16x1xf32>
    %353 = vector.broadcast %352 : vector<16x1xf32> to vector<16x64xf32>
    %354 = arith.subf %346, %353 : vector<16x64xf32>
    %355 = arith.mulf %354, %354 : vector<16x64xf32>
    %cst_110 = arith.constant dense<0.000000e+00> : vector<16xf32>
    %356 = vector.multi_reduction <add>, %355, %cst_110 [1] : vector<16x64xf32> to vector<16xf32>
    %357 = vector.shape_cast %356 : vector<16xf32> to vector<16x1xf32>
    %cst_111 = arith.constant 6.400000e+01 : f32
    %358 = vector.broadcast %cst_111 : f32 to vector<16x1xf32>
    %359 = arith.divf %357, %358 : vector<16x1xf32>
    %cst_112 = arith.constant 9.99999974E-6 : f32
    %360 = vector.broadcast %cst_112 : f32 to vector<16x1xf32>
    %361 = arith.addf %359, %360 : vector<16x1xf32>
    %362 = math.rsqrt %361 : vector<16x1xf32>
    %363 = vector.broadcast %362 : vector<16x1xf32> to vector<16x64xf32>
    %364 = arith.mulf %354, %363 : vector<16x64xf32>
    %365 = vector.broadcast %347 : vector<1x64xf32> to vector<16x64xf32>
    %366 = arith.mulf %364, %365 : vector<16x64xf32>
    %367 = vector.broadcast %348 : vector<1x64xf32> to vector<16x64xf32>
    %368 = arith.addf %366, %367 : vector<16x64xf32>
    %c1_113 = arith.constant 1 : index
    %c0_114 = arith.constant 0 : index
    %c0_115 = arith.constant 0 : index
    %369 = vector.load %arg1[%c1_113, %c0_114, %c0_115] : memref<4x7x128xf32, #tpu.memory_space<vmem>>, vector<1x7x128xf32>
    %370 = vector.shape_cast %369 : vector<1x7x128xf32> to vector<7x128xf32>
    %371 = vector.extract_strided_slice %370 {offsets = [0, 0], sizes = [1, 64], strides = [1, 1]} : vector<7x128xf32> to vector<1x64xf32>
    %372 = vector.extract_strided_slice %370 {offsets = [1, 0], sizes = [1, 64], strides = [1, 1]} : vector<7x128xf32> to vector<1x64xf32>
    %cst_116 = arith.constant dense<0.000000e+00> : vector<16xf32>
    %373 = vector.multi_reduction <add>, %240, %cst_116 [1] : vector<16x64xf32> to vector<16xf32>
    %374 = vector.shape_cast %373 : vector<16xf32> to vector<16x1xf32>
    %cst_117 = arith.constant 6.400000e+01 : f32
    %375 = vector.broadcast %cst_117 : f32 to vector<16x1xf32>
    %376 = arith.divf %374, %375 : vector<16x1xf32>
    %377 = vector.broadcast %376 : vector<16x1xf32> to vector<16x64xf32>
    %378 = arith.subf %240, %377 : vector<16x64xf32>
    %379 = arith.mulf %378, %378 : vector<16x64xf32>
    %cst_118 = arith.constant dense<0.000000e+00> : vector<16xf32>
    %380 = vector.multi_reduction <add>, %379, %cst_118 [1] : vector<16x64xf32> to vector<16xf32>
    %381 = vector.shape_cast %380 : vector<16xf32> to vector<16x1xf32>
    %cst_119 = arith.constant 6.400000e+01 : f32
    %382 = vector.broadcast %cst_119 : f32 to vector<16x1xf32>
    %383 = arith.divf %381, %382 : vector<16x1xf32>
    %cst_120 = arith.constant 9.99999974E-6 : f32
    %384 = vector.broadcast %cst_120 : f32 to vector<16x1xf32>
    %385 = arith.addf %383, %384 : vector<16x1xf32>
    %386 = math.rsqrt %385 : vector<16x1xf32>
    %387 = vector.broadcast %386 : vector<16x1xf32> to vector<16x64xf32>
    %388 = arith.mulf %378, %387 : vector<16x64xf32>
    %389 = vector.broadcast %371 : vector<1x64xf32> to vector<16x64xf32>
    %390 = arith.mulf %388, %389 : vector<16x64xf32>
    %391 = vector.broadcast %372 : vector<1x64xf32> to vector<16x64xf32>
    %392 = arith.addf %390, %391 : vector<16x64xf32>
    %393 = vector.extract_strided_slice %370 {offsets = [0, 0], sizes = [1, 64], strides = [1, 1]} : vector<7x128xf32> to vector<1x64xf32>
    %394 = vector.extract_strided_slice %370 {offsets = [1, 0], sizes = [1, 64], strides = [1, 1]} : vector<7x128xf32> to vector<1x64xf32>
    %cst_121 = arith.constant dense<0.000000e+00> : vector<16xf32>
    %395 = vector.multi_reduction <add>, %239, %cst_121 [1] : vector<16x64xf32> to vector<16xf32>
    %396 = vector.shape_cast %395 : vector<16xf32> to vector<16x1xf32>
    %cst_122 = arith.constant 6.400000e+01 : f32
    %397 = vector.broadcast %cst_122 : f32 to vector<16x1xf32>
    %398 = arith.divf %396, %397 : vector<16x1xf32>
    %399 = vector.broadcast %398 : vector<16x1xf32> to vector<16x64xf32>
    %400 = arith.subf %239, %399 : vector<16x64xf32>
    %401 = arith.mulf %400, %400 : vector<16x64xf32>
    %cst_123 = arith.constant dense<0.000000e+00> : vector<16xf32>
    %402 = vector.multi_reduction <add>, %401, %cst_123 [1] : vector<16x64xf32> to vector<16xf32>
    %403 = vector.shape_cast %402 : vector<16xf32> to vector<16x1xf32>
    %cst_124 = arith.constant 6.400000e+01 : f32
    %404 = vector.broadcast %cst_124 : f32 to vector<16x1xf32>
    %405 = arith.divf %403, %404 : vector<16x1xf32>
    %cst_125 = arith.constant 9.99999974E-6 : f32
    %406 = vector.broadcast %cst_125 : f32 to vector<16x1xf32>
    %407 = arith.addf %405, %406 : vector<16x1xf32>
    %408 = math.rsqrt %407 : vector<16x1xf32>
    %409 = vector.broadcast %408 : vector<16x1xf32> to vector<16x64xf32>
    %410 = arith.mulf %400, %409 : vector<16x64xf32>
    %411 = vector.broadcast %393 : vector<1x64xf32> to vector<16x64xf32>
    %412 = arith.mulf %410, %411 : vector<16x64xf32>
    %413 = vector.broadcast %394 : vector<1x64xf32> to vector<16x64xf32>
    %414 = arith.addf %412, %413 : vector<16x64xf32>
    %c1_126 = arith.constant 1 : index
    %c0_127 = arith.constant 0 : index
    %c0_128 = arith.constant 0 : index
    %415 = vector.load %arg4[%c1_126, %c0_127, %c0_128] : memref<4x64x64xbf16, #tpu.memory_space<vmem>>, vector<1x64x64xbf16>
    %416 = vector.shape_cast %415 : vector<1x64x64xbf16> to vector<64x64xbf16>
    %417 = arith.truncf %392 : vector<16x64xf32> to vector<16x64xbf16>
    %cst_129 = arith.constant dense<0.000000e+00> : vector<16x64xf32>
    %418 = tpu.matmul %417, %416, %cst_129 {dimension_numbers = #tpu.dot_dimension_numbers<[1], [0], [0], [1], [0, 0, 1, 1], [], []>} : vector<16x64xbf16>, vector<64x64xbf16>, vector<16x64xf32> -> vector<16x64xf32>
    %419 = vector.extract_strided_slice %370 {offsets = [4, 0], sizes = [1, 64], strides = [1, 1]} : vector<7x128xf32> to vector<1x64xf32>
    %420 = vector.broadcast %419 : vector<1x64xf32> to vector<16x64xf32>
    %421 = arith.addf %418, %420 : vector<16x64xf32>
    %c1_130 = arith.constant 1 : index
    %c0_131 = arith.constant 0 : index
    %c0_132 = arith.constant 0 : index
    %422 = vector.load %arg2[%c1_130, %c0_131, %c0_132] : memref<4x64x128xbf16, #tpu.memory_space<vmem>>, vector<1x64x128xbf16>
    %423 = vector.shape_cast %422 : vector<1x64x128xbf16> to vector<64x128xbf16>
    %424 = arith.truncf %414 : vector<16x64xf32> to vector<16x64xbf16>
    %cst_133 = arith.constant dense<0.000000e+00> : vector<16x128xf32>
    %425 = tpu.matmul %424, %423, %cst_133 {dimension_numbers = #tpu.dot_dimension_numbers<[1], [0], [0], [1], [0, 0, 1, 1], [], []>} : vector<16x64xbf16>, vector<64x128xbf16>, vector<16x128xf32> -> vector<16x128xf32>
    %426 = vector.extract_strided_slice %370 {offsets = [5, 0], sizes = [1, 128], strides = [1, 1]} : vector<7x128xf32> to vector<1x128xf32>
    %427 = vector.broadcast %426 : vector<1x128xf32> to vector<16x128xf32>
    %428 = arith.addf %425, %427 : vector<16x128xf32>
    %c1_134 = arith.constant 1 : index
    %c0_135 = arith.constant 0 : index
    %c0_136 = arith.constant 0 : index
    %429 = vector.load %arg3[%c1_134, %c0_135, %c0_136] : memref<4x64x64xbf16, #tpu.memory_space<vmem>>, vector<1x64x64xbf16>
    %430 = vector.shape_cast %429 : vector<1x64x64xbf16> to vector<64x64xbf16>
    %431 = vector.extract_strided_slice %370 {offsets = [6, 0], sizes = [1, 64], strides = [1, 1]} : vector<7x128xf32> to vector<1x64xf32>
    %432 = vector.extract_strided_slice %421 {offsets = [0, 0], sizes = [16, 16], strides = [1, 1]} : vector<16x64xf32> to vector<16x16xf32>
    %433 = vector.extract_strided_slice %421 {offsets = [0, 16], sizes = [16, 16], strides = [1, 1]} : vector<16x64xf32> to vector<16x16xf32>
    %434 = vector.extract_strided_slice %421 {offsets = [0, 32], sizes = [16, 16], strides = [1, 1]} : vector<16x64xf32> to vector<16x16xf32>
    %435 = vector.extract_strided_slice %421 {offsets = [0, 48], sizes = [16, 16], strides = [1, 1]} : vector<16x64xf32> to vector<16x16xf32>
    %436 = tpu.concatenate %432, %433, %434, %435 in 0 : vector<16x16xf32>, vector<16x16xf32>, vector<16x16xf32>, vector<16x16xf32> -> vector<64x16xf32>
    %437 = arith.truncf %436 : vector<64x16xf32> to vector<64x16xbf16>
    %438 = vector.extract_strided_slice %428 {offsets = [0, 0], sizes = [16, 16], strides = [1, 1]} : vector<16x128xf32> to vector<16x16xf32>
    %439 = vector.extract_strided_slice %428 {offsets = [0, 16], sizes = [16, 16], strides = [1, 1]} : vector<16x128xf32> to vector<16x16xf32>
    %440 = vector.extract_strided_slice %428 {offsets = [0, 32], sizes = [16, 16], strides = [1, 1]} : vector<16x128xf32> to vector<16x16xf32>
    %441 = vector.extract_strided_slice %428 {offsets = [0, 48], sizes = [16, 16], strides = [1, 1]} : vector<16x128xf32> to vector<16x16xf32>
    %442 = tpu.concatenate %438, %439, %440, %441 in 0 : vector<16x16xf32>, vector<16x16xf32>, vector<16x16xf32>, vector<16x16xf32> -> vector<64x16xf32>
    %443 = arith.truncf %442 : vector<64x16xf32> to vector<64x16xbf16>
    %444 = vector.extract_strided_slice %428 {offsets = [0, 64], sizes = [16, 16], strides = [1, 1]} : vector<16x128xf32> to vector<16x16xf32>
    %445 = vector.extract_strided_slice %428 {offsets = [0, 80], sizes = [16, 16], strides = [1, 1]} : vector<16x128xf32> to vector<16x16xf32>
    %446 = vector.extract_strided_slice %428 {offsets = [0, 96], sizes = [16, 16], strides = [1, 1]} : vector<16x128xf32> to vector<16x16xf32>
    %447 = vector.extract_strided_slice %428 {offsets = [0, 112], sizes = [16, 16], strides = [1, 1]} : vector<16x128xf32> to vector<16x16xf32>
    %448 = tpu.concatenate %444, %445, %446, %447 in 0 : vector<16x16xf32>, vector<16x16xf32>, vector<16x16xf32>, vector<16x16xf32> -> vector<64x16xf32>
    %449 = arith.truncf %448 : vector<64x16xf32> to vector<64x16xbf16>
    %cst_137 = arith.constant dense<0.000000e+00> : vector<64x64xf32>
    %450 = tpu.matmul %437, %443, %cst_137 {dimension_numbers = #tpu.dot_dimension_numbers<[1], [1], [0], [0], [0, 0, 1, 0], [], []>} : vector<64x16xbf16>, vector<64x16xbf16>, vector<64x64xf32> -> vector<64x64xf32>
    %c0_138 = arith.constant 0 : index
    %c0_139 = arith.constant 0 : index
    %451 = vector.load %arg14[%c0_138, %c0_139] : memref<64x64xf32, #tpu.memory_space<vmem>>, vector<64x64xf32>
    %452 = arith.addf %450, %451 : vector<64x64xf32>
    %cst_140 = arith.constant dense<0xFF800000> : vector<64xf32>
    %453 = vector.multi_reduction <maximumf>, %452, %cst_140 [1] : vector<64x64xf32> to vector<64xf32>
    %454 = vector.shape_cast %453 : vector<64xf32> to vector<64x1xf32>
    %455 = vector.broadcast %454 : vector<64x1xf32> to vector<64x64xf32>
    %456 = arith.subf %452, %455 : vector<64x64xf32>
    %457 = math.exp %456 : vector<64x64xf32>
    %cst_141 = arith.constant dense<0.000000e+00> : vector<64xf32>
    %458 = vector.multi_reduction <add>, %457, %cst_141 [1] : vector<64x64xf32> to vector<64xf32>
    %459 = vector.shape_cast %458 : vector<64xf32> to vector<64x1xf32>
    %460 = tpu.reciprocal %459 {approx = true} : vector<64x1xf32> -> vector<64x1xf32>
    %461 = vector.broadcast %460 : vector<64x1xf32> to vector<64x64xf32>
    %462 = arith.mulf %457, %461 : vector<64x64xf32>
    %463 = arith.truncf %462 : vector<64x64xf32> to vector<64x64xbf16>
    %cst_142 = arith.constant dense<0.000000e+00> : vector<64x16xf32>
    %464 = tpu.matmul %463, %449, %cst_142 {dimension_numbers = #tpu.dot_dimension_numbers<[1], [0], [0], [1], [0, 0, 1, 1], [], []>} : vector<64x64xbf16>, vector<64x16xbf16>, vector<64x16xf32> -> vector<64x16xf32>
    %465 = vector.extract_strided_slice %464 {offsets = [0, 0], sizes = [16, 16], strides = [1, 1]} : vector<64x16xf32> to vector<16x16xf32>
    %466 = vector.extract_strided_slice %464 {offsets = [16, 0], sizes = [16, 16], strides = [1, 1]} : vector<64x16xf32> to vector<16x16xf32>
    %467 = vector.extract_strided_slice %464 {offsets = [32, 0], sizes = [16, 16], strides = [1, 1]} : vector<64x16xf32> to vector<16x16xf32>
    %468 = vector.extract_strided_slice %464 {offsets = [48, 0], sizes = [16, 16], strides = [1, 1]} : vector<64x16xf32> to vector<16x16xf32>
    %469 = tpu.concatenate %465, %466, %467, %468 in 1 : vector<16x16xf32>, vector<16x16xf32>, vector<16x16xf32>, vector<16x16xf32> -> vector<16x64xf32>
    %470 = arith.truncf %469 : vector<16x64xf32> to vector<16x64xbf16>
    %cst_143 = arith.constant dense<0.000000e+00> : vector<16x64xf32>
    %471 = tpu.matmul %470, %430, %cst_143 {dimension_numbers = #tpu.dot_dimension_numbers<[1], [0], [0], [1], [0, 0, 1, 1], [], []>} : vector<16x64xbf16>, vector<64x64xbf16>, vector<16x64xf32> -> vector<16x64xf32>
    %472 = vector.broadcast %431 : vector<1x64xf32> to vector<16x64xf32>
    %473 = arith.addf %471, %472 : vector<16x64xf32>
    %474 = arith.addf %240, %473 : vector<16x64xf32>
    %475 = vector.extract_strided_slice %370 {offsets = [2, 0], sizes = [1, 64], strides = [1, 1]} : vector<7x128xf32> to vector<1x64xf32>
    %476 = vector.extract_strided_slice %370 {offsets = [3, 0], sizes = [1, 64], strides = [1, 1]} : vector<7x128xf32> to vector<1x64xf32>
    %cst_144 = arith.constant dense<0.000000e+00> : vector<16xf32>
    %477 = vector.multi_reduction <add>, %474, %cst_144 [1] : vector<16x64xf32> to vector<16xf32>
    %478 = vector.shape_cast %477 : vector<16xf32> to vector<16x1xf32>
    %cst_145 = arith.constant 6.400000e+01 : f32
    %479 = vector.broadcast %cst_145 : f32 to vector<16x1xf32>
    %480 = arith.divf %478, %479 : vector<16x1xf32>
    %481 = vector.broadcast %480 : vector<16x1xf32> to vector<16x64xf32>
    %482 = arith.subf %474, %481 : vector<16x64xf32>
    %483 = arith.mulf %482, %482 : vector<16x64xf32>
    %cst_146 = arith.constant dense<0.000000e+00> : vector<16xf32>
    %484 = vector.multi_reduction <add>, %483, %cst_146 [1] : vector<16x64xf32> to vector<16xf32>
    %485 = vector.shape_cast %484 : vector<16xf32> to vector<16x1xf32>
    %cst_147 = arith.constant 6.400000e+01 : f32
    %486 = vector.broadcast %cst_147 : f32 to vector<16x1xf32>
    %487 = arith.divf %485, %486 : vector<16x1xf32>
    %cst_148 = arith.constant 9.99999974E-6 : f32
    %488 = vector.broadcast %cst_148 : f32 to vector<16x1xf32>
    %489 = arith.addf %487, %488 : vector<16x1xf32>
    %490 = math.rsqrt %489 : vector<16x1xf32>
    %491 = vector.broadcast %490 : vector<16x1xf32> to vector<16x64xf32>
    %492 = arith.mulf %482, %491 : vector<16x64xf32>
    %493 = vector.broadcast %475 : vector<1x64xf32> to vector<16x64xf32>
    %494 = arith.mulf %492, %493 : vector<16x64xf32>
    %495 = vector.broadcast %476 : vector<1x64xf32> to vector<16x64xf32>
    %496 = arith.addf %494, %495 : vector<16x64xf32>
    %c2 = arith.constant 2 : index
    %c0_149 = arith.constant 0 : index
    %c0_150 = arith.constant 0 : index
    %497 = vector.load %arg1[%c2, %c0_149, %c0_150] : memref<4x7x128xf32, #tpu.memory_space<vmem>>, vector<1x7x128xf32>
    %498 = vector.shape_cast %497 : vector<1x7x128xf32> to vector<7x128xf32>
    %499 = vector.extract_strided_slice %498 {offsets = [0, 0], sizes = [1, 64], strides = [1, 1]} : vector<7x128xf32> to vector<1x64xf32>
    %500 = vector.extract_strided_slice %498 {offsets = [1, 0], sizes = [1, 64], strides = [1, 1]} : vector<7x128xf32> to vector<1x64xf32>
    %cst_151 = arith.constant dense<0.000000e+00> : vector<16xf32>
    %501 = vector.multi_reduction <add>, %368, %cst_151 [1] : vector<16x64xf32> to vector<16xf32>
    %502 = vector.shape_cast %501 : vector<16xf32> to vector<16x1xf32>
    %cst_152 = arith.constant 6.400000e+01 : f32
    %503 = vector.broadcast %cst_152 : f32 to vector<16x1xf32>
    %504 = arith.divf %502, %503 : vector<16x1xf32>
    %505 = vector.broadcast %504 : vector<16x1xf32> to vector<16x64xf32>
    %506 = arith.subf %368, %505 : vector<16x64xf32>
    %507 = arith.mulf %506, %506 : vector<16x64xf32>
    %cst_153 = arith.constant dense<0.000000e+00> : vector<16xf32>
    %508 = vector.multi_reduction <add>, %507, %cst_153 [1] : vector<16x64xf32> to vector<16xf32>
    %509 = vector.shape_cast %508 : vector<16xf32> to vector<16x1xf32>
    %cst_154 = arith.constant 6.400000e+01 : f32
    %510 = vector.broadcast %cst_154 : f32 to vector<16x1xf32>
    %511 = arith.divf %509, %510 : vector<16x1xf32>
    %cst_155 = arith.constant 9.99999974E-6 : f32
    %512 = vector.broadcast %cst_155 : f32 to vector<16x1xf32>
    %513 = arith.addf %511, %512 : vector<16x1xf32>
    %514 = math.rsqrt %513 : vector<16x1xf32>
    %515 = vector.broadcast %514 : vector<16x1xf32> to vector<16x64xf32>
    %516 = arith.mulf %506, %515 : vector<16x64xf32>
    %517 = vector.broadcast %499 : vector<1x64xf32> to vector<16x64xf32>
    %518 = arith.mulf %516, %517 : vector<16x64xf32>
    %519 = vector.broadcast %500 : vector<1x64xf32> to vector<16x64xf32>
    %520 = arith.addf %518, %519 : vector<16x64xf32>
    %521 = vector.extract_strided_slice %498 {offsets = [0, 0], sizes = [1, 64], strides = [1, 1]} : vector<7x128xf32> to vector<1x64xf32>
    %522 = vector.extract_strided_slice %498 {offsets = [1, 0], sizes = [1, 64], strides = [1, 1]} : vector<7x128xf32> to vector<1x64xf32>
    %cst_156 = arith.constant dense<0.000000e+00> : vector<16xf32>
    %523 = vector.multi_reduction <add>, %496, %cst_156 [1] : vector<16x64xf32> to vector<16xf32>
    %524 = vector.shape_cast %523 : vector<16xf32> to vector<16x1xf32>
    %cst_157 = arith.constant 6.400000e+01 : f32
    %525 = vector.broadcast %cst_157 : f32 to vector<16x1xf32>
    %526 = arith.divf %524, %525 : vector<16x1xf32>
    %527 = vector.broadcast %526 : vector<16x1xf32> to vector<16x64xf32>
    %528 = arith.subf %496, %527 : vector<16x64xf32>
    %529 = arith.mulf %528, %528 : vector<16x64xf32>
    %cst_158 = arith.constant dense<0.000000e+00> : vector<16xf32>
    %530 = vector.multi_reduction <add>, %529, %cst_158 [1] : vector<16x64xf32> to vector<16xf32>
    %531 = vector.shape_cast %530 : vector<16xf32> to vector<16x1xf32>
    %cst_159 = arith.constant 6.400000e+01 : f32
    %532 = vector.broadcast %cst_159 : f32 to vector<16x1xf32>
    %533 = arith.divf %531, %532 : vector<16x1xf32>
    %cst_160 = arith.constant 9.99999974E-6 : f32
    %534 = vector.broadcast %cst_160 : f32 to vector<16x1xf32>
    %535 = arith.addf %533, %534 : vector<16x1xf32>
    %536 = math.rsqrt %535 : vector<16x1xf32>
    %537 = vector.broadcast %536 : vector<16x1xf32> to vector<16x64xf32>
    %538 = arith.mulf %528, %537 : vector<16x64xf32>
    %539 = vector.broadcast %521 : vector<1x64xf32> to vector<16x64xf32>
    %540 = arith.mulf %538, %539 : vector<16x64xf32>
    %541 = vector.broadcast %522 : vector<1x64xf32> to vector<16x64xf32>
    %542 = arith.addf %540, %541 : vector<16x64xf32>
    %c2_161 = arith.constant 2 : index
    %c0_162 = arith.constant 0 : index
    %c0_163 = arith.constant 0 : index
    %543 = vector.load %arg4[%c2_161, %c0_162, %c0_163] : memref<4x64x64xbf16, #tpu.memory_space<vmem>>, vector<1x64x64xbf16>
    %544 = vector.shape_cast %543 : vector<1x64x64xbf16> to vector<64x64xbf16>
    %545 = arith.truncf %520 : vector<16x64xf32> to vector<16x64xbf16>
    %cst_164 = arith.constant dense<0.000000e+00> : vector<16x64xf32>
    %546 = tpu.matmul %545, %544, %cst_164 {dimension_numbers = #tpu.dot_dimension_numbers<[1], [0], [0], [1], [0, 0, 1, 1], [], []>} : vector<16x64xbf16>, vector<64x64xbf16>, vector<16x64xf32> -> vector<16x64xf32>
    %547 = vector.extract_strided_slice %498 {offsets = [4, 0], sizes = [1, 64], strides = [1, 1]} : vector<7x128xf32> to vector<1x64xf32>
    %548 = vector.broadcast %547 : vector<1x64xf32> to vector<16x64xf32>
    %549 = arith.addf %546, %548 : vector<16x64xf32>
    %c2_165 = arith.constant 2 : index
    %c0_166 = arith.constant 0 : index
    %c0_167 = arith.constant 0 : index
    %550 = vector.load %arg2[%c2_165, %c0_166, %c0_167] : memref<4x64x128xbf16, #tpu.memory_space<vmem>>, vector<1x64x128xbf16>
    %551 = vector.shape_cast %550 : vector<1x64x128xbf16> to vector<64x128xbf16>
    %552 = arith.truncf %542 : vector<16x64xf32> to vector<16x64xbf16>
    %cst_168 = arith.constant dense<0.000000e+00> : vector<16x128xf32>
    %553 = tpu.matmul %552, %551, %cst_168 {dimension_numbers = #tpu.dot_dimension_numbers<[1], [0], [0], [1], [0, 0, 1, 1], [], []>} : vector<16x64xbf16>, vector<64x128xbf16>, vector<16x128xf32> -> vector<16x128xf32>
    %554 = vector.extract_strided_slice %498 {offsets = [5, 0], sizes = [1, 128], strides = [1, 1]} : vector<7x128xf32> to vector<1x128xf32>
    %555 = vector.broadcast %554 : vector<1x128xf32> to vector<16x128xf32>
    %556 = arith.addf %553, %555 : vector<16x128xf32>
    %c2_169 = arith.constant 2 : index
    %c0_170 = arith.constant 0 : index
    %c0_171 = arith.constant 0 : index
    %557 = vector.load %arg3[%c2_169, %c0_170, %c0_171] : memref<4x64x64xbf16, #tpu.memory_space<vmem>>, vector<1x64x64xbf16>
    %558 = vector.shape_cast %557 : vector<1x64x64xbf16> to vector<64x64xbf16>
    %559 = vector.extract_strided_slice %498 {offsets = [6, 0], sizes = [1, 64], strides = [1, 1]} : vector<7x128xf32> to vector<1x64xf32>
    %560 = vector.extract_strided_slice %549 {offsets = [0, 0], sizes = [16, 16], strides = [1, 1]} : vector<16x64xf32> to vector<16x16xf32>
    %561 = vector.extract_strided_slice %549 {offsets = [0, 16], sizes = [16, 16], strides = [1, 1]} : vector<16x64xf32> to vector<16x16xf32>
    %562 = vector.extract_strided_slice %549 {offsets = [0, 32], sizes = [16, 16], strides = [1, 1]} : vector<16x64xf32> to vector<16x16xf32>
    %563 = vector.extract_strided_slice %549 {offsets = [0, 48], sizes = [16, 16], strides = [1, 1]} : vector<16x64xf32> to vector<16x16xf32>
    %564 = tpu.concatenate %560, %561, %562, %563 in 0 : vector<16x16xf32>, vector<16x16xf32>, vector<16x16xf32>, vector<16x16xf32> -> vector<64x16xf32>
    %565 = arith.truncf %564 : vector<64x16xf32> to vector<64x16xbf16>
    %566 = vector.extract_strided_slice %556 {offsets = [0, 0], sizes = [16, 16], strides = [1, 1]} : vector<16x128xf32> to vector<16x16xf32>
    %567 = vector.extract_strided_slice %556 {offsets = [0, 16], sizes = [16, 16], strides = [1, 1]} : vector<16x128xf32> to vector<16x16xf32>
    %568 = vector.extract_strided_slice %556 {offsets = [0, 32], sizes = [16, 16], strides = [1, 1]} : vector<16x128xf32> to vector<16x16xf32>
    %569 = vector.extract_strided_slice %556 {offsets = [0, 48], sizes = [16, 16], strides = [1, 1]} : vector<16x128xf32> to vector<16x16xf32>
    %570 = tpu.concatenate %566, %567, %568, %569 in 0 : vector<16x16xf32>, vector<16x16xf32>, vector<16x16xf32>, vector<16x16xf32> -> vector<64x16xf32>
    %571 = arith.truncf %570 : vector<64x16xf32> to vector<64x16xbf16>
    %572 = vector.extract_strided_slice %556 {offsets = [0, 64], sizes = [16, 16], strides = [1, 1]} : vector<16x128xf32> to vector<16x16xf32>
    %573 = vector.extract_strided_slice %556 {offsets = [0, 80], sizes = [16, 16], strides = [1, 1]} : vector<16x128xf32> to vector<16x16xf32>
    %574 = vector.extract_strided_slice %556 {offsets = [0, 96], sizes = [16, 16], strides = [1, 1]} : vector<16x128xf32> to vector<16x16xf32>
    %575 = vector.extract_strided_slice %556 {offsets = [0, 112], sizes = [16, 16], strides = [1, 1]} : vector<16x128xf32> to vector<16x16xf32>
    %576 = tpu.concatenate %572, %573, %574, %575 in 0 : vector<16x16xf32>, vector<16x16xf32>, vector<16x16xf32>, vector<16x16xf32> -> vector<64x16xf32>
    %577 = arith.truncf %576 : vector<64x16xf32> to vector<64x16xbf16>
    %cst_172 = arith.constant dense<0.000000e+00> : vector<64x64xf32>
    %578 = tpu.matmul %565, %571, %cst_172 {dimension_numbers = #tpu.dot_dimension_numbers<[1], [1], [0], [0], [0, 0, 1, 0], [], []>} : vector<64x16xbf16>, vector<64x16xbf16>, vector<64x64xf32> -> vector<64x64xf32>
    %c0_173 = arith.constant 0 : index
    %c0_174 = arith.constant 0 : index
    %579 = vector.load %arg14[%c0_173, %c0_174] : memref<64x64xf32, #tpu.memory_space<vmem>>, vector<64x64xf32>
    %580 = arith.addf %578, %579 : vector<64x64xf32>
    %cst_175 = arith.constant dense<0xFF800000> : vector<64xf32>
    %581 = vector.multi_reduction <maximumf>, %580, %cst_175 [1] : vector<64x64xf32> to vector<64xf32>
    %582 = vector.shape_cast %581 : vector<64xf32> to vector<64x1xf32>
    %583 = vector.broadcast %582 : vector<64x1xf32> to vector<64x64xf32>
    %584 = arith.subf %580, %583 : vector<64x64xf32>
    %585 = math.exp %584 : vector<64x64xf32>
    %cst_176 = arith.constant dense<0.000000e+00> : vector<64xf32>
    %586 = vector.multi_reduction <add>, %585, %cst_176 [1] : vector<64x64xf32> to vector<64xf32>
    %587 = vector.shape_cast %586 : vector<64xf32> to vector<64x1xf32>
    %588 = tpu.reciprocal %587 {approx = true} : vector<64x1xf32> -> vector<64x1xf32>
    %589 = vector.broadcast %588 : vector<64x1xf32> to vector<64x64xf32>
    %590 = arith.mulf %585, %589 : vector<64x64xf32>
    %591 = arith.truncf %590 : vector<64x64xf32> to vector<64x64xbf16>
    %cst_177 = arith.constant dense<0.000000e+00> : vector<64x16xf32>
    %592 = tpu.matmul %591, %577, %cst_177 {dimension_numbers = #tpu.dot_dimension_numbers<[1], [0], [0], [1], [0, 0, 1, 1], [], []>} : vector<64x64xbf16>, vector<64x16xbf16>, vector<64x16xf32> -> vector<64x16xf32>
    %593 = vector.extract_strided_slice %592 {offsets = [0, 0], sizes = [16, 16], strides = [1, 1]} : vector<64x16xf32> to vector<16x16xf32>
    %594 = vector.extract_strided_slice %592 {offsets = [16, 0], sizes = [16, 16], strides = [1, 1]} : vector<64x16xf32> to vector<16x16xf32>
    %595 = vector.extract_strided_slice %592 {offsets = [32, 0], sizes = [16, 16], strides = [1, 1]} : vector<64x16xf32> to vector<16x16xf32>
    %596 = vector.extract_strided_slice %592 {offsets = [48, 0], sizes = [16, 16], strides = [1, 1]} : vector<64x16xf32> to vector<16x16xf32>
    %597 = tpu.concatenate %593, %594, %595, %596 in 1 : vector<16x16xf32>, vector<16x16xf32>, vector<16x16xf32>, vector<16x16xf32> -> vector<16x64xf32>
    %598 = arith.truncf %597 : vector<16x64xf32> to vector<16x64xbf16>
    %cst_178 = arith.constant dense<0.000000e+00> : vector<16x64xf32>
    %599 = tpu.matmul %598, %558, %cst_178 {dimension_numbers = #tpu.dot_dimension_numbers<[1], [0], [0], [1], [0, 0, 1, 1], [], []>} : vector<16x64xbf16>, vector<64x64xbf16>, vector<16x64xf32> -> vector<16x64xf32>
    %600 = vector.broadcast %559 : vector<1x64xf32> to vector<16x64xf32>
    %601 = arith.addf %599, %600 : vector<16x64xf32>
    %602 = arith.addf %368, %601 : vector<16x64xf32>
    %603 = vector.extract_strided_slice %498 {offsets = [2, 0], sizes = [1, 64], strides = [1, 1]} : vector<7x128xf32> to vector<1x64xf32>
    %604 = vector.extract_strided_slice %498 {offsets = [3, 0], sizes = [1, 64], strides = [1, 1]} : vector<7x128xf32> to vector<1x64xf32>
    %cst_179 = arith.constant dense<0.000000e+00> : vector<16xf32>
    %605 = vector.multi_reduction <add>, %602, %cst_179 [1] : vector<16x64xf32> to vector<16xf32>
    %606 = vector.shape_cast %605 : vector<16xf32> to vector<16x1xf32>
    %cst_180 = arith.constant 6.400000e+01 : f32
    %607 = vector.broadcast %cst_180 : f32 to vector<16x1xf32>
    %608 = arith.divf %606, %607 : vector<16x1xf32>
    %609 = vector.broadcast %608 : vector<16x1xf32> to vector<16x64xf32>
    %610 = arith.subf %602, %609 : vector<16x64xf32>
    %611 = arith.mulf %610, %610 : vector<16x64xf32>
    %cst_181 = arith.constant dense<0.000000e+00> : vector<16xf32>
    %612 = vector.multi_reduction <add>, %611, %cst_181 [1] : vector<16x64xf32> to vector<16xf32>
    %613 = vector.shape_cast %612 : vector<16xf32> to vector<16x1xf32>
    %cst_182 = arith.constant 6.400000e+01 : f32
    %614 = vector.broadcast %cst_182 : f32 to vector<16x1xf32>
    %615 = arith.divf %613, %614 : vector<16x1xf32>
    %cst_183 = arith.constant 9.99999974E-6 : f32
    %616 = vector.broadcast %cst_183 : f32 to vector<16x1xf32>
    %617 = arith.addf %615, %616 : vector<16x1xf32>
    %618 = math.rsqrt %617 : vector<16x1xf32>
    %619 = vector.broadcast %618 : vector<16x1xf32> to vector<16x64xf32>
    %620 = arith.mulf %610, %619 : vector<16x64xf32>
    %621 = vector.broadcast %603 : vector<1x64xf32> to vector<16x64xf32>
    %622 = arith.mulf %620, %621 : vector<16x64xf32>
    %623 = vector.broadcast %604 : vector<1x64xf32> to vector<16x64xf32>
    %624 = arith.addf %622, %623 : vector<16x64xf32>
    %c3 = arith.constant 3 : index
    %c0_184 = arith.constant 0 : index
    %c0_185 = arith.constant 0 : index
    %625 = vector.load %arg1[%c3, %c0_184, %c0_185] : memref<4x7x128xf32, #tpu.memory_space<vmem>>, vector<1x7x128xf32>
    %626 = vector.shape_cast %625 : vector<1x7x128xf32> to vector<7x128xf32>
    %627 = vector.extract_strided_slice %626 {offsets = [0, 0], sizes = [1, 64], strides = [1, 1]} : vector<7x128xf32> to vector<1x64xf32>
    %628 = vector.extract_strided_slice %626 {offsets = [1, 0], sizes = [1, 64], strides = [1, 1]} : vector<7x128xf32> to vector<1x64xf32>
    %cst_186 = arith.constant dense<0.000000e+00> : vector<16xf32>
    %629 = vector.multi_reduction <add>, %496, %cst_186 [1] : vector<16x64xf32> to vector<16xf32>
    %630 = vector.shape_cast %629 : vector<16xf32> to vector<16x1xf32>
    %cst_187 = arith.constant 6.400000e+01 : f32
    %631 = vector.broadcast %cst_187 : f32 to vector<16x1xf32>
    %632 = arith.divf %630, %631 : vector<16x1xf32>
    %633 = vector.broadcast %632 : vector<16x1xf32> to vector<16x64xf32>
    %634 = arith.subf %496, %633 : vector<16x64xf32>
    %635 = arith.mulf %634, %634 : vector<16x64xf32>
    %cst_188 = arith.constant dense<0.000000e+00> : vector<16xf32>
    %636 = vector.multi_reduction <add>, %635, %cst_188 [1] : vector<16x64xf32> to vector<16xf32>
    %637 = vector.shape_cast %636 : vector<16xf32> to vector<16x1xf32>
    %cst_189 = arith.constant 6.400000e+01 : f32
    %638 = vector.broadcast %cst_189 : f32 to vector<16x1xf32>
    %639 = arith.divf %637, %638 : vector<16x1xf32>
    %cst_190 = arith.constant 9.99999974E-6 : f32
    %640 = vector.broadcast %cst_190 : f32 to vector<16x1xf32>
    %641 = arith.addf %639, %640 : vector<16x1xf32>
    %642 = math.rsqrt %641 : vector<16x1xf32>
    %643 = vector.broadcast %642 : vector<16x1xf32> to vector<16x64xf32>
    %644 = arith.mulf %634, %643 : vector<16x64xf32>
    %645 = vector.broadcast %627 : vector<1x64xf32> to vector<16x64xf32>
    %646 = arith.mulf %644, %645 : vector<16x64xf32>
    %647 = vector.broadcast %628 : vector<1x64xf32> to vector<16x64xf32>
    %648 = arith.addf %646, %647 : vector<16x64xf32>
    %649 = vector.extract_strided_slice %626 {offsets = [0, 0], sizes = [1, 64], strides = [1, 1]} : vector<7x128xf32> to vector<1x64xf32>
    %650 = vector.extract_strided_slice %626 {offsets = [1, 0], sizes = [1, 64], strides = [1, 1]} : vector<7x128xf32> to vector<1x64xf32>
    %cst_191 = arith.constant dense<0.000000e+00> : vector<16xf32>
    %651 = vector.multi_reduction <add>, %368, %cst_191 [1] : vector<16x64xf32> to vector<16xf32>
    %652 = vector.shape_cast %651 : vector<16xf32> to vector<16x1xf32>
    %cst_192 = arith.constant 6.400000e+01 : f32
    %653 = vector.broadcast %cst_192 : f32 to vector<16x1xf32>
    %654 = arith.divf %652, %653 : vector<16x1xf32>
    %655 = vector.broadcast %654 : vector<16x1xf32> to vector<16x64xf32>
    %656 = arith.subf %368, %655 : vector<16x64xf32>
    %657 = arith.mulf %656, %656 : vector<16x64xf32>
    %cst_193 = arith.constant dense<0.000000e+00> : vector<16xf32>
    %658 = vector.multi_reduction <add>, %657, %cst_193 [1] : vector<16x64xf32> to vector<16xf32>
    %659 = vector.shape_cast %658 : vector<16xf32> to vector<16x1xf32>
    %cst_194 = arith.constant 6.400000e+01 : f32
    %660 = vector.broadcast %cst_194 : f32 to vector<16x1xf32>
    %661 = arith.divf %659, %660 : vector<16x1xf32>
    %cst_195 = arith.constant 9.99999974E-6 : f32
    %662 = vector.broadcast %cst_195 : f32 to vector<16x1xf32>
    %663 = arith.addf %661, %662 : vector<16x1xf32>
    %664 = math.rsqrt %663 : vector<16x1xf32>
    %665 = vector.broadcast %664 : vector<16x1xf32> to vector<16x64xf32>
    %666 = arith.mulf %656, %665 : vector<16x64xf32>
    %667 = vector.broadcast %649 : vector<1x64xf32> to vector<16x64xf32>
    %668 = arith.mulf %666, %667 : vector<16x64xf32>
    %669 = vector.broadcast %650 : vector<1x64xf32> to vector<16x64xf32>
    %670 = arith.addf %668, %669 : vector<16x64xf32>
    %c3_196 = arith.constant 3 : index
    %c0_197 = arith.constant 0 : index
    %c0_198 = arith.constant 0 : index
    %671 = vector.load %arg4[%c3_196, %c0_197, %c0_198] : memref<4x64x64xbf16, #tpu.memory_space<vmem>>, vector<1x64x64xbf16>
    %672 = vector.shape_cast %671 : vector<1x64x64xbf16> to vector<64x64xbf16>
    %673 = arith.truncf %648 : vector<16x64xf32> to vector<16x64xbf16>
    %cst_199 = arith.constant dense<0.000000e+00> : vector<16x64xf32>
    %674 = tpu.matmul %673, %672, %cst_199 {dimension_numbers = #tpu.dot_dimension_numbers<[1], [0], [0], [1], [0, 0, 1, 1], [], []>} : vector<16x64xbf16>, vector<64x64xbf16>, vector<16x64xf32> -> vector<16x64xf32>
    %675 = vector.extract_strided_slice %626 {offsets = [4, 0], sizes = [1, 64], strides = [1, 1]} : vector<7x128xf32> to vector<1x64xf32>
    %676 = vector.broadcast %675 : vector<1x64xf32> to vector<16x64xf32>
    %677 = arith.addf %674, %676 : vector<16x64xf32>
    %c3_200 = arith.constant 3 : index
    %c0_201 = arith.constant 0 : index
    %c0_202 = arith.constant 0 : index
    %678 = vector.load %arg2[%c3_200, %c0_201, %c0_202] : memref<4x64x128xbf16, #tpu.memory_space<vmem>>, vector<1x64x128xbf16>
    %679 = vector.shape_cast %678 : vector<1x64x128xbf16> to vector<64x128xbf16>
    %680 = arith.truncf %670 : vector<16x64xf32> to vector<16x64xbf16>
    %cst_203 = arith.constant dense<0.000000e+00> : vector<16x128xf32>
    %681 = tpu.matmul %680, %679, %cst_203 {dimension_numbers = #tpu.dot_dimension_numbers<[1], [0], [0], [1], [0, 0, 1, 1], [], []>} : vector<16x64xbf16>, vector<64x128xbf16>, vector<16x128xf32> -> vector<16x128xf32>
    %682 = vector.extract_strided_slice %626 {offsets = [5, 0], sizes = [1, 128], strides = [1, 1]} : vector<7x128xf32> to vector<1x128xf32>
    %683 = vector.broadcast %682 : vector<1x128xf32> to vector<16x128xf32>
    %684 = arith.addf %681, %683 : vector<16x128xf32>
    %c3_204 = arith.constant 3 : index
    %c0_205 = arith.constant 0 : index
    %c0_206 = arith.constant 0 : index
    %685 = vector.load %arg3[%c3_204, %c0_205, %c0_206] : memref<4x64x64xbf16, #tpu.memory_space<vmem>>, vector<1x64x64xbf16>
    %686 = vector.shape_cast %685 : vector<1x64x64xbf16> to vector<64x64xbf16>
    %687 = vector.extract_strided_slice %626 {offsets = [6, 0], sizes = [1, 64], strides = [1, 1]} : vector<7x128xf32> to vector<1x64xf32>
    %688 = vector.extract_strided_slice %677 {offsets = [0, 0], sizes = [16, 16], strides = [1, 1]} : vector<16x64xf32> to vector<16x16xf32>
    %689 = vector.extract_strided_slice %677 {offsets = [0, 16], sizes = [16, 16], strides = [1, 1]} : vector<16x64xf32> to vector<16x16xf32>
    %690 = vector.extract_strided_slice %677 {offsets = [0, 32], sizes = [16, 16], strides = [1, 1]} : vector<16x64xf32> to vector<16x16xf32>
    %691 = vector.extract_strided_slice %677 {offsets = [0, 48], sizes = [16, 16], strides = [1, 1]} : vector<16x64xf32> to vector<16x16xf32>
    %692 = tpu.concatenate %688, %689, %690, %691 in 0 : vector<16x16xf32>, vector<16x16xf32>, vector<16x16xf32>, vector<16x16xf32> -> vector<64x16xf32>
    %693 = arith.truncf %692 : vector<64x16xf32> to vector<64x16xbf16>
    %694 = vector.extract_strided_slice %684 {offsets = [0, 0], sizes = [16, 16], strides = [1, 1]} : vector<16x128xf32> to vector<16x16xf32>
    %695 = vector.extract_strided_slice %684 {offsets = [0, 16], sizes = [16, 16], strides = [1, 1]} : vector<16x128xf32> to vector<16x16xf32>
    %696 = vector.extract_strided_slice %684 {offsets = [0, 32], sizes = [16, 16], strides = [1, 1]} : vector<16x128xf32> to vector<16x16xf32>
    %697 = vector.extract_strided_slice %684 {offsets = [0, 48], sizes = [16, 16], strides = [1, 1]} : vector<16x128xf32> to vector<16x16xf32>
    %698 = tpu.concatenate %694, %695, %696, %697 in 0 : vector<16x16xf32>, vector<16x16xf32>, vector<16x16xf32>, vector<16x16xf32> -> vector<64x16xf32>
    %699 = arith.truncf %698 : vector<64x16xf32> to vector<64x16xbf16>
    %700 = vector.extract_strided_slice %684 {offsets = [0, 64], sizes = [16, 16], strides = [1, 1]} : vector<16x128xf32> to vector<16x16xf32>
    %701 = vector.extract_strided_slice %684 {offsets = [0, 80], sizes = [16, 16], strides = [1, 1]} : vector<16x128xf32> to vector<16x16xf32>
    %702 = vector.extract_strided_slice %684 {offsets = [0, 96], sizes = [16, 16], strides = [1, 1]} : vector<16x128xf32> to vector<16x16xf32>
    %703 = vector.extract_strided_slice %684 {offsets = [0, 112], sizes = [16, 16], strides = [1, 1]} : vector<16x128xf32> to vector<16x16xf32>
    %704 = tpu.concatenate %700, %701, %702, %703 in 0 : vector<16x16xf32>, vector<16x16xf32>, vector<16x16xf32>, vector<16x16xf32> -> vector<64x16xf32>
    %705 = arith.truncf %704 : vector<64x16xf32> to vector<64x16xbf16>
    %cst_207 = arith.constant dense<0.000000e+00> : vector<64x64xf32>
    %706 = tpu.matmul %693, %699, %cst_207 {dimension_numbers = #tpu.dot_dimension_numbers<[1], [1], [0], [0], [0, 0, 1, 0], [], []>} : vector<64x16xbf16>, vector<64x16xbf16>, vector<64x64xf32> -> vector<64x64xf32>
    %c0_208 = arith.constant 0 : index
    %c0_209 = arith.constant 0 : index
    %707 = vector.load %arg14[%c0_208, %c0_209] : memref<64x64xf32, #tpu.memory_space<vmem>>, vector<64x64xf32>
    %708 = arith.addf %706, %707 : vector<64x64xf32>
    %cst_210 = arith.constant dense<0xFF800000> : vector<64xf32>
    %709 = vector.multi_reduction <maximumf>, %708, %cst_210 [1] : vector<64x64xf32> to vector<64xf32>
    %710 = vector.shape_cast %709 : vector<64xf32> to vector<64x1xf32>
    %711 = vector.broadcast %710 : vector<64x1xf32> to vector<64x64xf32>
    %712 = arith.subf %708, %711 : vector<64x64xf32>
    %713 = math.exp %712 : vector<64x64xf32>
    %cst_211 = arith.constant dense<0.000000e+00> : vector<64xf32>
    %714 = vector.multi_reduction <add>, %713, %cst_211 [1] : vector<64x64xf32> to vector<64xf32>
    %715 = vector.shape_cast %714 : vector<64xf32> to vector<64x1xf32>
    %716 = tpu.reciprocal %715 {approx = true} : vector<64x1xf32> -> vector<64x1xf32>
    %717 = vector.broadcast %716 : vector<64x1xf32> to vector<64x64xf32>
    %718 = arith.mulf %713, %717 : vector<64x64xf32>
    %719 = arith.truncf %718 : vector<64x64xf32> to vector<64x64xbf16>
    %cst_212 = arith.constant dense<0.000000e+00> : vector<64x16xf32>
    %720 = tpu.matmul %719, %705, %cst_212 {dimension_numbers = #tpu.dot_dimension_numbers<[1], [0], [0], [1], [0, 0, 1, 1], [], []>} : vector<64x64xbf16>, vector<64x16xbf16>, vector<64x16xf32> -> vector<64x16xf32>
    %721 = vector.extract_strided_slice %720 {offsets = [0, 0], sizes = [16, 16], strides = [1, 1]} : vector<64x16xf32> to vector<16x16xf32>
    %722 = vector.extract_strided_slice %720 {offsets = [16, 0], sizes = [16, 16], strides = [1, 1]} : vector<64x16xf32> to vector<16x16xf32>
    %723 = vector.extract_strided_slice %720 {offsets = [32, 0], sizes = [16, 16], strides = [1, 1]} : vector<64x16xf32> to vector<16x16xf32>
    %724 = vector.extract_strided_slice %720 {offsets = [48, 0], sizes = [16, 16], strides = [1, 1]} : vector<64x16xf32> to vector<16x16xf32>
    %725 = tpu.concatenate %721, %722, %723, %724 in 1 : vector<16x16xf32>, vector<16x16xf32>, vector<16x16xf32>, vector<16x16xf32> -> vector<16x64xf32>
    %726 = arith.truncf %725 : vector<16x64xf32> to vector<16x64xbf16>
    %cst_213 = arith.constant dense<0.000000e+00> : vector<16x64xf32>
    %727 = tpu.matmul %726, %686, %cst_213 {dimension_numbers = #tpu.dot_dimension_numbers<[1], [0], [0], [1], [0, 0, 1, 1], [], []>} : vector<16x64xbf16>, vector<64x64xbf16>, vector<16x64xf32> -> vector<16x64xf32>
    %728 = vector.broadcast %687 : vector<1x64xf32> to vector<16x64xf32>
    %729 = arith.addf %727, %728 : vector<16x64xf32>
    %730 = arith.addf %496, %729 : vector<16x64xf32>
    %731 = vector.extract_strided_slice %626 {offsets = [2, 0], sizes = [1, 64], strides = [1, 1]} : vector<7x128xf32> to vector<1x64xf32>
    %732 = vector.extract_strided_slice %626 {offsets = [3, 0], sizes = [1, 64], strides = [1, 1]} : vector<7x128xf32> to vector<1x64xf32>
    %cst_214 = arith.constant dense<0.000000e+00> : vector<16xf32>
    %733 = vector.multi_reduction <add>, %730, %cst_214 [1] : vector<16x64xf32> to vector<16xf32>
    %734 = vector.shape_cast %733 : vector<16xf32> to vector<16x1xf32>
    %cst_215 = arith.constant 6.400000e+01 : f32
    %735 = vector.broadcast %cst_215 : f32 to vector<16x1xf32>
    %736 = arith.divf %734, %735 : vector<16x1xf32>
    %737 = vector.broadcast %736 : vector<16x1xf32> to vector<16x64xf32>
    %738 = arith.subf %730, %737 : vector<16x64xf32>
    %739 = arith.mulf %738, %738 : vector<16x64xf32>
    %cst_216 = arith.constant dense<0.000000e+00> : vector<16xf32>
    %740 = vector.multi_reduction <add>, %739, %cst_216 [1] : vector<16x64xf32> to vector<16xf32>
    %741 = vector.shape_cast %740 : vector<16xf32> to vector<16x1xf32>
    %cst_217 = arith.constant 6.400000e+01 : f32
    %742 = vector.broadcast %cst_217 : f32 to vector<16x1xf32>
    %743 = arith.divf %741, %742 : vector<16x1xf32>
    %cst_218 = arith.constant 9.99999974E-6 : f32
    %744 = vector.broadcast %cst_218 : f32 to vector<16x1xf32>
    %745 = arith.addf %743, %744 : vector<16x1xf32>
    %746 = math.rsqrt %745 : vector<16x1xf32>
    %747 = vector.broadcast %746 : vector<16x1xf32> to vector<16x64xf32>
    %748 = arith.mulf %738, %747 : vector<16x64xf32>
    %749 = vector.broadcast %731 : vector<1x64xf32> to vector<16x64xf32>
    %750 = arith.mulf %748, %749 : vector<16x64xf32>
    %751 = vector.broadcast %732 : vector<1x64xf32> to vector<16x64xf32>
    %752 = arith.addf %750, %751 : vector<16x64xf32>
    %753 = tpu.concatenate %624, %752 in 0 : vector<16x64xf32>, vector<16x64xf32> -> vector<32x64xf32>
    %c2_219 = arith.constant 2 : index
    %c0_220 = arith.constant 0 : index
    %c0_221 = arith.constant 0 : index
    %754 = vector.load %arg5[%c2_219, %c0_220, %c0_221] : memref<4x8x192xf32, #tpu.memory_space<vmem>>, vector<1x8x192xf32>
    %755 = vector.shape_cast %754 : vector<1x8x192xf32> to vector<8x192xf32>
    %756 = vector.extract_strided_slice %755 {offsets = [0, 0], sizes = [1, 64], strides = [1, 1]} : vector<8x192xf32> to vector<1x64xf32>
    %757 = vector.extract_strided_slice %755 {offsets = [1, 0], sizes = [1, 64], strides = [1, 1]} : vector<8x192xf32> to vector<1x64xf32>
    %cst_222 = arith.constant dense<0.000000e+00> : vector<32xf32>
    %758 = vector.multi_reduction <add>, %753, %cst_222 [1] : vector<32x64xf32> to vector<32xf32>
    %759 = vector.shape_cast %758 : vector<32xf32> to vector<32x1xf32>
    %cst_223 = arith.constant 6.400000e+01 : f32
    %760 = vector.broadcast %cst_223 : f32 to vector<32x1xf32>
    %761 = arith.divf %759, %760 : vector<32x1xf32>
    %762 = vector.broadcast %761 : vector<32x1xf32> to vector<32x64xf32>
    %763 = arith.subf %753, %762 : vector<32x64xf32>
    %764 = arith.mulf %763, %763 : vector<32x64xf32>
    %cst_224 = arith.constant dense<0.000000e+00> : vector<32xf32>
    %765 = vector.multi_reduction <add>, %764, %cst_224 [1] : vector<32x64xf32> to vector<32xf32>
    %766 = vector.shape_cast %765 : vector<32xf32> to vector<32x1xf32>
    %cst_225 = arith.constant 6.400000e+01 : f32
    %767 = vector.broadcast %cst_225 : f32 to vector<32x1xf32>
    %768 = arith.divf %766, %767 : vector<32x1xf32>
    %cst_226 = arith.constant 9.99999974E-6 : f32
    %769 = vector.broadcast %cst_226 : f32 to vector<32x1xf32>
    %770 = arith.addf %768, %769 : vector<32x1xf32>
    %771 = math.rsqrt %770 : vector<32x1xf32>
    %772 = vector.broadcast %771 : vector<32x1xf32> to vector<32x64xf32>
    %773 = arith.mulf %763, %772 : vector<32x64xf32>
    %774 = vector.broadcast %756 : vector<1x64xf32> to vector<32x64xf32>
    %775 = arith.mulf %773, %774 : vector<32x64xf32>
    %776 = vector.broadcast %757 : vector<1x64xf32> to vector<32x64xf32>
    %777 = arith.addf %775, %776 : vector<32x64xf32>
    %c2_227 = arith.constant 2 : index
    %c0_228 = arith.constant 0 : index
    %c0_229 = arith.constant 0 : index
    %778 = vector.load %arg8[%c2_227, %c0_228, %c0_229] : memref<4x64x192xbf16, #tpu.memory_space<vmem>>, vector<1x64x192xbf16>
    %779 = vector.shape_cast %778 : vector<1x64x192xbf16> to vector<64x192xbf16>
    %780 = arith.truncf %777 : vector<32x64xf32> to vector<32x64xbf16>
    %cst_230 = arith.constant dense<0.000000e+00> : vector<32x192xf32>
    %781 = tpu.matmul %780, %779, %cst_230 {dimension_numbers = #tpu.dot_dimension_numbers<[1], [0], [0], [1], [0, 0, 1, 1], [], []>} : vector<32x64xbf16>, vector<64x192xbf16>, vector<32x192xf32> -> vector<32x192xf32>
    %782 = vector.extract_strided_slice %755 {offsets = [4, 0], sizes = [1, 192], strides = [1, 1]} : vector<8x192xf32> to vector<1x192xf32>
    %783 = vector.broadcast %782 : vector<1x192xf32> to vector<32x192xf32>
    %784 = arith.addf %781, %783 : vector<32x192xf32>
    %c2_231 = arith.constant 2 : index
    %c0_232 = arith.constant 0 : index
    %c0_233 = arith.constant 0 : index
    %785 = vector.load %arg9[%c2_231, %c0_232, %c0_233] : memref<4x64x64xbf16, #tpu.memory_space<vmem>>, vector<1x64x64xbf16>
    %786 = vector.shape_cast %785 : vector<1x64x64xbf16> to vector<64x64xbf16>
    %787 = vector.extract_strided_slice %755 {offsets = [5, 0], sizes = [1, 64], strides = [1, 1]} : vector<8x192xf32> to vector<1x64xf32>
    %788 = vector.extract_strided_slice %784 {offsets = [0, 0], sizes = [32, 16], strides = [1, 1]} : vector<32x192xf32> to vector<32x16xf32>
    %789 = vector.extract_strided_slice %784 {offsets = [0, 16], sizes = [32, 16], strides = [1, 1]} : vector<32x192xf32> to vector<32x16xf32>
    %790 = vector.extract_strided_slice %784 {offsets = [0, 32], sizes = [32, 16], strides = [1, 1]} : vector<32x192xf32> to vector<32x16xf32>
    %791 = vector.extract_strided_slice %784 {offsets = [0, 48], sizes = [32, 16], strides = [1, 1]} : vector<32x192xf32> to vector<32x16xf32>
    %792 = tpu.concatenate %788, %789, %790, %791 in 0 : vector<32x16xf32>, vector<32x16xf32>, vector<32x16xf32>, vector<32x16xf32> -> vector<128x16xf32>
    %793 = arith.truncf %792 : vector<128x16xf32> to vector<128x16xbf16>
    %794 = vector.extract_strided_slice %784 {offsets = [0, 64], sizes = [32, 16], strides = [1, 1]} : vector<32x192xf32> to vector<32x16xf32>
    %795 = vector.extract_strided_slice %784 {offsets = [0, 80], sizes = [32, 16], strides = [1, 1]} : vector<32x192xf32> to vector<32x16xf32>
    %796 = vector.extract_strided_slice %784 {offsets = [0, 96], sizes = [32, 16], strides = [1, 1]} : vector<32x192xf32> to vector<32x16xf32>
    %797 = vector.extract_strided_slice %784 {offsets = [0, 112], sizes = [32, 16], strides = [1, 1]} : vector<32x192xf32> to vector<32x16xf32>
    %798 = tpu.concatenate %794, %795, %796, %797 in 0 : vector<32x16xf32>, vector<32x16xf32>, vector<32x16xf32>, vector<32x16xf32> -> vector<128x16xf32>
    %799 = arith.truncf %798 : vector<128x16xf32> to vector<128x16xbf16>
    %800 = vector.extract_strided_slice %784 {offsets = [0, 128], sizes = [32, 16], strides = [1, 1]} : vector<32x192xf32> to vector<32x16xf32>
    %801 = vector.extract_strided_slice %784 {offsets = [0, 144], sizes = [32, 16], strides = [1, 1]} : vector<32x192xf32> to vector<32x16xf32>
    %802 = vector.extract_strided_slice %784 {offsets = [0, 160], sizes = [32, 16], strides = [1, 1]} : vector<32x192xf32> to vector<32x16xf32>
    %803 = vector.extract_strided_slice %784 {offsets = [0, 176], sizes = [32, 16], strides = [1, 1]} : vector<32x192xf32> to vector<32x16xf32>
    %804 = tpu.concatenate %800, %801, %802, %803 in 0 : vector<32x16xf32>, vector<32x16xf32>, vector<32x16xf32>, vector<32x16xf32> -> vector<128x16xf32>
    %805 = arith.truncf %804 : vector<128x16xf32> to vector<128x16xbf16>
    %cst_234 = arith.constant dense<0.000000e+00> : vector<128x128xf32>
    %806 = tpu.matmul %793, %799, %cst_234 {dimension_numbers = #tpu.dot_dimension_numbers<[1], [1], [0], [0], [0, 0, 1, 0], [], []>} : vector<128x16xbf16>, vector<128x16xbf16>, vector<128x128xf32> -> vector<128x128xf32>
    %c0_235 = arith.constant 0 : index
    %c0_236 = arith.constant 0 : index
    %807 = vector.load %arg15[%c0_235, %c0_236] : memref<128x128xf32, #tpu.memory_space<vmem>>, vector<128x128xf32>
    %808 = arith.addf %806, %807 : vector<128x128xf32>
    %cst_237 = arith.constant dense<0xFF800000> : vector<128xf32>
    %809 = vector.multi_reduction <maximumf>, %808, %cst_237 [1] : vector<128x128xf32> to vector<128xf32>
    %810 = vector.shape_cast %809 : vector<128xf32> to vector<128x1xf32>
    %811 = vector.broadcast %810 : vector<128x1xf32> to vector<128x128xf32>
    %812 = arith.subf %808, %811 : vector<128x128xf32>
    %813 = math.exp %812 : vector<128x128xf32>
    %cst_238 = arith.constant dense<0.000000e+00> : vector<128xf32>
    %814 = vector.multi_reduction <add>, %813, %cst_238 [1] : vector<128x128xf32> to vector<128xf32>
    %815 = vector.shape_cast %814 : vector<128xf32> to vector<128x1xf32>
    %816 = tpu.reciprocal %815 {approx = true} : vector<128x1xf32> -> vector<128x1xf32>
    %817 = vector.broadcast %816 : vector<128x1xf32> to vector<128x128xf32>
    %818 = arith.mulf %813, %817 : vector<128x128xf32>
    %819 = arith.truncf %818 : vector<128x128xf32> to vector<128x128xbf16>
    %cst_239 = arith.constant dense<0.000000e+00> : vector<128x16xf32>
    %820 = tpu.matmul %819, %805, %cst_239 {dimension_numbers = #tpu.dot_dimension_numbers<[1], [0], [0], [1], [0, 0, 1, 1], [], []>} : vector<128x128xbf16>, vector<128x16xbf16>, vector<128x16xf32> -> vector<128x16xf32>
    %821 = vector.extract_strided_slice %820 {offsets = [0, 0], sizes = [32, 16], strides = [1, 1]} : vector<128x16xf32> to vector<32x16xf32>
    %822 = vector.extract_strided_slice %820 {offsets = [32, 0], sizes = [32, 16], strides = [1, 1]} : vector<128x16xf32> to vector<32x16xf32>
    %823 = vector.extract_strided_slice %820 {offsets = [64, 0], sizes = [32, 16], strides = [1, 1]} : vector<128x16xf32> to vector<32x16xf32>
    %824 = vector.extract_strided_slice %820 {offsets = [96, 0], sizes = [32, 16], strides = [1, 1]} : vector<128x16xf32> to vector<32x16xf32>
    %825 = tpu.concatenate %821, %822, %823, %824 in 1 : vector<32x16xf32>, vector<32x16xf32>, vector<32x16xf32>, vector<32x16xf32> -> vector<32x64xf32>
    %826 = arith.truncf %825 : vector<32x64xf32> to vector<32x64xbf16>
    %cst_240 = arith.constant dense<0.000000e+00> : vector<32x64xf32>
    %827 = tpu.matmul %826, %786, %cst_240 {dimension_numbers = #tpu.dot_dimension_numbers<[1], [0], [0], [1], [0, 0, 1, 1], [], []>} : vector<32x64xbf16>, vector<64x64xbf16>, vector<32x64xf32> -> vector<32x64xf32>
    %828 = vector.broadcast %787 : vector<1x64xf32> to vector<32x64xf32>
    %829 = arith.addf %827, %828 : vector<32x64xf32>
    %830 = arith.addf %753, %829 : vector<32x64xf32>
    %831 = vector.extract_strided_slice %755 {offsets = [2, 0], sizes = [1, 64], strides = [1, 1]} : vector<8x192xf32> to vector<1x64xf32>
    %832 = vector.extract_strided_slice %755 {offsets = [3, 0], sizes = [1, 64], strides = [1, 1]} : vector<8x192xf32> to vector<1x64xf32>
    %cst_241 = arith.constant dense<0.000000e+00> : vector<32xf32>
    %833 = vector.multi_reduction <add>, %830, %cst_241 [1] : vector<32x64xf32> to vector<32xf32>
    %834 = vector.shape_cast %833 : vector<32xf32> to vector<32x1xf32>
    %cst_242 = arith.constant 6.400000e+01 : f32
    %835 = vector.broadcast %cst_242 : f32 to vector<32x1xf32>
    %836 = arith.divf %834, %835 : vector<32x1xf32>
    %837 = vector.broadcast %836 : vector<32x1xf32> to vector<32x64xf32>
    %838 = arith.subf %830, %837 : vector<32x64xf32>
    %839 = arith.mulf %838, %838 : vector<32x64xf32>
    %cst_243 = arith.constant dense<0.000000e+00> : vector<32xf32>
    %840 = vector.multi_reduction <add>, %839, %cst_243 [1] : vector<32x64xf32> to vector<32xf32>
    %841 = vector.shape_cast %840 : vector<32xf32> to vector<32x1xf32>
    %cst_244 = arith.constant 6.400000e+01 : f32
    %842 = vector.broadcast %cst_244 : f32 to vector<32x1xf32>
    %843 = arith.divf %841, %842 : vector<32x1xf32>
    %cst_245 = arith.constant 9.99999974E-6 : f32
    %844 = vector.broadcast %cst_245 : f32 to vector<32x1xf32>
    %845 = arith.addf %843, %844 : vector<32x1xf32>
    %846 = math.rsqrt %845 : vector<32x1xf32>
    %847 = vector.broadcast %846 : vector<32x1xf32> to vector<32x64xf32>
    %848 = arith.mulf %838, %847 : vector<32x64xf32>
    %849 = vector.broadcast %831 : vector<1x64xf32> to vector<32x64xf32>
    %850 = arith.mulf %848, %849 : vector<32x64xf32>
    %851 = vector.broadcast %832 : vector<1x64xf32> to vector<32x64xf32>
    %852 = arith.addf %850, %851 : vector<32x64xf32>
    %c2_246 = arith.constant 2 : index
    %c0_247 = arith.constant 0 : index
    %c0_248 = arith.constant 0 : index
    %853 = vector.load %arg6[%c2_246, %c0_247, %c0_248] : memref<4x64x128xbf16, #tpu.memory_space<vmem>>, vector<1x64x128xbf16>
    %854 = vector.shape_cast %853 : vector<1x64x128xbf16> to vector<64x128xbf16>
    %855 = arith.truncf %852 : vector<32x64xf32> to vector<32x64xbf16>
    %cst_249 = arith.constant dense<0.000000e+00> : vector<32x128xf32>
    %856 = tpu.matmul %855, %854, %cst_249 {dimension_numbers = #tpu.dot_dimension_numbers<[1], [0], [0], [1], [0, 0, 1, 1], [], []>} : vector<32x64xbf16>, vector<64x128xbf16>, vector<32x128xf32> -> vector<32x128xf32>
    %857 = vector.extract_strided_slice %755 {offsets = [6, 0], sizes = [1, 128], strides = [1, 1]} : vector<8x192xf32> to vector<1x128xf32>
    %858 = vector.broadcast %857 : vector<1x128xf32> to vector<32x128xf32>
    %859 = arith.addf %856, %858 : vector<32x128xf32>
    %cst_250 = arith.constant 0.000000e+00 : f32
    %860 = vector.broadcast %cst_250 : f32 to vector<32x128xf32>
    %861 = arith.maximumf %859, %860 : vector<32x128xf32>
    %c2_251 = arith.constant 2 : index
    %c0_252 = arith.constant 0 : index
    %c0_253 = arith.constant 0 : index
    %862 = vector.load %arg7[%c2_251, %c0_252, %c0_253] : memref<4x128x64xbf16, #tpu.memory_space<vmem>>, vector<1x128x64xbf16>
    %863 = vector.shape_cast %862 : vector<1x128x64xbf16> to vector<128x64xbf16>
    %864 = arith.truncf %861 : vector<32x128xf32> to vector<32x128xbf16>
    %cst_254 = arith.constant dense<0.000000e+00> : vector<32x64xf32>
    %865 = tpu.matmul %864, %863, %cst_254 {dimension_numbers = #tpu.dot_dimension_numbers<[1], [0], [0], [1], [0, 0, 1, 1], [], []>} : vector<32x128xbf16>, vector<128x64xbf16>, vector<32x64xf32> -> vector<32x64xf32>
    %866 = arith.addf %830, %865 : vector<32x64xf32>
    %867 = vector.extract_strided_slice %755 {offsets = [7, 0], sizes = [1, 64], strides = [1, 1]} : vector<8x192xf32> to vector<1x64xf32>
    %868 = vector.broadcast %867 : vector<1x64xf32> to vector<32x64xf32>
    %869 = arith.addf %866, %868 : vector<32x64xf32>
    %c3_255 = arith.constant 3 : index
    %c0_256 = arith.constant 0 : index
    %c0_257 = arith.constant 0 : index
    %870 = vector.load %arg5[%c3_255, %c0_256, %c0_257] : memref<4x8x192xf32, #tpu.memory_space<vmem>>, vector<1x8x192xf32>
    %871 = vector.shape_cast %870 : vector<1x8x192xf32> to vector<8x192xf32>
    %872 = vector.extract_strided_slice %871 {offsets = [0, 0], sizes = [1, 64], strides = [1, 1]} : vector<8x192xf32> to vector<1x64xf32>
    %873 = vector.extract_strided_slice %871 {offsets = [1, 0], sizes = [1, 64], strides = [1, 1]} : vector<8x192xf32> to vector<1x64xf32>
    %cst_258 = arith.constant dense<0.000000e+00> : vector<32xf32>
    %874 = vector.multi_reduction <add>, %869, %cst_258 [1] : vector<32x64xf32> to vector<32xf32>
    %875 = vector.shape_cast %874 : vector<32xf32> to vector<32x1xf32>
    %cst_259 = arith.constant 6.400000e+01 : f32
    %876 = vector.broadcast %cst_259 : f32 to vector<32x1xf32>
    %877 = arith.divf %875, %876 : vector<32x1xf32>
    %878 = vector.broadcast %877 : vector<32x1xf32> to vector<32x64xf32>
    %879 = arith.subf %869, %878 : vector<32x64xf32>
    %880 = arith.mulf %879, %879 : vector<32x64xf32>
    %cst_260 = arith.constant dense<0.000000e+00> : vector<32xf32>
    %881 = vector.multi_reduction <add>, %880, %cst_260 [1] : vector<32x64xf32> to vector<32xf32>
    %882 = vector.shape_cast %881 : vector<32xf32> to vector<32x1xf32>
    %cst_261 = arith.constant 6.400000e+01 : f32
    %883 = vector.broadcast %cst_261 : f32 to vector<32x1xf32>
    %884 = arith.divf %882, %883 : vector<32x1xf32>
    %cst_262 = arith.constant 9.99999974E-6 : f32
    %885 = vector.broadcast %cst_262 : f32 to vector<32x1xf32>
    %886 = arith.addf %884, %885 : vector<32x1xf32>
    %887 = math.rsqrt %886 : vector<32x1xf32>
    %888 = vector.broadcast %887 : vector<32x1xf32> to vector<32x64xf32>
    %889 = arith.mulf %879, %888 : vector<32x64xf32>
    %890 = vector.broadcast %872 : vector<1x64xf32> to vector<32x64xf32>
    %891 = arith.mulf %889, %890 : vector<32x64xf32>
    %892 = vector.broadcast %873 : vector<1x64xf32> to vector<32x64xf32>
    %893 = arith.addf %891, %892 : vector<32x64xf32>
    %c3_263 = arith.constant 3 : index
    %c0_264 = arith.constant 0 : index
    %c0_265 = arith.constant 0 : index
    %894 = vector.load %arg8[%c3_263, %c0_264, %c0_265] : memref<4x64x192xbf16, #tpu.memory_space<vmem>>, vector<1x64x192xbf16>
    %895 = vector.shape_cast %894 : vector<1x64x192xbf16> to vector<64x192xbf16>
    %896 = arith.truncf %893 : vector<32x64xf32> to vector<32x64xbf16>
    %cst_266 = arith.constant dense<0.000000e+00> : vector<32x192xf32>
    %897 = tpu.matmul %896, %895, %cst_266 {dimension_numbers = #tpu.dot_dimension_numbers<[1], [0], [0], [1], [0, 0, 1, 1], [], []>} : vector<32x64xbf16>, vector<64x192xbf16>, vector<32x192xf32> -> vector<32x192xf32>
    %898 = vector.extract_strided_slice %871 {offsets = [4, 0], sizes = [1, 192], strides = [1, 1]} : vector<8x192xf32> to vector<1x192xf32>
    %899 = vector.broadcast %898 : vector<1x192xf32> to vector<32x192xf32>
    %900 = arith.addf %897, %899 : vector<32x192xf32>
    %c3_267 = arith.constant 3 : index
    %c0_268 = arith.constant 0 : index
    %c0_269 = arith.constant 0 : index
    %901 = vector.load %arg9[%c3_267, %c0_268, %c0_269] : memref<4x64x64xbf16, #tpu.memory_space<vmem>>, vector<1x64x64xbf16>
    %902 = vector.shape_cast %901 : vector<1x64x64xbf16> to vector<64x64xbf16>
    %903 = vector.extract_strided_slice %871 {offsets = [5, 0], sizes = [1, 64], strides = [1, 1]} : vector<8x192xf32> to vector<1x64xf32>
    %904 = vector.extract_strided_slice %900 {offsets = [0, 0], sizes = [32, 16], strides = [1, 1]} : vector<32x192xf32> to vector<32x16xf32>
    %905 = vector.extract_strided_slice %900 {offsets = [0, 16], sizes = [32, 16], strides = [1, 1]} : vector<32x192xf32> to vector<32x16xf32>
    %906 = vector.extract_strided_slice %900 {offsets = [0, 32], sizes = [32, 16], strides = [1, 1]} : vector<32x192xf32> to vector<32x16xf32>
    %907 = vector.extract_strided_slice %900 {offsets = [0, 48], sizes = [32, 16], strides = [1, 1]} : vector<32x192xf32> to vector<32x16xf32>
    %908 = tpu.concatenate %904, %905, %906, %907 in 0 : vector<32x16xf32>, vector<32x16xf32>, vector<32x16xf32>, vector<32x16xf32> -> vector<128x16xf32>
    %909 = arith.truncf %908 : vector<128x16xf32> to vector<128x16xbf16>
    %910 = vector.extract_strided_slice %900 {offsets = [0, 64], sizes = [32, 16], strides = [1, 1]} : vector<32x192xf32> to vector<32x16xf32>
    %911 = vector.extract_strided_slice %900 {offsets = [0, 80], sizes = [32, 16], strides = [1, 1]} : vector<32x192xf32> to vector<32x16xf32>
    %912 = vector.extract_strided_slice %900 {offsets = [0, 96], sizes = [32, 16], strides = [1, 1]} : vector<32x192xf32> to vector<32x16xf32>
    %913 = vector.extract_strided_slice %900 {offsets = [0, 112], sizes = [32, 16], strides = [1, 1]} : vector<32x192xf32> to vector<32x16xf32>
    %914 = tpu.concatenate %910, %911, %912, %913 in 0 : vector<32x16xf32>, vector<32x16xf32>, vector<32x16xf32>, vector<32x16xf32> -> vector<128x16xf32>
    %915 = arith.truncf %914 : vector<128x16xf32> to vector<128x16xbf16>
    %916 = vector.extract_strided_slice %900 {offsets = [0, 128], sizes = [32, 16], strides = [1, 1]} : vector<32x192xf32> to vector<32x16xf32>
    %917 = vector.extract_strided_slice %900 {offsets = [0, 144], sizes = [32, 16], strides = [1, 1]} : vector<32x192xf32> to vector<32x16xf32>
    %918 = vector.extract_strided_slice %900 {offsets = [0, 160], sizes = [32, 16], strides = [1, 1]} : vector<32x192xf32> to vector<32x16xf32>
    %919 = vector.extract_strided_slice %900 {offsets = [0, 176], sizes = [32, 16], strides = [1, 1]} : vector<32x192xf32> to vector<32x16xf32>
    %920 = tpu.concatenate %916, %917, %918, %919 in 0 : vector<32x16xf32>, vector<32x16xf32>, vector<32x16xf32>, vector<32x16xf32> -> vector<128x16xf32>
    %921 = arith.truncf %920 : vector<128x16xf32> to vector<128x16xbf16>
    %cst_270 = arith.constant dense<0.000000e+00> : vector<128x128xf32>
    %922 = tpu.matmul %909, %915, %cst_270 {dimension_numbers = #tpu.dot_dimension_numbers<[1], [1], [0], [0], [0, 0, 1, 0], [], []>} : vector<128x16xbf16>, vector<128x16xbf16>, vector<128x128xf32> -> vector<128x128xf32>
    %c0_271 = arith.constant 0 : index
    %c0_272 = arith.constant 0 : index
    %923 = vector.load %arg15[%c0_271, %c0_272] : memref<128x128xf32, #tpu.memory_space<vmem>>, vector<128x128xf32>
    %924 = arith.addf %922, %923 : vector<128x128xf32>
    %cst_273 = arith.constant dense<0xFF800000> : vector<128xf32>
    %925 = vector.multi_reduction <maximumf>, %924, %cst_273 [1] : vector<128x128xf32> to vector<128xf32>
    %926 = vector.shape_cast %925 : vector<128xf32> to vector<128x1xf32>
    %927 = vector.broadcast %926 : vector<128x1xf32> to vector<128x128xf32>
    %928 = arith.subf %924, %927 : vector<128x128xf32>
    %929 = math.exp %928 : vector<128x128xf32>
    %cst_274 = arith.constant dense<0.000000e+00> : vector<128xf32>
    %930 = vector.multi_reduction <add>, %929, %cst_274 [1] : vector<128x128xf32> to vector<128xf32>
    %931 = vector.shape_cast %930 : vector<128xf32> to vector<128x1xf32>
    %932 = tpu.reciprocal %931 {approx = true} : vector<128x1xf32> -> vector<128x1xf32>
    %933 = vector.broadcast %932 : vector<128x1xf32> to vector<128x128xf32>
    %934 = arith.mulf %929, %933 : vector<128x128xf32>
    %935 = arith.truncf %934 : vector<128x128xf32> to vector<128x128xbf16>
    %cst_275 = arith.constant dense<0.000000e+00> : vector<128x16xf32>
    %936 = tpu.matmul %935, %921, %cst_275 {dimension_numbers = #tpu.dot_dimension_numbers<[1], [0], [0], [1], [0, 0, 1, 1], [], []>} : vector<128x128xbf16>, vector<128x16xbf16>, vector<128x16xf32> -> vector<128x16xf32>
    %937 = vector.extract_strided_slice %936 {offsets = [0, 0], sizes = [32, 16], strides = [1, 1]} : vector<128x16xf32> to vector<32x16xf32>
    %938 = vector.extract_strided_slice %936 {offsets = [32, 0], sizes = [32, 16], strides = [1, 1]} : vector<128x16xf32> to vector<32x16xf32>
    %939 = vector.extract_strided_slice %936 {offsets = [64, 0], sizes = [32, 16], strides = [1, 1]} : vector<128x16xf32> to vector<32x16xf32>
    %940 = vector.extract_strided_slice %936 {offsets = [96, 0], sizes = [32, 16], strides = [1, 1]} : vector<128x16xf32> to vector<32x16xf32>
    %941 = tpu.concatenate %937, %938, %939, %940 in 1 : vector<32x16xf32>, vector<32x16xf32>, vector<32x16xf32>, vector<32x16xf32> -> vector<32x64xf32>
    %942 = arith.truncf %941 : vector<32x64xf32> to vector<32x64xbf16>
    %cst_276 = arith.constant dense<0.000000e+00> : vector<32x64xf32>
    %943 = tpu.matmul %942, %902, %cst_276 {dimension_numbers = #tpu.dot_dimension_numbers<[1], [0], [0], [1], [0, 0, 1, 1], [], []>} : vector<32x64xbf16>, vector<64x64xbf16>, vector<32x64xf32> -> vector<32x64xf32>
    %944 = vector.broadcast %903 : vector<1x64xf32> to vector<32x64xf32>
    %945 = arith.addf %943, %944 : vector<32x64xf32>
    %946 = arith.addf %869, %945 : vector<32x64xf32>
    %947 = vector.extract_strided_slice %871 {offsets = [2, 0], sizes = [1, 64], strides = [1, 1]} : vector<8x192xf32> to vector<1x64xf32>
    %948 = vector.extract_strided_slice %871 {offsets = [3, 0], sizes = [1, 64], strides = [1, 1]} : vector<8x192xf32> to vector<1x64xf32>
    %cst_277 = arith.constant dense<0.000000e+00> : vector<32xf32>
    %949 = vector.multi_reduction <add>, %946, %cst_277 [1] : vector<32x64xf32> to vector<32xf32>
    %950 = vector.shape_cast %949 : vector<32xf32> to vector<32x1xf32>
    %cst_278 = arith.constant 6.400000e+01 : f32
    %951 = vector.broadcast %cst_278 : f32 to vector<32x1xf32>
    %952 = arith.divf %950, %951 : vector<32x1xf32>
    %953 = vector.broadcast %952 : vector<32x1xf32> to vector<32x64xf32>
    %954 = arith.subf %946, %953 : vector<32x64xf32>
    %955 = arith.mulf %954, %954 : vector<32x64xf32>
    %cst_279 = arith.constant dense<0.000000e+00> : vector<32xf32>
    %956 = vector.multi_reduction <add>, %955, %cst_279 [1] : vector<32x64xf32> to vector<32xf32>
    %957 = vector.shape_cast %956 : vector<32xf32> to vector<32x1xf32>
    %cst_280 = arith.constant 6.400000e+01 : f32
    %958 = vector.broadcast %cst_280 : f32 to vector<32x1xf32>
    %959 = arith.divf %957, %958 : vector<32x1xf32>
    %cst_281 = arith.constant 9.99999974E-6 : f32
    %960 = vector.broadcast %cst_281 : f32 to vector<32x1xf32>
    %961 = arith.addf %959, %960 : vector<32x1xf32>
    %962 = math.rsqrt %961 : vector<32x1xf32>
    %963 = vector.broadcast %962 : vector<32x1xf32> to vector<32x64xf32>
    %964 = arith.mulf %954, %963 : vector<32x64xf32>
    %965 = vector.broadcast %947 : vector<1x64xf32> to vector<32x64xf32>
    %966 = arith.mulf %964, %965 : vector<32x64xf32>
    %967 = vector.broadcast %948 : vector<1x64xf32> to vector<32x64xf32>
    %968 = arith.addf %966, %967 : vector<32x64xf32>
    %c3_282 = arith.constant 3 : index
    %c0_283 = arith.constant 0 : index
    %c0_284 = arith.constant 0 : index
    %969 = vector.load %arg6[%c3_282, %c0_283, %c0_284] : memref<4x64x128xbf16, #tpu.memory_space<vmem>>, vector<1x64x128xbf16>
    %970 = vector.shape_cast %969 : vector<1x64x128xbf16> to vector<64x128xbf16>
    %971 = arith.truncf %968 : vector<32x64xf32> to vector<32x64xbf16>
    %cst_285 = arith.constant dense<0.000000e+00> : vector<32x128xf32>
    %972 = tpu.matmul %971, %970, %cst_285 {dimension_numbers = #tpu.dot_dimension_numbers<[1], [0], [0], [1], [0, 0, 1, 1], [], []>} : vector<32x64xbf16>, vector<64x128xbf16>, vector<32x128xf32> -> vector<32x128xf32>
    %973 = vector.extract_strided_slice %871 {offsets = [6, 0], sizes = [1, 128], strides = [1, 1]} : vector<8x192xf32> to vector<1x128xf32>
    %974 = vector.broadcast %973 : vector<1x128xf32> to vector<32x128xf32>
    %975 = arith.addf %972, %974 : vector<32x128xf32>
    %cst_286 = arith.constant 0.000000e+00 : f32
    %976 = vector.broadcast %cst_286 : f32 to vector<32x128xf32>
    %977 = arith.maximumf %975, %976 : vector<32x128xf32>
    %c3_287 = arith.constant 3 : index
    %c0_288 = arith.constant 0 : index
    %c0_289 = arith.constant 0 : index
    %978 = vector.load %arg7[%c3_287, %c0_288, %c0_289] : memref<4x128x64xbf16, #tpu.memory_space<vmem>>, vector<1x128x64xbf16>
    %979 = vector.shape_cast %978 : vector<1x128x64xbf16> to vector<128x64xbf16>
    %980 = arith.truncf %977 : vector<32x128xf32> to vector<32x128xbf16>
    %cst_290 = arith.constant dense<0.000000e+00> : vector<32x64xf32>
    %981 = tpu.matmul %980, %979, %cst_290 {dimension_numbers = #tpu.dot_dimension_numbers<[1], [0], [0], [1], [0, 0, 1, 1], [], []>} : vector<32x128xbf16>, vector<128x64xbf16>, vector<32x64xf32> -> vector<32x64xf32>
    %982 = arith.addf %946, %981 : vector<32x64xf32>
    %983 = vector.extract_strided_slice %871 {offsets = [7, 0], sizes = [1, 64], strides = [1, 1]} : vector<8x192xf32> to vector<1x64xf32>
    %984 = vector.broadcast %983 : vector<1x64xf32> to vector<32x64xf32>
    %985 = arith.addf %982, %984 : vector<32x64xf32>
    %c0_291 = arith.constant 0 : index
    %c0_292 = arith.constant 0 : index
    %986 = vector.load %arg19[%c0_291, %c0_292] : memref<2x128xf32, #tpu.memory_space<vmem>>, vector<2x128xf32>
    %c0_293 = arith.constant 0 : index
    %c0_294 = arith.constant 0 : index
    %987 = vector.load %arg20[%c0_293, %c0_294] : memref<64x128xbf16, #tpu.memory_space<vmem>>, vector<64x128xbf16>
    %988 = arith.truncf %985 : vector<32x64xf32> to vector<32x64xbf16>
    %cst_295 = arith.constant dense<0.000000e+00> : vector<32x128xf32>
    %989 = tpu.matmul %988, %987, %cst_295 {dimension_numbers = #tpu.dot_dimension_numbers<[1], [0], [0], [1], [0, 0, 1, 1], [], []>} : vector<32x64xbf16>, vector<64x128xbf16>, vector<32x128xf32> -> vector<32x128xf32>
    %990 = vector.extract_strided_slice %986 {offsets = [0, 0], sizes = [1, 128], strides = [1, 1]} : vector<2x128xf32> to vector<1x128xf32>
    %991 = vector.broadcast %990 : vector<1x128xf32> to vector<32x128xf32>
    %992 = arith.addf %989, %991 : vector<32x128xf32>
    %c0_296 = arith.constant 0 : index
    %c0_297 = arith.constant 0 : index
    %993 = vector.load %arg18[%c0_296, %c0_297] : memref<1x64xf32, #tpu.memory_space<vmem>>, vector<1x64xf32>
    %994 = vector.shape_cast %993 : vector<1x64xf32> to vector<1x64xf32>
    %995 = vector.broadcast %994 : vector<1x64xf32> to vector<2x64xf32>
    %c0_298 = arith.constant 0 : index
    %c0_299 = arith.constant 0 : index
    %996 = vector.load %arg21[%c0_298, %c0_299] : memref<64x64xbf16, #tpu.memory_space<vmem>>, vector<64x64xbf16>
    %997 = vector.extract_strided_slice %986 {offsets = [1, 0], sizes = [1, 64], strides = [1, 1]} : vector<2x128xf32> to vector<1x64xf32>
    %998 = vector.extract_strided_slice %995 {offsets = [0, 0], sizes = [2, 16], strides = [1, 1]} : vector<2x64xf32> to vector<2x16xf32>
    %999 = vector.extract_strided_slice %995 {offsets = [0, 16], sizes = [2, 16], strides = [1, 1]} : vector<2x64xf32> to vector<2x16xf32>
    %1000 = vector.extract_strided_slice %995 {offsets = [0, 32], sizes = [2, 16], strides = [1, 1]} : vector<2x64xf32> to vector<2x16xf32>
    %1001 = vector.extract_strided_slice %995 {offsets = [0, 48], sizes = [2, 16], strides = [1, 1]} : vector<2x64xf32> to vector<2x16xf32>
    %1002 = tpu.concatenate %998, %999, %1000, %1001 in 0 : vector<2x16xf32>, vector<2x16xf32>, vector<2x16xf32>, vector<2x16xf32> -> vector<8x16xf32>
    %1003 = arith.truncf %1002 : vector<8x16xf32> to vector<8x16xbf16>
    %1004 = vector.extract_strided_slice %992 {offsets = [0, 0], sizes = [32, 16], strides = [1, 1]} : vector<32x128xf32> to vector<32x16xf32>
    %1005 = vector.extract_strided_slice %992 {offsets = [0, 16], sizes = [32, 16], strides = [1, 1]} : vector<32x128xf32> to vector<32x16xf32>
    %1006 = vector.extract_strided_slice %992 {offsets = [0, 32], sizes = [32, 16], strides = [1, 1]} : vector<32x128xf32> to vector<32x16xf32>
    %1007 = vector.extract_strided_slice %992 {offsets = [0, 48], sizes = [32, 16], strides = [1, 1]} : vector<32x128xf32> to vector<32x16xf32>
    %1008 = tpu.concatenate %1004, %1005, %1006, %1007 in 0 : vector<32x16xf32>, vector<32x16xf32>, vector<32x16xf32>, vector<32x16xf32> -> vector<128x16xf32>
    %1009 = arith.truncf %1008 : vector<128x16xf32> to vector<128x16xbf16>
    %1010 = vector.extract_strided_slice %992 {offsets = [0, 64], sizes = [32, 16], strides = [1, 1]} : vector<32x128xf32> to vector<32x16xf32>
    %1011 = vector.extract_strided_slice %992 {offsets = [0, 80], sizes = [32, 16], strides = [1, 1]} : vector<32x128xf32> to vector<32x16xf32>
    %1012 = vector.extract_strided_slice %992 {offsets = [0, 96], sizes = [32, 16], strides = [1, 1]} : vector<32x128xf32> to vector<32x16xf32>
    %1013 = vector.extract_strided_slice %992 {offsets = [0, 112], sizes = [32, 16], strides = [1, 1]} : vector<32x128xf32> to vector<32x16xf32>
    %1014 = tpu.concatenate %1010, %1011, %1012, %1013 in 0 : vector<32x16xf32>, vector<32x16xf32>, vector<32x16xf32>, vector<32x16xf32> -> vector<128x16xf32>
    %1015 = arith.truncf %1014 : vector<128x16xf32> to vector<128x16xbf16>
    %cst_300 = arith.constant dense<0.000000e+00> : vector<8x128xf32>
    %1016 = tpu.matmul %1003, %1009, %cst_300 {dimension_numbers = #tpu.dot_dimension_numbers<[1], [1], [0], [0], [0, 0, 1, 0], [], []>} : vector<8x16xbf16>, vector<128x16xbf16>, vector<8x128xf32> -> vector<8x128xf32>
    %c0_301 = arith.constant 0 : index
    %c0_302 = arith.constant 0 : index
    %1017 = vector.load %arg16[%c0_301, %c0_302] : memref<8x128xf32, #tpu.memory_space<vmem>>, vector<8x128xf32>
    %1018 = arith.addf %1016, %1017 : vector<8x128xf32>
    %cst_303 = arith.constant dense<0xFF800000> : vector<8xf32>
    %1019 = vector.multi_reduction <maximumf>, %1018, %cst_303 [1] : vector<8x128xf32> to vector<8xf32>
    %1020 = vector.shape_cast %1019 : vector<8xf32> to vector<8x1xf32>
    %1021 = vector.broadcast %1020 : vector<8x1xf32> to vector<8x128xf32>
    %1022 = arith.subf %1018, %1021 : vector<8x128xf32>
    %1023 = math.exp %1022 : vector<8x128xf32>
    %cst_304 = arith.constant dense<0.000000e+00> : vector<8xf32>
    %1024 = vector.multi_reduction <add>, %1023, %cst_304 [1] : vector<8x128xf32> to vector<8xf32>
    %1025 = vector.shape_cast %1024 : vector<8xf32> to vector<8x1xf32>
    %1026 = tpu.reciprocal %1025 {approx = true} : vector<8x1xf32> -> vector<8x1xf32>
    %1027 = vector.broadcast %1026 : vector<8x1xf32> to vector<8x128xf32>
    %1028 = arith.mulf %1023, %1027 : vector<8x128xf32>
    %1029 = arith.truncf %1028 : vector<8x128xf32> to vector<8x128xbf16>
    %cst_305 = arith.constant dense<0.000000e+00> : vector<8x16xf32>
    %1030 = tpu.matmul %1029, %1015, %cst_305 {dimension_numbers = #tpu.dot_dimension_numbers<[1], [0], [0], [1], [0, 0, 1, 1], [], []>} : vector<8x128xbf16>, vector<128x16xbf16>, vector<8x16xf32> -> vector<8x16xf32>
    %1031 = vector.extract_strided_slice %1030 {offsets = [0, 0], sizes = [2, 16], strides = [1, 1]} : vector<8x16xf32> to vector<2x16xf32>
    %1032 = vector.extract_strided_slice %1030 {offsets = [2, 0], sizes = [2, 16], strides = [1, 1]} : vector<8x16xf32> to vector<2x16xf32>
    %1033 = vector.extract_strided_slice %1030 {offsets = [4, 0], sizes = [2, 16], strides = [1, 1]} : vector<8x16xf32> to vector<2x16xf32>
    %1034 = vector.extract_strided_slice %1030 {offsets = [6, 0], sizes = [2, 16], strides = [1, 1]} : vector<8x16xf32> to vector<2x16xf32>
    %1035 = tpu.concatenate %1031, %1032, %1033, %1034 in 1 : vector<2x16xf32>, vector<2x16xf32>, vector<2x16xf32>, vector<2x16xf32> -> vector<2x64xf32>
    %1036 = arith.truncf %1035 : vector<2x64xf32> to vector<2x64xbf16>
    %cst_306 = arith.constant dense<0.000000e+00> : vector<2x64xf32>
    %1037 = tpu.matmul %1036, %996, %cst_306 {dimension_numbers = #tpu.dot_dimension_numbers<[1], [0], [0], [1], [0, 0, 1, 1], [], []>} : vector<2x64xbf16>, vector<64x64xbf16>, vector<2x64xf32> -> vector<2x64xf32>
    %1038 = vector.broadcast %997 : vector<1x64xf32> to vector<2x64xf32>
    %1039 = arith.addf %1037, %1038 : vector<2x64xf32>
    %c0_307 = arith.constant 0 : index
    %c0_308 = arith.constant 0 : index
    %1040 = vector.load %arg10[%c0_307, %c0_308] : memref<5x64xf32, #tpu.memory_space<vmem>>, vector<5x64xf32>
    %1041 = vector.extract_strided_slice %1040 {offsets = [0, 0], sizes = [1, 64], strides = [1, 1]} : vector<5x64xf32> to vector<1x64xf32>
    %1042 = vector.extract_strided_slice %1040 {offsets = [1, 0], sizes = [1, 64], strides = [1, 1]} : vector<5x64xf32> to vector<1x64xf32>
    %cst_309 = arith.constant dense<0.000000e+00> : vector<2xf32>
    %1043 = vector.multi_reduction <add>, %1039, %cst_309 [1] : vector<2x64xf32> to vector<2xf32>
    %1044 = vector.shape_cast %1043 : vector<2xf32> to vector<2x1xf32>
    %cst_310 = arith.constant 6.400000e+01 : f32
    %1045 = vector.broadcast %cst_310 : f32 to vector<2x1xf32>
    %1046 = arith.divf %1044, %1045 : vector<2x1xf32>
    %1047 = vector.broadcast %1046 : vector<2x1xf32> to vector<2x64xf32>
    %1048 = arith.subf %1039, %1047 : vector<2x64xf32>
    %1049 = arith.mulf %1048, %1048 : vector<2x64xf32>
    %cst_311 = arith.constant dense<0.000000e+00> : vector<2xf32>
    %1050 = vector.multi_reduction <add>, %1049, %cst_311 [1] : vector<2x64xf32> to vector<2xf32>
    %1051 = vector.shape_cast %1050 : vector<2xf32> to vector<2x1xf32>
    %cst_312 = arith.constant 6.400000e+01 : f32
    %1052 = vector.broadcast %cst_312 : f32 to vector<2x1xf32>
    %1053 = arith.divf %1051, %1052 : vector<2x1xf32>
    %cst_313 = arith.constant 9.99999974E-6 : f32
    %1054 = vector.broadcast %cst_313 : f32 to vector<2x1xf32>
    %1055 = arith.addf %1053, %1054 : vector<2x1xf32>
    %1056 = math.rsqrt %1055 : vector<2x1xf32>
    %1057 = vector.broadcast %1056 : vector<2x1xf32> to vector<2x64xf32>
    %1058 = arith.mulf %1048, %1057 : vector<2x64xf32>
    %1059 = vector.broadcast %1041 : vector<1x64xf32> to vector<2x64xf32>
    %1060 = arith.mulf %1058, %1059 : vector<2x64xf32>
    %1061 = vector.broadcast %1042 : vector<1x64xf32> to vector<2x64xf32>
    %1062 = arith.addf %1060, %1061 : vector<2x64xf32>
    %c0_314 = arith.constant 0 : index
    %c0_315 = arith.constant 0 : index
    %1063 = vector.load %arg11[%c0_314, %c0_315] : memref<64x32xbf16, #tpu.memory_space<vmem>>, vector<64x32xbf16>
    %1064 = arith.truncf %1062 : vector<2x64xf32> to vector<2x64xbf16>
    %cst_316 = arith.constant dense<0.000000e+00> : vector<2x32xf32>
    %1065 = tpu.matmul %1064, %1063, %cst_316 {dimension_numbers = #tpu.dot_dimension_numbers<[1], [0], [0], [1], [0, 0, 1, 1], [], []>} : vector<2x64xbf16>, vector<64x32xbf16>, vector<2x32xf32> -> vector<2x32xf32>
    %1066 = vector.extract_strided_slice %1040 {offsets = [2, 0], sizes = [1, 32], strides = [1, 1]} : vector<5x64xf32> to vector<1x32xf32>
    %1067 = vector.broadcast %1066 : vector<1x32xf32> to vector<2x32xf32>
    %1068 = arith.addf %1065, %1067 : vector<2x32xf32>
    %cst_317 = arith.constant 5.000000e-01 : f32
    %1069 = vector.broadcast %cst_317 : f32 to vector<2x32xf32>
    %1070 = arith.mulf %1069, %1068 : vector<2x32xf32>
    %cst_318 = arith.constant 0.707106769 : f32
    %1071 = vector.broadcast %cst_318 : f32 to vector<2x32xf32>
    %1072 = arith.mulf %1068, %1071 : vector<2x32xf32>
    %1073 = math.erf %1072 : vector<2x32xf32>
    %cst_319 = arith.constant 1.000000e+00 : f32
    %1074 = vector.broadcast %cst_319 : f32 to vector<2x32xf32>
    %1075 = arith.addf %1074, %1073 : vector<2x32xf32>
    %1076 = arith.mulf %1070, %1075 : vector<2x32xf32>
    %c0_320 = arith.constant 0 : index
    %c0_321 = arith.constant 0 : index
    %1077 = vector.load %arg12[%c0_320, %c0_321] : memref<32x16xbf16, #tpu.memory_space<vmem>>, vector<32x16xbf16>
    %1078 = arith.truncf %1076 : vector<2x32xf32> to vector<2x32xbf16>
    %cst_322 = arith.constant dense<0.000000e+00> : vector<2x16xf32>
    %1079 = tpu.matmul %1078, %1077, %cst_322 {dimension_numbers = #tpu.dot_dimension_numbers<[1], [0], [0], [1], [0, 0, 1, 1], [], []>} : vector<2x32xbf16>, vector<32x16xbf16>, vector<2x16xf32> -> vector<2x16xf32>
    %1080 = vector.extract_strided_slice %1040 {offsets = [3, 0], sizes = [1, 16], strides = [1, 1]} : vector<5x64xf32> to vector<1x16xf32>
    %1081 = vector.broadcast %1080 : vector<1x16xf32> to vector<2x16xf32>
    %1082 = arith.addf %1079, %1081 : vector<2x16xf32>
    %cst_323 = arith.constant 5.000000e-01 : f32
    %1083 = vector.broadcast %cst_323 : f32 to vector<2x16xf32>
    %1084 = arith.mulf %1083, %1082 : vector<2x16xf32>
    %cst_324 = arith.constant 0.707106769 : f32
    %1085 = vector.broadcast %cst_324 : f32 to vector<2x16xf32>
    %1086 = arith.mulf %1082, %1085 : vector<2x16xf32>
    %1087 = math.erf %1086 : vector<2x16xf32>
    %cst_325 = arith.constant 1.000000e+00 : f32
    %1088 = vector.broadcast %cst_325 : f32 to vector<2x16xf32>
    %1089 = arith.addf %1088, %1087 : vector<2x16xf32>
    %1090 = arith.mulf %1084, %1089 : vector<2x16xf32>
    %c0_326 = arith.constant 0 : index
    %c0_327 = arith.constant 0 : index
    %1091 = vector.load %arg13[%c0_326, %c0_327] : memref<1x16xf32, #tpu.memory_space<vmem>>, vector<1x16xf32>
    %1092 = vector.broadcast %1091 : vector<1x16xf32> to vector<2x16xf32>
    %1093 = arith.mulf %1090, %1092 : vector<2x16xf32>
    %cst_328 = arith.constant dense<0.000000e+00> : vector<2xf32>
    %1094 = vector.multi_reduction <add>, %1093, %cst_328 [1] : vector<2x16xf32> to vector<2xf32>
    %1095 = vector.shape_cast %1094 : vector<2xf32> to vector<2x1xf32>
    %1096 = vector.extract_strided_slice %1040 {offsets = [4, 0], sizes = [1, 1], strides = [1, 1]} : vector<5x64xf32> to vector<1x1xf32>
    %1097 = vector.broadcast %1096 : vector<1x1xf32> to vector<2x1xf32>
    %1098 = arith.addf %1095, %1097 : vector<2x1xf32>
    %c0_329 = arith.constant 0 : index
    %c0_330 = arith.constant 0 : index
    %c0_331 = arith.constant 0 : index
    %1099 = vector.load %arg25[%c0_329, %c0_330, %c0_331] : memref<1x2x1xf32, #tpu.memory_space<vmem>>, vector<1x2x1xf32>
    %1100 = vector.shape_cast %1099 : vector<1x2x1xf32> to vector<2x1xf32>
    %1101 = vector.shape_cast %1098 : vector<2x1xf32> to vector<1x2x1xf32>
    tpu.vector_store %arg25[%c0_329, %c0_330, %c0_331], %1101 {strides = array<i32>} : memref<1x2x1xf32, #tpu.memory_space<vmem>>, vector<1x2x1xf32>,
    return
  }
  func.func @transform_0(%arg0: i32) -> (i32, i32, i32) {
    %c0_i32 = arith.constant 0 : i32
    %c0_i32_0 = arith.constant 0 : i32
    %c0_i32_1 = arith.constant 0 : i32
    %c0_i32_2 = arith.constant 0 : i32
    return %c0_i32, %c0_i32_0, %c0_i32_1 : i32, i32, i32
  }
  func.func @transform_1(%arg0: i32) -> (i32, i32, i32) {
    %c0_i32 = arith.constant 0 : i32
    %c0_i32_0 = arith.constant 0 : i32
    %c0_i32_1 = arith.constant 0 : i32
    %c0_i32_2 = arith.constant 0 : i32
    return %c0_i32, %c0_i32_0, %c0_i32_1 : i32, i32, i32
  }
  func.func @transform_2(%arg0: i32) -> (i32, i32, i32) {
    %c0_i32 = arith.constant 0 : i32
    %c0_i32_0 = arith.constant 0 : i32
    %c0_i32_1 = arith.constant 0 : i32
    %c0_i32_2 = arith.constant 0 : i32
    return %c0_i32, %c0_i32_0, %c0_i32_1 : i32, i32, i32
  }
  func.func @transform_3(%arg0: i32) -> (i32, i32, i32) {
    %c0_i32 = arith.constant 0 : i32
    %c0_i32_0 = arith.constant 0 : i32
    %c0_i32_1 = arith.constant 0 : i32
    %c0_i32_2 = arith.constant 0 : i32
    return %c0_i32, %c0_i32_0, %c0_i32_1 : i32, i32, i32
  }
  func.func @transform_4(%arg0: i32) -> (i32, i32, i32) {
    %c0_i32 = arith.constant 0 : i32
    %c0_i32_0 = arith.constant 0 : i32
    %c0_i32_1 = arith.constant 0 : i32
    %c0_i32_2 = arith.constant 0 : i32
    return %c0_i32, %c0_i32_0, %c0_i32_1 : i32, i32, i32
  }
  func.func @transform_5(%arg0: i32) -> (i32, i32, i32) {
    %c0_i32 = arith.constant 0 : i32
    %c0_i32_0 = arith.constant 0 : i32
    %c0_i32_1 = arith.constant 0 : i32
    %c0_i32_2 = arith.constant 0 : i32
    return %c0_i32, %c0_i32_0, %c0_i32_1 : i32, i32, i32
  }
  func.func @transform_6(%arg0: i32) -> (i32, i32, i32) {
    %c0_i32 = arith.constant 0 : i32
    %c0_i32_0 = arith.constant 0 : i32
    %c0_i32_1 = arith.constant 0 : i32
    %c0_i32_2 = arith.constant 0 : i32
    return %c0_i32, %c0_i32_0, %c0_i32_1 : i32, i32, i32
  }
  func.func @transform_7(%arg0: i32) -> (i32, i32, i32) {
    %c0_i32 = arith.constant 0 : i32
    %c0_i32_0 = arith.constant 0 : i32
    %c0_i32_1 = arith.constant 0 : i32
    %c0_i32_2 = arith.constant 0 : i32
    return %c0_i32, %c0_i32_0, %c0_i32_1 : i32, i32, i32
  }
  func.func @transform_8(%arg0: i32) -> (i32, i32, i32) {
    %c0_i32 = arith.constant 0 : i32
    %c0_i32_0 = arith.constant 0 : i32
    %c0_i32_1 = arith.constant 0 : i32
    %c0_i32_2 = arith.constant 0 : i32
    return %c0_i32, %c0_i32_0, %c0_i32_1 : i32, i32, i32
  }
  func.func @transform_9(%arg0: i32) -> (i32, i32) {
    %c0_i32 = arith.constant 0 : i32
    %c0_i32_0 = arith.constant 0 : i32
    %c0_i32_1 = arith.constant 0 : i32
    return %c0_i32, %c0_i32_0 : i32, i32
  }
  func.func @transform_10(%arg0: i32) -> (i32, i32) {
    %c0_i32 = arith.constant 0 : i32
    %c0_i32_0 = arith.constant 0 : i32
    %c0_i32_1 = arith.constant 0 : i32
    return %c0_i32, %c0_i32_0 : i32, i32
  }
  func.func @transform_11(%arg0: i32) -> (i32, i32) {
    %c0_i32 = arith.constant 0 : i32
    %c0_i32_0 = arith.constant 0 : i32
    %c0_i32_1 = arith.constant 0 : i32
    return %c0_i32, %c0_i32_0 : i32, i32
  }
  func.func @transform_12(%arg0: i32) -> (i32, i32) {
    %c0_i32 = arith.constant 0 : i32
    %c0_i32_0 = arith.constant 0 : i32
    %c0_i32_1 = arith.constant 0 : i32
    return %c0_i32, %c0_i32_0 : i32, i32
  }
  func.func @transform_13(%arg0: i32) -> (i32, i32) {
    %c0_i32 = arith.constant 0 : i32
    %c0_i32_0 = arith.constant 0 : i32
    %c0_i32_1 = arith.constant 0 : i32
    return %c0_i32, %c0_i32_0 : i32, i32
  }
  func.func @transform_14(%arg0: i32) -> (i32, i32) {
    %c0_i32 = arith.constant 0 : i32
    %c0_i32_0 = arith.constant 0 : i32
    %c0_i32_1 = arith.constant 0 : i32
    return %c0_i32, %c0_i32_0 : i32, i32
  }
  func.func @transform_15(%arg0: i32) -> (i32, i32) {
    %c0_i32 = arith.constant 0 : i32
    %c0_i32_0 = arith.constant 0 : i32
    %c0_i32_1 = arith.constant 0 : i32
    return %c0_i32, %c0_i32_0 : i32, i32
  }
  func.func @transform_16(%arg0: i32) -> (i32, i32) {
    %c0_i32 = arith.constant 0 : i32
    %c0_i32_0 = arith.constant 0 : i32
    %c0_i32_1 = arith.constant 0 : i32
    return %c0_i32, %c0_i32_0 : i32, i32
  }
  func.func @transform_17(%arg0: i32) -> (i32, i32) {
    %c0_i32 = arith.constant 0 : i32
    %c0_i32_0 = arith.constant 0 : i32
    %c0_i32_1 = arith.constant 0 : i32
    return %c0_i32, %c0_i32_0 : i32, i32
  }
  func.func @transform_18(%arg0: i32) -> (i32, i32) {
    %c0_i32 = arith.constant 0 : i32
    %c0_i32_0 = arith.constant 0 : i32
    %c0_i32_1 = arith.constant 0 : i32
    return %c0_i32, %c0_i32_0 : i32, i32
  }
  func.func @transform_19(%arg0: i32) -> (i32, i32) {
    %c0_i32 = arith.constant 0 : i32
    %c0_i32_0 = arith.constant 0 : i32
    %c0_i32_1 = arith.constant 0 : i32
    return %c0_i32, %c0_i32_0 : i32, i32
  }
  func.func @transform_20(%arg0: i32) -> (i32, i32) {
    %c0_i32 = arith.constant 0 : i32
    %c0_i32_0 = arith.constant 0 : i32
    %c0_i32_1 = arith.constant 0 : i32
    return %c0_i32, %c0_i32_0 : i32, i32
  }
  func.func @transform_21(%arg0: i32) -> (i32, i32) {
    %c0_i32 = arith.constant 0 : i32
    %c0_i32_0 = arith.constant 0 : i32
    %c0_i32_1 = arith.constant 0 : i32
    return %c0_i32, %c0_i32_0 : i32, i32
  }
  func.func @transform_22(%arg0: i32) -> (i32, i32) {
    %c0_i32 = arith.constant 0 : i32
    %c0_i32_0 = arith.constant 0 : i32
    %c0_i32_1 = arith.constant 0 : i32
    return %c0_i32, %c0_i32_0 : i32, i32
  }
  func.func @transform_23(%arg0: i32) -> (i32, i32, i32) {
    %c0_i32 = arith.constant 0 : i32
    %c0_i32_0 = arith.constant 0 : i32
    %c0_i32_1 = arith.constant 0 : i32
    return %arg0, %c0_i32, %c0_i32_0 : i32, i32, i32
  }
  func.func @transform_24(%arg0: i32) -> (i32, i32, i32) {
    %c0_i32 = arith.constant 0 : i32
    %c0_i32_0 = arith.constant 0 : i32
    %c0_i32_1 = arith.constant 0 : i32
    return %arg0, %c0_i32, %c0_i32_0 : i32, i32, i32
  }
}

</mosaic_0001>

<bundles_post_ra>
// kernel: _lambda_.1
= control target key start
LH: loop header
LB: loop body
LE: loop exit
PB: predicated region body
PF: predicated region fallthrough
CT: control target
= control target key end

     0   :  { %vm120_vm0 = vcmask 523264   ;;  %v11172_v50 = vmov 0   ;;  %v231_v62 = vlaneseq  ;;  %vm508_vm1 = vcmask 130048   ;;  %s14274_s29 = smov 80   ;;  %s14230_s22 = inlined_call_operand.vmem [shape: bf16[64,64], index: 22, kind: input, shape index: {}]   ;;  %s14231_s23 = inlined_call_operand.vmem [shape: f32[1,32,64], index: 23, kind: input, shape index: {}]   ;;  %s14232_s21 = inlined_call_operand.vmem [shape: f32[32,64], index: 21, kind: input, shape index: {}]   ;;  %s14233_s7 = inlined_call_operand.vmem [shape: bf16[4,64,192], index: 7, kind: input, shape index: {}]   ;;  %s14234_s4 = inlined_call_operand.vmem [shape: f32[4,8,192], index: 4, kind: input, shape index: {}]   ;;  %s14235_s16 = inlined_call_operand.vmem [shape: f32[128,128], index: 16, kind: input, shape index: {}]   ;;  %s14236_s8 = inlined_call_operand.vmem [shape: bf16[4,64,64], index: 8, kind: input, shape index: {}]   ;;  %s14237_s5 = inlined_call_operand.vmem [shape: bf16[4,64,128], index: 5, kind: input, shape index: {}]   ;;  %s14238_s6 = inlined_call_operand.vmem [shape: bf16[4,128,64], index: 6, kind: input, shape index: {}]   ;;  %s14239_s1 = inlined_call_operand.vmem [shape: bf16[4,64,128], index: 1, kind: input, shape index: {}]   ;;  %s14240_s3 = inlined_call_operand.vmem [shape: bf16[4,64,64], index: 3, kind: input, shape index: {}]   ;;  %s14241_s0 = inlined_call_operand.vmem [shape: f32[4,7,128], index: 0, kind: input, shape index: {}]   ;;  %s14242_s13 = inlined_call_operand.vmem [shape: f32[64,64], index: 13, kind: input, shape index: {}]   ;;  %s14243_s2 = inlined_call_operand.vmem [shape: bf16[4,64,64], index: 2, kind: input, shape index: {}]   ;;  %s14244_s14 = inlined_call_operand.vmem [shape: f32[128,128], index: 14, kind: input, shape index: {}]   ;;  %s14245_s19 = inlined_call_operand.vmem [shape: bf16[64,128], index: 19, kind: input, shape index: {}]   ;;  %s14246_s18 = inlined_call_operand.vmem [shape: f32[2,128], index: 18, kind: input, shape index: {}]   ;;  %s14247_s17 = inlined_call_operand.vmem [shape: f32[1,64], index: 17, kind: input, shape index: {}]   ;;  %s14248_s15 = inlined_call_operand.vmem [shape: f32[8,128], index: 15, kind: input, shape index: {}]   ;;  %s14249_s20 = inlined_call_operand.vmem [shape: bf16[64,64], index: 20, kind: input, shape index: {}]   ;;  %s14250_s10 = inlined_call_operand.vmem [shape: bf16[64,32], index: 10, kind: input, shape index: {}]   ;;  %s14251_s9 = inlined_call_operand.vmem [shape: f32[5,64], index: 9, kind: input, shape index: {}]   ;;  %s14252_s11 = inlined_call_operand.vmem [shape: bf16[32,16], index: 11, kind: input, shape index: {}]   ;;  %s14253_s12 = inlined_call_operand.vmem [shape: f32[1,16], index: 12, kind: input, shape index: {}]   ;;  %s14254_s24 = inlined_call_operand.vmem [shape: f32[1,2,1], index: 24, kind: output, shape index: {}]  }
   0x1   :  { %14280 = sst [smem:[#allocation2_spill]] %s14230_s22  ;;  %343 = vmatprep.mubr.bf16.mxu1 %v11172_v50  ;;  %vm955_vm2 = vcmask 261120   ;;  %vm960_vm3 = vcmask 392192   ;;  %vm11181_vm4 = vmmov 0   ;;  %vm7677_vm5 = vcmask 1041408  }
   0x2   :  { %14281 = sst [smem:[#allocation3_spill]] %s14231_s23  ;;  %s14294_s27 = sld [smem:[#allocation2_spill]]  ;;  %vm7679_vm6 = vcmask 1043456   ;;  %vm7681_vm7 = vcmask 1045504   ;;  %vm7971_vm8 = vcmask 517120   ;;  %vm8157_vm9 = vcmask 123904  }
   0x3   :  { %14282 = sst [smem:[#allocation4_spill]] %s14232_s21  ;;  %s14295_s30 = sld [smem:[#allocation3_spill]]  ;;  %vm8166_vm10 = vcmask 1024  }
   0x4   :  { %14283 = sst [smem:[#allocation5_spill]] %s14233_s7  ;;  %s14270_s7 = smov 96  }
   0x5   :  { %14284 = sst [smem:[#allocation6_spill]] %s14234_s4  ;;  %s14297_s23 = sld [smem:[#allocation5_spill]] }
   0x6   :  { %14285 = sst [smem:[#allocation7_spill]] %s14235_s16  ;;  %s14298_s28 = sld [smem:[#allocation6_spill]] }
   0x7   :  { %14286 = sst [smem:[#allocation8_spill]] %s14236_s8  ;;  %s14299_s22 = sld [smem:[#allocation7_spill]] }
   0x8   :  { %14287 = sst [smem:[#allocation9_spill]] %s14237_s5  ;;  %v10456_v0 = vld [vmem:[%s14294_s27] sm:$0xff]   ;;  %v10457_v1 = vld [vmem:[%s14294_s27 + $0x8] sm:$0xff]   ;;  %v10458_v2 = vld [vmem:[%s14294_s27 + $0x10] sm:$0xff]   ;;  %s14296_s5 = sld [smem:[#allocation4_spill]] }
   0x9   :  { %14288 = sst [smem:[#allocation10_spill]] %s14238_s6  ;;  %9028 = vmatprep.subr.bf16.mxu0 %v10456_v0  ;;  %v78_v3 = vld [vmem:[%s14295_s30] sm:$0xff]  ;;  %v79_v4 = vld [vmem:[%s14295_s30 + $0x8] sm:$0xff]  ;;  %v10459_v6 = vld [vmem:[%s14294_s27 + $0x18] sm:$0xff]   ;;  %s14272_s27 = smov 64  }
   0xa   :  { %14289 = sst [smem:[#allocation11_spill]] %s14250_s10  ;;  %9029 = vmatpush3.bf16.msra.mxu0 %v10456_v0  ;;  %v90_v5 = vpack.c.bf16 %v79_v4, %v78_v3  ;;  %v80_v7 = vld [vmem:[%s14295_s30 + $0x10] sm:$0xff]  ;;  %v81_v8 = vld [vmem:[%s14295_s30 + $0x18] sm:$0xff]  ;;  %v11402_v3 = vshrl.u32 %v231_v62, 7  ;;  %s14264_s6 = smov 16  }
   0xb   :  { %14290 = sst [smem:[#allocation12_spill]] %s14251_s9  ;;  %9030 = vmatprep.subr.bf16.mxu0 %v10457_v1  ;;  %v91_v9 = vpack.c.bf16 %v81_v8, %v80_v7  ;;  %v10460_v46 = vld [vmem:[%s14297_s23 + $0x4] ss:$8 sps:$4 sm:$0xff]   ;;  %v10462_v47 = vld [vmem:[%s14297_s23] ss:$8 sps:$4 sm:$0xff]   ;;  %s14300_s4 = sld [smem:[#allocation8_spill]] }
   0xc   :  { %14291 = sst [smem:[#allocation13_spill]] %s14252_s11  ;;  %9036 = vmatprep.mubr.msk.bf16.mxu0 %vm120_vm0, %v90_v5  ;;  %311 = vmatprep.subr.bf16.mxu1 %v10460_v46  ;;  %v10463_v48 = vld [vmem:[%s14297_s23 + $0x14] ss:$8 sps:$4 sm:$0xff]   ;;  %v10465_v49 = vld [vmem:[%s14297_s23 + $0x10] ss:$8 sps:$4 sm:$0xff]   ;;  %v11405_v5 = vsub.s32 0, %v11402_v3 }
   0xd   :  { %14292 = sst [smem:[#allocation14_spill]] %s14253_s12  ;;  %312 = vmatpush1.bf16.msra.mxu1 %v10462_v47  ;;  %v10466_v51 = vld [vmem:[%s14297_s23 + $0x24] ss:$8 sps:$4 sm:$0xff]   ;;  %v10468_v52 = vld [vmem:[%s14297_s23 + $0x20] ss:$8 sps:$4 sm:$0xff]   ;;  %s14266_s16 = smov 48  }
   0xe   :  { %14293 = sst [smem:[#allocation15_spill]] %s14254_s24  ;;  %9031 = vmatpush3.bf16.msra.mxu0 %v10457_v1  ;;  %v94_v10 = vld [vmem:[%s14296_s5 + $0x10] sm:$0xff]  ;;  %v92_v11 = vld [vmem:[%s14296_s5] sm:$0xff]  ;;  %v95_v13 = vld [vmem:[%s14296_s5 + $0x18] sm:$0xff]  ;;  %313 = vmatprep.subr.bf16.mxu1 %v10463_v48  ;;  %s14301_s25 = sld [smem:[#allocation9_spill]] }
   0xf   :  { %9032 = vmatprep.subr.bf16.mxu0 %v10458_v2  ;;  %v93_v16 = vld [vmem:[%s14296_s5 + $0x8] sm:$0xff]  ;;  %v10469_v53 = vld [vmem:[%s14297_s23 + $0x34] ss:$8 sps:$4 sm:$0xff]   ;;  %v10471_v54 = vld [vmem:[%s14297_s23 + $0x30] ss:$8 sps:$4 sm:$0xff]   ;;  %s14276_s5 = smov 112  }
  0x10   :  { %s14305_s21 = smov 64   ;;  %s14306_s30 = smov 96  }
  0x11   :  { %314 = vmatpush1.bf16.msra.mxu1 %v10465_v49  ;;  %s14308_s12 = smov 32   ;;  %s14312_s8 = sld [smem:[#allocation13_spill]] }
  0x12   :  { %9033 = vmatpush3.bf16.msra.mxu0 %v10458_v2  ;;  %315 = vmatprep.subr.bf16.mxu1 %v10466_v51 }
  0x13   :  { %9034 = vmatprep.subr.bf16.mxu0 %v10459_v6 }
  0x15   :  { %316 = vmatpush1.bf16.msra.mxu1 %v10468_v52 }
  0x16   :  { %9035 = vmatpush3.bf16.msra.mxu0 %v10459_v6  ;;  %317 = vmatprep.subr.bf16.mxu1 %v10469_v53  ;;  %v176_v6 = vld [vmem:[%s14298_s28] sm:$0xff] }
  0x19   :  { %9037 = vmatmul.mubr.msk.bf16.vlgmr.msra.gmra.mrb[0].mxu0 %vm120_vm0, %v91_v9  ;;  %318 = vmatpush1.bf16.msra.mxu1 %v10471_v54  ;;  %v234_v9 = vrot.slane %v176_v6, %v11405_v5 }
  0xec   :  { %v9038_v12 = vpop.f32.mrb[0].mxu0 }
  0xed   :  { %v11342_v14 = vadd.f32 %v9038_v12, %v94_v10  ;;  %v161_v15 = vpop.f32.mrb[1].mxu0  ;;  %v11412_v10 = vsub.s32 1, %v11402_v3 }
  0xee   :  { %v11347_v17 = vadd.f32 %v161_v15, %v92_v11  ;;  %v9039_v18 = vpop.f32.mrb[2].mxu0 }
  0xef   :  { %v11349_v19 = vadd.f32 %v9039_v18, %v95_v13  ;;  %v164_v20 = vpop.f32.mrb[3].mxu0  ;;  %v184_v21 = vsel %vm120_vm0, %v11342_v14, 0.0  ;;  %v242_v15 = vrot.slane %v176_v6, %v11412_v10 }
  0xf0   :  { %v11353_v22 = vadd.f32 %v164_v20, %v93_v16  ;;  %185 = vadd.xlane.f32.xlu1 %v184_v21  ;;  %v178_v23 = vsel %vm120_vm0, %v11347_v17, 0.0 }
  0xf1   :  { %179 = vadd.xlane.f32.xlu0 %v178_v23  ;;  %v187_v24 = vsel %vm120_vm0, %v11349_v19, 0.0 }
  0xf2   :  { %v181_v25 = vsel %vm120_vm0, %v11353_v22, 0.0 }
  0xf4   :  { %188 = vadd.xlane.f32.xlu1 %v187_v24 }
  0xf5   :  { %182 = vadd.xlane.f32.xlu0 %v181_v25 }
 0x17d   :  { %v186_v26 = vpop.xlane.xlu1 %185 }
 0x17e   :  { %v193_v27 = vmul.f32 0.015625, %v186_v26  ;;  %v180_v28 = vpop.xlane.xlu0 %179 }
 0x17f   :  { %v191_v29 = vmul.f32 0.015625, %v180_v28 }
 0x180   :  { %v11362_v30 = vsub.f32 %v11342_v14, %v193_v27 }
 0x181   :  { %v195_v31 = vsub.f32 %v11347_v17, %v191_v29  ;;  %v189_v32 = vpop.xlane.xlu1 %188 }
 0x182   :  { %v194_v33 = vmul.f32 0.015625, %v189_v32  ;;  %v183_v34 = vpop.xlane.xlu0 %182  ;;  %v201_v40 = vmul.f32 %v11362_v30, %v11362_v30 }
 0x183   :  { %v192_v35 = vmul.f32 0.015625, %v183_v34  ;;  %v199_v36 = vmul.f32 %v195_v31, %v195_v31  ;;  %v177_v34 = vld [vmem:[%s14298_s28 + $0x8] sm:$0xff] }
 0x184   :  { %v11366_v37 = vsub.f32 %v11349_v19, %v194_v33  ;;  %v209_v43 = vsel %vm120_vm0, %v201_v40, 0.0  ;;  %v11421_v33 = vsub.s32 4, %v11402_v3 }
 0x185   :  { %v196_v38 = vsub.f32 %v11353_v22, %v192_v35  ;;  %v203_v39 = vsel %vm120_vm0, %v199_v36, 0.0 }
 0x186   :  { %204 = vadd.xlane.f32.xlu0 %v203_v39  ;;  %v202_v44 = vmul.f32 %v11366_v37, %v11366_v37  ;;  %v264_v36 = vrot.slane %v177_v34, %v11421_v33 }
 0x187   :  { %v200_v41 = vmul.f32 %v196_v38, %v196_v38 }
 0x188   :  { %v212_v45 = vsel %vm120_vm0, %v202_v44, 0.0 }
 0x189   :  { %v206_v42 = vsel %vm120_vm0, %v200_v41, 0.0 }
 0x18a   :  { %207 = vadd.xlane.f32.xlu1 %v206_v42  ;;  %210 = vadd.xlane.f32.xlu0 %v209_v43 }
 0x18e   :  { %213 = vadd.xlane.f32.xlu1 %v212_v45 }
 0x213   :  { %v205_v55 = vpop.xlane.xlu0 %204 }
 0x214   :  { %v215_v56 = vmul.f32 0.015625, %v205_v55 }
 0x216   :  { %v219_v57 = vadd.f32 1e-05, %v215_v56 }
 0x217   :  { %v211_v58 = vpop.xlane.xlu0 %210  ;;  %v208_v59 = vpop.xlane.xlu1 %207 }
 0x218   :  { %10634 = vrsqrt.f32 %v219_v57  ;;  %v217_v60 = vmul.f32 0.015625, %v211_v58  ;;  %v216_v61 = vmul.f32 0.015625, %v208_v59 }
 0x21a   :  { %v220_v63 = vadd.f32 1e-05, %v216_v61  ;;  %v221_v0 = vadd.f32 1e-05, %v217_v60 }
 0x21b   :  { %v214_v1 = vpop.xlane.xlu1 %213 }
 0x21c   :  { %v218_v2 = vmul.f32 0.015625, %v214_v1  ;;  %10636 = vrsqrt.f32 %v220_v63 }
 0x21d   :  { %10638 = vrsqrt.f32 %v221_v0 }
 0x21e   :  { %v222_v4 = vadd.f32 1e-05, %v218_v2 }
 0x220   :  { %10640 = vrsqrt.f32 %v222_v4 }
 0x222   :  { %v10635_v7 = vpop.eup %10634 }
 0x223   :  { %v227_v8 = vmul.f32 %v10635_v7, %v195_v31 }
 0x225   :  { %v235_v13 = vmul.f32 %v234_v9, %v227_v8 }
 0x226   :  { %v10637_v11 = vpop.eup %10636 }
 0x227   :  { %v228_v12 = vmul.f32 %v10637_v11, %v196_v38  ;;  %v10639_v16 = vpop.eup %10638  ;;  %v243_v23 = vadd.f32 %v242_v15, %v235_v13 }
 0x228   :  { %v229_v25 = vmul.f32 %v10639_v16, %v11362_v30  ;;  %v260_v30 = vrot.slane %v176_v6, %v11421_v33 }
 0x229   :  { %v236_v20 = vmul.f32 %v234_v9, %v228_v12 }
 0x22a   :  { %v10641_v18 = vpop.eup %10640  ;;  %v237_v28 = vmul.f32 %v234_v9, %v229_v25 }
 0x22b   :  { %v230_v21 = vmul.f32 %v10641_v18, %v11366_v37  ;;  %v244_v24 = vadd.f32 %v242_v15, %v236_v20 }
 0x22c   :  { %v245_v31 = vadd.f32 %v242_v15, %v237_v28 }
 0x22d   :  { %v255_v26 = vpack.c.bf16 %v244_v24, %v243_v23  ;;  %v238_v27 = vmul.f32 %v234_v9, %v230_v21 }
 0x22f   :  { %8186 = vmatmul.mubr.msk.bf16.vlgmr.msra.gmra.mrb[0].mxu1 %vm120_vm0, %v255_v26  ;;  %v246_v29 = vadd.f32 %v242_v15, %v238_v27 }
 0x230   :  { %353 = vmatprep.mubr.bf16.mxu1 %v11172_v50 }
 0x231   :  { %v256_v32 = vpack.c.bf16 %v246_v29, %v245_v31 }
 0x237   :  { %8187 = vmatmul.mubr.msk.bf16.gmra.mrb[4].mxu1 %vm120_vm0, %v256_v32 }
 0x302   :  { %v345_v35 = vpop.f32.mrb[0].mxu1 }
 0x303   :  { %v347_v37 = vpop.f32.mrb[1].mxu1  ;;  %v346_v39 = vadd.f32 %v345_v35, %v260_v30 }
 0x304   :  { %v349_v38 = vpop.f32.mrb[2].mxu1  ;;  %v348_v42 = vadd.f32 %v347_v37, %v264_v36 }
 0x305   :  { %v350_v40 = vadd.f32 %v349_v38, %v260_v30  ;;  %v351_v41 = vpop.f32.mrb[3].mxu1 }
 0x306   :  { %v352_v43 = vadd.f32 %v351_v41, %v264_v36 }
 0x307   :  { %v9886_v44 = vpack.i.bf16 %v350_v40, %v346_v39  ;;  %v412_v45 = vpack.c.bf16 %v350_v40, %v346_v39 }
 0x308   :  { %v460_v46 = vpack.c.bf16 %v352_v43, %v348_v42  ;;  %v11428_v47 = vpack.i.bf16 %v352_v43, %v348_v42 }
 0x309   :  { %9887 = vrot.lane.b32.xlu0 %v9886_v44, %s14276_s5  ;;  %9056 = vmatprep.mubr.msk.bf16.mxu0 %vm508_vm1, %v412_v45 }
 0x30a   :  { %v355_v48 = vpop.f32.mrb[4].mxu1  ;;  %9072 = vmatprep.subr.bf16.mxu1 %v460_v46 }
 0x30b   :  { %v357_v49 = vpop.f32.mrb[5].mxu1  ;;  %9073 = vmatpush3.bf16.msra.mxu1 %v460_v46  ;;  %v356_v52 = vadd.f32 %v355_v48, %v260_v30 }
 0x30c   :  { %v359_v51 = vpop.f32.mrb[6].mxu1  ;;  %v358_v55 = vadd.f32 %v357_v49, %v264_v36 }
 0x30d   :  { %v360_v53 = vadd.f32 %v359_v51, %v260_v30  ;;  %v361_v54 = vpop.f32.mrb[7].mxu1  ;;  %9907 = vrot.lane.b32.xlu0 %v9886_v44, %s14274_s29 }
 0x30e   :  { %v362_v56 = vadd.f32 %v361_v54, %v264_v36 }
 0x30f   :  { %v9891_v57 = vpack.i.bf16 %v360_v53, %v356_v52  ;;  %v11433_v58 = vpack.c.bf16 %v360_v53, %v356_v52 }
 0x310   :  { %v461_v59 = vpack.c.bf16 %v362_v56, %v358_v55  ;;  %v11435_v60 = vpack.i.bf16 %v362_v56, %v358_v55  ;;  %v470_v55 = vld [vmem:[%s14299_s22 + $0x10] sm:$0xff] }
 0x311   :  { %9892 = vrot.lane.b32.xlu1 %v9891_v57, %s14276_s5  ;;  %492 = vrot.lane.b32.xlu0 %v412_v45, %s14272_s27 }
 0x312   :  { %9074 = vmatprep.subr.bf16.mxu1 %v461_v59 }
 0x313   :  { %9075 = vmatpush3.bf16.msra.mxu1 %v461_v59  ;;  %v469_v59 = vld [vmem:[%s14299_s22 + $0x8] sm:$0xff] }
 0x315   :  { %9897 = vrot.lane.b32.xlu1 %v9886_v44, %s14270_s7 }
 0x319   :  { %9902 = vrot.lane.b32.xlu1 %v9891_v57, %s14270_s7 }
 0x31d   :  { %9912 = vrot.lane.b32.xlu1 %v9891_v57, %s14274_s29 }
 0x321   :  { %494 = vrot.lane.b32.xlu1 %v11433_v58, %s14272_s27 }
 0x37b   :  { %v9888_v61 = vpop.permute.xlu0 %9887 }
 0x37c   :  { %v9890_v62 = vunpack.i.h.bf16 %v9888_v61  ;;  %v9889_v63 = vunpack.i.l.bf16 %v9888_v61  ;;  %v468_v61 = vld [vmem:[%s14299_s22] sm:$0xff] }
 0x37e   :  { %v11444_v0 = vpack.c.bf16 %v9890_v62, %v9889_v63 }
 0x37f   :  { %v9908_v1 = vpop.permute.xlu0 %9907 }
 0x380   :  { %496 = vrot.lane.b32.xlu0 %v11444_v0, %s14272_s27  ;;  %v9910_v15 = vunpack.i.h.bf16 %v9908_v1  ;;  %v9909_v16 = vunpack.i.l.bf16 %v9908_v1 }
 0x382   :  { %v418_v25 = vpack.c.bf16 %v9910_v15, %v9909_v16  ;;  %v473_v15 = vld [vmem:[%s14299_s22 + $0x28] sm:$0xff] }
 0x383   :  { %v9893_v2 = vpop.permute.xlu1 %9892  ;;  %v493_v4 = vpop.permute.xlu0 %492 }
 0x384   :  { %v9895_v6 = vunpack.i.h.bf16 %v9893_v2  ;;  %v9894_v7 = vunpack.i.l.bf16 %v9893_v2  ;;  %9828 = vmatprep.subr.msk.bf16.mxu0 %vm508_vm1, %v493_v4  ;;  %v534_v8 = vsel %vm508_vm1, %v493_v4, 0  ;;  %v471_v2 = vld [vmem:[%s14299_s22 + $0x18] sm:$0xff] }
 0x385   :  { %9041 = vmatpush3.bf16.xpose.msra.mxu0 %v534_v8 }
 0x386   :  { %v11450_v9 = vpack.c.bf16 %v9895_v6, %v9894_v7  ;;  %v475_v6 = vld [vmem:[%s14299_s22 + $0x38] sm:$0xff] }
 0x387   :  { %v9898_v11 = vpop.permute.xlu1 %9897 }
 0x388   :  { %v9900_v12 = vunpack.i.h.bf16 %v9898_v11  ;;  %v9899_v13 = vunpack.i.l.bf16 %v9898_v11  ;;  %498 = vrot.lane.b32.xlu1 %v11450_v9, %s14272_s27 }
 0x38a   :  { %v416_v18 = vpack.c.bf16 %v9900_v12, %v9899_v13 }
 0x38b   :  { %v9903_v20 = vpop.permute.xlu1 %9902 }
 0x38c   :  { %v9905_v21 = vunpack.i.h.bf16 %v9903_v20  ;;  %v9904_v23 = vunpack.i.l.bf16 %v9903_v20  ;;  %500 = vrot.lane.b32.xlu0 %v416_v18, %s14272_s27 }
 0x38e   :  { %v417_v24 = vpack.c.bf16 %v9905_v21, %v9904_v23  ;;  %v479_v23 = vld [vmem:[%s14299_s22 + $0x58] sm:$0xff] }
 0x38f   :  { %v9913_v26 = vpop.permute.xlu1 %9912 }
 0x390   :  { %v9915_v27 = vunpack.i.h.bf16 %v9913_v26  ;;  %v9914_v28 = vunpack.i.l.bf16 %v9913_v26  ;;  %502 = vrot.lane.b32.xlu1 %v417_v24, %s14272_s27  ;;  %504 = vrot.lane.b32.xlu0 %v418_v25, %s14272_s27  ;;  %v478_v26 = vld [vmem:[%s14299_s22 + $0x50] sm:$0xff] }
 0x392   :  { %v419_v29 = vpack.c.bf16 %v9915_v27, %v9914_v28 }
 0x393   :  { %v495_v31 = vpop.permute.xlu1 %494 }
 0x394   :  { %506 = vrot.lane.b32.xlu1 %v419_v29, %s14272_s27  ;;  %9917 = vrot.lane.b32.xlu0 %v11428_v47, %s14276_s5  ;;  %v537_v32 = vsel %vm508_vm1, %v495_v31, 0  ;;  %s14303_s27 = smov 112  }
 0x395   :  { %9829 = vmatprep.subr.msk.bf16.mxu0 %vm508_vm1, %v495_v31  ;;  %v477_v31 = vld [vmem:[%s14299_s22 + $0x48] sm:$0xff] }
 0x396   :  { %9043 = vmatpush3.bf16.xpose.msra.mxu0 %v537_v32 }
 0x398   :  { %9922 = vrot.lane.b32.xlu1 %v11435_v60, %s14276_s5 }
 0x3f2   :  { %v497_v34 = vpop.permute.xlu0 %496 }
 0x3f3   :  { %9830 = vmatprep.subr.msk.bf16.mxu0 %vm508_vm1, %v497_v34  ;;  %v540_v30 = vsel %vm508_vm1, %v497_v34, 0  ;;  %v476_v34 = vld [vmem:[%s14299_s22 + $0x40] sm:$0xff] }
 0x3f4   :  { %9045 = vmatpush3.bf16.xpose.msra.mxu0 %v540_v30 }
 0x3fa   :  { %v499_v35 = vpop.permute.xlu1 %498 }
 0x3fb   :  { %9831 = vmatprep.subr.msk.bf16.mxu0 %vm508_vm1, %v499_v35  ;;  %v543_v36 = vsel %vm508_vm1, %v499_v35, 0 }
 0x3fc   :  { %9047 = vmatpush3.bf16.xpose.msra.mxu0 %v543_v36  ;;  %v483_v36 = vld [vmem:[%s14299_s22 + $0x78] sm:$0xff] }
 0x3fe   :  { %v501_v37 = vpop.permute.xlu0 %500 }
 0x3ff   :  { %9832 = vmatprep.subr.msk.bf16.mxu0 %vm508_vm1, %v501_v37  ;;  %v546_v40 = vsel %vm508_vm1, %v501_v37, 0 }
 0x402   :  { %v503_v38 = vpop.permute.xlu1 %502  ;;  %v505_v39 = vpop.permute.xlu0 %504 }
 0x403   :  { %v549_v51 = vsel %vm508_vm1, %v503_v38, 0  ;;  %v552_v53 = vsel %vm508_vm1, %v505_v39, 0 }
 0x404   :  { %9049 = vmatpush3.bf16.xpose.msra.mxu0 %v546_v40 }
 0x405   :  { %9833 = vmatprep.subr.msk.bf16.mxu0 %vm508_vm1, %v503_v38 }
 0x406   :  { %v507_v41 = vpop.permute.xlu1 %506  ;;  %v9918_v42 = vpop.permute.xlu0 %9917 }
 0x407   :  { %v9920_v43 = vunpack.i.h.bf16 %v9918_v42  ;;  %v9919_v44 = vunpack.i.l.bf16 %v9918_v42  ;;  %v555_v54 = vsel %vm508_vm1, %v507_v41, 0 }
 0x409   :  { %v462_v45 = vpack.c.bf16 %v9920_v43, %v9919_v44  ;;  %v481_v43 = vld [vmem:[%s14299_s22 + $0x68] sm:$0xff] }
 0x40a   :  { %v9923_v46 = vpop.permute.xlu1 %9922 }
 0x40b   :  { %v9925_v48 = vunpack.i.h.bf16 %v9923_v46  ;;  %v9924_v49 = vunpack.i.l.bf16 %v9923_v46  ;;  %9076 = vmatprep.subr.bf16.mxu1 %v462_v45 }
 0x40c   :  { %9051 = vmatpush3.bf16.xpose.msra.mxu0 %v549_v51  ;;  %9077 = vmatpush3.bf16.msra.mxu1 %v462_v45  ;;  %v480_v45 = vld [vmem:[%s14299_s22 + $0x60] sm:$0xff] }
 0x40d   :  { %9834 = vmatprep.subr.msk.bf16.mxu0 %vm508_vm1, %v505_v39  ;;  %v463_v52 = vpack.c.bf16 %v9925_v48, %v9924_v49  ;;  %v482_v39 = vld [vmem:[%s14299_s22 + $0x70] sm:$0xff] }
 0x40f   :  { %9078 = vmatprep.subr.bf16.mxu1 %v463_v52 }
 0x410   :  { %9079 = vmatpush3.bf16.msra.mxu1 %v463_v52 }
 0x414   :  { %9053 = vmatpush3.bf16.xpose.msra.mxu0 %v552_v53 }
 0x415   :  { %9835 = vmatprep.subr.msk.bf16.mxu0 %vm508_vm1, %v507_v41 }
 0x41c   :  { %9055 = vmatpush3.bf16.xpose.msra.mxu0 %v555_v54 }
 0x423   :  { %9057 = vmatmul.mubr.msk.bf16.vlgmr.msra.gmra.mrb[4].mxu0 %vm508_vm1, %v11433_v58 }
 0x424   :  { %9060 = vmatprep.mubr.msk.bf16.mxu0 %vm508_vm1, %v11444_v0 }
 0x42b   :  { %9061 = vmatmul.mubr.msk.bf16.gmra.mrb[8].mxu0 %vm508_vm1, %v11450_v9  ;;  %v474_v9 = vld [vmem:[%s14299_s22 + $0x30] sm:$0xff] }
 0x42c   :  { %9064 = vmatprep.mubr.msk.bf16.mxu0 %vm508_vm1, %v416_v18  ;;  %v472_v18 = vld [vmem:[%s14299_s22 + $0x20] sm:$0xff] }
 0x433   :  { %9065 = vmatmul.mubr.msk.bf16.gmra.mrb[12].mxu0 %vm508_vm1, %v417_v24 }
 0x434   :  { %9068 = vmatprep.mubr.msk.bf16.mxu0 %vm508_vm1, %v418_v25 }
 0x43b   :  { %9069 = vmatmul.mubr.msk.bf16.gmra.mrb[16].mxu0 %vm508_vm1, %v419_v29 }
 0x4f6   :  { %v9058_v56 = vpop.f32.mrb[4].mxu0 }
 0x4f7   :  { %v11489_v57 = vadd.f32 %v9058_v56, %v470_v55  ;;  %v591_v58 = vpop.f32.mrb[5].mxu0 }
 0x4f8   :  { %v9059_v62 = vpop.f32.mrb[6].mxu0  ;;  %v11500_v1 = vadd.f32 %v591_v58, %v468_v61 }
 0x4f9   :  { %658 = vmax.xlane.f32.xlu0 %v11489_v57  ;;  %v594_v63 = vpop.f32.mrb[7].mxu0  ;;  %v11510_v7 = vadd.f32 %v9059_v62, %v471_v2 }
 0x4fa   :  { %v11498_v0 = vadd.f32 %v594_v63, %v469_v59 }
 0x4fc   :  { %656 = vmax.xlane.f32.xlu1 %v11498_v0 }
 0x4fd   :  { %654 = vmax.xlane.f32.xlu0 %v11500_v1 }
 0x4fe   :  { %v9062_v4 = vpop.f32.mrb[8].mxu0 }
 0x4ff   :  { %v607_v8 = vpop.f32.mrb[9].mxu0  ;;  %v616_v16 = vadd.f32 %v9062_v4, %v474_v9 }
 0x500   :  { %v9063_v11 = vpop.f32.mrb[10].mxu0  ;;  %v11530_v24 = vadd.f32 %v607_v8, %v472_v18 }
 0x501   :  { %v11515_v12 = vadd.f32 %v9063_v11, %v475_v6  ;;  %v610_v13 = vpop.f32.mrb[11].mxu0  ;;  %660 = vmax.xlane.f32.xlu0 %v11510_v7 }
 0x502   :  { %v11525_v20 = vadd.f32 %v610_v13, %v473_v15 }
 0x503   :  { %668 = vmax.xlane.f32.xlu1 %v11515_v12 }
 0x505   :  { %666 = vmax.xlane.f32.xlu0 %v616_v16 }
 0x506   :  { %v9066_v21 = vpop.f32.mrb[12].mxu0 }
 0x507   :  { %v623_v25 = vpop.f32.mrb[13].mxu0  ;;  %664 = vmax.xlane.f32.xlu1 %v11525_v20  ;;  %v11542_v32 = vadd.f32 %v9066_v21, %v478_v26 }
 0x508   :  { %v9067_v27 = vpop.f32.mrb[14].mxu0  ;;  %v11554_v37 = vadd.f32 %v623_v25, %v476_v34 }
 0x509   :  { %v11536_v28 = vadd.f32 %v9067_v27, %v479_v23  ;;  %v626_v29 = vpop.f32.mrb[15].mxu0  ;;  %662 = vmax.xlane.f32.xlu0 %v11530_v24 }
 0x50a   :  { %v11548_v30 = vadd.f32 %v626_v29, %v477_v31 }
 0x50b   :  { %676 = vmax.xlane.f32.xlu1 %v11536_v28 }
 0x50d   :  { %674 = vmax.xlane.f32.xlu0 %v11542_v32 }
 0x50e   :  { %v9070_v35 = vpop.f32.mrb[16].mxu0 }
 0x50f   :  { %v639_v38 = vpop.f32.mrb[17].mxu0  ;;  %672 = vmax.xlane.f32.xlu1 %v11548_v30  ;;  %v11566_v44 = vadd.f32 %v9070_v35, %v482_v39 }
 0x510   :  { %v9071_v40 = vpop.f32.mrb[18].mxu0  ;;  %v11575_v48 = vadd.f32 %v639_v38, %v480_v45 }
 0x511   :  { %v11560_v41 = vadd.f32 %v9071_v40, %v483_v36  ;;  %v642_v42 = vpop.f32.mrb[19].mxu0  ;;  %670 = vmax.xlane.f32.xlu0 %v11554_v37 }
 0x512   :  { %v11572_v46 = vadd.f32 %v642_v42, %v481_v43 }
 0x513   :  { %684 = vmax.xlane.f32.xlu1 %v11560_v41 }
 0x515   :  { %682 = vmax.xlane.f32.xlu0 %v11566_v44 }
 0x517   :  { %680 = vmax.xlane.f32.xlu1 %v11572_v46 }
 0x519   :  { %678 = vmax.xlane.f32.xlu0 %v11575_v48 }
 0x528   :  { %9932 = vrot.lane.b32.xlu1 %v11435_v60, %s14270_s7 }
 0x52f   :  { %9927 = vrot.lane.b32.xlu0 %v11428_v47, %s14270_s7  ;;  %s14304_s7 = smov 80  }
 0x586   :  { %v659_v49 = vpop.xlane.xlu0 %658 }
 0x587   :  { %v688_v51 = vsub.f32 %v11489_v57, %v659_v49 }
 0x589   :  { %v706_v52 = vmul.f32 1.442695, %v688_v51  ;;  %v657_v54 = vpop.xlane.xlu1 %656 }
 0x58a   :  { %v655_v53 = vpop.xlane.xlu0 %654  ;;  %v687_v58 = vsub.f32 %v11498_v0, %v657_v54 }
 0x58b   :  { %10642 = vpow2.f32 %v706_v52  ;;  %v686_v55 = vsub.f32 %v11500_v1, %v655_v53 }
 0x58c   :  { %v704_v2 = vmul.f32 1.442695, %v687_v58 }
 0x58d   :  { %v702_v56 = vmul.f32 1.442695, %v686_v55 }
 0x58e   :  { %v661_v59 = vpop.xlane.xlu0 %660 }
 0x58f   :  { %10644 = vpow2.f32 %v702_v56  ;;  %v689_v61 = vsub.f32 %v11510_v7, %v661_v59 }
 0x590   :  { %v669_v62 = vpop.xlane.xlu1 %668 }
 0x591   :  { %v708_v63 = vmul.f32 1.442695, %v689_v61  ;;  %v693_v1 = vsub.f32 %v11515_v12, %v669_v62 }
 0x592   :  { %v667_v4 = vpop.xlane.xlu0 %666 }
 0x593   :  { %10646 = vpow2.f32 %v708_v63  ;;  %v692_v6 = vsub.f32 %v616_v16, %v667_v4  ;;  %v716_v21 = vmul.f32 1.442695, %v693_v1 }
 0x594   :  { %v665_v57 = vpop.xlane.xlu1 %664  ;;  %10648 = vpow2.f32 %v704_v2 }
 0x595   :  { %v11587_v8 = vpop.eup %10642  ;;  %v714_v9 = vmul.f32 1.442695, %v692_v6  ;;  %v691_v11 = vsub.f32 %v11525_v20, %v665_v57 }
 0x596   :  { %738 = vadd.xlane.f32.xlu0 %v11587_v8  ;;  %v663_v0 = vpop.xlane.xlu0 %662 }
 0x597   :  { %10650 = vpow2.f32 %v714_v9  ;;  %v712_v7 = vmul.f32 1.442695, %v691_v11  ;;  %v690_v13 = vsub.f32 %v11530_v24, %v663_v0 }
 0x598   :  { %v677_v15 = vpop.xlane.xlu1 %676 }
 0x599   :  { %v11593_v18 = vpop.eup %10644  ;;  %v710_v16 = vmul.f32 1.442695, %v690_v13  ;;  %10652 = vpow2.f32 %v712_v7  ;;  %v697_v29 = vsub.f32 %v11536_v28, %v677_v15 }
 0x59a   :  { %734 = vadd.xlane.f32.xlu0 %v11593_v18  ;;  %v675_v23 = vpop.xlane.xlu0 %674 }
 0x59b   :  { %10654 = vpow2.f32 %v710_v16  ;;  %v696_v20 = vsub.f32 %v11542_v32, %v675_v23  ;;  %v724_v39 = vmul.f32 1.442695, %v697_v29 }
 0x59c   :  { %v673_v12 = vpop.xlane.xlu1 %672  ;;  %10656 = vpow2.f32 %v716_v21 }
 0x59d   :  { %v11597_v25 = vpop.eup %10646  ;;  %v722_v26 = vmul.f32 1.442695, %v696_v20  ;;  %v695_v27 = vsub.f32 %v11548_v30, %v673_v12 }
 0x59e   :  { %740 = vadd.xlane.f32.xlu1 %v11597_v25  ;;  %v671_v24 = vpop.xlane.xlu0 %670  ;;  %v11603_v35 = vpop.eup %10648 }
 0x59f   :  { %10658 = vpow2.f32 %v722_v26  ;;  %v720_v31 = vmul.f32 1.442695, %v695_v27  ;;  %v694_v34 = vsub.f32 %v11554_v37, %v671_v24 }
 0x5a0   :  { %v685_v36 = vpop.xlane.xlu1 %684 }
 0x5a1   :  { %v11605_v32 = vpop.eup %10650  ;;  %v718_v38 = vmul.f32 1.442695, %v694_v34  ;;  %10660 = vpow2.f32 %v720_v31  ;;  %v701_v9 = vsub.f32 %v11560_v41, %v685_v36 }
 0x5a2   :  { %736 = vadd.xlane.f32.xlu1 %v11603_v35  ;;  %746 = vadd.xlane.f32.xlu0 %v11605_v32  ;;  %v683_v30 = vpop.xlane.xlu0 %682 }
 0x5a3   :  { %10662 = vpow2.f32 %v718_v38  ;;  %v11609_v40 = vpop.eup %10652  ;;  %v700_v2 = vsub.f32 %v11566_v44, %v683_v30  ;;  %v732_v1 = vmul.f32 1.442695, %v701_v9 }
 0x5a4   :  { %v681_v28 = vpop.xlane.xlu1 %680  ;;  %10664 = vpow2.f32 %v724_v39 }
 0x5a5   :  { %v11611_v42 = vpop.eup %10654  ;;  %v699_v63 = vsub.f32 %v11572_v46, %v681_v28  ;;  %v730_v57 = vmul.f32 1.442695, %v700_v2 }
 0x5a6   :  { %744 = vadd.xlane.f32.xlu0 %v11609_v40  ;;  %742 = vadd.xlane.f32.xlu1 %v11611_v42  ;;  %v679_v37 = vpop.xlane.xlu0 %678  ;;  %v11615_v43 = vpop.eup %10656 }
 0x5a7   :  { %v728_v4 = vmul.f32 1.442695, %v699_v63  ;;  %v698_v6 = vsub.f32 %v11575_v48, %v679_v37 }
 0x5a8   :  { %v9933_v45 = vpop.permute.xlu1 %9932 }
 0x5a9   :  { %v11617_v49 = vpop.eup %10658  ;;  %v9935_v52 = vunpack.i.h.bf16 %v9933_v45  ;;  %v9934_v53 = vunpack.i.l.bf16 %v9933_v45  ;;  %10666 = vpow2.f32 %v728_v4  ;;  %v726_v11 = vmul.f32 1.442695, %v698_v6 }
 0x5aa   :  { %748 = vadd.xlane.f32.xlu1 %v11615_v43  ;;  %754 = vadd.xlane.f32.xlu0 %v11617_v49  ;;  %v9928_v51 = vpop.permute.xlu0 %9927  ;;  %10668 = vpow2.f32 %v730_v57 }
 0x5ab   :  { %v9930_v54 = vunpack.i.h.bf16 %v9928_v51  ;;  %v9929_v55 = vunpack.i.l.bf16 %v9928_v51  ;;  %v11621_v56 = vpop.eup %10660  ;;  %v465_v61 = vpack.c.bf16 %v9935_v52, %v9934_v53  ;;  %10670 = vpow2.f32 %v726_v11 }
 0x5ac   :  { %10672 = vpow2.f32 %v732_v1 }
 0x5ad   :  { %v11623_v58 = vpop.eup %10662  ;;  %v464_v59 = vpack.c.bf16 %v9930_v54, %v9929_v55 }
 0x5ae   :  { %752 = vadd.xlane.f32.xlu0 %v11621_v56  ;;  %750 = vadd.xlane.f32.xlu1 %v11623_v58  ;;  %v11627_v62 = vpop.eup %10664 }
 0x5af   :  { %9080 = vmatprep.subr.bf16.mxu1 %v464_v59 }
 0x5b0   :  { %9081 = vmatpush3.bf16.msra.mxu1 %v464_v59 }
 0x5b1   :  { %9082 = vmatprep.subr.bf16.mxu1 %v465_v61 }
 0x5b2   :  { %756 = vadd.xlane.f32.xlu1 %v11627_v62 }
 0x5b4   :  { %9083 = vmatpush3.bf16.msra.mxu1 %v465_v61 }
 0x5c3   :  { %9942 = vrot.lane.b32.xlu1 %v11435_v60, %s14274_s29  ;;  %v11638_v60 = vpop.eup %10666 }
 0x5c4   :  { %9937 = vrot.lane.b32.xlu0 %v11428_v47, %s14274_s29  ;;  %v11641_v47 = vpop.eup %10668  ;;  %s14302_s29 = sld [smem:[#allocation10_spill]] }
 0x5c5   :  { %v11643_v46 = vpop.eup %10670 }
 0x5c6   :  { %v11647_v44 = vpop.eup %10672 }
 0x5e3   :  { %760 = vadd.xlane.f32.xlu0 %v11638_v60 }
 0x5e7   :  { %762 = vadd.xlane.f32.xlu0 %v11641_v47  ;;  %758 = vadd.xlane.f32.xlu1 %v11643_v46 }
 0x5eb   :  { %764 = vadd.xlane.f32.xlu1 %v11647_v44 }
 0x623   :  { %v739_v41 = vpop.xlane.xlu0 %738 }
 0x627   :  { %v735_v48 = vpop.xlane.xlu0 %734 }
 0x628   :  { %10674 = vrcp.f32 %v735_v48 }
 0x62b   :  { %v741_v0 = vpop.xlane.xlu1 %740 }
 0x62f   :  { %v737_v7 = vpop.xlane.xlu1 %736  ;;  %v747_v13 = vpop.xlane.xlu0 %746 }
 0x630   :  { %10676 = vrcp.f32 %v737_v7 }
 0x631   :  { %10678 = vrcp.f32 %v741_v0 }
 0x632   :  { %v10675_v20 = vpop.eup %10674 }
 0x633   :  { %v743_v15 = vpop.xlane.xlu1 %742  ;;  %v745_v16 = vpop.xlane.xlu0 %744  ;;  %v782_v24 = vmul.f32 %v10675_v20, %v11593_v18 }
 0x634   :  { %10680 = vrcp.f32 %v743_v15 }
 0x635   :  { %10682 = vrcp.f32 %v745_v16 }
 0x636   :  { %10684 = vrcp.f32 %v739_v41 }
 0x637   :  { %v749_v21 = vpop.xlane.xlu1 %748  ;;  %v755_v23 = vpop.xlane.xlu0 %754 }
 0x638   :  { %10686 = vrcp.f32 %v749_v21 }
 0x63a   :  { %v10677_v12 = vpop.eup %10676 }
 0x63b   :  { %v751_v26 = vpop.xlane.xlu1 %750  ;;  %v753_v27 = vpop.xlane.xlu0 %752  ;;  %v783_v29 = vmul.f32 %v10677_v12, %v11603_v35 }
 0x63c   :  { %10688 = vrcp.f32 %v751_v26  ;;  %v10679_v39 = vpop.eup %10678 }
 0x63d   :  { %v798_v31 = vpack.c.bf16 %v783_v29, %v782_v24  ;;  %10690 = vrcp.f32 %v753_v27  ;;  %v785_v35 = vmul.f32 %v10679_v39, %v11597_v25 }
 0x63e   :  { %v10681_v37 = vpop.eup %10680  ;;  %10692 = vrcp.f32 %v747_v13 }
 0x63f   :  { %v757_v34 = vpop.xlane.xlu1 %756  ;;  %9088 = vmatprep.mubr.bf16.mxu1 %v798_v31  ;;  %v9938_v36 = vpop.permute.xlu0 %9937  ;;  %v786_v55 = vmul.f32 %v10681_v37, %v11611_v42 }
 0x640   :  { %v9940_v38 = vunpack.i.h.bf16 %v9938_v36  ;;  %v9939_v30 = vunpack.i.l.bf16 %v9938_v36  ;;  %v10683_v51 = vpop.eup %10682  ;;  %10694 = vrcp.f32 %v757_v34 }
 0x641   :  { %v10685_v18 = vpop.eup %10684  ;;  %v787_v59 = vmul.f32 %v10683_v51, %v11609_v40  ;;  %10696 = vrcp.f32 %v755_v23 }
 0x642   :  { %v466_v28 = vpack.c.bf16 %v9940_v38, %v9939_v30  ;;  %v784_v61 = vmul.f32 %v10685_v18, %v11587_v8  ;;  %v10687_v63 = vpop.eup %10686 }
 0x643   :  { %v9943_v45 = vpop.permute.xlu1 %9942  ;;  %v800_v6 = vpack.c.bf16 %v787_v59, %v786_v55  ;;  %v789_v25 = vmul.f32 %v10687_v63, %v11615_v43 }
 0x644   :  { %v9945_v52 = vunpack.i.h.bf16 %v9943_v45  ;;  %v9944_v53 = vunpack.i.l.bf16 %v9943_v45  ;;  %9084 = vmatprep.subr.bf16.mxu1 %v466_v28  ;;  %v799_v2 = vpack.c.bf16 %v785_v35, %v784_v61  ;;  %v10475_v35 = vld [vmem:[%s14300_s4 + $0x18] sm:$0xff]  }
 0x645   :  { %9085 = vmatpush3.bf16.msra.mxu1 %v466_v28  ;;  %v10473_v28 = vld [vmem:[%s14300_s4 + $0x8] sm:$0xff]  }
 0x646   :  { %v467_v54 = vpack.c.bf16 %v9945_v52, %v9944_v53  ;;  %v10689_v4 = vpop.eup %10688  ;;  %v10474_v53 = vld [vmem:[%s14300_s4 + $0x10] sm:$0xff]  }
 0x647   :  { %v10691_v57 = vpop.eup %10690  ;;  %v790_v42 = vmul.f32 %v10689_v4, %v11623_v58 }
 0x648   :  { %9086 = vmatprep.subr.bf16.mxu1 %v467_v54  ;;  %v10693_v9 = vpop.eup %10692  ;;  %v791_v40 = vmul.f32 %v10691_v57, %v11621_v56 }
 0x649   :  { %9087 = vmatpush3.bf16.msra.mxu1 %v467_v54  ;;  %v788_v8 = vmul.f32 %v10693_v9, %v11605_v32 }
 0x64a   :  { %v10695_v1 = vpop.eup %10694  ;;  %v802_v41 = vpack.c.bf16 %v791_v40, %v790_v42 }
 0x64b   :  { %v801_v11 = vpack.c.bf16 %v789_v25, %v788_v8  ;;  %v10697_v48 = vpop.eup %10696  ;;  %v793_v0 = vmul.f32 %v10695_v1, %v11627_v62 }
 0x64c   :  { %9089 = vmatmul.mubr.bf16.vlgmr.msra.gmra.mrb[8].mxu1 %v799_v2  ;;  %v792_v7 = vmul.f32 %v10697_v48, %v11617_v49 }
 0x64d   :  { %9092 = vmatprep.mubr.bf16.mxu1 %v800_v6 }
 0x64e   :  { %v803_v13 = vpack.c.bf16 %v793_v0, %v792_v7 }
 0x654   :  { %9093 = vmatmul.mubr.bf16.gmra.mrb[12].mxu1 %v801_v11 }
 0x655   :  { %9096 = vmatprep.mubr.bf16.mxu1 %v802_v41 }
 0x65c   :  { %9097 = vmatmul.mubr.bf16.gmra.mrb[16].mxu1 %v803_v13 }
 0x670   :  { %v761_v15 = vpop.xlane.xlu0 %760 }
 0x671   :  { %10698 = vrcp.f32 %v761_v15 }
 0x674   :  { %v759_v43 = vpop.xlane.xlu1 %758  ;;  %v763_v58 = vpop.xlane.xlu0 %762 }
 0x675   :  { %10700 = vrcp.f32 %v759_v43 }
 0x676   :  { %10702 = vrcp.f32 %v763_v58 }
 0x678   :  { %v765_v56 = vpop.xlane.xlu1 %764 }
 0x679   :  { %10704 = vrcp.f32 %v765_v56 }
 0x67b   :  { %v10699_v32 = vpop.eup %10698 }
 0x67c   :  { %v795_v23 = vmul.f32 %v10699_v32, %v11638_v60 }
 0x67f   :  { %v10701_v16 = vpop.eup %10700 }
 0x680   :  { %v794_v21 = vmul.f32 %v10701_v16, %v11643_v46  ;;  %v10703_v20 = vpop.eup %10702 }
 0x681   :  { %v796_v49 = vmul.f32 %v10703_v20, %v11641_v47  ;;  %v10472_v47 = vld [vmem:[%s14300_s4] sm:$0xff]  }
 0x682   :  { %v804_v62 = vpack.c.bf16 %v795_v23, %v794_v21  ;;  %9104 = vmatprep.subr.bf16.mxu1 %v10472_v47 }
 0x683   :  { %v10705_v12 = vpop.eup %10704  ;;  %9105 = vmatpush3.bf16.msra.mxu1 %v10472_v47 }
 0x684   :  { %9100 = vmatprep.mubr.bf16.mxu1 %v804_v62  ;;  %v797_v26 = vmul.f32 %v10705_v12, %v11647_v44  ;;  %9106 = vmatprep.subr.bf16.mxu1 %v10473_v28 }
 0x686   :  { %v805_v27 = vpack.c.bf16 %v797_v26, %v796_v49 }
 0x687   :  { %9107 = vmatpush3.bf16.msra.mxu1 %v10473_v28 }
 0x688   :  { %9101 = vmatmul.mubr.bf16.gmra.mrb[20].mxu1 %v805_v27  ;;  %9108 = vmatprep.subr.bf16.mxu1 %v10474_v53 }
 0x68b   :  { %9109 = vmatpush3.bf16.msra.mxu1 %v10474_v53 }
 0x68c   :  { %9110 = vmatprep.subr.bf16.mxu1 %v10475_v35 }
 0x68f   :  { %9111 = vmatpush3.bf16.msra.mxu1 %v10475_v35 }
 0x71f   :  { %v9090_v24 = vpop.f32.mrb[8].mxu1 }
 0x720   :  { %v840_v29 = vpop.f32.mrb[9].mxu1 }
 0x721   :  { %v9091_v31 = vpop.f32.mrb[10].mxu1 }
 0x722   :  { %v843_v34 = vpop.f32.mrb[11].mxu1 }
 0x727   :  { %v9094_v36 = vpop.f32.mrb[12].mxu1 }
 0x728   :  { %v856_v38 = vpop.f32.mrb[13].mxu1 }
 0x729   :  { %v9095_v30 = vpop.f32.mrb[14].mxu1 }
 0x72a   :  { %v9946_v46 = vpack.i.bf16 %v9095_v30, %v9094_v36  ;;  %v859_v39 = vpop.f32.mrb[15].mxu1  ;;  %v11704_v36 = vld [vmem:[%s14298_s28] sm:$0xff] }
 0x72b   :  { %v9951_v60 = vpack.i.bf16 %v859_v39, %v856_v38 }
 0x72c   :  { %9947 = vrot.lane.b32.xlu1 %v9946_v46, %s14264_s6 }
 0x72d   :  { %9952 = vrot.lane.b32.xlu0 %v9951_v60, %s14264_s6  ;;  %s14268_s6 = smov 32  }
 0x72f   :  { %v9098_v44 = vpop.f32.mrb[16].mxu1 }
 0x730   :  { %v872_v37 = vpop.f32.mrb[17].mxu1 }
 0x731   :  { %v9099_v45 = vpop.f32.mrb[18].mxu1 }
 0x732   :  { %v9956_v51 = vpack.i.bf16 %v9099_v45, %v9098_v44  ;;  %v875_v52 = vpop.f32.mrb[19].mxu1 }
 0x733   :  { %v9961_v18 = vpack.i.bf16 %v875_v52, %v872_v37 }
 0x734   :  { %9957 = vrot.lane.b32.xlu1 %v9956_v51, %s14268_s6 }
 0x738   :  { %9962 = vrot.lane.b32.xlu1 %v9961_v18, %s14268_s6  ;;  %s14309_s6 = smov 48  }
 0x75b   :  { %v9102_v54 = vpop.f32.mrb[20].mxu1 }
 0x75c   :  { %v888_v55 = vpop.f32.mrb[21].mxu1 }
 0x75d   :  { %v9103_v59 = vpop.f32.mrb[22].mxu1 }
 0x75e   :  { %v9971_v61 = vpack.i.bf16 %v9103_v59, %v9102_v54  ;;  %v891_v63 = vpop.f32.mrb[23].mxu1 }
 0x75f   :  { %v9966_v2 = vpack.i.bf16 %v891_v63, %v888_v55 }
 0x760   :  { %9972 = vrot.lane.b32.xlu1 %v9971_v61, %s14266_s16 }
 0x761   :  { %9967 = vrot.lane.b32.xlu0 %v9966_v2, %s14266_s16 }
 0x79e   :  { %v9948_v4 = vpop.permute.xlu1 %9947 }
 0x79f   :  { %v9953_v57 = vpop.permute.xlu0 %9952  ;;  %v9950_v9 = vunpack.i.h.bf16 %v9948_v4  ;;  %v9949_v25 = vunpack.i.l.bf16 %v9948_v4 }
 0x7a0   :  { %v9955_v40 = vunpack.i.h.bf16 %v9953_v57  ;;  %v9954_v8 = vunpack.i.l.bf16 %v9953_v57 }
 0x7a1   :  { %v954_v0 = vsel %vm508_vm1, %v9091_v31, %v9950_v9  ;;  %v953_v7 = vsel %vm508_vm1, %v9090_v24, %v9949_v25 }
 0x7a2   :  { %v952_v15 = vsel %vm508_vm1, %v843_v34, %v9955_v40  ;;  %v951_v43 = vsel %vm508_vm1, %v840_v29, %v9954_v8  ;;  %v11699_v34 = vsub.s32 5, %v11402_v3 }
 0x7a4   :  { %v970_v38 = vrot.slane %v11704_v36, %v11699_v34 }
 0x7a6   :  { %v9958_v6 = vpop.permute.xlu1 %9957 }
 0x7a7   :  { %v9960_v11 = vunpack.i.h.bf16 %v9958_v6  ;;  %v9959_v1 = vunpack.i.l.bf16 %v9958_v6 }
 0x7a9   :  { %v959_v16 = vsel %vm955_vm2, %v954_v0, %v9960_v11  ;;  %v958_v21 = vsel %vm955_vm2, %v953_v7, %v9959_v1  ;;  %v10476_v0 = vld [vmem:[%s14301_s25] sm:$0xff]   ;;  %v10477_v7 = vld [vmem:[%s14301_s25 + $0x8] sm:$0xff]  }
 0x7aa   :  { %v9963_v42 = vpop.permute.xlu1 %9962  ;;  %9116 = vmatprep.subr.bf16.mxu1 %v10476_v0 }
 0x7ab   :  { %v9965_v41 = vunpack.i.h.bf16 %v9963_v42  ;;  %v9964_v48 = vunpack.i.l.bf16 %v9963_v42 }
 0x7ad   :  { %v957_v62 = vsel %vm955_vm2, %v952_v15, %v9965_v41  ;;  %v956_v12 = vsel %vm955_vm2, %v951_v43, %v9964_v48  ;;  %v10479_v15 = vld [vmem:[%s14301_s25 + $0x18] sm:$0xff]   ;;  %v10480_v43 = vld [vmem:[%s14302_s29] sm:$0xff]  }
 0x7ae   :  { %9128 = vmatprep.subr.bf16.mxu0 %v10480_v43 }
 0x7af   :  { %9129 = vmatpush3.bf16.msra.mxu0 %v10480_v43 }
 0x7d2   :  { %v9973_v13 = vpop.permute.xlu1 %9972 }
 0x7d3   :  { %v9975_v58 = vunpack.i.h.bf16 %v9973_v13  ;;  %v9974_v56 = vunpack.i.l.bf16 %v9973_v13  ;;  %v9968_v32 = vpop.permute.xlu0 %9967  ;;  %v10478_v13 = vld [vmem:[%s14301_s25 + $0x10] sm:$0xff]  }
 0x7d4   :  { %v9970_v23 = vunpack.i.h.bf16 %v9968_v32  ;;  %v9969_v20 = vunpack.i.l.bf16 %v9968_v32  ;;  %v10483_v32 = vld [vmem:[%s14302_s29 + $0x18] sm:$0xff]  }
 0x7d5   :  { %v964_v49 = vsel %vm960_vm3, %v959_v16, %v9975_v58  ;;  %v963_v26 = vsel %vm960_vm3, %v958_v21, %v9974_v56  ;;  %v10481_v58 = vld [vmem:[%s14302_s29 + $0x8] sm:$0xff]   ;;  %v10482_v56 = vld [vmem:[%s14302_s29 + $0x10] sm:$0xff]   ;;  %v10484_v16 = vld [vmem:[%s14302_s29 + $0x20] sm:$0xff]  }
 0x7d6   :  { %v966_v27 = vpack.c.bf16 %v964_v49, %v963_v26  ;;  %v962_v24 = vsel %vm960_vm3, %v957_v62, %v9970_v23  ;;  %v961_v29 = vsel %vm960_vm3, %v956_v12, %v9969_v20  ;;  %9130 = vmatprep.subr.bf16.mxu0 %v10481_v58  ;;  %v10485_v21 = vld [vmem:[%s14302_s29 + $0x28] sm:$0xff]  }
 0x7d7   :  { %v965_v31 = vpack.c.bf16 %v962_v24, %v961_v29  ;;  %9131 = vmatpush3.bf16.msra.mxu0 %v10481_v58 }
 0x7d8   :  { %9132 = vmatprep.subr.bf16.mxu0 %v10482_v56 }
 0x7d9   :  { %9112 = vmatprep.mubr.msk.bf16.mxu1 %vm120_vm0, %v965_v31 }
 0x7da   :  { %9113 = vmatmul.mubr.msk.bf16.vlgmr.msra.gmra.mrb[24].mxu1 %vm120_vm0, %v966_v27 }
 0x7db   :  { %9117 = vmatpush3.bf16.msra.mxu1 %v10476_v0  ;;  %9133 = vmatpush3.bf16.msra.mxu0 %v10482_v56 }
 0x7dc   :  { %9118 = vmatprep.subr.bf16.mxu1 %v10477_v7  ;;  %9134 = vmatprep.subr.bf16.mxu0 %v10483_v32 }
 0x7df   :  { %9119 = vmatpush3.bf16.msra.mxu1 %v10477_v7  ;;  %9135 = vmatpush3.bf16.msra.mxu0 %v10483_v32 }
 0x7e0   :  { %9120 = vmatprep.subr.bf16.mxu1 %v10478_v13  ;;  %9136 = vmatprep.subr.bf16.mxu0 %v10484_v16 }
 0x7e3   :  { %9121 = vmatpush3.bf16.msra.mxu1 %v10478_v13  ;;  %9137 = vmatpush3.bf16.msra.mxu0 %v10484_v16 }
 0x7e4   :  { %9122 = vmatprep.subr.bf16.mxu1 %v10479_v15  ;;  %9138 = vmatprep.subr.bf16.mxu0 %v10485_v21 }
 0x7e7   :  { %9123 = vmatpush3.bf16.msra.mxu1 %v10479_v15  ;;  %9139 = vmatpush3.bf16.msra.mxu0 %v10485_v21  ;;  %v11811_v21 = vsub.s32 7, %v11402_v3 }
 0x8ad   :  { %v9114_v30 = vpop.f32.mrb[24].mxu1 }
 0x8ae   :  { %v1035_v46 = vpop.f32.mrb[25].mxu1  ;;  %v1044_v39 = vadd.f32 %v9114_v30, %v970_v38  ;;  %v11783_v30 = vsub.s32 2, %v11402_v3 }
 0x8af   :  { %v1036_v60 = vadd.f32 %v1035_v46, %v970_v38  ;;  %v9115_v47 = vpop.f32.mrb[26].mxu1 }
 0x8b0   :  { %v1038_v44 = vpop.f32.mrb[27].mxu1  ;;  %v11712_v45 = vadd.f32 %v1044_v39, %v11342_v14  ;;  %v1047_v51 = vadd.f32 %v9115_v47, %v970_v38  ;;  %v1109_v39 = vrot.slane %v11704_v36, %v11783_v30 }
 0x8b1   :  { %v11709_v28 = vadd.f32 %v1036_v60, %v11347_v17  ;;  %v1039_v37 = vadd.f32 %v1038_v44, %v970_v38  ;;  %v11788_v60 = vsub.s32 3, %v11402_v3 }
 0x8b2   :  { %v11722_v35 = vadd.f32 %v1047_v51, %v11349_v19  ;;  %v1060_v17 = vsel %vm120_vm0, %v11712_v45, 0.0 }
 0x8b3   :  { %v11715_v52 = vadd.f32 %v1039_v37, %v11353_v22  ;;  %v1054_v53 = vsel %vm120_vm0, %v11709_v28, 0.0 }
 0x8b4   :  { %1055 = vadd.xlane.f32.xlu0 %v1054_v53  ;;  %v1063_v14 = vsel %vm120_vm0, %v11722_v35, 0.0 }
 0x8b5   :  { %v1057_v18 = vsel %vm120_vm0, %v11715_v52, 0.0 }
 0x8b6   :  { %1058 = vadd.xlane.f32.xlu1 %v1057_v18  ;;  %v1117_v18 = vrot.slane %v11704_v36, %v11788_v60 }
 0x8b8   :  { %1061 = vadd.xlane.f32.xlu0 %v1060_v17 }
 0x8bc   :  { %1064 = vadd.xlane.f32.xlu0 %v1063_v14 }
 0x941   :  { %v1056_v22 = vpop.xlane.xlu0 %1055 }
 0x942   :  { %v1066_v54 = vmul.f32 0.015625, %v1056_v22 }
 0x943   :  { %v1059_v55 = vpop.xlane.xlu1 %1058 }
 0x944   :  { %v11729_v59 = vsub.f32 %v11709_v28, %v1066_v54  ;;  %v1067_v61 = vmul.f32 0.015625, %v1059_v55 }
 0x945   :  { %v1062_v63 = vpop.xlane.xlu0 %1061 }
 0x946   :  { %v11732_v2 = vsub.f32 %v11715_v52, %v1067_v61  ;;  %v1068_v19 = vmul.f32 0.015625, %v1062_v63  ;;  %v1074_v4 = vmul.f32 %v11729_v59, %v11729_v59 }
 0x948   :  { %v11737_v6 = vsub.f32 %v11712_v45, %v1068_v19  ;;  %v1078_v57 = vsel %vm120_vm0, %v1074_v4, 0.0  ;;  %v1075_v9 = vmul.f32 %v11732_v2, %v11732_v2 }
 0x949   :  { %1079 = vadd.xlane.f32.xlu0 %v1078_v57  ;;  %v1065_v25 = vpop.xlane.xlu0 %1064 }
 0x94a   :  { %v1069_v42 = vmul.f32 0.015625, %v1065_v25  ;;  %v1081_v40 = vsel %vm120_vm0, %v1075_v9, 0.0  ;;  %v1076_v8 = vmul.f32 %v11737_v6, %v11737_v6  ;;  %v10487_v25 = vld [vmem:[%s14302_s29 + $0x38] sm:$0xff]  }
 0x94b   :  { %1082 = vadd.xlane.f32.xlu1 %v1081_v40 }
 0x94c   :  { %v11746_v11 = vsub.f32 %v11722_v35, %v1069_v42  ;;  %v1084_v1 = vsel %vm120_vm0, %v1076_v8, 0.0  ;;  %v11806_v42 = vsub.s32 6, %v11402_v3 }
 0x94d   :  { %1085 = vadd.xlane.f32.xlu0 %v1084_v1 }
 0x94e   :  { %v1077_v41 = vmul.f32 %v11746_v11, %v11746_v11  ;;  %v1135_v40 = vrot.slane %v11704_v36, %v11806_v42 }
 0x950   :  { %v1087_v48 = vsel %vm120_vm0, %v1077_v41, 0.0 }
 0x951   :  { %1088 = vadd.xlane.f32.xlu1 %v1087_v48 }
 0x9d6   :  { %v1080_v23 = vpop.xlane.xlu0 %1079 }
 0x9d7   :  { %v1090_v20 = vmul.f32 0.015625, %v1080_v23 }
 0x9d8   :  { %v1083_v62 = vpop.xlane.xlu1 %1082 }
 0x9d9   :  { %v1094_v12 = vadd.f32 1e-05, %v1090_v20  ;;  %v1091_v49 = vmul.f32 0.015625, %v1083_v62  ;;  %v1341_v20 = vrot.slane %v11704_v36, %v11811_v21 }
 0x9da   :  { %v1086_v26 = vpop.xlane.xlu0 %1085 }
 0x9db   :  { %10706 = vrsqrt.f32 %v1094_v12  ;;  %v1095_v27 = vadd.f32 1e-05, %v1091_v49  ;;  %v1092_v24 = vmul.f32 0.015625, %v1086_v26 }
 0x9dd   :  { %10708 = vrsqrt.f32 %v1095_v27  ;;  %v1096_v29 = vadd.f32 1e-05, %v1092_v24 }
 0x9de   :  { %v1089_v31 = vpop.xlane.xlu1 %1088 }
 0x9df   :  { %10710 = vrsqrt.f32 %v1096_v29  ;;  %v1093_v38 = vmul.f32 0.015625, %v1089_v31 }
 0x9e1   :  { %v1097_v46 = vadd.f32 1e-05, %v1093_v38 }
 0x9e3   :  { %10712 = vrsqrt.f32 %v1097_v46 }
 0x9e5   :  { %v10707_v47 = vpop.eup %10706 }
 0x9e6   :  { %v1102_v44 = vmul.f32 %v10707_v47, %v11729_v59 }
 0x9e7   :  { %v10709_v37 = vpop.eup %10708 }
 0x9e8   :  { %v1103_v51 = vmul.f32 %v10709_v37, %v11732_v2  ;;  %v1110_v53 = vmul.f32 %v1109_v39, %v1102_v44 }
 0x9e9   :  { %v10711_v17 = vpop.eup %10710 }
 0x9ea   :  { %v1104_v14 = vmul.f32 %v10711_v17, %v11737_v6  ;;  %v1111_v22 = vmul.f32 %v1109_v39, %v1103_v51  ;;  %v1118_v54 = vadd.f32 %v1117_v18, %v1110_v53  ;;  %v10486_v6 = vld [vmem:[%s14302_s29 + $0x30] sm:$0xff]  }
 0x9eb   :  { %9140 = vmatprep.subr.bf16.mxu0 %v10486_v6 }
 0x9ec   :  { %v1119_v55 = vadd.f32 %v1117_v18, %v1111_v22  ;;  %v1112_v63 = vmul.f32 %v1109_v39, %v1104_v14  ;;  %9141 = vmatpush3.bf16.msra.mxu0 %v10486_v6  ;;  %v10488_v6 = vld [vmem:[%s14297_s23 + $0x40] ss:$8 sps:$4 sm:$0xff]  }
 0x9ed   :  { %v10713_v61 = vpop.eup %10712  ;;  %9142 = vmatprep.subr.bf16.mxu0 %v10487_v25 }
 0x9ee   :  { %v1105_v19 = vmul.f32 %v10713_v61, %v11746_v11  ;;  %v1130_v4 = vpack.c.bf16 %v1119_v55, %v1118_v54  ;;  %v1120_v59 = vadd.f32 %v1117_v18, %v1112_v63 }
 0x9f0   :  { %v1113_v57 = vmul.f32 %v1109_v39, %v1105_v19  ;;  %9124 = vmatprep.mubr.msk.bf16.mxu1 %vm120_vm0, %v1130_v4  ;;  %9143 = vmatpush3.bf16.msra.mxu0 %v10487_v25  ;;  %v10493_v25 = vld [vmem:[%s14297_s23 + $0x54] ss:$8 sps:$4 sm:$0xff]  }
 0x9f2   :  { %v1121_v2 = vadd.f32 %v1117_v18, %v1113_v57 }
 0x9f4   :  { %v1131_v9 = vpack.c.bf16 %v1121_v2, %v1120_v59 }
 0x9f6   :  { %9125 = vmatmul.mubr.msk.bf16.vlgmr.msra.gmra.mrb[28].mxu1 %vm120_vm0, %v1131_v9  ;;  %v10490_v9 = vld [vmem:[%s14297_s23 + $0x44] ss:$8 sps:$4 sm:$0xff]  }
 0x9f7   :  { %1514 = vmatprep.mubr.bf16.mxu1 %v11172_v50  ;;  %1482 = vmatprep.subr.bf16.mxu1 %v10490_v9 }
 0x9f8   :  { %1483 = vmatpush1.bf16.msra.mxu1 %v10488_v6 }
 0x9f9   :  { %1484 = vmatprep.subr.bf16.mxu1 %v10493_v25 }
 0xac9   :  { %v9126_v8 = vpop.f32.mrb[28].mxu1 }
 0xaca   :  { %v1209_v11 = vadd.f32 %v9126_v8, %v1135_v40  ;;  %v1200_v1 = vpop.f32.mrb[29].mxu1  ;;  %v10496_v8 = vld [vmem:[%s14297_s23 + $0x64] ss:$8 sps:$4 sm:$0xff]  }
 0xacb   :  { %v1201_v41 = vadd.f32 %v1200_v1, %v1135_v40  ;;  %v9127_v48 = vpop.f32.mrb[30].mxu1  ;;  %v10497_v1 = vld [vmem:[%s14297_s23 + $0x70] ss:$8 sps:$4 sm:$0xff]  }
 0xacc   :  { %v1212_v0 = vadd.f32 %v9127_v48, %v1135_v40  ;;  %v1203_v7 = vpop.f32.mrb[31].mxu1  ;;  %v1217_v15 = vmax.f32 %v1209_v11, 0.0  ;;  %v10494_v11 = vld [vmem:[%s14297_s23 + $0x60] ss:$8 sps:$4 sm:$0xff]  }
 0xacd   :  { %v1204_v13 = vadd.f32 %v1203_v7, %v1135_v40  ;;  %v1215_v58 = vmax.f32 %v1201_v41, 0.0  ;;  %v10491_v40 = vld [vmem:[%s14297_s23 + $0x50] ss:$8 sps:$4 sm:$0xff]   ;;  %v10499_v41 = vld [vmem:[%s14297_s23 + $0x74] ss:$8 sps:$4 sm:$0xff]  }
 0xace   :  { %v1218_v43 = vmax.f32 %v1212_v0, 0.0  ;;  %1485 = vmatpush1.bf16.msra.mxu1 %v10491_v40 }
 0xacf   :  { %v1216_v56 = vmax.f32 %v1204_v13, 0.0  ;;  %1486 = vmatprep.subr.bf16.mxu1 %v10496_v8 }
 0xad0   :  { %v1236_v32 = vpack.c.bf16 %v1218_v43, %v1217_v15 }
 0xad1   :  { %v1235_v16 = vpack.c.bf16 %v1216_v56, %v1215_v58 }
 0xad2   :  { %1487 = vmatpush1.bf16.msra.mxu1 %v10494_v11 }
 0xad3   :  { %9144 = vmatprep.mubr.bf16.mxu0 %v1235_v16  ;;  %1488 = vmatprep.subr.bf16.mxu1 %v10499_v41 }
 0xad4   :  { %9145 = vmatmul.mubr.bf16.vlgmr.msra.gmra.mrb[20].mxu0 %v1236_v32 }
 0xad6   :  { %1489 = vmatpush1.bf16.msra.mxu1 %v10497_v1 }
 0xba7   :  { %v9146_v23 = vpop.f32.mrb[20].mxu0 }
 0xba8   :  { %v1319_v62 = vpop.f32.mrb[21].mxu0  ;;  %v1336_v12 = vadd.f32 %v9146_v23, %v11712_v45 }
 0xba9   :  { %v1334_v49 = vadd.f32 %v1319_v62, %v11709_v28  ;;  %v9147_v26 = vpop.f32.mrb[22].mxu0  ;;  %v11870_v62 = vld [vmem:[%s14298_s28 + $0x10] sm:$0xff] }
 0xbaa   :  { %v1322_v27 = vpop.f32.mrb[23].mxu0  ;;  %v1337_v29 = vadd.f32 %v9147_v26, %v11722_v35  ;;  %v11821_v38 = vadd.f32 %v1341_v20, %v1336_v12  ;;  %v1404_v12 = vrot.slane %v11870_v62, %v11405_v5 }
 0xbab   :  { %v11817_v24 = vadd.f32 %v1341_v20, %v1334_v49  ;;  %v1335_v31 = vadd.f32 %v1322_v27, %v11715_v52 }
 0xbac   :  { %v11827_v46 = vadd.f32 %v1341_v20, %v1337_v29  ;;  %v1355_v45 = vsel %vm120_vm0, %v11821_v38, 0.0 }
 0xbad   :  { %v11823_v3 = vadd.f32 %v1341_v20, %v1335_v31  ;;  %v1349_v36 = vsel %vm120_vm0, %v11817_v24, 0.0 }
 0xbae   :  { %1350 = vadd.xlane.f32.xlu0 %v1349_v36  ;;  %v1358_v52 = vsel %vm120_vm0, %v11827_v46, 0.0  ;;  %v1412_v36 = vrot.slane %v11870_v62, %v11412_v10 }
 0xbaf   :  { %v1352_v28 = vsel %vm120_vm0, %v11823_v3, 0.0 }
 0xbb0   :  { %1353 = vadd.xlane.f32.xlu1 %v1352_v28 }
 0xbb2   :  { %1356 = vadd.xlane.f32.xlu0 %v1355_v45 }
 0xbb4   :  { %1359 = vadd.xlane.f32.xlu1 %v1358_v52 }
 0xc3b   :  { %v1351_v35 = vpop.xlane.xlu0 %1350 }
 0xc3c   :  { %v1361_v39 = vmul.f32 0.015625, %v1351_v35 }
 0xc3d   :  { %v1354_v47 = vpop.xlane.xlu1 %1353 }
 0xc3e   :  { %v1365_v44 = vsub.f32 %v11817_v24, %v1361_v39  ;;  %v1362_v37 = vmul.f32 0.015625, %v1354_v47 }
 0xc3f   :  { %v1357_v51 = vpop.xlane.xlu0 %1356 }
 0xc40   :  { %v1366_v53 = vsub.f32 %v11823_v3, %v1362_v37  ;;  %v1363_v18 = vmul.f32 0.015625, %v1357_v51  ;;  %v1369_v17 = vmul.f32 %v1365_v44, %v1365_v44 }
 0xc41   :  { %v1360_v14 = vpop.xlane.xlu1 %1359 }
 0xc42   :  { %v1367_v22 = vsub.f32 %v11821_v38, %v1363_v18  ;;  %v1364_v54 = vmul.f32 0.015625, %v1360_v14  ;;  %v1373_v55 = vsel %vm120_vm0, %v1369_v17, 0.0  ;;  %v1370_v61 = vmul.f32 %v1366_v53, %v1366_v53 }
 0xc43   :  { %1374 = vadd.xlane.f32.xlu0 %v1373_v55 }
 0xc44   :  { %v1368_v63 = vsub.f32 %v11827_v46, %v1364_v54  ;;  %v1376_v19 = vsel %vm120_vm0, %v1370_v61, 0.0  ;;  %v1371_v4 = vmul.f32 %v1367_v22, %v1367_v22  ;;  %v8217_v54 = vld [vmem:[%s14298_s28 + $0x18] sm:$0xff] }
 0xc45   :  { %1377 = vadd.xlane.f32.xlu1 %v1376_v19  ;;  %v1435_v61 = vrot.slane %v8217_v54, %v11421_v33 }
 0xc46   :  { %v1379_v57 = vsel %vm120_vm0, %v1371_v4, 0.0  ;;  %v1372_v59 = vmul.f32 %v1368_v63, %v1368_v63 }
 0xc47   :  { %1380 = vadd.xlane.f32.xlu0 %v1379_v57 }
 0xc48   :  { %v1382_v2 = vsel %vm120_vm0, %v1372_v59, 0.0 }
 0xc49   :  { %1383 = vadd.xlane.f32.xlu1 %v1382_v2 }
 0xcd0   :  { %v1375_v48 = vpop.xlane.xlu0 %1374 }
 0xcd1   :  { %v1385_v0 = vmul.f32 0.015625, %v1375_v48 }
 0xcd2   :  { %v1378_v7 = vpop.xlane.xlu1 %1377 }
 0xcd3   :  { %v1389_v13 = vadd.f32 1e-05, %v1385_v0  ;;  %v1386_v15 = vmul.f32 0.015625, %v1378_v7 }
 0xcd4   :  { %v1381_v43 = vpop.xlane.xlu0 %1380 }
 0xcd5   :  { %10714 = vrsqrt.f32 %v1389_v13  ;;  %v1390_v58 = vadd.f32 1e-05, %v1386_v15  ;;  %v1387_v56 = vmul.f32 0.015625, %v1381_v43 }
 0xcd6   :  { %v1384_v32 = vpop.xlane.xlu1 %1383 }
 0xcd7   :  { %10716 = vrsqrt.f32 %v1390_v58  ;;  %v1391_v16 = vadd.f32 1e-05, %v1387_v56  ;;  %v1388_v23 = vmul.f32 0.015625, %v1384_v32 }
 0xcd9   :  { %10718 = vrsqrt.f32 %v1391_v16  ;;  %v1392_v20 = vadd.f32 1e-05, %v1388_v23 }
 0xcdb   :  { %10720 = vrsqrt.f32 %v1392_v20 }
 0xcdf   :  { %v10715_v49 = vpop.eup %10714 }
 0xce0   :  { %v1397_v26 = vmul.f32 %v10715_v49, %v1365_v44 }
 0xce1   :  { %v10717_v27 = vpop.eup %10716 }
 0xce2   :  { %v1405_v29 = vmul.f32 %v1404_v12, %v1397_v26  ;;  %v1398_v31 = vmul.f32 %v10717_v27, %v1366_v53 }
 0xce3   :  { %v10719_v28 = vpop.eup %10718 }
 0xce4   :  { %v1406_v45 = vmul.f32 %v1404_v12, %v1398_v31  ;;  %v1413_v35 = vadd.f32 %v1412_v36, %v1405_v29  ;;  %v1399_v47 = vmul.f32 %v10719_v28, %v1367_v22  ;;  %v1431_v22 = vrot.slane %v11870_v62, %v11421_v33 }
 0xce5   :  { %v10721_v52 = vpop.eup %10720 }
 0xce6   :  { %v1414_v39 = vadd.f32 %v1412_v36, %v1406_v45  ;;  %v1400_v37 = vmul.f32 %v10721_v52, %v1368_v63  ;;  %v1407_v17 = vmul.f32 %v1404_v12, %v1399_v47 }
 0xce8   :  { %v1426_v51 = vpack.c.bf16 %v1414_v39, %v1413_v35  ;;  %v1408_v18 = vmul.f32 %v1404_v12, %v1400_v37  ;;  %v1415_v14 = vadd.f32 %v1412_v36, %v1407_v17 }
 0xcea   :  { %8234 = vmatmul.mubr.msk.bf16.vlgmr.msra.gmra.mrb[32].mxu1 %vm120_vm0, %v1426_v51  ;;  %v1416_v44 = vadd.f32 %v1412_v36, %v1408_v18 }
 0xceb   :  { %1524 = vmatprep.mubr.bf16.mxu1 %v11172_v50 }
 0xcec   :  { %v1427_v53 = vpack.c.bf16 %v1416_v44, %v1415_v14 }
 0xcf2   :  { %8235 = vmatmul.mubr.msk.bf16.gmra.mrb[36].mxu1 %vm120_vm0, %v1427_v53 }
 0xdbd   :  { %v1516_v55 = vpop.f32.mrb[32].mxu1 }
 0xdbe   :  { %v1518_v63 = vpop.f32.mrb[33].mxu1  ;;  %v1517_v4 = vadd.f32 %v1516_v55, %v1431_v22 }
 0xdbf   :  { %v1520_v19 = vpop.f32.mrb[34].mxu1  ;;  %v1519_v2 = vadd.f32 %v1518_v63, %v1435_v61 }
 0xdc0   :  { %v1521_v57 = vadd.f32 %v1520_v19, %v1431_v22  ;;  %v1522_v59 = vpop.f32.mrb[35].mxu1 }
 0xdc1   :  { %v1523_v9 = vadd.f32 %v1522_v59, %v1435_v61 }
 0xdc2   :  { %v9976_v6 = vpack.i.bf16 %v1521_v57, %v1517_v4  ;;  %v1584_v25 = vpack.c.bf16 %v1521_v57, %v1517_v4 }
 0xdc3   :  { %v1632_v40 = vpack.c.bf16 %v1523_v9, %v1519_v2  ;;  %v11885_v8 = vpack.i.bf16 %v1523_v9, %v1519_v2 }
 0xdc4   :  { %9977 = vrot.lane.b32.xlu0 %v9976_v6, %s14303_s27  ;;  %9164 = vmatprep.mubr.msk.bf16.mxu0 %vm508_vm1, %v1584_v25 }
 0xdc5   :  { %v1526_v11 = vpop.f32.mrb[36].mxu1  ;;  %9180 = vmatprep.subr.bf16.mxu1 %v1632_v40 }
 0xdc6   :  { %v1528_v1 = vpop.f32.mrb[37].mxu1  ;;  %9181 = vmatpush3.bf16.msra.mxu1 %v1632_v40  ;;  %v1527_v48 = vadd.f32 %v1526_v11, %v1431_v22 }
 0xdc7   :  { %v1530_v41 = vpop.f32.mrb[38].mxu1  ;;  %v1529_v13 = vadd.f32 %v1528_v1, %v1435_v61 }
 0xdc8   :  { %v1531_v0 = vadd.f32 %v1530_v41, %v1431_v22  ;;  %9997 = vrot.lane.b32.xlu0 %v9976_v6, %s14304_s7  ;;  %v1532_v7 = vpop.f32.mrb[39].mxu1 }
 0xdc9   :  { %v1533_v15 = vadd.f32 %v1532_v7, %v1435_v61 }
 0xdca   :  { %v9981_v43 = vpack.i.bf16 %v1531_v0, %v1527_v48  ;;  %v11890_v58 = vpack.c.bf16 %v1531_v0, %v1527_v48 }
 0xdcb   :  { %v1633_v56 = vpack.c.bf16 %v1533_v15, %v1529_v13  ;;  %v11892_v32 = vpack.i.bf16 %v1533_v15, %v1529_v13 }
 0xdcc   :  { %1648 = vrot.lane.b32.xlu0 %v1584_v25, %s14305_s21  ;;  %9982 = vrot.lane.b32.xlu1 %v9981_v43, %s14303_s27 }
 0xdcd   :  { %9182 = vmatprep.subr.bf16.mxu1 %v1633_v56 }
 0xdce   :  { %9183 = vmatpush3.bf16.msra.mxu1 %v1633_v56 }
 0xdd0   :  { %9987 = vrot.lane.b32.xlu1 %v9976_v6, %s14306_s30 }
 0xdd4   :  { %9992 = vrot.lane.b32.xlu1 %v9981_v43, %s14306_s30 }
 0xdd8   :  { %10002 = vrot.lane.b32.xlu1 %v9981_v43, %s14304_s7 }
 0xddc   :  { %1650 = vrot.lane.b32.xlu1 %v11890_v58, %s14305_s21 }
 0xe36   :  { %v9978_v16 = vpop.permute.xlu0 %9977 }
 0xe37   :  { %v9980_v23 = vunpack.i.h.bf16 %v9978_v16  ;;  %v9979_v20 = vunpack.i.l.bf16 %v9978_v16 }
 0xe39   :  { %v11901_v12 = vpack.c.bf16 %v9980_v23, %v9979_v20  ;;  %v11125_v20 = vld [vmem:[%s14299_s22 + $0x10] sm:$0xff] }
 0xe3a   :  { %v9998_v49 = vpop.permute.xlu0 %9997 }
 0xe3b   :  { %1652 = vrot.lane.b32.xlu0 %v11901_v12, %s14305_s21  ;;  %v10000_v39 = vunpack.i.h.bf16 %v9998_v49  ;;  %v9999_v47 = vunpack.i.l.bf16 %v9998_v49 }
 0xe3d   :  { %v1590_v44 = vpack.c.bf16 %v10000_v39, %v9999_v47  ;;  %v11129_v47 = vld [vmem:[%s14299_s22 + $0x38] sm:$0xff] }
 0xe3e   :  { %v1649_v26 = vpop.permute.xlu0 %1648  ;;  %v9983_v27 = vpop.permute.xlu1 %9982 }
 0xe3f   :  { %v9985_v29 = vunpack.i.h.bf16 %v9983_v27  ;;  %v9984_v31 = vunpack.i.l.bf16 %v9983_v27  ;;  %9836 = vmatprep.subr.msk.bf16.mxu0 %vm508_vm1, %v1649_v26  ;;  %v1689_v36 = vsel %vm508_vm1, %v1649_v26, 0  ;;  %v11126_v27 = vld [vmem:[%s14299_s22 + $0x8] sm:$0xff] }
 0xe40   :  { %9149 = vmatpush3.bf16.xpose.msra.mxu0 %v1689_v36 }
 0xe41   :  { %v11907_v28 = vpack.c.bf16 %v9985_v29, %v9984_v31  ;;  %v11127_v31 = vld [vmem:[%s14299_s22] sm:$0xff] }
 0xe42   :  { %v9988_v45 = vpop.permute.xlu1 %9987 }
 0xe43   :  { %v9990_v52 = vunpack.i.h.bf16 %v9988_v45  ;;  %v9989_v35 = vunpack.i.l.bf16 %v9988_v45  ;;  %1654 = vrot.lane.b32.xlu1 %v11907_v28, %s14305_s21  ;;  %v11128_v45 = vld [vmem:[%s14299_s22 + $0x18] sm:$0xff] }
 0xe45   :  { %v1588_v37 = vpack.c.bf16 %v9990_v52, %v9989_v35 }
 0xe46   :  { %v9993_v51 = vpop.permute.xlu1 %9992 }
 0xe47   :  { %v9995_v18 = vunpack.i.h.bf16 %v9993_v51  ;;  %v9994_v17 = vunpack.i.l.bf16 %v9993_v51  ;;  %1656 = vrot.lane.b32.xlu0 %v1588_v37, %s14305_s21 }
 0xe49   :  { %v1589_v14 = vpack.c.bf16 %v9995_v18, %v9994_v17  ;;  %v11130_v18 = vld [vmem:[%s14299_s22 + $0x30] sm:$0xff] }
 0xe4a   :  { %v10003_v53 = vpop.permute.xlu1 %10002 }
 0xe4b   :  { %v10005_v54 = vunpack.i.h.bf16 %v10003_v53  ;;  %v10004_v22 = vunpack.i.l.bf16 %v10003_v53  ;;  %1660 = vrot.lane.b32.xlu0 %v1590_v44, %s14305_s21  ;;  %1658 = vrot.lane.b32.xlu1 %v1589_v14, %s14305_s21 }
 0xe4d   :  { %v1591_v55 = vpack.c.bf16 %v10005_v54, %v10004_v22  ;;  %v11132_v54 = vld [vmem:[%s14299_s22 + $0x20] sm:$0xff] }
 0xe4e   :  { %v1651_v61 = vpop.permute.xlu1 %1650 }
 0xe4f   :  { %10007 = vrot.lane.b32.xlu0 %v11885_v8, %s14303_s27  ;;  %1662 = vrot.lane.b32.xlu1 %v1591_v55, %s14305_s21  ;;  %v1692_v63 = vsel %vm508_vm1, %v1651_v61, 0 }
 0xe50   :  { %9837 = vmatprep.subr.msk.bf16.mxu0 %vm508_vm1, %v1651_v61 }
 0xe51   :  { %9151 = vmatpush3.bf16.xpose.msra.mxu0 %v1692_v63  ;;  %v11133_v63 = vld [vmem:[%s14299_s22 + $0x58] sm:$0xff] }
 0xe53   :  { %10012 = vrot.lane.b32.xlu1 %v11892_v32, %s14303_s27 }
 0xead   :  { %v1653_v19 = vpop.permute.xlu0 %1652 }
 0xeae   :  { %9838 = vmatprep.subr.msk.bf16.mxu0 %vm508_vm1, %v1653_v19  ;;  %v1695_v4 = vsel %vm508_vm1, %v1653_v19, 0 }
 0xeaf   :  { %9153 = vmatpush3.bf16.xpose.msra.mxu0 %v1695_v4 }
 0xeb5   :  { %v1655_v57 = vpop.permute.xlu1 %1654 }
 0xeb6   :  { %9839 = vmatprep.subr.msk.bf16.mxu0 %vm508_vm1, %v1655_v57  ;;  %v1698_v59 = vsel %vm508_vm1, %v1655_v57, 0  ;;  %v11134_v57 = vld [vmem:[%s14299_s22 + $0x50] sm:$0xff] }
 0xeb7   :  { %9155 = vmatpush3.bf16.xpose.msra.mxu0 %v1698_v59 }
 0xeb9   :  { %v1657_v2 = vpop.permute.xlu0 %1656 }
 0xeba   :  { %9840 = vmatprep.subr.msk.bf16.mxu0 %vm508_vm1, %v1657_v2  ;;  %v1701_v25 = vsel %vm508_vm1, %v1657_v2, 0  ;;  %v11135_v2 = vld [vmem:[%s14299_s22 + $0x48] sm:$0xff] }
 0xebd   :  { %v1661_v9 = vpop.permute.xlu0 %1660  ;;  %v1659_v6 = vpop.permute.xlu1 %1658 }
 0xebe   :  { %v1704_v15 = vsel %vm508_vm1, %v1659_v6, 0  ;;  %v1707_v56 = vsel %vm508_vm1, %v1661_v9, 0 }
 0xebf   :  { %9157 = vmatpush3.bf16.xpose.msra.mxu0 %v1701_v25  ;;  %v11136_v25 = vld [vmem:[%s14299_s22 + $0x40] sm:$0xff] }
 0xec0   :  { %9841 = vmatprep.subr.msk.bf16.mxu0 %vm508_vm1, %v1659_v6 }
 0xec1   :  { %v10008_v40 = vpop.permute.xlu0 %10007  ;;  %v1663_v11 = vpop.permute.xlu1 %1662 }
 0xec2   :  { %v10010_v1 = vunpack.i.h.bf16 %v10008_v40  ;;  %v10009_v41 = vunpack.i.l.bf16 %v10008_v40  ;;  %v1710_v16 = vsel %vm508_vm1, %v1663_v11, 0 }
 0xec4   :  { %v1634_v48 = vpack.c.bf16 %v10010_v1, %v10009_v41  ;;  %v11137_v41 = vld [vmem:[%s14299_s22 + $0x78] sm:$0xff] }
 0xec5   :  { %v10013_v0 = vpop.permute.xlu1 %10012 }
 0xec6   :  { %v10015_v7 = vunpack.i.h.bf16 %v10013_v0  ;;  %v10014_v13 = vunpack.i.l.bf16 %v10013_v0  ;;  %9184 = vmatprep.subr.bf16.mxu1 %v1634_v48 }
 0xec7   :  { %9159 = vmatpush3.bf16.xpose.msra.mxu0 %v1704_v15  ;;  %9185 = vmatpush3.bf16.msra.mxu1 %v1634_v48  ;;  %v11139_v15 = vld [vmem:[%s14299_s22 + $0x68] sm:$0xff] }
 0xec8   :  { %9842 = vmatprep.subr.msk.bf16.mxu0 %vm508_vm1, %v1661_v9  ;;  %v1635_v43 = vpack.c.bf16 %v10015_v7, %v10014_v13  ;;  %v11138_v7 = vld [vmem:[%s14299_s22 + $0x70] sm:$0xff] }
 0xeca   :  { %9186 = vmatprep.subr.bf16.mxu1 %v1635_v43 }
 0xecb   :  { %9187 = vmatpush3.bf16.msra.mxu1 %v1635_v43 }
 0xecf   :  { %9161 = vmatpush3.bf16.xpose.msra.mxu0 %v1707_v56  ;;  %v11140_v56 = vld [vmem:[%s14299_s22 + $0x60] sm:$0xff] }
 0xed0   :  { %9843 = vmatprep.subr.msk.bf16.mxu0 %vm508_vm1, %v1663_v11 }
 0xed7   :  { %9163 = vmatpush3.bf16.xpose.msra.mxu0 %v1710_v16 }
 0xede   :  { %9165 = vmatmul.mubr.msk.bf16.vlgmr.msra.gmra.mrb[24].mxu0 %vm508_vm1, %v11890_v58 }
 0xedf   :  { %9168 = vmatprep.mubr.msk.bf16.mxu0 %vm508_vm1, %v11901_v12 }
 0xee6   :  { %9169 = vmatmul.mubr.msk.bf16.gmra.mrb[28].mxu0 %vm508_vm1, %v11907_v28 }
 0xee7   :  { %9172 = vmatprep.mubr.msk.bf16.mxu0 %vm508_vm1, %v1588_v37 }
 0xeee   :  { %9173 = vmatmul.mubr.msk.bf16.gmra.mrb[32].mxu0 %vm508_vm1, %v1589_v14 }
 0xeef   :  { %9176 = vmatprep.mubr.msk.bf16.mxu0 %vm508_vm1, %v1590_v44  ;;  %v11131_v44 = vld [vmem:[%s14299_s22 + $0x28] sm:$0xff]  ;;  %s14307_s22 = smov 16  }
 0xef6   :  { %9177 = vmatmul.mubr.msk.bf16.gmra.mrb[36].mxu0 %vm508_vm1, %v1591_v55 }
 0xfb1   :  { %v9166_v23 = vpop.f32.mrb[24].mxu0 }
 0xfb2   :  { %v11946_v58 = vadd.f32 %v11125_v20, %v9166_v23  ;;  %v1746_v49 = vpop.f32.mrb[25].mxu0 }
 0xfb3   :  { %v9167_v12 = vpop.f32.mrb[26].mxu0  ;;  %v11957_v36 = vadd.f32 %v11127_v31, %v1746_v49 }
 0xfb4   :  { %1813 = vmax.xlane.f32.xlu0 %v11946_v58  ;;  %v1749_v26 = vpop.f32.mrb[27].mxu0  ;;  %v11964_v52 = vadd.f32 %v11128_v45, %v9167_v12 }
 0xfb5   :  { %v11952_v29 = vadd.f32 %v11126_v27, %v1749_v26 }
 0xfb7   :  { %1811 = vmax.xlane.f32.xlu1 %v11952_v29 }
 0xfb8   :  { %1809 = vmax.xlane.f32.xlu0 %v11957_v36 }
 0xfb9   :  { %v9170_v28 = vpop.f32.mrb[28].mxu0 }
 0xfba   :  { %v1762_v35 = vpop.f32.mrb[29].mxu0  ;;  %v11975_v17 = vadd.f32 %v11130_v18, %v9170_v28 }
 0xfbb   :  { %v9171_v39 = vpop.f32.mrb[30].mxu0  ;;  %v11987_v22 = vadd.f32 %v11132_v54, %v1762_v35 }
 0xfbc   :  { %v11969_v37 = vadd.f32 %v11129_v47, %v9171_v39  ;;  %v1765_v51 = vpop.f32.mrb[31].mxu0  ;;  %1815 = vmax.xlane.f32.xlu0 %v11964_v52 }
 0xfbd   :  { %v11981_v14 = vadd.f32 %v11131_v44, %v1765_v51 }
 0xfbe   :  { %1823 = vmax.xlane.f32.xlu1 %v11969_v37 }
 0xfc0   :  { %1821 = vmax.xlane.f32.xlu0 %v11975_v17 }
 0xfc1   :  { %v9174_v53 = vpop.f32.mrb[32].mxu0 }
 0xfc2   :  { %v1778_v55 = vpop.f32.mrb[33].mxu0  ;;  %1819 = vmax.xlane.f32.xlu1 %v11981_v14  ;;  %v11999_v59 = vadd.f32 %v11134_v57, %v9174_v53 }
 0xfc3   :  { %v9175_v61 = vpop.f32.mrb[34].mxu0  ;;  %v12011_v40 = vadd.f32 %v11136_v25, %v1778_v55 }
 0xfc4   :  { %v11993_v19 = vadd.f32 %v11133_v63, %v9175_v61  ;;  %v1781_v4 = vpop.f32.mrb[35].mxu0  ;;  %1817 = vmax.xlane.f32.xlu0 %v11987_v22 }
 0xfc5   :  { %v12005_v9 = vadd.f32 %v11135_v2, %v1781_v4 }
 0xfc6   :  { %1831 = vmax.xlane.f32.xlu1 %v11993_v19 }
 0xfc8   :  { %1829 = vmax.xlane.f32.xlu0 %v11999_v59 }
 0xfc9   :  { %v9178_v6 = vpop.f32.mrb[36].mxu0 }
 0xfca   :  { %v1794_v11 = vpop.f32.mrb[37].mxu0  ;;  %1827 = vmax.xlane.f32.xlu1 %v12005_v9  ;;  %v12023_v13 = vadd.f32 %v11138_v7, %v9178_v6 }
 0xfcb   :  { %v9179_v1 = vpop.f32.mrb[38].mxu0  ;;  %v12035_v16 = vadd.f32 %v11140_v56, %v1794_v11 }
 0xfcc   :  { %v12017_v48 = vadd.f32 %v11137_v41, %v9179_v1  ;;  %v1797_v0 = vpop.f32.mrb[39].mxu0  ;;  %1825 = vmax.xlane.f32.xlu0 %v12011_v40 }
 0xfcd   :  { %v12029_v43 = vadd.f32 %v11139_v15, %v1797_v0 }
 0xfce   :  { %1839 = vmax.xlane.f32.xlu1 %v12017_v48 }
 0xfd0   :  { %1837 = vmax.xlane.f32.xlu0 %v12023_v13 }
 0xfd2   :  { %1835 = vmax.xlane.f32.xlu1 %v12029_v43 }
 0xfd4   :  { %1833 = vmax.xlane.f32.xlu0 %v12035_v16 }
 0xfe3   :  { %10022 = vrot.lane.b32.xlu1 %v11892_v32, %s14306_s30 }
 0xfea   :  { %10017 = vrot.lane.b32.xlu0 %v11885_v8, %s14306_s30 }
0x1041   :  { %v1814_v23 = vpop.xlane.xlu0 %1813 }
0x1042   :  { %v1843_v20 = vsub.f32 %v11946_v58, %v1814_v23 }
0x1044   :  { %v1861_v49 = vmul.f32 1.442695, %v1843_v20  ;;  %v1812_v26 = vpop.xlane.xlu1 %1811 }
0x1045   :  { %v1810_v12 = vpop.xlane.xlu0 %1809  ;;  %v1842_v28 = vsub.f32 %v11952_v29, %v1812_v26 }
0x1046   :  { %10722 = vpow2.f32 %v1861_v49  ;;  %v1841_v27 = vsub.f32 %v11957_v36, %v1810_v12 }
0x1047   :  { %v1859_v51 = vmul.f32 1.442695, %v1842_v28 }
0x1048   :  { %v1857_v31 = vmul.f32 1.442695, %v1841_v27 }
0x1049   :  { %v1816_v45 = vpop.xlane.xlu0 %1815 }
0x104a   :  { %10724 = vpow2.f32 %v1857_v31  ;;  %v1844_v35 = vsub.f32 %v11964_v52, %v1816_v45 }
0x104b   :  { %v1824_v39 = vpop.xlane.xlu1 %1823 }
0x104c   :  { %v1863_v47 = vmul.f32 1.442695, %v1844_v35  ;;  %v1848_v29 = vsub.f32 %v11969_v37, %v1824_v39 }
0x104d   :  { %v1822_v18 = vpop.xlane.xlu0 %1821 }
0x104e   :  { %10726 = vpow2.f32 %v1863_v47  ;;  %v1847_v58 = vsub.f32 %v11975_v17, %v1822_v18  ;;  %v1871_v57 = vmul.f32 1.442695, %v1848_v29 }
0x104f   :  { %v1820_v44 = vpop.xlane.xlu1 %1819  ;;  %10728 = vpow2.f32 %v1859_v51 }
0x1050   :  { %v12048_v53 = vpop.eup %10722  ;;  %v1869_v54 = vmul.f32 1.442695, %v1847_v58  ;;  %v1846_v36 = vsub.f32 %v11981_v14, %v1820_v44 }
0x1051   :  { %1893 = vadd.xlane.f32.xlu0 %v12048_v53  ;;  %v1818_v55 = vpop.xlane.xlu0 %1817 }
0x1052   :  { %10730 = vpow2.f32 %v1869_v54  ;;  %v1867_v52 = vmul.f32 1.442695, %v1846_v36  ;;  %v1845_v61 = vsub.f32 %v11987_v22, %v1818_v55 }
0x1053   :  { %v1832_v63 = vpop.xlane.xlu1 %1831 }
0x1054   :  { %v12054_v4 = vpop.eup %10724  ;;  %v1865_v17 = vmul.f32 1.442695, %v1845_v61  ;;  %10732 = vpow2.f32 %v1867_v52  ;;  %v1852_v1 = vsub.f32 %v11993_v19, %v1832_v63 }
0x1055   :  { %1889 = vadd.xlane.f32.xlu0 %v12054_v4  ;;  %v1830_v2 = vpop.xlane.xlu0 %1829 }
0x1056   :  { %10734 = vpow2.f32 %v1865_v17  ;;  %v1851_v14 = vsub.f32 %v11999_v59, %v1830_v2  ;;  %v1879_v23 = vmul.f32 1.442695, %v1852_v1 }
0x1057   :  { %v1828_v37 = vpop.xlane.xlu1 %1827  ;;  %10736 = vpow2.f32 %v1871_v57 }
0x1058   :  { %v12058_v6 = vpop.eup %10726  ;;  %v1877_v25 = vmul.f32 1.442695, %v1851_v14  ;;  %v1850_v11 = vsub.f32 %v12005_v9, %v1828_v37 }
0x1059   :  { %1895 = vadd.xlane.f32.xlu1 %v12058_v6  ;;  %v1826_v22 = vpop.xlane.xlu0 %1825  ;;  %v12064_v7 = vpop.eup %10728 }
0x105a   :  { %10738 = vpow2.f32 %v1877_v25  ;;  %v1875_v41 = vmul.f32 1.442695, %v1850_v11  ;;  %v1849_v0 = vsub.f32 %v12011_v40, %v1826_v22 }
0x105b   :  { %v1840_v15 = vpop.xlane.xlu1 %1839 }
0x105c   :  { %v12066_v59 = vpop.eup %10730  ;;  %v1873_v56 = vmul.f32 1.442695, %v1849_v0  ;;  %10740 = vpow2.f32 %v1875_v41  ;;  %v1856_v61 = vsub.f32 %v12017_v48, %v1840_v15 }
0x105d   :  { %1901 = vadd.xlane.f32.xlu0 %v12066_v59  ;;  %v1838_v9 = vpop.xlane.xlu0 %1837  ;;  %1891 = vadd.xlane.f32.xlu1 %v12064_v7 }
0x105e   :  { %10742 = vpow2.f32 %v1873_v56  ;;  %v12070_v20 = vpop.eup %10732  ;;  %v1855_v36 = vsub.f32 %v12023_v13, %v1838_v9  ;;  %v1887_v17 = vmul.f32 1.442695, %v1856_v61 }
0x105f   :  { %v1836_v19 = vpop.xlane.xlu1 %1835  ;;  %10744 = vpow2.f32 %v1879_v23 }
0x1060   :  { %v12072_v49 = vpop.eup %10734  ;;  %v1854_v54 = vsub.f32 %v12029_v43, %v1836_v19  ;;  %v1885_v52 = vmul.f32 1.442695, %v1855_v36 }
0x1061   :  { %v1834_v40 = vpop.xlane.xlu0 %1833  ;;  %1897 = vadd.xlane.f32.xlu1 %v12072_v49  ;;  %1899 = vadd.xlane.f32.xlu0 %v12070_v20  ;;  %v12076_v12 = vpop.eup %10736 }
0x1062   :  { %v1883_v29 = vmul.f32 1.442695, %v1854_v54  ;;  %v1853_v55 = vsub.f32 %v12035_v16, %v1834_v40 }
0x1063   :  { %v10023_v26 = vpop.permute.xlu1 %10022 }
0x1064   :  { %v12078_v27 = vpop.eup %10738  ;;  %v10025_v28 = vunpack.i.h.bf16 %v10023_v26  ;;  %v10024_v45 = vunpack.i.l.bf16 %v10023_v26  ;;  %10746 = vpow2.f32 %v1883_v29  ;;  %v1881_v63 = vmul.f32 1.442695, %v1853_v55 }
0x1065   :  { %v10018_v31 = vpop.permute.xlu0 %10017  ;;  %1903 = vadd.xlane.f32.xlu1 %v12076_v12  ;;  %1909 = vadd.xlane.f32.xlu0 %v12078_v27  ;;  %10748 = vpow2.f32 %v1885_v52 }
0x1066   :  { %v10020_v35 = vunpack.i.h.bf16 %v10018_v31  ;;  %v10019_v39 = vunpack.i.l.bf16 %v10018_v31  ;;  %v12082_v47 = vpop.eup %10740  ;;  %v1637_v58 = vpack.c.bf16 %v10025_v28, %v10024_v45  ;;  %10750 = vpow2.f32 %v1881_v63 }
0x1067   :  { %10752 = vpow2.f32 %v1887_v17 }
0x1068   :  { %v12084_v51 = vpop.eup %10742  ;;  %v1636_v18 = vpack.c.bf16 %v10020_v35, %v10019_v39 }
0x1069   :  { %1905 = vadd.xlane.f32.xlu1 %v12084_v51  ;;  %1907 = vadd.xlane.f32.xlu0 %v12082_v47  ;;  %v12088_v44 = vpop.eup %10744 }
0x106a   :  { %9188 = vmatprep.subr.bf16.mxu1 %v1636_v18 }
0x106b   :  { %9189 = vmatpush3.bf16.msra.mxu1 %v1636_v18 }
0x106c   :  { %9190 = vmatprep.subr.bf16.mxu1 %v1637_v58 }
0x106d   :  { %1911 = vadd.xlane.f32.xlu1 %v12088_v44 }
0x106f   :  { %9191 = vmatpush3.bf16.msra.mxu1 %v1637_v58 }
0x107e   :  { %10032 = vrot.lane.b32.xlu1 %v11892_v32, %s14304_s7  ;;  %v12099_v32 = vpop.eup %10746 }
0x107f   :  { %10027 = vrot.lane.b32.xlu0 %v11885_v8, %s14304_s7  ;;  %v12102_v8 = vpop.eup %10748 }
0x1080   :  { %v12104_v43 = vpop.eup %10750 }
0x1081   :  { %v12108_v13 = vpop.eup %10752 }
0x109e   :  { %1915 = vadd.xlane.f32.xlu0 %v12099_v32 }
0x10a2   :  { %1913 = vadd.xlane.f32.xlu1 %v12104_v43  ;;  %1917 = vadd.xlane.f32.xlu0 %v12102_v8 }
0x10a6   :  { %1919 = vadd.xlane.f32.xlu1 %v12108_v13 }
0x10de   :  { %v1894_v48 = vpop.xlane.xlu0 %1893 }
0x10e2   :  { %v1890_v16 = vpop.xlane.xlu0 %1889 }
0x10e3   :  { %10754 = vrcp.f32 %v1890_v16 }
0x10e6   :  { %v1896_v57 = vpop.xlane.xlu1 %1895 }
0x10ea   :  { %v1902_v2 = vpop.xlane.xlu0 %1901  ;;  %v1892_v14 = vpop.xlane.xlu1 %1891 }
0x10eb   :  { %10756 = vrcp.f32 %v1892_v14 }
0x10ec   :  { %10758 = vrcp.f32 %v1896_v57 }
0x10ed   :  { %v10755_v1 = vpop.eup %10754 }
0x10ee   :  { %v1900_v37 = vpop.xlane.xlu0 %1899  ;;  %v1898_v25 = vpop.xlane.xlu1 %1897  ;;  %v1937_v56 = vmul.f32 %v10755_v1, %v12054_v4 }
0x10ef   :  { %10760 = vrcp.f32 %v1900_v37 }
0x10f0   :  { %10762 = vrcp.f32 %v1898_v25 }
0x10f1   :  { %10764 = vrcp.f32 %v1894_v48 }
0x10f2   :  { %v1910_v11 = vpop.xlane.xlu0 %1909  ;;  %v1904_v22 = vpop.xlane.xlu1 %1903 }
0x10f3   :  { %10766 = vrcp.f32 %v1904_v22 }
0x10f5   :  { %v10757_v41 = vpop.eup %10756 }
0x10f6   :  { %v1908_v0 = vpop.xlane.xlu0 %1907  ;;  %v1906_v15 = vpop.xlane.xlu1 %1905  ;;  %v1938_v9 = vmul.f32 %v10757_v41, %v12064_v7 }
0x10f7   :  { %10768 = vrcp.f32 %v1908_v0  ;;  %v10759_v28 = vpop.eup %10758 }
0x10f8   :  { %v1953_v23 = vpack.c.bf16 %v1938_v9, %v1937_v56  ;;  %10770 = vrcp.f32 %v1906_v15  ;;  %v1940_v7 = vmul.f32 %v10759_v28, %v12058_v6 }
0x10f9   :  { %v10761_v35 = vpop.eup %10760  ;;  %10772 = vrcp.f32 %v1902_v2 }
0x10fa   :  { %v10028_v19 = vpop.permute.xlu0 %10027  ;;  %v1912_v40 = vpop.xlane.xlu1 %1911  ;;  %9196 = vmatprep.mubr.bf16.mxu1 %v1953_v23  ;;  %v1942_v55 = vmul.f32 %v10761_v35, %v12070_v20 }
0x10fb   :  { %v10030_v26 = vunpack.i.h.bf16 %v10028_v19  ;;  %v10029_v31 = vunpack.i.l.bf16 %v10028_v19  ;;  %v10763_v18 = vpop.eup %10762  ;;  %10774 = vrcp.f32 %v1912_v40 }
0x10fc   :  { %v10765_v4 = vpop.eup %10764  ;;  %v1941_v29 = vmul.f32 %v10763_v18, %v12072_v49  ;;  %10776 = vrcp.f32 %v1910_v11 }
0x10fd   :  { %v1638_v45 = vpack.c.bf16 %v10030_v26, %v10029_v31  ;;  %v1939_v52 = vmul.f32 %v10765_v4, %v12048_v53  ;;  %v10767_v61 = vpop.eup %10766 }
0x10fe   :  { %v10033_v39 = vpop.permute.xlu1 %10032  ;;  %v1955_v48 = vpack.c.bf16 %v1942_v55, %v1941_v29  ;;  %v1944_v6 = vmul.f32 %v10767_v61, %v12076_v12  ;;  %v10503_v61 = vld [vmem:[%s14300_s4 + $0x38] sm:$0xff]  }
0x10ff   :  { %v10035_v58 = vunpack.i.h.bf16 %v10033_v39  ;;  %v10034_v54 = vunpack.i.l.bf16 %v10033_v39  ;;  %9192 = vmatprep.subr.bf16.mxu1 %v1638_v45  ;;  %v1954_v63 = vpack.c.bf16 %v1940_v7, %v1939_v52 }
0x1100   :  { %9193 = vmatpush3.bf16.msra.mxu1 %v1638_v45 }
0x1101   :  { %v1639_v36 = vpack.c.bf16 %v10035_v58, %v10034_v54  ;;  %v10769_v17 = vpop.eup %10768 }
0x1102   :  { %v10771_v16 = vpop.eup %10770  ;;  %v1946_v20 = vmul.f32 %v10769_v17, %v12082_v47 }
0x1103   :  { %9194 = vmatprep.subr.bf16.mxu1 %v1639_v36  ;;  %v10773_v57 = vpop.eup %10772  ;;  %v1945_v49 = vmul.f32 %v10771_v16, %v12084_v51 }
0x1104   :  { %9195 = vmatpush3.bf16.msra.mxu1 %v1639_v36  ;;  %v1943_v53 = vmul.f32 %v10773_v57, %v12066_v59  ;;  %v10502_v36 = vld [vmem:[%s14300_s4 + $0x30] sm:$0xff]  }
0x1105   :  { %v10775_v14 = vpop.eup %10774  ;;  %v1957_v37 = vpack.c.bf16 %v1946_v20, %v1945_v49 }
0x1106   :  { %v1956_v2 = vpack.c.bf16 %v1944_v6, %v1943_v53  ;;  %v10777_v25 = vpop.eup %10776  ;;  %v1948_v11 = vmul.f32 %v10775_v14, %v12088_v44 }
0x1107   :  { %9197 = vmatmul.mubr.bf16.vlgmr.msra.gmra.mrb[40].mxu1 %v1954_v63  ;;  %v1947_v22 = vmul.f32 %v10777_v25, %v12078_v27 }
0x1108   :  { %9200 = vmatprep.mubr.bf16.mxu1 %v1955_v48 }
0x1109   :  { %v1958_v1 = vpack.c.bf16 %v1948_v11, %v1947_v22 }
0x110f   :  { %9201 = vmatmul.mubr.bf16.gmra.mrb[44].mxu1 %v1956_v2 }
0x1110   :  { %9204 = vmatprep.mubr.bf16.mxu1 %v1957_v37 }
0x1117   :  { %9205 = vmatmul.mubr.bf16.gmra.mrb[48].mxu1 %v1958_v1 }
0x112b   :  { %v1916_v41 = vpop.xlane.xlu0 %1915 }
0x112c   :  { %10778 = vrcp.f32 %v1916_v41 }
0x112f   :  { %v1918_v12 = vpop.xlane.xlu0 %1917  ;;  %v1914_v51 = vpop.xlane.xlu1 %1913 }
0x1130   :  { %10780 = vrcp.f32 %v1914_v51 }
0x1131   :  { %10782 = vrcp.f32 %v1918_v12 }
0x1133   :  { %v1920_v47 = vpop.xlane.xlu1 %1919 }
0x1134   :  { %10784 = vrcp.f32 %v1920_v47 }
0x1136   :  { %v10779_v59 = vpop.eup %10778 }
0x1137   :  { %v1950_v9 = vmul.f32 %v10779_v59, %v12099_v32  ;;  %v10500_v32 = vld [vmem:[%s14300_s4 + $0x20] sm:$0xff]  }
0x1138   :  { %9212 = vmatprep.subr.bf16.mxu1 %v10500_v32 }
0x1139   :  { %9213 = vmatpush3.bf16.msra.mxu1 %v10500_v32 }
0x113a   :  { %v10781_v0 = vpop.eup %10780 }
0x113b   :  { %v10783_v15 = vpop.eup %10782  ;;  %v1949_v56 = vmul.f32 %v10781_v0, %v12104_v43 }
0x113c   :  { %v1951_v27 = vmul.f32 %v10783_v15, %v12102_v8  ;;  %v10501_v8 = vld [vmem:[%s14300_s4 + $0x28] sm:$0xff]  }
0x113d   :  { %v1959_v23 = vpack.c.bf16 %v1950_v9, %v1949_v56  ;;  %9214 = vmatprep.subr.bf16.mxu1 %v10501_v8 }
0x113e   :  { %v10785_v44 = vpop.eup %10784  ;;  %9215 = vmatpush3.bf16.msra.mxu1 %v10501_v8 }
0x113f   :  { %v1952_v19 = vmul.f32 %v10785_v44, %v12108_v13  ;;  %9208 = vmatprep.mubr.bf16.mxu1 %v1959_v23  ;;  %9216 = vmatprep.subr.bf16.mxu1 %v10502_v36 }
0x1141   :  { %v1960_v40 = vpack.c.bf16 %v1952_v19, %v1951_v27 }
0x1142   :  { %9217 = vmatpush3.bf16.msra.mxu1 %v10502_v36 }
0x1143   :  { %9209 = vmatmul.mubr.bf16.gmra.mrb[52].mxu1 %v1960_v40  ;;  %9218 = vmatprep.subr.bf16.mxu1 %v10503_v61 }
0x1146   :  { %9219 = vmatpush3.bf16.msra.mxu1 %v10503_v61 }
0x11da   :  { %v9198_v26 = vpop.f32.mrb[40].mxu1 }
0x11db   :  { %v1995_v31 = vpop.f32.mrb[41].mxu1 }
0x11dc   :  { %v9199_v28 = vpop.f32.mrb[42].mxu1 }
0x11dd   :  { %v1998_v45 = vpop.f32.mrb[43].mxu1 }
0x11e2   :  { %v9202_v35 = vpop.f32.mrb[44].mxu1 }
0x11e3   :  { %v2011_v39 = vpop.f32.mrb[45].mxu1 }
0x11e4   :  { %v9203_v18 = vpop.f32.mrb[46].mxu1 }
0x11e5   :  { %v10036_v58 = vpack.i.bf16 %v9203_v18, %v9202_v35  ;;  %v2014_v43 = vpop.f32.mrb[47].mxu1 }
0x11e6   :  { %v10041_v54 = vpack.i.bf16 %v2014_v43, %v2011_v39  ;;  %v2123_v43 = vrot.slane %v11870_v62, %v11699_v34 }
0x11e7   :  { %10037 = vrot.lane.b32.xlu1 %v10036_v58, %s14307_s22 }
0x11e8   :  { %10042 = vrot.lane.b32.xlu0 %v10041_v54, %s14307_s22 }
0x11ea   :  { %v9206_v13 = vpop.f32.mrb[48].mxu1 }
0x11eb   :  { %v2027_v4 = vpop.f32.mrb[49].mxu1 }
0x11ec   :  { %v9207_v7 = vpop.f32.mrb[50].mxu1 }
0x11ed   :  { %v10046_v29 = vpack.i.bf16 %v9207_v7, %v9206_v13  ;;  %v2030_v55 = vpop.f32.mrb[51].mxu1 }
0x11ee   :  { %v10051_v52 = vpack.i.bf16 %v2030_v55, %v2027_v4 }
0x11ef   :  { %10047 = vrot.lane.b32.xlu1 %v10046_v29, %s14308_s12 }
0x11f3   :  { %10052 = vrot.lane.b32.xlu1 %v10051_v52, %s14308_s12 }
0x1216   :  { %v9210_v63 = vpop.f32.mrb[52].mxu1 }
0x1217   :  { %v2043_v17 = vpop.f32.mrb[53].mxu1 }
0x1218   :  { %v9211_v48 = vpop.f32.mrb[54].mxu1 }
0x1219   :  { %v10061_v16 = vpack.i.bf16 %v9211_v48, %v9210_v63  ;;  %v2046_v57 = vpop.f32.mrb[55].mxu1 }
0x121a   :  { %v10056_v6 = vpack.i.bf16 %v2046_v57, %v2043_v17 }
0x121b   :  { %10062 = vrot.lane.b32.xlu1 %v10061_v16, %s14309_s6 }
0x121c   :  { %10057 = vrot.lane.b32.xlu0 %v10056_v6, %s14309_s6 }
0x1259   :  { %v10038_v49 = vpop.permute.xlu1 %10037 }
0x125a   :  { %v10043_v53 = vpop.permute.xlu0 %10042  ;;  %v10040_v2 = vunpack.i.h.bf16 %v10038_v49  ;;  %v10039_v14 = vunpack.i.l.bf16 %v10038_v49 }
0x125b   :  { %v10045_v25 = vunpack.i.h.bf16 %v10043_v53  ;;  %v10044_v11 = vunpack.i.l.bf16 %v10043_v53 }
0x125c   :  { %v2109_v51 = vsel %vm508_vm1, %v9199_v28, %v10040_v2  ;;  %v2108_v47 = vsel %vm508_vm1, %v9198_v26, %v10039_v14 }
0x125d   :  { %v2107_v0 = vsel %vm508_vm1, %v1998_v45, %v10045_v25  ;;  %v2106_v15 = vsel %vm508_vm1, %v1995_v31, %v10044_v11 }
0x1261   :  { %v10048_v20 = vpop.permute.xlu1 %10047 }
0x1262   :  { %v10050_v22 = vunpack.i.h.bf16 %v10048_v20  ;;  %v10049_v1 = vunpack.i.l.bf16 %v10048_v20 }
0x1264   :  { %v2113_v23 = vsel %vm955_vm2, %v2109_v51, %v10050_v22  ;;  %v2112_v27 = vsel %vm955_vm2, %v2108_v47, %v10049_v1 }
0x1265   :  { %v10053_v37 = vpop.permute.xlu1 %10052 }
0x1266   :  { %v10055_v41 = vunpack.i.h.bf16 %v10053_v37  ;;  %v10054_v12 = vunpack.i.l.bf16 %v10053_v37 }
0x1268   :  { %v2111_v35 = vsel %vm955_vm2, %v2107_v0, %v10055_v41  ;;  %v2110_v28 = vsel %vm955_vm2, %v2106_v15, %v10054_v12  ;;  %v10505_v0 = vld [vmem:[%s14301_s25 + $0x28] sm:$0xff]   ;;  %v10506_v15 = vld [vmem:[%s14301_s25 + $0x30] sm:$0xff]  }
0x128d   :  { %v10063_v59 = vpop.permute.xlu1 %10062 }
0x128e   :  { %v10065_v56 = vunpack.i.h.bf16 %v10063_v59  ;;  %v10064_v9 = vunpack.i.l.bf16 %v10063_v59  ;;  %v10058_v44 = vpop.permute.xlu0 %10057  ;;  %v10504_v59 = vld [vmem:[%s14301_s25 + $0x20] sm:$0xff]  }
0x128f   :  { %v10060_v19 = vunpack.i.h.bf16 %v10058_v44  ;;  %v10059_v40 = vunpack.i.l.bf16 %v10058_v44  ;;  %9224 = vmatprep.subr.bf16.mxu1 %v10504_v59  ;;  %v10509_v44 = vld [vmem:[%s14302_s29 + $0x48] sm:$0xff]  }
0x1290   :  { %v2117_v26 = vsel %vm960_vm3, %v2113_v23, %v10065_v56  ;;  %v2116_v39 = vsel %vm960_vm3, %v2112_v27, %v10064_v9  ;;  %v10507_v56 = vld [vmem:[%s14301_s25 + $0x38] sm:$0xff]   ;;  %v10508_v9 = vld [vmem:[%s14302_s29 + $0x40] sm:$0xff]   ;;  %v10510_v23 = vld [vmem:[%s14302_s29 + $0x50] sm:$0xff]  }
0x1291   :  { %v2119_v45 = vpack.c.bf16 %v2117_v26, %v2116_v39  ;;  %v2115_v31 = vsel %vm960_vm3, %v2111_v35, %v10060_v19  ;;  %v2114_v18 = vsel %vm960_vm3, %v2110_v28, %v10059_v40  ;;  %9236 = vmatprep.subr.bf16.mxu0 %v10508_v9  ;;  %v10511_v27 = vld [vmem:[%s14302_s29 + $0x58] sm:$0xff]   ;;  %v10512_v19 = vld [vmem:[%s14302_s29 + $0x60] sm:$0xff]   ;;  %v10513_v40 = vld [vmem:[%s14302_s29 + $0x68] sm:$0xff]  }
0x1292   :  { %v2118_v58 = vpack.c.bf16 %v2115_v31, %v2114_v18  ;;  %9237 = vmatpush3.bf16.msra.mxu0 %v10508_v9 }
0x1293   :  { %9238 = vmatprep.subr.bf16.mxu0 %v10509_v44 }
0x1294   :  { %9220 = vmatprep.mubr.msk.bf16.mxu1 %vm120_vm0, %v2118_v58 }
0x1295   :  { %9221 = vmatmul.mubr.msk.bf16.vlgmr.msra.gmra.mrb[56].mxu1 %vm120_vm0, %v2119_v45 }
0x1296   :  { %9225 = vmatpush3.bf16.msra.mxu1 %v10504_v59  ;;  %9239 = vmatpush3.bf16.msra.mxu0 %v10509_v44 }
0x1297   :  { %9226 = vmatprep.subr.bf16.mxu1 %v10505_v0  ;;  %9240 = vmatprep.subr.bf16.mxu0 %v10510_v23 }
0x129a   :  { %9227 = vmatpush3.bf16.msra.mxu1 %v10505_v0  ;;  %9241 = vmatpush3.bf16.msra.mxu0 %v10510_v23 }
0x129b   :  { %9228 = vmatprep.subr.bf16.mxu1 %v10506_v15  ;;  %9242 = vmatprep.subr.bf16.mxu0 %v10511_v27 }
0x129e   :  { %9229 = vmatpush3.bf16.msra.mxu1 %v10506_v15  ;;  %9243 = vmatpush3.bf16.msra.mxu0 %v10511_v27 }
0x129f   :  { %9230 = vmatprep.subr.bf16.mxu1 %v10507_v56  ;;  %9244 = vmatprep.subr.bf16.mxu0 %v10512_v19 }
0x12a2   :  { %9231 = vmatpush3.bf16.msra.mxu1 %v10507_v56  ;;  %9245 = vmatpush3.bf16.msra.mxu0 %v10512_v19 }
0x12a3   :  { %9246 = vmatprep.subr.bf16.mxu0 %v10513_v40 }
0x12a6   :  { %9247 = vmatpush3.bf16.msra.mxu0 %v10513_v40 }
0x1368   :  { %v9222_v54 = vpop.f32.mrb[56].mxu1 }
0x1369   :  { %v2188_v32 = vpop.f32.mrb[57].mxu1  ;;  %v2197_v8 = vadd.f32 %v9222_v54, %v2123_v43 }
0x136a   :  { %v2189_v13 = vadd.f32 %v2188_v32, %v2123_v43  ;;  %v9223_v4 = vpop.f32.mrb[58].mxu1 }
0x136b   :  { %v2191_v7 = vpop.f32.mrb[59].mxu1  ;;  %v12165_v55 = vadd.f32 %v2197_v8, %v11821_v38  ;;  %v2200_v52 = vadd.f32 %v9223_v4, %v2123_v43 }
0x136c   :  { %v12162_v36 = vadd.f32 %v2189_v13, %v11817_v24  ;;  %v2192_v29 = vadd.f32 %v2191_v7, %v2123_v43  ;;  %v11141_v13 = vld [vmem:[%s14298_s28 + $0x10] sm:$0xff] }
0x136d   :  { %v12175_v17 = vadd.f32 %v2200_v52, %v11827_v46  ;;  %v2213_v24 = vsel %vm120_vm0, %v12165_v55, 0.0  ;;  %v2262_v4 = vrot.slane %v11141_v13, %v11783_v30  ;;  %v2496_v40 = vrot.slane %v11141_v13, %v11811_v21 }
0x136e   :  { %v12168_v61 = vadd.f32 %v2192_v29, %v11823_v3  ;;  %v2207_v62 = vsel %vm120_vm0, %v12162_v36, 0.0 }
0x136f   :  { %2208 = vadd.xlane.f32.xlu0 %v2207_v62  ;;  %v2216_v38 = vsel %vm120_vm0, %v12175_v17, 0.0 }
0x1370   :  { %v2210_v63 = vsel %vm120_vm0, %v12168_v61, 0.0 }
0x1371   :  { %2211 = vadd.xlane.f32.xlu1 %v2210_v63 }
0x1373   :  { %2214 = vadd.xlane.f32.xlu0 %v2213_v24  ;;  %v2270_v24 = vrot.slane %v11141_v13, %v11788_v60 }
0x1377   :  { %2217 = vadd.xlane.f32.xlu0 %v2216_v38 }
0x13fc   :  { %v2209_v3 = vpop.xlane.xlu0 %2208 }
0x13fd   :  { %v2219_v48 = vmul.f32 0.015625, %v2209_v3 }
0x13fe   :  { %v2212_v16 = vpop.xlane.xlu1 %2211 }
0x13ff   :  { %v12182_v57 = vsub.f32 %v12162_v36, %v2219_v48  ;;  %v2220_v6 = vmul.f32 0.015625, %v2212_v16 }
0x1400   :  { %v2215_v49 = vpop.xlane.xlu0 %2214 }
0x1401   :  { %v12185_v20 = vsub.f32 %v12168_v61, %v2220_v6  ;;  %v2221_v46 = vmul.f32 0.015625, %v2215_v49  ;;  %v2227_v53 = vmul.f32 %v12182_v57, %v12182_v57 }
0x1403   :  { %v12190_v2 = vsub.f32 %v12165_v55, %v2221_v46  ;;  %v2231_v14 = vsel %vm120_vm0, %v2227_v53, 0.0  ;;  %v2228_v37 = vmul.f32 %v12185_v20, %v12185_v20 }
0x1404   :  { %2232 = vadd.xlane.f32.xlu0 %v2231_v14  ;;  %v2218_v25 = vpop.xlane.xlu0 %2217 }
0x1405   :  { %v2222_v11 = vmul.f32 0.015625, %v2218_v25  ;;  %v2234_v22 = vsel %vm120_vm0, %v2228_v37, 0.0  ;;  %v2229_v1 = vmul.f32 %v12190_v2, %v12190_v2 }
0x1406   :  { %2235 = vadd.xlane.f32.xlu1 %v2234_v22  ;;  %v2289_v22 = vrot.slane %v11141_v13, %v11806_v42 }
0x1407   :  { %v12199_v41 = vsub.f32 %v12175_v17, %v2222_v11  ;;  %v2237_v12 = vsel %vm120_vm0, %v2229_v1, 0.0  ;;  %v10515_v11 = vld [vmem:[%s14302_s29 + $0x78] sm:$0xff]  }
0x1408   :  { %2238 = vadd.xlane.f32.xlu0 %v2237_v12 }
0x1409   :  { %v2230_v51 = vmul.f32 %v12199_v41, %v12199_v41 }
0x140b   :  { %v2240_v47 = vsel %vm120_vm0, %v2230_v51, 0.0 }
0x140c   :  { %2241 = vadd.xlane.f32.xlu1 %v2240_v47 }
0x1491   :  { %v2233_v35 = vpop.xlane.xlu0 %2232 }
0x1492   :  { %v2243_v28 = vmul.f32 0.015625, %v2233_v35 }
0x1493   :  { %v2236_v26 = vpop.xlane.xlu1 %2235 }
0x1494   :  { %v2247_v39 = vadd.f32 1e-05, %v2243_v28  ;;  %v2244_v45 = vmul.f32 0.015625, %v2236_v26 }
0x1495   :  { %v2239_v31 = vpop.xlane.xlu0 %2238 }
0x1496   :  { %10786 = vrsqrt.f32 %v2247_v39  ;;  %v2248_v18 = vadd.f32 1e-05, %v2244_v45  ;;  %v2245_v58 = vmul.f32 0.015625, %v2239_v31 }
0x1498   :  { %10788 = vrsqrt.f32 %v2248_v18  ;;  %v2249_v43 = vadd.f32 1e-05, %v2245_v58 }
0x1499   :  { %v2242_v54 = vpop.xlane.xlu1 %2241 }
0x149a   :  { %10790 = vrsqrt.f32 %v2249_v43  ;;  %v2246_v32 = vmul.f32 0.015625, %v2242_v54 }
0x149c   :  { %v2250_v8 = vadd.f32 1e-05, %v2246_v32 }
0x149e   :  { %10792 = vrsqrt.f32 %v2250_v8 }
0x14a0   :  { %v10787_v7 = vpop.eup %10786 }
0x14a1   :  { %v2255_v29 = vmul.f32 %v10787_v7, %v12182_v57 }
0x14a2   :  { %v10789_v52 = vpop.eup %10788 }
0x14a3   :  { %v2256_v62 = vmul.f32 %v10789_v52, %v12185_v20  ;;  %v2263_v63 = vmul.f32 %v2262_v4, %v2255_v29 }
0x14a4   :  { %v10791_v38 = vpop.eup %10790 }
0x14a5   :  { %v2257_v3 = vmul.f32 %v10791_v38, %v12190_v2  ;;  %v2264_v48 = vmul.f32 %v2262_v4, %v2256_v62  ;;  %v2271_v16 = vadd.f32 %v2270_v24, %v2263_v63  ;;  %v10514_v2 = vld [vmem:[%s14302_s29 + $0x70] sm:$0xff]  }
0x14a6   :  { %9248 = vmatprep.subr.bf16.mxu0 %v10514_v2 }
0x14a7   :  { %v2272_v6 = vadd.f32 %v2270_v24, %v2264_v48  ;;  %v2265_v46 = vmul.f32 %v2262_v4, %v2257_v3  ;;  %9249 = vmatpush3.bf16.msra.mxu0 %v10514_v2  ;;  %v11180_v2 = vmov 0.0  }
0x14a8   :  { %v10793_v49 = vpop.eup %10792  ;;  %9250 = vmatprep.subr.bf16.mxu0 %v10515_v11  ;;  %9256 = vmatprep.subr.bf16.mxu1 %v11180_v2 }
0x14a9   :  { %v2258_v53 = vmul.f32 %v10793_v49, %v12199_v41  ;;  %v2284_v14 = vpack.c.bf16 %v2272_v6, %v2271_v16  ;;  %v2273_v57 = vadd.f32 %v2270_v24, %v2265_v46 }
0x14ab   :  { %v2266_v37 = vmul.f32 %v2262_v4, %v2258_v53  ;;  %9232 = vmatprep.mubr.msk.bf16.mxu1 %vm120_vm0, %v2284_v14  ;;  %9251 = vmatpush3.bf16.msra.mxu0 %v10515_v11  ;;  %v10517_v11 = vld [vmem:[%s14240_s3] sm:$0xff]  }
0x14ac   :  { %9268 = vmatprep.subr.bf16.mxu0 %v11180_v2 }
0x14ad   :  { %v2274_v25 = vadd.f32 %v2270_v24, %v2266_v37 }
0x14af   :  { %v2285_v20 = vpack.c.bf16 %v2274_v25, %v2273_v57 }
0x14b1   :  { %9233 = vmatmul.mubr.msk.bf16.vlgmr.msra.gmra.mrb[60].mxu1 %vm120_vm0, %v2285_v20  ;;  %v10516_v20 = vld [vmem:[%s14239_s1] sm:$0xff]  }
0x14b2   :  { %9257 = vmatpush3.bf16.msra.mxu1 %v10517_v11  ;;  %9264 = vmatprep.mubr.msk.bf16.mxu1 %vm11181_vm4, %v11180_v2 }
0x14b3   :  { %9258 = vmatprep.subr.bf16.mxu1 %v11180_v2 }
0x1584   :  { %v9234_v1 = vpop.f32.mrb[60].mxu1 }
0x1585   :  { %v2363_v41 = vadd.f32 %v9234_v1, %v2289_v22  ;;  %v2354_v12 = vpop.f32.mrb[61].mxu1  ;;  %v10519_v1 = vld [vmem:[%s14240_s3 + $0x8] sm:$0xff]  }
0x1586   :  { %v2355_v51 = vadd.f32 %v2354_v12, %v2289_v22  ;;  %v9235_v47 = vpop.f32.mrb[62].mxu1  ;;  %9259 = vmatpush3.bf16.msra.mxu1 %v10519_v1  ;;  %v10521_v12 = vld [vmem:[%s14240_s3 + $0x10] sm:$0xff]  }
0x1587   :  { %v2366_v59 = vadd.f32 %v9235_v47, %v2289_v22  ;;  %v2357_v0 = vpop.f32.mrb[63].mxu1  ;;  %v2371_v56 = vmax.f32 %v2363_v41, 0.0  ;;  %v10520_v41 = vld [vmem:[%s14239_s1 + $0x10] sm:$0xff]   ;;  %9260 = vmatprep.subr.bf16.mxu1 %v11180_v2  ;;  %v10523_v47 = vld [vmem:[%s14240_s3 + $0x18] sm:$0xff]  }
0x1588   :  { %v2358_v15 = vadd.f32 %v2357_v0, %v2289_v22  ;;  %v2369_v44 = vmax.f32 %v2355_v51, 0.0  ;;  %v10518_v22 = vld [vmem:[%s14239_s1 + $0x8] sm:$0xff]   ;;  %v10522_v51 = vld [vmem:[%s14239_s1 + $0x18] sm:$0xff]  }
0x1589   :  { %v2372_v9 = vmax.f32 %v2366_v59, 0.0 }
0x158a   :  { %v2370_v23 = vmax.f32 %v2358_v15, 0.0  ;;  %9261 = vmatpush3.bf16.msra.mxu1 %v10521_v12 }
0x158b   :  { %v2391_v27 = vpack.c.bf16 %v2372_v9, %v2371_v56  ;;  %9262 = vmatprep.subr.bf16.mxu1 %v11180_v2 }
0x158c   :  { %v2390_v19 = vpack.c.bf16 %v2370_v23, %v2369_v44 }
0x158e   :  { %9252 = vmatprep.mubr.bf16.mxu0 %v2390_v19  ;;  %9263 = vmatpush3.bf16.msra.mxu1 %v10523_v47 }
0x158f   :  { %9253 = vmatmul.mubr.bf16.vlgmr.msra.gmra.mrb[40].mxu0 %v2391_v27 }
0x1590   :  { %9269 = vmatpush3.bf16.msra.mxu0 %v10516_v20  ;;  %9276 = vmatprep.mubr.msk.bf16.mxu0 %vm11181_vm4, %v11180_v2 }
0x1591   :  { %9270 = vmatprep.subr.bf16.mxu0 %v11180_v2 }
0x1594   :  { %9271 = vmatpush3.bf16.msra.mxu0 %v10518_v22 }
0x1595   :  { %9272 = vmatprep.subr.bf16.mxu0 %v11180_v2 }
0x1598   :  { %9273 = vmatpush3.bf16.msra.mxu0 %v10520_v41 }
0x1599   :  { %9274 = vmatprep.subr.bf16.mxu0 %v11180_v2 }
0x159c   :  { %9275 = vmatpush3.bf16.msra.mxu0 %v10522_v51 }
0x1662   :  { %v9254_v35 = vpop.f32.mrb[40].mxu0 }
0x1663   :  { %v2491_v28 = vadd.f32 %v9254_v35, %v12165_v55  ;;  %v2474_v26 = vpop.f32.mrb[41].mxu0 }
0x1664   :  { %v2489_v39 = vadd.f32 %v2474_v26, %v12162_v36  ;;  %v9255_v45 = vpop.f32.mrb[42].mxu0  ;;  %v12337_v26 = vld [vmem:[%s14241_s0 + $0x8] sm:$0x7f] }
0x1665   :  { %v12256_v31 = vadd.f32 %v2496_v40, %v2491_v28  ;;  %v2492_v18 = vadd.f32 %v9255_v45, %v12175_v17  ;;  %v2477_v58 = vpop.f32.mrb[43].mxu0  ;;  %v3218_v45 = vrot.slane %v12337_v26, %v11405_v5 }
0x1666   :  { %v2490_v43 = vadd.f32 %v2477_v58, %v12168_v61  ;;  %v12260_v54 = vadd.f32 %v2496_v40, %v2489_v39  ;;  %v2501_v39 = vld [vmem:[%s14241_s0] sm:$0x7f] }
0x1667   :  { %v12262_v32 = vadd.f32 %v2496_v40, %v2492_v18  ;;  %v2540_v8 = vsel %vm120_vm0, %v12256_v31, 0.0  ;;  %v2531_v58 = vrot.slane %v2501_v39, %v11405_v5  ;;  %v2663_v41 = vrot.slane %v2501_v39, %v11699_v34 }
0x1668   :  { %2541 = vadd.xlane.f32.xlu0 %v2540_v8  ;;  %v12266_v55 = vadd.f32 %v2496_v40, %v2490_v43  ;;  %v2502_v17 = vsel %vm120_vm0, %v12260_v54, 0.0 }
0x1669   :  { %v2543_v36 = vsel %vm120_vm0, %v12262_v32, 0.0 }
0x166a   :  { %2544 = vadd.xlane.f32.xlu1 %v2543_v36  ;;  %v2505_v61 = vsel %vm120_vm0, %v12266_v55, 0.0  ;;  %v3224_v36 = vrot.slane %v12337_v26, %v11412_v10 }
0x166c   :  { %2503 = vadd.xlane.f32.xlu0 %v2502_v17 }
0x166e   :  { %2506 = vadd.xlane.f32.xlu1 %v2505_v61 }
0x16f5   :  { %v2542_v13 = vpop.xlane.xlu0 %2541 }
0x16f6   :  { %v2546_v4 = vmul.f32 0.015625, %v2542_v13 }
0x16f7   :  { %v2545_v7 = vpop.xlane.xlu1 %2544 }
0x16f8   :  { %v12275_v29 = vsub.f32 %v12256_v31, %v2546_v4  ;;  %v2547_v52 = vmul.f32 0.015625, %v2545_v7  ;;  %v2537_v7 = vrot.slane %v2501_v39, %v11412_v10 }
0x16f9   :  { %v2504_v62 = vpop.xlane.xlu0 %2503 }
0x16fa   :  { %v12278_v63 = vsub.f32 %v12262_v32, %v2547_v52  ;;  %v2508_v24 = vmul.f32 0.015625, %v2504_v62  ;;  %v2550_v38 = vmul.f32 %v12275_v29, %v12275_v29 }
0x16fb   :  { %v2507_v3 = vpop.xlane.xlu1 %2506 }
0x16fc   :  { %v12283_v48 = vsub.f32 %v12260_v54, %v2508_v24  ;;  %v2509_v16 = vmul.f32 0.015625, %v2507_v3  ;;  %v2552_v6 = vsel %vm120_vm0, %v2550_v38, 0.0  ;;  %v2551_v49 = vmul.f32 %v12278_v63, %v12278_v63 }
0x16fd   :  { %2553 = vadd.xlane.f32.xlu0 %v2552_v6 }
0x16fe   :  { %v12289_v46 = vsub.f32 %v12266_v55, %v2509_v16  ;;  %v2555_v53 = vsel %vm120_vm0, %v2551_v49, 0.0  ;;  %v2512_v14 = vmul.f32 %v12283_v48, %v12283_v48 }
0x16ff   :  { %2556 = vadd.xlane.f32.xlu1 %v2555_v53 }
0x1700   :  { %v2514_v37 = vsel %vm120_vm0, %v2512_v14, 0.0  ;;  %v2513_v57 = vmul.f32 %v12289_v46, %v12289_v46 }
0x1701   :  { %2515 = vadd.xlane.f32.xlu0 %v2514_v37 }
0x1702   :  { %v2517_v25 = vsel %vm120_vm0, %v2513_v57, 0.0 }
0x1703   :  { %2518 = vadd.xlane.f32.xlu1 %v2517_v25 }
0x178a   :  { %v2554_v59 = vpop.xlane.xlu0 %2553 }
0x178b   :  { %v2558_v0 = vmul.f32 0.015625, %v2554_v59  ;;  %v2582_v59 = vrot.slane %v2501_v39, %v11421_v33 }
0x178c   :  { %v2557_v15 = vpop.xlane.xlu1 %2556 }
0x178d   :  { %v2560_v56 = vadd.f32 1e-05, %v2558_v0  ;;  %v2559_v9 = vmul.f32 0.015625, %v2557_v15 }
0x178e   :  { %v2516_v44 = vpop.xlane.xlu0 %2515 }
0x178f   :  { %10794 = vrsqrt.f32 %v2560_v56  ;;  %v2561_v23 = vadd.f32 1e-05, %v2559_v9  ;;  %v2520_v27 = vmul.f32 0.015625, %v2516_v44 }
0x1790   :  { %v2519_v19 = vpop.xlane.xlu1 %2518 }
0x1791   :  { %10796 = vrsqrt.f32 %v2561_v23  ;;  %v2522_v40 = vadd.f32 1e-05, %v2520_v27  ;;  %v2521_v35 = vmul.f32 0.015625, %v2519_v19 }
0x1793   :  { %10798 = vrsqrt.f32 %v2522_v40  ;;  %v2523_v28 = vadd.f32 1e-05, %v2521_v35 }
0x1795   :  { %10800 = vrsqrt.f32 %v2523_v28 }
0x1799   :  { %v10795_v18 = vpop.eup %10794 }
0x179a   :  { %v2564_v43 = vmul.f32 %v10795_v18, %v12275_v29 }
0x179b   :  { %v10797_v8 = vpop.eup %10796 }
0x179c   :  { %v3219_v17 = vmul.f32 %v3218_v45, %v2564_v43  ;;  %v2565_v61 = vmul.f32 %v10797_v8, %v12278_v63  ;;  %v2566_v4 = vmul.f32 %v2564_v43, %v2531_v58 }
0x179d   :  { %v10799_v13 = vpop.eup %10798 }
0x179e   :  { %v2567_v52 = vmul.f32 %v2565_v61, %v2531_v58  ;;  %v3220_v62 = vmul.f32 %v3218_v45, %v2565_v61  ;;  %v2526_v24 = vmul.f32 %v10799_v13, %v12283_v48  ;;  %v12351_v3 = vadd.f32 %v3224_v36, %v3219_v17 }
0x179f   :  { %v10801_v38 = vpop.eup %10800  ;;  %v2568_v53 = vadd.f32 %v2566_v4, %v2537_v7 }
0x17a0   :  { %v12353_v16 = vadd.f32 %v3224_v36, %v3220_v62  ;;  %v2532_v29 = vmul.f32 %v2531_v58, %v2526_v24  ;;  %v3227_v6 = vmul.f32 %v3218_v45, %v2526_v24  ;;  %v2527_v49 = vmul.f32 %v10801_v38, %v12289_v46 }
0x17a1   :  { %v2569_v14 = vadd.f32 %v2567_v52, %v2537_v7 }
0x17a2   :  { %v2533_v63 = vmul.f32 %v2531_v58, %v2527_v49  ;;  %v3228_v37 = vmul.f32 %v3218_v45, %v2527_v49  ;;  %v3240_v57 = vpack.c.bf16 %v12353_v16, %v12351_v3  ;;  %v12358_v20 = vadd.f32 %v3227_v6, %v3224_v36 }
0x17a3   :  { %v2659_v25 = vpack.c.bf16 %v2569_v14, %v2568_v53  ;;  %v2538_v48 = vadd.f32 %v2537_v7, %v2532_v29 }
0x17a4   :  { %v2539_v11 = vadd.f32 %v2537_v7, %v2533_v63  ;;  %v12360_v22 = vadd.f32 %v3228_v37, %v3224_v36 }
0x17a5   :  { %9277 = vmatmul.mubr.msk.bf16.vlgmr.msra.gmra.mrb[44].mxu0 %vm120_vm0, %v2659_v25 }
0x17a6   :  { %v2578_v1 = vpack.c.bf16 %v2539_v11, %v2538_v48  ;;  %v3322_v46 = vpack.c.bf16 %v12360_v22, %v12358_v20  ;;  %v10524_v48 = vld [vmem:[%s14240_s3 + $0x20] sm:$0xff]  }
0x17a8   :  { %9265 = vmatmul.mubr.msk.bf16.vlgmr.msra.gmra.mrb[64].mxu1 %vm120_vm0, %v2578_v1 }
0x1878   :  { %v2725_v12 = vpop.f32.mrb[44].mxu0 }
0x1879   :  { %v9278_v51 = vpop.f32.mrb[45].mxu0  ;;  %v2726_v0 = vadd.f32 %v2725_v12, %v2663_v41  ;;  %v10525_v12 = vld [vmem:[%s14240_s3 + $0x28] sm:$0xff]  }
0x187a   :  { %v2728_v47 = vpop.f32.mrb[46].mxu0 }
0x187b   :  { %v2729_v15 = vadd.f32 %v2728_v47, %v2663_v41  ;;  %v9279_v56 = vpop.f32.mrb[47].mxu0  ;;  %v2644_v9 = vpop.f32.mrb[64].mxu1 }
0x187c   :  { %v9266_v44 = vpop.f32.mrb[65].mxu1  ;;  %v2645_v40 = vadd.f32 %v2644_v9, %v2582_v59  ;;  %v12427_v56 = vld [vmem:[%s14242_s13] sm:$0xff] }
0x187d   :  { %v2647_v23 = vpop.f32.mrb[66].mxu1  ;;  %v10071_v27 = vpack.i.bf16 %v2729_v15, %v2726_v0  ;;  %v12368_v19 = vpack.c.bf16 %v2729_v15, %v2726_v0  ;;  %v10527_v15 = vld [vmem:[%s14240_s3 + $0x38] sm:$0xff]   ;;  %v12432_v44 = vld [vmem:[%s14242_s13 + $0x10] sm:$0xff] }
0x187e   :  { %v2648_v35 = vadd.f32 %v2647_v23, %v2582_v59  ;;  %v9267_v28 = vpop.f32.mrb[67].mxu1  ;;  %v10526_v59 = vld [vmem:[%s14240_s3 + $0x30] sm:$0xff]  }
0x187f   :  { %10072 = vrot.lane.b32.xlu1 %v10071_v27, %s14306_s30  ;;  %10067 = vrot.lane.b32.xlu0 %v10071_v27, %s14303_s27  ;;  %v2809_v45 = vsel %vm508_vm1, %v12368_v19, 0 }
0x1880   :  { %9844 = vmatprep.subr.msk.bf16.mxu1 %vm508_vm1, %v12368_v19  ;;  %v10086_v39 = vpack.i.bf16 %v2648_v35, %v2645_v40  ;;  %v2760_v18 = vpack.c.bf16 %v2648_v35, %v2645_v40 }
0x1881   :  { %9281 = vmatpush3.bf16.xpose.msra.mxu1 %v2809_v45  ;;  %v12446_v45 = vld [vmem:[%s14242_s13 + $0x18] sm:$0xff] }
0x1882   :  { %9288 = vmatprep.mubr.msk.bf16.mxu1 %vm508_vm1, %v2760_v18 }
0x1883   :  { %10077 = vrot.lane.b32.xlu1 %v10071_v27, %s14304_s7  ;;  %10087 = vrot.lane.b32.xlu0 %v10086_v39, %s14306_s30  ;;  %v12437_v27 = vld [vmem:[%s14242_s13 + $0x8] sm:$0xff] }
0x1887   :  { %10082 = vrot.lane.b32.xlu1 %v10086_v39, %s14303_s27 }
0x188b   :  { %10092 = vrot.lane.b32.xlu1 %v10086_v39, %s14304_s7 }
0x18f1   :  { %v10073_v58 = vpop.permute.xlu1 %10072  ;;  %v10068_v43 = vpop.permute.xlu0 %10067 }
0x18f2   :  { %v10070_v8 = vunpack.i.h.bf16 %v10068_v43  ;;  %v10069_v36 = vunpack.i.l.bf16 %v10068_v43  ;;  %v10075_v17 = vunpack.i.h.bf16 %v10073_v58  ;;  %v10074_v61 = vunpack.i.l.bf16 %v10073_v58 }
0x18f4   :  { %v12381_v13 = vpack.c.bf16 %v10070_v8, %v10069_v36  ;;  %v12385_v4 = vpack.c.bf16 %v10075_v17, %v10074_v61  ;;  %v12454_v36 = vld [vmem:[%s14242_s13 + $0x20] sm:$0xff]  ;;  %v12459_v17 = vld [vmem:[%s14242_s13 + $0x28] sm:$0xff] }
0x18f5   :  { %v10078_v52 = vpop.permute.xlu1 %10077  ;;  %v10088_v49 = vpop.permute.xlu0 %10087 }
0x18f6   :  { %9845 = vmatprep.subr.msk.bf16.mxu1 %vm508_vm1, %v12381_v13  ;;  %v2812_v7 = vsel %vm508_vm1, %v12381_v13, 0  ;;  %v10080_v62 = vunpack.i.h.bf16 %v10078_v52  ;;  %v10079_v24 = vunpack.i.l.bf16 %v10078_v52  ;;  %v2815_v29 = vsel %vm508_vm1, %v12385_v4, 0 }
0x18f7   :  { %9283 = vmatpush3.bf16.xpose.msra.mxu1 %v2812_v7  ;;  %v10090_v37 = vunpack.i.h.bf16 %v10088_v49  ;;  %v10089_v25 = vunpack.i.l.bf16 %v10088_v49  ;;  %v12464_v7 = vld [vmem:[%s14242_s13 + $0x38] sm:$0xff] }
0x18f8   :  { %9846 = vmatprep.subr.msk.bf16.mxu1 %vm508_vm1, %v12385_v4  ;;  %v12391_v38 = vpack.c.bf16 %v10080_v62, %v10079_v24 }
0x18f9   :  { %v10083_v6 = vpop.permute.xlu1 %10082  ;;  %v2762_v1 = vpack.c.bf16 %v10090_v37, %v10089_v25 }
0x18fa   :  { %v2818_v53 = vsel %vm508_vm1, %v12391_v38, 0  ;;  %v10085_v14 = vunpack.i.h.bf16 %v10083_v6  ;;  %v10084_v63 = vunpack.i.l.bf16 %v10083_v6  ;;  %v12474_v6 = vld [vmem:[%s14242_s13 + $0x30] sm:$0xff] }
0x18fc   :  { %v2761_v11 = vpack.c.bf16 %v10085_v14, %v10084_v63  ;;  %v3244_v14 = vrot.slane %v12337_v26, %v11421_v33 }
0x18fd   :  { %v10093_v41 = vpop.permute.xlu1 %10092 }
0x18fe   :  { %v10095_v51 = vunpack.i.h.bf16 %v10093_v41  ;;  %v10094_v47 = vunpack.i.l.bf16 %v10093_v41 }
0x18ff   :  { %9285 = vmatpush3.bf16.xpose.msra.mxu1 %v2815_v29 }
0x1900   :  { %9847 = vmatprep.subr.msk.bf16.mxu1 %vm508_vm1, %v12391_v38  ;;  %v2763_v0 = vpack.c.bf16 %v10095_v51, %v10094_v47 }
0x1907   :  { %9287 = vmatpush3.bf16.xpose.msra.mxu1 %v2818_v53 }
0x1908   :  { %9324 = vmatprep.subr.bf16.mxu1 %v11180_v2 }
0x190e   :  { %9289 = vmatmul.mubr.msk.bf16.vlgmr.msra.gmra.mrb[68].mxu1 %vm508_vm1, %v2761_v11 }
0x190f   :  { %9292 = vmatprep.mubr.msk.bf16.mxu1 %vm508_vm1, %v2762_v1  ;;  %9325 = vmatpush3.bf16.msra.mxu1 %v10524_v48 }
0x1910   :  { %9326 = vmatprep.subr.bf16.mxu1 %v11180_v2 }
0x1913   :  { %9327 = vmatpush3.bf16.msra.mxu1 %v10525_v12 }
0x1914   :  { %9328 = vmatprep.subr.bf16.mxu1 %v11180_v2 }
0x1916   :  { %9293 = vmatmul.mubr.msk.bf16.gmra.mrb[72].mxu1 %vm508_vm1, %v2763_v0 }
0x1917   :  { %9329 = vmatpush3.bf16.msra.mxu1 %v10526_v59  ;;  %9332 = vmatprep.mubr.msk.bf16.mxu1 %vm11181_vm4, %v11180_v2 }
0x1918   :  { %9330 = vmatprep.subr.bf16.mxu1 %v11180_v2 }
0x191b   :  { %9331 = vmatpush3.bf16.msra.mxu1 %v10527_v15 }
0x191e   :  { %9333 = vmatmul.mubr.msk.bf16.vlgmr.msra.gmra.mrb[76].mxu1 %vm120_vm0, %v3240_v57 }
0x19e1   :  { %v9290_v9 = vpop.f32.mrb[68].mxu1 }
0x19e2   :  { %v2854_v23 = vpop.f32.mrb[69].mxu1  ;;  %v2863_v40 = vadd.f32 %v9290_v9, %v12432_v44 }
0x19e3   :  { %v2855_v3 = vadd.f32 %v2854_v23, %v12427_v56  ;;  %v9291_v16 = vpop.f32.mrb[70].mxu1 }
0x19e4   :  { %v2857_v57 = vpop.f32.mrb[71].mxu1  ;;  %v2866_v18 = vadd.f32 %v9291_v16, %v12446_v45  ;;  %v2891_v43 = vsel %vm120_vm0, %v2863_v40, -inf }
0x19e5   :  { %v2858_v35 = vadd.f32 %v2857_v57, %v12437_v27  ;;  %v2885_v28 = vsel %vm120_vm0, %v2855_v3, -inf }
0x19e6   :  { %2886 = vmax.xlane.f32.xlu0 %v2885_v28  ;;  %v2894_v29 = vsel %vm120_vm0, %v2866_v18, -inf }
0x19e7   :  { %v2888_v39 = vsel %vm120_vm0, %v2858_v35, -inf }
0x19e8   :  { %2889 = vmax.xlane.f32.xlu1 %v2888_v39 }
0x19e9   :  { %v9294_v58 = vpop.f32.mrb[72].mxu1 }
0x19ea   :  { %v2870_v8 = vpop.f32.mrb[73].mxu1  ;;  %2892 = vmax.xlane.f32.xlu0 %v2891_v43  ;;  %v2879_v63 = vadd.f32 %v9294_v58, %v12474_v6 }
0x19eb   :  { %v9295_v61 = vpop.f32.mrb[74].mxu1  ;;  %v2871_v62 = vadd.f32 %v2870_v8, %v12454_v36 }
0x19ec   :  { %v2873_v52 = vpop.f32.mrb[75].mxu1  ;;  %v12477_v49 = vadd.f32 %v9295_v61, %v12464_v7  ;;  %v2903_v47 = vsel %vm120_vm0, %v2879_v63, -inf }
0x19ed   :  { %v12468_v24 = vadd.f32 %v2873_v52, %v12459_v17  ;;  %v2897_v25 = vsel %vm120_vm0, %v2871_v62, -inf }
0x19ee   :  { %2895 = vmax.xlane.f32.xlu0 %v2894_v29  ;;  %v2906_v1 = vsel %vm120_vm0, %v12477_v49, -inf }
0x19ef   :  { %v2900_v53 = vsel %vm120_vm0, %v12468_v24, -inf }
0x19f0   :  { %2901 = vmax.xlane.f32.xlu1 %v2900_v53 }
0x19f1   :  { %v3306_v37 = vpop.f32.mrb[76].mxu1 }
0x19f2   :  { %v9334_v48 = vpop.f32.mrb[77].mxu1  ;;  %2898 = vmax.xlane.f32.xlu0 %v2897_v25  ;;  %v3307_v41 = vadd.f32 %v3306_v37, %v3244_v14 }
0x19f3   :  { %v3309_v11 = vpop.f32.mrb[78].mxu1 }
0x19f4   :  { %v3310_v12 = vadd.f32 %v3309_v11, %v3244_v14  ;;  %v9335_v51 = vpop.f32.mrb[79].mxu1  ;;  %2907 = vmax.xlane.f32.xlu1 %v2906_v1 }
0x19f6   :  { %2904 = vmax.xlane.f32.xlu0 %v2903_v47  ;;  %v3424_v59 = vpack.c.bf16 %v3310_v12, %v3307_v41  ;;  %v12488_v0 = vpack.i.bf16 %v3310_v12, %v3307_v41 }
0x19f8   :  { %9356 = vmatprep.mubr.msk.bf16.mxu1 %vm508_vm1, %v3424_v59 }
0x1a73   :  { %v2887_v15 = vpop.xlane.xlu0 %2886 }
0x1a74   :  { %v2909_v9 = vsub.f32 %v2855_v3, %v2887_v15 }
0x1a75   :  { %v2890_v23 = vpop.xlane.xlu1 %2889 }
0x1a76   :  { %v2917_v28 = vmul.f32 1.442695, %v2909_v9  ;;  %v2910_v39 = vsub.f32 %v2858_v35, %v2890_v23 }
0x1a77   :  { %v2893_v16 = vpop.xlane.xlu0 %2892 }
0x1a78   :  { %v2911_v57 = vsub.f32 %v2863_v40, %v2893_v16  ;;  %v2919_v61 = vmul.f32 1.442695, %v2910_v39 }
0x1a7a   :  { %v2921_v58 = vmul.f32 1.442695, %v2911_v57 }
0x1a7b   :  { %v2896_v43 = vpop.xlane.xlu0 %2895 }
0x1a7c   :  { %10802 = vpow2.f32 %v2921_v58  ;;  %v2912_v8 = vsub.f32 %v2866_v18, %v2896_v43 }
0x1a7d   :  { %10804 = vpow2.f32 %v2917_v28  ;;  %v2902_v59 = vpop.xlane.xlu1 %2901 }
0x1a7e   :  { %v2923_v52 = vmul.f32 1.442695, %v2912_v8  ;;  %v2914_v23 = vsub.f32 %v12468_v24, %v2902_v59 }
0x1a7f   :  { %v2899_v29 = vpop.xlane.xlu0 %2898 }
0x1a80   :  { %10806 = vpow2.f32 %v2923_v52  ;;  %v2913_v53 = vsub.f32 %v2871_v62, %v2899_v29  ;;  %v2927_v57 = vmul.f32 1.442695, %v2914_v23 }
0x1a81   :  { %10808 = vpow2.f32 %v2919_v61  ;;  %v2908_v15 = vpop.xlane.xlu1 %2907 }
0x1a82   :  { %v2925_v3 = vmul.f32 1.442695, %v2913_v53  ;;  %v2916_v9 = vsub.f32 %v12477_v49, %v2908_v15 }
0x1a83   :  { %v2905_v14 = vpop.xlane.xlu0 %2904 }
0x1a84   :  { %v2915_v37 = vsub.f32 %v2879_v63, %v2905_v14  ;;  %v2931_v16 = vmul.f32 1.442695, %v2916_v9 }
0x1a86   :  { %v12491_v25 = vpop.eup %10802  ;;  %v2929_v48 = vmul.f32 1.442695, %v2915_v37 }
0x1a87   :  { %v2939_v40 = vsel %vm120_vm0, %v12491_v25, 0.0  ;;  %v10805_v35 = vpop.eup %10804 }
0x1a88   :  { %10810 = vpow2.f32 %v2929_v48  ;;  %2940 = vadd.xlane.f32.xlu0 %v2939_v40  ;;  %v2933_v11 = vsel %vm120_vm0, %v10805_v35, 0.0 }
0x1a89   :  { %10812 = vpow2.f32 %v2925_v3 }
0x1a8a   :  { %v12495_v18 = vpop.eup %10806  ;;  %10814 = vpow2.f32 %v2931_v16 }
0x1a8b   :  { %v2942_v62 = vsel %vm120_vm0, %v12495_v18, 0.0  ;;  %v10809_v1 = vpop.eup %10808  ;;  %10816 = vpow2.f32 %v2927_v57 }
0x1a8c   :  { %2934 = vadd.xlane.f32.xlu0 %v2933_v11  ;;  %2943 = vadd.xlane.f32.xlu1 %v2942_v62  ;;  %v2936_v63 = vsel %vm120_vm0, %v10809_v1, 0.0 }
0x1a90   :  { %2937 = vadd.xlane.f32.xlu1 %v2936_v63 }
0x1a92   :  { %v12501_v41 = vpop.eup %10810 }
0x1a93   :  { %v2951_v12 = vsel %vm120_vm0, %v12501_v41, 0.0  ;;  %v12505_v51 = vpop.eup %10812 }
0x1a94   :  { %2952 = vadd.xlane.f32.xlu0 %v2951_v12  ;;  %v2945_v47 = vsel %vm120_vm0, %v12505_v51, 0.0  ;;  %v10815_v28 = vpop.eup %10814 }
0x1a95   :  { %v2954_v39 = vsel %vm120_vm0, %v10815_v28, 0.0 }
0x1a98   :  { %2946 = vadd.xlane.f32.xlu0 %v2945_v47 }
0x1aa1   :  { %2983 = vrot.lane.b32.xlu1 %v12381_v13, %s14305_s21  ;;  %v10817_v13 = vpop.eup %10816 }
0x1aa5   :  { %2985 = vrot.lane.b32.xlu1 %v12385_v4, %s14305_s21  ;;  %v2948_v4 = vsel %vm120_vm0, %v10817_v13, 0.0 }
0x1aae   :  { %2981 = vrot.lane.b32.xlu0 %v12368_v19, %s14305_s21 }
0x1ac9   :  { %2955 = vadd.xlane.f32.xlu1 %v2954_v39 }
0x1acd   :  { %2949 = vadd.xlane.f32.xlu1 %v2948_v4 }
0x1ade   :  { %2987 = vrot.lane.b32.xlu1 %v12391_v38, %s14305_s21 }
0x1b15   :  { %v2941_v19 = vpop.xlane.xlu0 %2940 }
0x1b19   :  { %v2944_v58 = vpop.xlane.xlu1 %2943  ;;  %v2935_v49 = vpop.xlane.xlu0 %2934 }
0x1b1a   :  { %10818 = vrcp.f32 %v2935_v49 }
0x1b1d   :  { %v2938_v24 = vpop.xlane.xlu1 %2937 }
0x1b1e   :  { %10820 = vrcp.f32 %v2938_v24 }
0x1b1f   :  { %10822 = vrcp.f32 %v2944_v58  ;;  %v10531_v58 = vld [vmem:[%s14243_s2 + $0x18] sm:$0xff]  }
0x1b20   :  { %10824 = vrcp.f32 %v2941_v19 }
0x1b21   :  { %v2953_v43 = vpop.xlane.xlu0 %2952  ;;  %v2984_v29 = vpop.permute.xlu1 %2983 }
0x1b24   :  { %v10819_v61 = vpop.eup %10818 }
0x1b25   :  { %v2947_v8 = vpop.xlane.xlu0 %2946  ;;  %v2965_v14 = vmul.f32 %v10819_v61, %v10805_v35  ;;  %v2986_v38 = vpop.permute.xlu1 %2985 }
0x1b28   :  { %v10821_v52 = vpop.eup %10820 }
0x1b29   :  { %v2982_v53 = vpop.permute.xlu0 %2981  ;;  %v2966_v37 = vmul.f32 %v10821_v52, %v10809_v1  ;;  %v10823_v40 = vpop.eup %10822 }
0x1b2a   :  { %9296 = vmatprep.subr.bf16.mxu0 %v2982_v53  ;;  %v10825_v35 = vpop.eup %10824  ;;  %v2968_v62 = vmul.f32 %v10823_v40, %v12495_v18 }
0x1b2b   :  { %9297 = vmatpush3.bf16.msra.mxu0 %v2982_v53  ;;  %v2973_v3 = vpack.c.bf16 %v2966_v37, %v2965_v14  ;;  %v2967_v63 = vmul.f32 %v10825_v35, %v12491_v25  ;;  %v10528_v25 = vld [vmem:[%s14243_s2] sm:$0xff]  }
0x1b2c   :  { %9298 = vmatprep.subr.bf16.mxu0 %v2984_v29 }
0x1b2d   :  { %9304 = vmatprep.mubr.msk.bf16.mxu0 %vm120_vm0, %v2973_v3  ;;  %v2974_v12 = vpack.c.bf16 %v2968_v62, %v2967_v63 }
0x1b2f   :  { %9299 = vmatpush3.bf16.msra.mxu0 %v2984_v29 }
0x1b30   :  { %9300 = vmatprep.subr.bf16.mxu0 %v2986_v38 }
0x1b33   :  { %9301 = vmatpush3.bf16.msra.mxu0 %v2986_v38 }
0x1b56   :  { %v2956_v48 = vpop.xlane.xlu1 %2955 }
0x1b57   :  { %10826 = vrcp.f32 %v2956_v48 }
0x1b58   :  { %10828 = vrcp.f32 %v2947_v8 }
0x1b59   :  { %10830 = vrcp.f32 %v2953_v43 }
0x1b5a   :  { %v2950_v11 = vpop.xlane.xlu1 %2949 }
0x1b5b   :  { %10832 = vrcp.f32 %v2950_v11 }
0x1b5e   :  { %v2988_v1 = vpop.permute.xlu1 %2987 }
0x1b5f   :  { %9302 = vmatprep.subr.bf16.mxu0 %v2988_v1 }
0x1b60   :  { %9303 = vmatpush3.bf16.msra.mxu0 %v2988_v1 }
0x1b61   :  { %9312 = vmatprep.subr.bf16.mxu0 %v11180_v2  ;;  %v10827_v47 = vpop.eup %10826 }
0x1b62   :  { %v10829_v59 = vpop.eup %10828  ;;  %v2972_v23 = vmul.f32 %v10827_v47, %v10815_v28 }
0x1b63   :  { %9305 = vmatmul.mubr.msk.bf16.vlgmr.msra.gmra.mrb[48].mxu0 %vm120_vm0, %v2974_v12  ;;  %v10831_v15 = vpop.eup %10830  ;;  %v2969_v16 = vmul.f32 %v10829_v59, %v12505_v51  ;;  %v10530_v51 = vld [vmem:[%s14243_s2 + $0x10] sm:$0xff]  }
0x1b64   :  { %v2971_v18 = vmul.f32 %v10831_v15, %v12501_v41  ;;  %9313 = vmatpush3.bf16.msra.mxu0 %v10528_v25  ;;  %v10529_v41 = vld [vmem:[%s14243_s2 + $0x8] sm:$0xff]  }
0x1b65   :  { %v10833_v9 = vpop.eup %10832  ;;  %9314 = vmatprep.subr.bf16.mxu0 %v11180_v2 }
0x1b66   :  { %v2970_v57 = vmul.f32 %v10833_v9, %v10817_v13  ;;  %v2976_v4 = vpack.c.bf16 %v2972_v23, %v2971_v18  ;;  %v10532_v9 = vld [vmem:[%s14239_s1 + $0x20] sm:$0xff]   ;;  %v10535_v18 = vld [vmem:[%s14239_s1 + $0x38] sm:$0xff]  }
0x1b68   :  { %v2975_v39 = vpack.c.bf16 %v2970_v57, %v2969_v16  ;;  %9315 = vmatpush3.bf16.msra.mxu0 %v10529_v41  ;;  %v10533_v16 = vld [vmem:[%s14239_s1 + $0x28] sm:$0xff]   ;;  %v10534_v57 = vld [vmem:[%s14239_s1 + $0x30] sm:$0xff]  }
0x1b69   :  { %9316 = vmatprep.subr.bf16.mxu0 %v11180_v2 }
0x1b6a   :  { %9308 = vmatprep.mubr.msk.bf16.mxu0 %vm120_vm0, %v2975_v39 }
0x1b6b   :  { %9309 = vmatmul.mubr.msk.bf16.gmra.mrb[52].mxu0 %vm120_vm0, %v2976_v4 }
0x1b6c   :  { %9320 = vmatprep.mubr.msk.bf16.mxu0 %vm11181_vm4, %v11180_v2  ;;  %9317 = vmatpush3.bf16.msra.mxu0 %v10530_v51  ;;  %v3326_v51 = vrot.slane %v12337_v26, %v11699_v34 }
0x1b6d   :  { %9318 = vmatprep.subr.bf16.mxu0 %v11180_v2 }
0x1b70   :  { %9319 = vmatpush3.bf16.msra.mxu0 %v10531_v58 }
0x1b71   :  { %9336 = vmatprep.subr.bf16.mxu0 %v11180_v2 }
0x1c36   :  { %v9306_v28 = vpop.f32.mrb[48].mxu0 }
0x1c37   :  { %v3039_v13 = vpop.f32.mrb[49].mxu0 }
0x1c38   :  { %v9307_v19 = vpop.f32.mrb[50].mxu0 }
0x1c39   :  { %v10096_v49 = vpack.i.bf16 %v9307_v19, %v9306_v28  ;;  %v3042_v24 = vpop.f32.mrb[51].mxu0 }
0x1c3b   :  { %10097 = vrot.lane.b32.xlu0 %v10096_v49, %s14307_s22 }
0x1c3e   :  { %v9310_v43 = vpop.f32.mrb[52].mxu0 }
0x1c3f   :  { %v3055_v8 = vpop.f32.mrb[53].mxu0 }
0x1c40   :  { %v9311_v61 = vpop.f32.mrb[54].mxu0 }
0x1c41   :  { %v10106_v52 = vpack.i.bf16 %v9311_v61, %v9310_v43  ;;  %v3058_v29 = vpop.f32.mrb[55].mxu0 }
0x1c42   :  { %v10101_v53 = vpack.i.bf16 %v3058_v29, %v3055_v8 }
0x1c43   :  { %10107 = vrot.lane.b32.xlu0 %v10106_v52, %s14309_s6 }
0x1c44   :  { %10102 = vrot.lane.b32.xlu1 %v10101_v53, %s14308_s12 }
0x1cad   :  { %v10098_v14 = vpop.permute.xlu0 %10097 }
0x1cae   :  { %v10100_v37 = vunpack.i.h.bf16 %v10098_v14  ;;  %v10099_v3 = vunpack.i.l.bf16 %v10098_v14 }
0x1cb0   :  { %v3094_v35 = vsel %vm508_vm1, %v3039_v13, %v10099_v3  ;;  %v3095_v62 = vsel %vm508_vm1, %v3042_v24, %v10100_v37 }
0x1cb5   :  { %v10108_v38 = vpop.permute.xlu0 %10107 }
0x1cb6   :  { %v10103_v48 = vpop.permute.xlu1 %10102  ;;  %v10110_v1 = vunpack.i.h.bf16 %v10108_v38  ;;  %v10109_v63 = vunpack.i.l.bf16 %v10108_v38 }
0x1cb7   :  { %v10105_v40 = vunpack.i.h.bf16 %v10103_v48  ;;  %v10104_v11 = vunpack.i.l.bf16 %v10103_v48 }
0x1cb9   :  { %v3097_v12 = vsel %vm955_vm2, %v3095_v62, %v10105_v40  ;;  %v3096_v47 = vsel %vm955_vm2, %v3094_v35, %v10104_v11 }
0x1cba   :  { %v3099_v59 = vsel %vm960_vm3, %v3097_v12, %v10110_v1  ;;  %v3098_v15 = vsel %vm960_vm3, %v3096_v47, %v10109_v63 }
0x1cbb   :  { %v3100_v23 = vpack.c.bf16 %v3099_v59, %v3098_v15 }
0x1cbd   :  { %9321 = vmatmul.mubr.msk.bf16.vlgmr.msra.gmra.mrb[56].mxu0 %vm120_vm0, %v3100_v23 }
0x1cbe   :  { %9337 = vmatpush3.bf16.msra.mxu0 %v10532_v9  ;;  %9344 = vmatprep.mubr.msk.bf16.mxu0 %vm11181_vm4, %v11180_v2 }
0x1cbf   :  { %9338 = vmatprep.subr.bf16.mxu0 %v11180_v2 }
0x1cc2   :  { %9339 = vmatpush3.bf16.msra.mxu0 %v10533_v16 }
0x1cc3   :  { %9340 = vmatprep.subr.bf16.mxu0 %v11180_v2 }
0x1cc6   :  { %9341 = vmatpush3.bf16.msra.mxu0 %v10534_v57 }
0x1cc7   :  { %9342 = vmatprep.subr.bf16.mxu0 %v11180_v2 }
0x1cca   :  { %9343 = vmatpush3.bf16.msra.mxu0 %v10535_v18 }
0x1ccd   :  { %9345 = vmatmul.mubr.msk.bf16.vlgmr.msra.gmra.mrb[60].mxu0 %vm120_vm0, %v3322_v46 }
0x1d90   :  { %v12579_v39 = vpop.f32.mrb[56].mxu0 }
0x1d91   :  { %v9322_v4 = vpop.f32.mrb[57].mxu0 }
0x1d92   :  { %v12581_v25 = vpop.f32.mrb[58].mxu0 }
0x1d93   :  { %v9323_v41 = vpop.f32.mrb[59].mxu0 }
0x1da0   :  { %v3388_v28 = vpop.f32.mrb[60].mxu0 }
0x1da1   :  { %v9346_v13 = vpop.f32.mrb[61].mxu0  ;;  %v3389_v58 = vadd.f32 %v3388_v28, %v3326_v51 }
0x1da2   :  { %v3391_v19 = vpop.f32.mrb[62].mxu0 }
0x1da3   :  { %v3392_v49 = vadd.f32 %v3391_v19, %v3326_v51  ;;  %v9347_v24 = vpop.f32.mrb[63].mxu0 }
0x1da5   :  { %v10116_v43 = vpack.i.bf16 %v3392_v49, %v3389_v58  ;;  %v12585_v8 = vpack.c.bf16 %v3392_v49, %v3389_v58 }
0x1da7   :  { %10117 = vrot.lane.b32.xlu0 %v10116_v43, %s14306_s30  ;;  %10112 = vrot.lane.b32.xlu1 %v10116_v43, %s14303_s27  ;;  %v3465_v20 = vsel %vm508_vm1, %v12585_v8, 0 }
0x1da8   :  { %9848 = vmatprep.subr.msk.bf16.mxu1 %vm508_vm1, %v12585_v8 }
0x1da9   :  { %9349 = vmatpush3.bf16.xpose.msra.mxu1 %v3465_v20 }
0x1dab   :  { %10127 = vrot.lane.b32.xlu0 %v12488_v0, %s14303_s27  ;;  %10122 = vrot.lane.b32.xlu1 %v10116_v43, %s14304_s7 }
0x1daf   :  { %10137 = vrot.lane.b32.xlu0 %v12488_v0, %s14304_s7  ;;  %10132 = vrot.lane.b32.xlu1 %v12488_v0, %s14306_s30 }
0x1e19   :  { %v10118_v26 = vpop.permute.xlu0 %10117  ;;  %v10113_v22 = vpop.permute.xlu1 %10112 }
0x1e1a   :  { %v10115_v46 = vunpack.i.h.bf16 %v10113_v22  ;;  %v10114_v61 = vunpack.i.l.bf16 %v10113_v22  ;;  %v10120_v52 = vunpack.i.h.bf16 %v10118_v26  ;;  %v10119_v29 = vunpack.i.l.bf16 %v10118_v26 }
0x1e1c   :  { %v12600_v53 = vpack.c.bf16 %v10115_v46, %v10114_v61  ;;  %v12604_v14 = vpack.c.bf16 %v10120_v52, %v10119_v29 }
0x1e1d   :  { %v10123_v3 = vpop.permute.xlu1 %10122  ;;  %v10128_v11 = vpop.permute.xlu0 %10127 }
0x1e1e   :  { %9849 = vmatprep.subr.msk.bf16.mxu1 %vm508_vm1, %v12600_v53  ;;  %v3468_v37 = vsel %vm508_vm1, %v12600_v53, 0  ;;  %v10125_v0 = vunpack.i.h.bf16 %v10123_v3  ;;  %v10124_v38 = vunpack.i.l.bf16 %v10123_v3  ;;  %v3471_v40 = vsel %vm508_vm1, %v12604_v14, 0 }
0x1e1f   :  { %9351 = vmatpush3.bf16.xpose.msra.mxu1 %v3468_v37  ;;  %v10130_v1 = vunpack.i.h.bf16 %v10128_v11  ;;  %v10129_v63 = vunpack.i.l.bf16 %v10128_v11 }
0x1e20   :  { %9850 = vmatprep.subr.msk.bf16.mxu1 %vm508_vm1, %v12604_v14  ;;  %v12610_v48 = vpack.c.bf16 %v10125_v0, %v10124_v38 }
0x1e21   :  { %v10133_v35 = vpop.permute.xlu1 %10132  ;;  %v3425_v59 = vpack.c.bf16 %v10130_v1, %v10129_v63  ;;  %v10138_v15 = vpop.permute.xlu0 %10137 }
0x1e22   :  { %v3474_v62 = vsel %vm508_vm1, %v12610_v48, 0  ;;  %v10135_v12 = vunpack.i.h.bf16 %v10133_v35  ;;  %v10134_v47 = vunpack.i.l.bf16 %v10133_v35  ;;  %v10140_v23 = vunpack.i.h.bf16 %v10138_v15 }
0x1e23   :  { %v10139_v16 = vunpack.i.l.bf16 %v10138_v15 }
0x1e24   :  { %v3426_v9 = vpack.c.bf16 %v10135_v12, %v10134_v47 }
0x1e25   :  { %v3427_v57 = vpack.c.bf16 %v10140_v23, %v10139_v16 }
0x1e27   :  { %9353 = vmatpush3.bf16.xpose.msra.mxu1 %v3471_v40 }
0x1e28   :  { %9851 = vmatprep.subr.msk.bf16.mxu1 %vm508_vm1, %v12610_v48 }
0x1e2f   :  { %9355 = vmatpush3.bf16.xpose.msra.mxu1 %v3474_v62 }
0x1e30   :  { %9392 = vmatprep.subr.bf16.mxu1 %v11180_v2 }
0x1e36   :  { %9357 = vmatmul.mubr.msk.bf16.vlgmr.msra.gmra.mrb[80].mxu1 %vm508_vm1, %v3425_v59 }
0x1e37   :  { %9360 = vmatprep.mubr.msk.bf16.mxu1 %vm508_vm1, %v3426_v9 }
0x1e3e   :  { %9361 = vmatmul.mubr.msk.bf16.gmra.mrb[84].mxu1 %vm508_vm1, %v3427_v57 }
0x1e3f   :  { %9400 = vmatprep.mubr.msk.bf16.mxu1 %vm11181_vm4, %v11180_v2 }
0x1f09   :  { %v9358_v18 = vpop.f32.mrb[80].mxu1 }
0x1f0a   :  { %v3519_v4 = vadd.f32 %v9358_v18, %v12432_v44  ;;  %v3510_v41 = vpop.f32.mrb[81].mxu1 }
0x1f0b   :  { %v3511_v51 = vadd.f32 %v3510_v41, %v12427_v56  ;;  %v9359_v28 = vpop.f32.mrb[82].mxu1 }
0x1f0c   :  { %v3513_v13 = vpop.f32.mrb[83].mxu1  ;;  %v3547_v19 = vsel %vm120_vm0, %v3519_v4, -inf  ;;  %v3522_v43 = vadd.f32 %v9359_v28, %v12446_v45 }
0x1f0d   :  { %v3514_v58 = vadd.f32 %v3513_v13, %v12437_v27  ;;  %3548 = vmax.xlane.f32.xlu0 %v3547_v19  ;;  %v3541_v49 = vsel %vm120_vm0, %v3511_v51, -inf }
0x1f0e   :  { %3542 = vmax.xlane.f32.xlu1 %v3541_v49  ;;  %v3550_v46 = vsel %vm120_vm0, %v3522_v43, -inf }
0x1f0f   :  { %v3544_v24 = vsel %vm120_vm0, %v3514_v58, -inf }
0x1f11   :  { %v9362_v20 = vpop.f32.mrb[84].mxu1  ;;  %3545 = vmax.xlane.f32.xlu0 %v3544_v24 }
0x1f12   :  { %v3526_v44 = vpop.f32.mrb[85].mxu1  ;;  %v3535_v61 = vadd.f32 %v9362_v20, %v12474_v6 }
0x1f13   :  { %v3527_v26 = vadd.f32 %v3526_v44, %v12454_v36  ;;  %v9363_v56 = vpop.f32.mrb[86].mxu1 }
0x1f14   :  { %v3529_v22 = vpop.f32.mrb[87].mxu1  ;;  %v3538_v45 = vadd.f32 %v9363_v56, %v12464_v7  ;;  %v3559_v37 = vsel %vm120_vm0, %v3535_v61, -inf }
0x1f15   :  { %v3530_v27 = vadd.f32 %v3529_v22, %v12459_v17  ;;  %3551 = vmax.xlane.f32.xlu0 %v3550_v46  ;;  %v3553_v52 = vsel %vm120_vm0, %v3527_v26, -inf }
0x1f16   :  { %3554 = vmax.xlane.f32.xlu1 %v3553_v52  ;;  %v3562_v36 = vsel %vm120_vm0, %v3538_v45, -inf }
0x1f17   :  { %v3556_v29 = vsel %vm120_vm0, %v3530_v27, -inf }
0x1f19   :  { %3557 = vmax.xlane.f32.xlu0 %v3556_v29 }
0x1f1a   :  { %3560 = vmax.xlane.f32.xlu1 %v3559_v37 }
0x1f1d   :  { %3563 = vmax.xlane.f32.xlu0 %v3562_v36 }
0x1f2b   :  { %3637 = vrot.lane.b32.xlu1 %v12585_v8, %s14305_s21 }
0x1f9a   :  { %v3549_v6 = vpop.xlane.xlu0 %3548 }
0x1f9b   :  { %v3567_v17 = vsub.f32 %v3519_v4, %v3549_v6  ;;  %v3543_v3 = vpop.xlane.xlu1 %3542 }
0x1f9c   :  { %v3565_v0 = vsub.f32 %v3511_v51, %v3543_v3 }
0x1f9d   :  { %v3577_v38 = vmul.f32 1.442695, %v3567_v17 }
0x1f9e   :  { %v3573_v40 = vmul.f32 1.442695, %v3565_v0  ;;  %v3546_v11 = vpop.xlane.xlu0 %3545 }
0x1f9f   :  { %10834 = vpow2.f32 %v3577_v38  ;;  %v3566_v7 = vsub.f32 %v3514_v58, %v3546_v11 }
0x1fa0   :  { %10836 = vpow2.f32 %v3573_v40 }
0x1fa1   :  { %v3575_v63 = vmul.f32 1.442695, %v3566_v7 }
0x1fa2   :  { %v3552_v35 = vpop.xlane.xlu0 %3551 }
0x1fa3   :  { %v3568_v62 = vsub.f32 %v3522_v43, %v3552_v35  ;;  %v3555_v1 = vpop.xlane.xlu1 %3554 }
0x1fa4   :  { %v3569_v47 = vsub.f32 %v3527_v26, %v3555_v1 }
0x1fa5   :  { %v3579_v12 = vmul.f32 1.442695, %v3568_v62 }
0x1fa6   :  { %v3558_v59 = vpop.xlane.xlu0 %3557  ;;  %v3581_v16 = vmul.f32 1.442695, %v3569_v47 }
0x1fa7   :  { %10838 = vpow2.f32 %v3579_v12  ;;  %v3561_v15 = vpop.xlane.xlu1 %3560  ;;  %v3570_v23 = vsub.f32 %v3530_v27, %v3558_v59 }
0x1fa8   :  { %v3571_v8 = vsub.f32 %v3535_v61, %v3561_v15  ;;  %10840 = vpow2.f32 %v3575_v63 }
0x1fa9   :  { %v12642_v9 = vpop.eup %10834  ;;  %v3583_v13 = vmul.f32 1.442695, %v3570_v23 }
0x1faa   :  { %v3585_v57 = vmul.f32 1.442695, %v3571_v8  ;;  %v3564_v18 = vpop.xlane.xlu0 %3563  ;;  %v3595_v4 = vsel %vm120_vm0, %v12642_v9, 0.0  ;;  %v10837_v41 = vpop.eup %10836 }
0x1fab   :  { %v3572_v51 = vsub.f32 %v3538_v45, %v3564_v18  ;;  %3596 = vadd.xlane.f32.xlu1 %v3595_v4  ;;  %v3638_v28 = vpop.permute.xlu1 %3637  ;;  %v3589_v58 = vsel %vm120_vm0, %v10837_v41, 0.0 }
0x1fac   :  { %10842 = vpow2.f32 %v3585_v57  ;;  %9364 = vmatprep.subr.bf16.mxu0 %v3638_v28 }
0x1fad   :  { %v3587_v19 = vmul.f32 1.442695, %v3572_v51  ;;  %9365 = vmatpush3.bf16.msra.mxu0 %v3638_v28  ;;  %10844 = vpow2.f32 %v3581_v16  ;;  %v10537_v28 = vld [vmem:[%s14243_s2 + $0x28] sm:$0xff]  }
0x1faf   :  { %10846 = vpow2.f32 %v3587_v19  ;;  %3590 = vadd.xlane.f32.xlu1 %v3589_v58 }
0x1fb0   :  { %10848 = vpow2.f32 %v3583_v13  ;;  %v10538_v13 = vld [vmem:[%s14243_s2 + $0x30] sm:$0xff]  }
0x1fb1   :  { %v10839_v49 = vpop.eup %10838 }
0x1fb2   :  { %v3598_v24 = vsel %vm120_vm0, %v10839_v49, 0.0  ;;  %v10841_v43 = vpop.eup %10840 }
0x1fb3   :  { %3599 = vadd.xlane.f32.xlu0 %v3598_v24  ;;  %v3592_v44 = vsel %vm120_vm0, %v10841_v43, 0.0  ;;  %v10539_v24 = vld [vmem:[%s14243_s2 + $0x38] sm:$0xff]  }
0x1fb6   :  { %v12648_v20 = vpop.eup %10842 }
0x1fb7   :  { %3593 = vadd.xlane.f32.xlu0 %v3592_v44  ;;  %v3607_v26 = vsel %vm120_vm0, %v12648_v20, 0.0  ;;  %v10845_v56 = vpop.eup %10844 }
0x1fb8   :  { %3608 = vadd.xlane.f32.xlu1 %v3607_v26  ;;  %v3601_v27 = vsel %vm120_vm0, %v10845_v56, 0.0 }
0x1fb9   :  { %v10847_v22 = vpop.eup %10846 }
0x1fba   :  { %v3610_v46 = vsel %vm120_vm0, %v10847_v22, 0.0  ;;  %v10849_v61 = vpop.eup %10848 }
0x1fbb   :  { %3611 = vadd.xlane.f32.xlu0 %v3610_v46  ;;  %v3604_v52 = vsel %vm120_vm0, %v10849_v61, 0.0 }
0x1fbc   :  { %3602 = vadd.xlane.f32.xlu1 %v3601_v27 }
0x1fbf   :  { %3605 = vadd.xlane.f32.xlu0 %v3604_v52 }
0x1fcd   :  { %3641 = vrot.lane.b32.xlu1 %v12604_v14, %s14305_s21 }
0x1fd1   :  { %3643 = vrot.lane.b32.xlu1 %v12610_v48, %s14305_s21 }
0x1fd5   :  { %3639 = vrot.lane.b32.xlu0 %v12600_v53, %s14305_s21 }
0x2038   :  { %v3597_v29 = vpop.xlane.xlu1 %3596 }
0x203c   :  { %v3591_v45 = vpop.xlane.xlu1 %3590 }
0x203d   :  { %10850 = vrcp.f32 %v3591_v45 }
0x2040   :  { %v3600_v37 = vpop.xlane.xlu0 %3599 }
0x2044   :  { %v3594_v36 = vpop.xlane.xlu0 %3593 }
0x2045   :  { %10852 = vrcp.f32 %v3594_v36  ;;  %v3609_v6 = vpop.xlane.xlu1 %3608 }
0x2046   :  { %10854 = vrcp.f32 %v3600_v37 }
0x2047   :  { %10856 = vrcp.f32 %v3597_v29  ;;  %v10851_v14 = vpop.eup %10850 }
0x2048   :  { %v3612_v17 = vpop.xlane.xlu0 %3611  ;;  %v3621_v11 = vmul.f32 %v10851_v14, %v10837_v41 }
0x2049   :  { %v3603_v3 = vpop.xlane.xlu1 %3602 }
0x204a   :  { %10858 = vrcp.f32 %v3603_v3 }
0x204c   :  { %v3606_v0 = vpop.xlane.xlu0 %3605 }
0x204d   :  { %10860 = vrcp.f32 %v3606_v0  ;;  %v3642_v48 = vpop.permute.xlu1 %3641 }
0x204e   :  { %10862 = vrcp.f32 %v3612_v17 }
0x204f   :  { %v10853_v38 = vpop.eup %10852  ;;  %10864 = vrcp.f32 %v3609_v6 }
0x2050   :  { %v3640_v40 = vpop.permute.xlu0 %3639  ;;  %v3622_v53 = vmul.f32 %v10853_v38, %v10841_v43  ;;  %v10855_v35 = vpop.eup %10854 }
0x2051   :  { %9366 = vmatprep.subr.bf16.mxu0 %v3640_v40  ;;  %v10857_v62 = vpop.eup %10856  ;;  %v3644_v63 = vpop.permute.xlu1 %3643  ;;  %v3624_v47 = vmul.f32 %v10855_v35, %v10839_v49 }
0x2052   :  { %9367 = vmatpush3.bf16.msra.mxu0 %v3640_v40  ;;  %v3629_v7 = vpack.c.bf16 %v3622_v53, %v3621_v11  ;;  %v3623_v15 = vmul.f32 %v10857_v62, %v12642_v9  ;;  %v10536_v9 = vld [vmem:[%s14243_s2 + $0x20] sm:$0xff]   ;;  %v12709_v62 = vld [vmem:[%s14241_s0 + $0x8] sm:$0x7f] }
0x2053   :  { %9368 = vmatprep.subr.bf16.mxu0 %v3642_v48 }
0x2054   :  { %9372 = vmatprep.mubr.msk.bf16.mxu0 %vm120_vm0, %v3629_v7  ;;  %v10859_v1 = vpop.eup %10858  ;;  %v3630_v23 = vpack.c.bf16 %v3624_v47, %v3623_v15  ;;  %v12702_v7 = vld [vmem:[%s14241_s0] sm:$0x7f] }
0x2055   :  { %v3625_v8 = vmul.f32 %v10859_v1, %v10845_v56  ;;  %v3104_v35 = vrot.slane %v12702_v7, %v11806_v42  ;;  %v3760_v1 = vrot.slane %v12709_v62, %v11806_v42 }
0x2056   :  { %9369 = vmatpush3.bf16.msra.mxu0 %v3642_v48 }
0x2057   :  { %v10861_v12 = vpop.eup %10860  ;;  %9370 = vmatprep.subr.bf16.mxu0 %v3644_v63 }
0x2058   :  { %v3626_v59 = vmul.f32 %v10861_v12, %v10849_v61  ;;  %v10863_v16 = vpop.eup %10862  ;;  %v3167_v12 = vadd.f32 %v12579_v39, %v3104_v35 }
0x2059   :  { %v10865_v18 = vpop.eup %10864  ;;  %v3628_v4 = vmul.f32 %v10863_v16, %v10847_v22 }
0x205a   :  { %9371 = vmatpush3.bf16.msra.mxu0 %v3644_v63  ;;  %v3631_v57 = vpack.c.bf16 %v3626_v59, %v3625_v8  ;;  %v3627_v41 = vmul.f32 %v10865_v18, %v12648_v20  ;;  %v3170_v18 = vadd.f32 %v12581_v25, %v3104_v35 }
0x205b   :  { %9380 = vmatprep.subr.bf16.mxu0 %v11180_v2 }
0x205c   :  { %v3632_v51 = vpack.c.bf16 %v3628_v4, %v3627_v41  ;;  %v3174_v39 = vadd.f32 %v3170_v18, %v12266_v55 }
0x205d   :  { %9373 = vmatmul.mubr.msk.bf16.vlgmr.msra.gmra.mrb[64].mxu0 %vm120_vm0, %v3630_v23 }
0x205e   :  { %9376 = vmatprep.mubr.msk.bf16.mxu0 %vm120_vm0, %v3631_v57  ;;  %9381 = vmatpush3.bf16.msra.mxu0 %v10536_v9  ;;  %v3173_v57 = vadd.f32 %v3167_v12, %v12260_v54 }
0x205f   :  { %9382 = vmatprep.subr.bf16.mxu0 %v11180_v2 }
0x2060   :  { %v3175_v9 = vsel %vm120_vm0, %v3173_v57, 0.0 }
0x2062   :  { %9383 = vmatpush3.bf16.msra.mxu0 %v10537_v28 }
0x2063   :  { %9384 = vmatprep.subr.bf16.mxu0 %v11180_v2 }
0x2065   :  { %9377 = vmatmul.mubr.msk.bf16.gmra.mrb[68].mxu0 %vm120_vm0, %v3632_v51 }
0x2066   :  { %9388 = vmatprep.mubr.msk.bf16.mxu0 %vm11181_vm4, %v11180_v2  ;;  %9385 = vmatpush3.bf16.msra.mxu0 %v10538_v13 }
0x2067   :  { %9386 = vmatprep.subr.bf16.mxu0 %v11180_v2 }
0x206a   :  { %9387 = vmatpush3.bf16.msra.mxu0 %v10539_v24 }
0x206b   :  { %9404 = vmatprep.subr.bf16.mxu0 %v11180_v2 }
0x2130   :  { %v9374_v19 = vpop.f32.mrb[64].mxu0 }
0x2131   :  { %v3695_v58 = vpop.f32.mrb[65].mxu0 }
0x2132   :  { %v9375_v49 = vpop.f32.mrb[66].mxu0 }
0x2133   :  { %v10141_v43 = vpack.i.bf16 %v9375_v49, %v9374_v19  ;;  %v3698_v20 = vpop.f32.mrb[67].mxu0 }
0x2135   :  { %10142 = vrot.lane.b32.xlu1 %v10141_v43, %s14307_s22 }
0x2138   :  { %v9378_v44 = vpop.f32.mrb[68].mxu0 }
0x2139   :  { %v3711_v26 = vpop.f32.mrb[69].mxu0 }
0x213a   :  { %v9379_v56 = vpop.f32.mrb[70].mxu0 }
0x213b   :  { %v10151_v22 = vpack.i.bf16 %v9379_v56, %v9378_v44  ;;  %v3714_v46 = vpop.f32.mrb[71].mxu0 }
0x213c   :  { %v10146_v61 = vpack.i.bf16 %v3714_v46, %v3711_v26 }
0x213d   :  { %10152 = vrot.lane.b32.xlu1 %v10151_v22, %s14309_s6 }
0x213e   :  { %10147 = vrot.lane.b32.xlu0 %v10146_v61, %s14308_s12 }
0x21a7   :  { %v10143_v27 = vpop.permute.xlu1 %10142 }
0x21a8   :  { %v10145_v52 = vunpack.i.h.bf16 %v10143_v27  ;;  %v10144_v29 = vunpack.i.l.bf16 %v10143_v27 }
0x21aa   :  { %v3750_v17 = vsel %vm508_vm1, %v3695_v58, %v10144_v29  ;;  %v3751_v3 = vsel %vm508_vm1, %v3698_v20, %v10145_v52 }
0x21af   :  { %v10153_v45 = vpop.permute.xlu1 %10152 }
0x21b0   :  { %v10148_v37 = vpop.permute.xlu0 %10147  ;;  %v10155_v0 = vunpack.i.h.bf16 %v10153_v45  ;;  %v10154_v14 = vunpack.i.l.bf16 %v10153_v45 }
0x21b1   :  { %v10150_v36 = vunpack.i.h.bf16 %v10148_v37  ;;  %v10149_v6 = vunpack.i.l.bf16 %v10148_v37 }
0x21b3   :  { %v3753_v38 = vsel %vm955_vm2, %v3751_v3, %v10150_v36  ;;  %v3752_v48 = vsel %vm955_vm2, %v3750_v17, %v10149_v6 }
0x21b4   :  { %v3755_v40 = vsel %vm960_vm3, %v3753_v38, %v10155_v0  ;;  %v3754_v11 = vsel %vm960_vm3, %v3752_v48, %v10154_v14 }
0x21b5   :  { %v3756_v53 = vpack.c.bf16 %v3755_v40, %v3754_v11  ;;  %v3860_v11 = vrot.slane %v12709_v62, %v11783_v30 }
0x21b7   :  { %9389 = vmatmul.mubr.msk.bf16.vlgmr.msra.gmra.mrb[72].mxu0 %vm120_vm0, %v3756_v53 }
0x21b8   :  { %9412 = vmatprep.mubr.msk.bf16.mxu0 %vm11181_vm4, %v11180_v2 }
0x228a   :  { %v3822_v63 = vpop.f32.mrb[72].mxu0 }
0x228b   :  { %v3823_v47 = vadd.f32 %v3822_v63, %v3760_v1  ;;  %v9390_v59 = vpop.f32.mrb[73].mxu0 }
0x228c   :  { %v3825_v15 = vpop.f32.mrb[74].mxu0  ;;  %v3204_v59 = vrot.slane %v12702_v7, %v11783_v30 }
0x228d   :  { %v3829_v8 = vadd.f32 %v3823_v47, %v12256_v31  ;;  %v3826_v23 = vadd.f32 %v3825_v15, %v3760_v1  ;;  %v9391_v16 = vpop.f32.mrb[75].mxu0  ;;  %v3178_v31 = vsel %vm120_vm0, %v3174_v39, 0.0  ;;  %v3866_v1 = vrot.slane %v12709_v62, %v11788_v60 }
0x228f   :  { %v3830_v4 = vadd.f32 %v3826_v23, %v12262_v32  ;;  %v3831_v41 = vsel %vm120_vm0, %v3829_v8, 0.0 }
0x2290   :  { %3832 = vadd.xlane.f32.xlu0 %v3831_v41 }
0x2291   :  { %v3834_v51 = vsel %vm120_vm0, %v3830_v4, 0.0 }
0x2292   :  { %3835 = vadd.xlane.f32.xlu1 %v3834_v51 }
0x2294   :  { %3176 = vadd.xlane.f32.xlu0 %v3175_v9 }
0x2298   :  { %3179 = vadd.xlane.f32.xlu0 %v3178_v31 }
0x231d   :  { %v3833_v28 = vpop.xlane.xlu0 %3832 }
0x231e   :  { %v3837_v54 = vmul.f32 0.015625, %v3833_v28 }
0x231f   :  { %v3836_v13 = vpop.xlane.xlu1 %3835 }
0x2320   :  { %v3839_v25 = vsub.f32 %v3829_v8, %v3837_v54  ;;  %v3838_v19 = vmul.f32 0.015625, %v3836_v13 }
0x2321   :  { %v3177_v32 = vpop.xlane.xlu0 %3176 }
0x2322   :  { %v3840_v58 = vsub.f32 %v3830_v4, %v3838_v19  ;;  %v3181_v49 = vmul.f32 0.015625, %v3177_v32  ;;  %v3841_v24 = vmul.f32 %v3839_v25, %v3839_v25 }
0x2324   :  { %v3183_v43 = vsub.f32 %v3173_v57, %v3181_v49  ;;  %v3843_v20 = vsel %vm120_vm0, %v3841_v24, 0.0  ;;  %v3842_v44 = vmul.f32 %v3840_v58, %v3840_v58  ;;  %v3210_v57 = vrot.slane %v12702_v7, %v11788_v60 }
0x2325   :  { %3844 = vadd.xlane.f32.xlu0 %v3843_v20  ;;  %v3180_v55 = vpop.xlane.xlu0 %3179 }
0x2326   :  { %v3182_v26 = vmul.f32 0.015625, %v3180_v55  ;;  %v3846_v56 = vsel %vm120_vm0, %v3842_v44, 0.0  ;;  %v3185_v22 = vmul.f32 %v3183_v43, %v3183_v43 }
0x2327   :  { %3847 = vadd.xlane.f32.xlu1 %v3846_v56 }
0x2328   :  { %v3184_v46 = vsub.f32 %v3174_v39, %v3182_v26  ;;  %v3187_v61 = vsel %vm120_vm0, %v3185_v22, 0.0 }
0x2329   :  { %3188 = vadd.xlane.f32.xlu0 %v3187_v61 }
0x232a   :  { %v3186_v27 = vmul.f32 %v3184_v46, %v3184_v46 }
0x232c   :  { %v3190_v52 = vsel %vm120_vm0, %v3186_v27, 0.0 }
0x232d   :  { %3191 = vadd.xlane.f32.xlu1 %v3190_v52 }
0x23b2   :  { %v3845_v29 = vpop.xlane.xlu0 %3844 }
0x23b3   :  { %v3849_v45 = vmul.f32 0.015625, %v3845_v29 }
0x23b4   :  { %v3848_v37 = vpop.xlane.xlu1 %3847 }
0x23b5   :  { %v3851_v36 = vadd.f32 1e-05, %v3849_v45  ;;  %v3850_v6 = vmul.f32 0.015625, %v3848_v37  ;;  %v10540_v37 = vld [vmem:[%s14239_s1 + $0x40] sm:$0xff]  }
0x23b6   :  { %v3189_v17 = vpop.xlane.xlu0 %3188  ;;  %9405 = vmatpush3.bf16.msra.mxu0 %v10540_v37 }
0x23b7   :  { %10866 = vrsqrt.f32 %v3851_v36  ;;  %v3852_v3 = vadd.f32 1e-05, %v3850_v6  ;;  %v3193_v0 = vmul.f32 0.015625, %v3189_v17  ;;  %9406 = vmatprep.subr.bf16.mxu0 %v11180_v2  ;;  %v10541_v36 = vld [vmem:[%s14239_s1 + $0x48] sm:$0xff]   ;;  %v10542_v6 = vld [vmem:[%s14240_s3 + $0x40] sm:$0xff]   ;;  %v10543_v17 = vld [vmem:[%s14239_s1 + $0x50] sm:$0xff]  }
0x23b8   :  { %9393 = vmatpush3.bf16.msra.mxu1 %v10542_v6 }
0x23b9   :  { %10868 = vrsqrt.f32 %v3852_v3  ;;  %v3195_v14 = vadd.f32 1e-05, %v3193_v0  ;;  %9394 = vmatprep.subr.bf16.mxu1 %v11180_v2  ;;  %v10544_v3 = vld [vmem:[%s14240_s3 + $0x48] sm:$0xff]   ;;  %v10545_v0 = vld [vmem:[%s14239_s1 + $0x58] sm:$0xff]  }
0x23ba   :  { %v3192_v38 = vpop.xlane.xlu1 %3191  ;;  %9407 = vmatpush3.bf16.msra.mxu0 %v10541_v36 }
0x23bb   :  { %10870 = vrsqrt.f32 %v3195_v14  ;;  %v3194_v48 = vmul.f32 0.015625, %v3192_v38  ;;  %9408 = vmatprep.subr.bf16.mxu0 %v11180_v2  ;;  %v10546_v14 = vld [vmem:[%s14240_s3 + $0x50] sm:$0xff]   ;;  %v10547_v38 = vld [vmem:[%s14240_s3 + $0x58] sm:$0xff]  }
0x23bc   :  { %9395 = vmatpush3.bf16.msra.mxu1 %v10544_v3 }
0x23bd   :  { %v3196_v40 = vadd.f32 1e-05, %v3194_v48  ;;  %9396 = vmatprep.subr.bf16.mxu1 %v11180_v2 }
0x23be   :  { %9409 = vmatpush3.bf16.msra.mxu0 %v10543_v17 }
0x23bf   :  { %10872 = vrsqrt.f32 %v3196_v40  ;;  %9410 = vmatprep.subr.bf16.mxu0 %v11180_v2 }
0x23c0   :  { %9397 = vmatpush3.bf16.msra.mxu1 %v10546_v14 }
0x23c1   :  { %v10867_v53 = vpop.eup %10866  ;;  %9398 = vmatprep.subr.bf16.mxu1 %v11180_v2 }
0x23c2   :  { %v3855_v35 = vmul.f32 %v10867_v53, %v3839_v25  ;;  %9411 = vmatpush3.bf16.msra.mxu0 %v10545_v0 }
0x23c3   :  { %v10869_v63 = vpop.eup %10868 }
0x23c4   :  { %v3861_v12 = vmul.f32 %v3860_v11, %v3855_v35  ;;  %v3856_v47 = vmul.f32 %v10869_v63, %v3840_v58  ;;  %9399 = vmatpush3.bf16.msra.mxu1 %v10547_v38 }
0x23c5   :  { %v10871_v15 = vpop.eup %10870 }
0x23c6   :  { %v12733_v8 = vadd.f32 %v3866_v1, %v3861_v12  ;;  %v3862_v23 = vmul.f32 %v3860_v11, %v3856_v47  ;;  %v3199_v16 = vmul.f32 %v10871_v15, %v3183_v43 }
0x23c8   :  { %v3909_v18 = vsel %vm120_vm0, %v12733_v8, 0.0  ;;  %v12739_v4 = vadd.f32 %v3866_v1, %v3862_v23  ;;  %v3205_v62 = vmul.f32 %v3204_v59, %v3199_v16  ;;  %v8367_v23 = vld [vmem:[%s14241_s0 + $0x10] sm:$0x7f]  ;;  %v12811_v16 = vld [vmem:[%s14241_s0 + $0x18] sm:$0x7f] }
0x23c9   :  { %v10873_v41 = vpop.eup %10872  ;;  %3910 = vadd.xlane.f32.xlu0 %v3909_v18  ;;  %v3900_v18 = vrot.slane %v8367_v23, %v11405_v5 }
0x23ca   :  { %v3912_v51 = vsel %vm120_vm0, %v12739_v4, 0.0  ;;  %v12743_v39 = vadd.f32 %v3210_v57, %v3205_v62  ;;  %v3200_v9 = vmul.f32 %v10873_v41, %v3184_v46  ;;  %v4582_v62 = vrot.slane %v12811_v16, %v11405_v5 }
0x23cb   :  { %3913 = vadd.xlane.f32.xlu1 %v3912_v51 }
0x23cc   :  { %v3871_v31 = vsel %vm120_vm0, %v12743_v39, 0.0  ;;  %v3206_v28 = vmul.f32 %v3204_v59, %v3200_v9 }
0x23cd   :  { %3872 = vadd.xlane.f32.xlu0 %v3871_v31  ;;  %v4588_v31 = vrot.slane %v12811_v16, %v11412_v10 }
0x23ce   :  { %v12747_v7 = vadd.f32 %v3210_v57, %v3206_v28 }
0x23d0   :  { %v3874_v54 = vsel %vm120_vm0, %v12747_v7, 0.0 }
0x23d1   :  { %3875 = vadd.xlane.f32.xlu1 %v3874_v54 }
0x2456   :  { %v3911_v13 = vpop.xlane.xlu0 %3910 }
0x2457   :  { %v3915_v25 = vmul.f32 0.015625, %v3911_v13 }
0x2458   :  { %v3914_v19 = vpop.xlane.xlu1 %3913 }
0x2459   :  { %v12752_v32 = vsub.f32 %v12733_v8, %v3915_v25  ;;  %v3916_v58 = vmul.f32 0.015625, %v3914_v19  ;;  %v3906_v25 = vrot.slane %v8367_v23, %v11412_v10 }
0x245a   :  { %v3873_v49 = vpop.xlane.xlu0 %3872 }
0x245b   :  { %v12755_v24 = vsub.f32 %v12739_v4, %v3916_v58  ;;  %v3877_v43 = vmul.f32 0.015625, %v3873_v49  ;;  %v3919_v20 = vmul.f32 %v12752_v32, %v12752_v32 }
0x245d   :  { %v12760_v44 = vsub.f32 %v12743_v39, %v3877_v43  ;;  %v3921_v55 = vsel %vm120_vm0, %v3919_v20, 0.0  ;;  %v3920_v26 = vmul.f32 %v12755_v24, %v12755_v24 }
0x245e   :  { %3922 = vadd.xlane.f32.xlu0 %v3921_v55  ;;  %v3876_v56 = vpop.xlane.xlu1 %3875 }
0x245f   :  { %v3878_v22 = vmul.f32 0.015625, %v3876_v56  ;;  %v3924_v46 = vsel %vm120_vm0, %v3920_v26, 0.0  ;;  %v3881_v61 = vmul.f32 %v12760_v44, %v12760_v44 }
0x2460   :  { %3925 = vadd.xlane.f32.xlu1 %v3924_v46 }
0x2461   :  { %v12769_v27 = vsub.f32 %v12747_v7, %v3878_v22  ;;  %v3883_v52 = vsel %vm120_vm0, %v3881_v61, 0.0 }
0x2462   :  { %3884 = vadd.xlane.f32.xlu0 %v3883_v52 }
0x2463   :  { %v3882_v29 = vmul.f32 %v12769_v27, %v12769_v27 }
0x2465   :  { %v3886_v45 = vsel %vm120_vm0, %v3882_v29, 0.0 }
0x2466   :  { %3887 = vadd.xlane.f32.xlu1 %v3886_v45 }
0x24eb   :  { %v3923_v48 = vpop.xlane.xlu0 %3922 }
0x24ec   :  { %v3927_v40 = vmul.f32 0.015625, %v3923_v48 }
0x24ed   :  { %v3926_v11 = vpop.xlane.xlu1 %3925 }
0x24ee   :  { %v3929_v53 = vadd.f32 1e-05, %v3927_v40  ;;  %v3928_v35 = vmul.f32 0.015625, %v3926_v11 }
0x24ef   :  { %v3885_v1 = vpop.xlane.xlu0 %3884 }
0x24f0   :  { %10874 = vrsqrt.f32 %v3929_v53  ;;  %v3930_v63 = vadd.f32 1e-05, %v3928_v35  ;;  %v3889_v12 = vmul.f32 0.015625, %v3885_v1  ;;  %v3952_v53 = vrot.slane %v8367_v23, %v11421_v33 }
0x24f2   :  { %10876 = vrsqrt.f32 %v3930_v63  ;;  %v3891_v47 = vadd.f32 1e-05, %v3889_v12 }
0x24f3   :  { %v3888_v59 = vpop.xlane.xlu1 %3887 }
0x24f4   :  { %10878 = vrsqrt.f32 %v3891_v47  ;;  %v3890_v15 = vmul.f32 0.015625, %v3888_v59 }
0x24f6   :  { %v3892_v57 = vadd.f32 1e-05, %v3890_v15 }
0x24f8   :  { %10880 = vrsqrt.f32 %v3892_v57 }
0x24fa   :  { %v10875_v41 = vpop.eup %10874 }
0x24fb   :  { %v3933_v51 = vmul.f32 %v10875_v41, %v12752_v32 }
0x24fc   :  { %v10877_v9 = vpop.eup %10876 }
0x24fd   :  { %v3935_v28 = vmul.f32 %v3933_v51, %v3900_v18  ;;  %v4583_v54 = vmul.f32 %v4582_v62, %v3933_v51  ;;  %v3934_v13 = vmul.f32 %v10877_v9, %v12755_v24 }
0x24fe   :  { %v10879_v19 = vpop.eup %10878 }
0x24ff   :  { %v3936_v58 = vmul.f32 %v3934_v13, %v3900_v18  ;;  %v4584_v49 = vmul.f32 %v4582_v62, %v3934_v13  ;;  %v3895_v43 = vmul.f32 %v10879_v19, %v12760_v44  ;;  %v12822_v20 = vadd.f32 %v4588_v31, %v4583_v54 }
0x2500   :  { %v3937_v26 = vadd.f32 %v3935_v28, %v3906_v25 }
0x2501   :  { %v12824_v55 = vadd.f32 %v4588_v31, %v4584_v49  ;;  %v4591_v32 = vmul.f32 %v4582_v62, %v3895_v43  ;;  %v3938_v56 = vadd.f32 %v3936_v58, %v3906_v25  ;;  %v3901_v46 = vmul.f32 %v3900_v18, %v3895_v43 }
0x2502   :  { %v10881_v22 = vpop.eup %10880 }
0x2503   :  { %v3896_v61 = vmul.f32 %v10881_v22, %v12769_v27  ;;  %v4030_v52 = vpack.c.bf16 %v3938_v56, %v3937_v26  ;;  %v4604_v24 = vpack.c.bf16 %v12824_v55, %v12822_v20  ;;  %v12829_v29 = vadd.f32 %v4591_v32, %v4588_v31  ;;  %v12910_v55 = vld [vmem:[%s14242_s13 + $0x8] sm:$0xff] }
0x2504   :  { %v3907_v44 = vadd.f32 %v3906_v25, %v3901_v46  ;;  %v4034_v27 = vrot.slane %v8367_v23, %v11699_v34 }
0x2505   :  { %v3902_v45 = vmul.f32 %v3900_v18, %v3896_v61  ;;  %v4592_v37 = vmul.f32 %v4582_v62, %v3896_v61  ;;  %9413 = vmatmul.mubr.msk.bf16.vlgmr.msra.gmra.mrb[76].mxu0 %vm120_vm0, %v4030_v52 }
0x2507   :  { %v3908_v36 = vadd.f32 %v3906_v25, %v3902_v45  ;;  %v12832_v6 = vadd.f32 %v4592_v37, %v4588_v31 }
0x2509   :  { %v3948_v17 = vpack.c.bf16 %v3908_v36, %v3907_v44  ;;  %v4686_v3 = vpack.c.bf16 %v12832_v6, %v12829_v29  ;;  %v10548_v44 = vld [vmem:[%s14240_s3 + $0x60] sm:$0xff]  }
0x250b   :  { %9401 = vmatmul.mubr.msk.bf16.vlgmr.msra.gmra.mrb[88].mxu1 %vm120_vm0, %v3948_v17 }
0x25d8   :  { %v4096_v0 = vpop.f32.mrb[76].mxu0 }
0x25d9   :  { %v9414_v14 = vpop.f32.mrb[77].mxu0  ;;  %v4097_v48 = vadd.f32 %v4096_v0, %v4034_v27  ;;  %v10549_v0 = vld [vmem:[%s14240_s3 + $0x68] sm:$0xff]  }
0x25da   :  { %v4099_v38 = vpop.f32.mrb[78].mxu0 }
0x25db   :  { %v4100_v40 = vadd.f32 %v4099_v38, %v4034_v27  ;;  %v9415_v11 = vpop.f32.mrb[79].mxu0 }
0x25dc   :  { %v10551_v11 = vld [vmem:[%s14240_s3 + $0x78] sm:$0xff]  }
0x25dd   :  { %v10161_v35 = vpack.i.bf16 %v4100_v40, %v4097_v48  ;;  %v12839_v1 = vpack.c.bf16 %v4100_v40, %v4097_v48  ;;  %v10550_v48 = vld [vmem:[%s14240_s3 + $0x70] sm:$0xff]  }
0x25de   :  { %v4014_v63 = vpop.f32.mrb[88].mxu1 }
0x25df   :  { %v9402_v12 = vpop.f32.mrb[89].mxu1  ;;  %10162 = vrot.lane.b32.xlu1 %v10161_v35, %s14306_s30  ;;  %10157 = vrot.lane.b32.xlu0 %v10161_v35, %s14303_s27  ;;  %v4173_v47 = vsel %vm508_vm1, %v12839_v1, 0  ;;  %v4015_v15 = vadd.f32 %v4014_v63, %v3952_v53  ;;  %v12898_v63 = vld [vmem:[%s14242_s13] sm:$0xff] }
0x25e0   :  { %9852 = vmatprep.subr.msk.bf16.mxu1 %vm508_vm1, %v12839_v1  ;;  %v4017_v59 = vpop.f32.mrb[90].mxu1 }
0x25e1   :  { %v4018_v57 = vadd.f32 %v4017_v59, %v3952_v53  ;;  %9417 = vmatpush3.bf16.xpose.msra.mxu1 %v4173_v47  ;;  %v9403_v23 = vpop.f32.mrb[91].mxu1 }
0x25e3   :  { %10167 = vrot.lane.b32.xlu1 %v10161_v35, %s14304_s7  ;;  %v4132_v18 = vpack.c.bf16 %v4018_v57, %v4015_v15  ;;  %v10176_v62 = vpack.i.bf16 %v4018_v57, %v4015_v15  ;;  %v12904_v15 = vld [vmem:[%s14242_s13 + $0x10] sm:$0xff] }
0x25e5   :  { %9424 = vmatprep.mubr.msk.bf16.mxu1 %vm508_vm1, %v4132_v18  ;;  %10177 = vrot.lane.b32.xlu0 %v10176_v62, %s14306_s30  ;;  %v12918_v18 = vld [vmem:[%s14242_s13 + $0x18] sm:$0xff] }
0x25e7   :  { %10172 = vrot.lane.b32.xlu1 %v10176_v62, %s14303_s27 }
0x25eb   :  { %10182 = vrot.lane.b32.xlu1 %v10176_v62, %s14304_s7 }
0x2651   :  { %v10163_v41 = vpop.permute.xlu1 %10162  ;;  %v10158_v51 = vpop.permute.xlu0 %10157 }
0x2652   :  { %v10165_v9 = vunpack.i.h.bf16 %v10163_v41  ;;  %v10164_v31 = vunpack.i.l.bf16 %v10163_v41  ;;  %v10160_v28 = vunpack.i.h.bf16 %v10158_v51  ;;  %v10159_v54 = vunpack.i.l.bf16 %v10158_v51 }
0x2654   :  { %v12852_v13 = vpack.c.bf16 %v10160_v28, %v10159_v54  ;;  %v12854_v25 = vpack.c.bf16 %v10165_v9, %v10164_v31  ;;  %v12925_v54 = vld [vmem:[%s14242_s13 + $0x20] sm:$0xff] }
0x2655   :  { %v10168_v58 = vpop.permute.xlu1 %10167 }
0x2656   :  { %9853 = vmatprep.subr.msk.bf16.mxu1 %vm508_vm1, %v12852_v13  ;;  %v4176_v19 = vsel %vm508_vm1, %v12852_v13, 0  ;;  %v10170_v49 = vunpack.i.h.bf16 %v10168_v58  ;;  %v10169_v43 = vunpack.i.l.bf16 %v10168_v58  ;;  %v4179_v26 = vsel %vm508_vm1, %v12854_v25, 0  ;;  %v12931_v58 = vld [vmem:[%s14242_s13 + $0x28] sm:$0xff] }
0x2657   :  { %9419 = vmatpush3.bf16.xpose.msra.mxu1 %v4176_v19  ;;  %v10178_v22 = vpop.permute.xlu0 %10177 }
0x2658   :  { %9854 = vmatprep.subr.msk.bf16.mxu1 %vm508_vm1, %v12854_v25  ;;  %v12862_v32 = vpack.c.bf16 %v10170_v49, %v10169_v43  ;;  %v10180_v45 = vunpack.i.h.bf16 %v10178_v22  ;;  %v10179_v37 = vunpack.i.l.bf16 %v10178_v22 }
0x2659   :  { %v10173_v56 = vpop.permute.xlu1 %10172 }
0x265a   :  { %v4182_v46 = vsel %vm508_vm1, %v12862_v32, 0  ;;  %v10175_v61 = vunpack.i.h.bf16 %v10173_v56  ;;  %v10174_v52 = vunpack.i.l.bf16 %v10173_v56  ;;  %v4134_v17 = vpack.c.bf16 %v10180_v45, %v10179_v37 }
0x265c   :  { %v4133_v36 = vpack.c.bf16 %v10175_v61, %v10174_v52  ;;  %v12952_v61 = vld [vmem:[%s14242_s13 + $0x30] sm:$0xff] }
0x265d   :  { %v10183_v27 = vpop.permute.xlu1 %10182 }
0x265e   :  { %v10185_v14 = vunpack.i.h.bf16 %v10183_v27  ;;  %v10184_v38 = vunpack.i.l.bf16 %v10183_v27 }
0x265f   :  { %9421 = vmatpush3.bf16.xpose.msra.mxu1 %v4179_v26  ;;  %v12940_v26 = vld [vmem:[%s14242_s13 + $0x38] sm:$0xff]  ;;  %s14311_s13 = sld [smem:[#allocation12_spill]] }
0x2660   :  { %9855 = vmatprep.subr.msk.bf16.mxu1 %vm508_vm1, %v12862_v32  ;;  %v4135_v40 = vpack.c.bf16 %v10185_v14, %v10184_v38 }
0x2667   :  { %9423 = vmatpush3.bf16.xpose.msra.mxu1 %v4182_v46  ;;  %v4608_v46 = vrot.slane %v12811_v16, %v11421_v33 }
0x2668   :  { %9460 = vmatprep.subr.bf16.mxu1 %v11180_v2 }
0x266e   :  { %9425 = vmatmul.mubr.msk.bf16.vlgmr.msra.gmra.mrb[92].mxu1 %vm508_vm1, %v4133_v36 }
0x266f   :  { %9428 = vmatprep.mubr.msk.bf16.mxu1 %vm508_vm1, %v4134_v17  ;;  %9461 = vmatpush3.bf16.msra.mxu1 %v10548_v44 }
0x2670   :  { %9462 = vmatprep.subr.bf16.mxu1 %v11180_v2 }
0x2673   :  { %9463 = vmatpush3.bf16.msra.mxu1 %v10549_v0 }
0x2674   :  { %9464 = vmatprep.subr.bf16.mxu1 %v11180_v2 }
0x2676   :  { %9429 = vmatmul.mubr.msk.bf16.gmra.mrb[96].mxu1 %vm508_vm1, %v4135_v40 }
0x2677   :  { %9465 = vmatpush3.bf16.msra.mxu1 %v10550_v48  ;;  %9468 = vmatprep.mubr.msk.bf16.mxu1 %vm11181_vm4, %v11180_v2 }
0x2678   :  { %9466 = vmatprep.subr.bf16.mxu1 %v11180_v2 }
0x267b   :  { %9467 = vmatpush3.bf16.msra.mxu1 %v10551_v11 }
0x267e   :  { %9469 = vmatmul.mubr.msk.bf16.vlgmr.msra.gmra.mrb[100].mxu1 %vm120_vm0, %v4604_v24 }
0x2741   :  { %v9426_v53 = vpop.f32.mrb[92].mxu1 }
0x2742   :  { %v4218_v35 = vpop.f32.mrb[93].mxu1  ;;  %v4227_v20 = vadd.f32 %v12904_v15, %v9426_v53 }
0x2743   :  { %v4219_v12 = vadd.f32 %v12898_v63, %v4218_v35  ;;  %v9427_v47 = vpop.f32.mrb[94].mxu1 }
0x2744   :  { %v4221_v59 = vpop.f32.mrb[95].mxu1  ;;  %v4230_v62 = vadd.f32 %v12918_v18, %v9427_v47  ;;  %v4255_v51 = vsel %vm120_vm0, %v4227_v20, -inf }
0x2745   :  { %v4222_v24 = vadd.f32 %v12910_v55, %v4221_v59  ;;  %v4249_v57 = vsel %vm120_vm0, %v4219_v12, -inf }
0x2746   :  { %4250 = vmax.xlane.f32.xlu0 %v4249_v57  ;;  %v4258_v43 = vsel %vm120_vm0, %v4230_v62, -inf }
0x2747   :  { %v4252_v23 = vsel %vm120_vm0, %v4222_v24, -inf }
0x2748   :  { %4253 = vmax.xlane.f32.xlu1 %v4252_v23 }
0x2749   :  { %v9430_v41 = vpop.f32.mrb[96].mxu1 }
0x274a   :  { %v4234_v9 = vpop.f32.mrb[97].mxu1  ;;  %4256 = vmax.xlane.f32.xlu0 %v4255_v51  ;;  %v4243_v52 = vadd.f32 %v12952_v61, %v9430_v41 }
0x274b   :  { %v9431_v31 = vpop.f32.mrb[98].mxu1  ;;  %v4235_v19 = vadd.f32 %v12925_v54, %v4234_v9 }
0x274c   :  { %v4237_v28 = vpop.f32.mrb[99].mxu1  ;;  %v12943_v56 = vadd.f32 %v12940_v26, %v9431_v31  ;;  %v4267_v38 = vsel %vm120_vm0, %v4243_v52, -inf }
0x274d   :  { %v12934_v49 = vadd.f32 %v12931_v58, %v4237_v28  ;;  %v4261_v37 = vsel %vm120_vm0, %v4235_v19, -inf }
0x274e   :  { %4259 = vmax.xlane.f32.xlu0 %v4258_v43  ;;  %v4270_v17 = vsel %vm120_vm0, %v12943_v56, -inf }
0x274f   :  { %v4264_v22 = vsel %vm120_vm0, %v12934_v49, -inf }
0x2750   :  { %4265 = vmax.xlane.f32.xlu1 %v4264_v22 }
0x2751   :  { %v4670_v45 = vpop.f32.mrb[100].mxu1 }
0x2752   :  { %v9470_v44 = vpop.f32.mrb[101].mxu1  ;;  %4262 = vmax.xlane.f32.xlu0 %v4261_v37  ;;  %v4671_v27 = vadd.f32 %v4670_v45, %v4608_v46 }
0x2753   :  { %v4673_v36 = vpop.f32.mrb[102].mxu1 }
0x2754   :  { %v4674_v0 = vadd.f32 %v4673_v36, %v4608_v46  ;;  %v9471_v14 = vpop.f32.mrb[103].mxu1  ;;  %4271 = vmax.xlane.f32.xlu1 %v4270_v17 }
0x2756   :  { %4268 = vmax.xlane.f32.xlu0 %v4267_v38  ;;  %v4788_v48 = vpack.c.bf16 %v4674_v0, %v4671_v27  ;;  %v12959_v40 = vpack.i.bf16 %v4674_v0, %v4671_v27 }
0x2758   :  { %9492 = vmatprep.mubr.msk.bf16.mxu1 %vm508_vm1, %v4788_v48 }
0x27d3   :  { %v4251_v11 = vpop.xlane.xlu0 %4250 }
0x27d4   :  { %v4273_v53 = vsub.f32 %v4219_v12, %v4251_v11 }
0x27d5   :  { %v4254_v35 = vpop.xlane.xlu1 %4253 }
0x27d6   :  { %v4281_v57 = vmul.f32 1.442695, %v4273_v53  ;;  %v4274_v23 = vsub.f32 %v4222_v24, %v4254_v35 }
0x27d7   :  { %v4257_v47 = vpop.xlane.xlu0 %4256 }
0x27d8   :  { %v4275_v59 = vsub.f32 %v4227_v20, %v4257_v47  ;;  %v4283_v31 = vmul.f32 1.442695, %v4274_v23 }
0x27da   :  { %v4285_v41 = vmul.f32 1.442695, %v4275_v59 }
0x27db   :  { %v4260_v51 = vpop.xlane.xlu0 %4259 }
0x27dc   :  { %10882 = vpow2.f32 %v4285_v41  ;;  %v4276_v9 = vsub.f32 %v4230_v62, %v4260_v51 }
0x27dd   :  { %10884 = vpow2.f32 %v4281_v57  ;;  %v4266_v48 = vpop.xlane.xlu1 %4265 }
0x27de   :  { %v4287_v28 = vmul.f32 1.442695, %v4276_v9  ;;  %v4278_v35 = vsub.f32 %v12934_v49, %v4266_v48 }
0x27df   :  { %v4263_v43 = vpop.xlane.xlu0 %4262 }
0x27e0   :  { %10886 = vpow2.f32 %v4287_v28  ;;  %v4277_v22 = vsub.f32 %v4235_v19, %v4263_v43  ;;  %v4291_v59 = vmul.f32 1.442695, %v4278_v35 }
0x27e1   :  { %10888 = vpow2.f32 %v4283_v31  ;;  %v4272_v11 = vpop.xlane.xlu1 %4271 }
0x27e2   :  { %v4289_v12 = vmul.f32 1.442695, %v4277_v22  ;;  %v4280_v53 = vsub.f32 %v12943_v56, %v4272_v11 }
0x27e3   :  { %v4269_v46 = vpop.xlane.xlu0 %4268 }
0x27e4   :  { %v4279_v45 = vsub.f32 %v4243_v52, %v4269_v46  ;;  %v4295_v47 = vmul.f32 1.442695, %v4280_v53 }
0x27e6   :  { %v12962_v37 = vpop.eup %10882  ;;  %v4293_v44 = vmul.f32 1.442695, %v4279_v45 }
0x27e7   :  { %v4303_v20 = vsel %vm120_vm0, %v12962_v37, 0.0  ;;  %v10885_v24 = vpop.eup %10884 }
0x27e8   :  { %10890 = vpow2.f32 %v4293_v44  ;;  %4304 = vadd.xlane.f32.xlu0 %v4303_v20  ;;  %v4297_v36 = vsel %vm120_vm0, %v10885_v24, 0.0 }
0x27e9   :  { %10892 = vpow2.f32 %v4289_v12 }
0x27ea   :  { %v12966_v62 = vpop.eup %10886  ;;  %10894 = vpow2.f32 %v4295_v47 }
0x27eb   :  { %v4306_v19 = vsel %vm120_vm0, %v12966_v62, 0.0  ;;  %v10889_v17 = vpop.eup %10888  ;;  %10896 = vpow2.f32 %v4291_v59 }
0x27ec   :  { %4298 = vadd.xlane.f32.xlu0 %v4297_v36  ;;  %4307 = vadd.xlane.f32.xlu1 %v4306_v19  ;;  %v4300_v52 = vsel %vm120_vm0, %v10889_v17, 0.0 }
0x27f0   :  { %4301 = vadd.xlane.f32.xlu1 %v4300_v52 }
0x27f2   :  { %v12972_v27 = vpop.eup %10890 }
0x27f3   :  { %v4315_v0 = vsel %vm120_vm0, %v12972_v27, 0.0  ;;  %v12976_v14 = vpop.eup %10892 }
0x27f4   :  { %4316 = vadd.xlane.f32.xlu0 %v4315_v0  ;;  %v4309_v38 = vsel %vm120_vm0, %v12976_v14, 0.0  ;;  %v10895_v57 = vpop.eup %10894 }
0x27f5   :  { %v4318_v23 = vsel %vm120_vm0, %v10895_v57, 0.0 }
0x27f8   :  { %4310 = vadd.xlane.f32.xlu0 %v4309_v38 }
0x2801   :  { %4347 = vrot.lane.b32.xlu1 %v12852_v13, %s14305_s21  ;;  %v10897_v13 = vpop.eup %10896 }
0x2805   :  { %4349 = vrot.lane.b32.xlu1 %v12854_v25, %s14305_s21  ;;  %v4312_v25 = vsel %vm120_vm0, %v10897_v13, 0.0 }
0x280e   :  { %4345 = vrot.lane.b32.xlu0 %v12839_v1, %s14305_s21 }
0x2829   :  { %4319 = vadd.xlane.f32.xlu1 %v4318_v23 }
0x282d   :  { %4313 = vadd.xlane.f32.xlu1 %v4312_v25 }
0x283e   :  { %4351 = vrot.lane.b32.xlu1 %v12862_v32, %s14305_s21 }
0x2875   :  { %v4305_v1 = vpop.xlane.xlu0 %4304 }
0x2879   :  { %v4308_v41 = vpop.xlane.xlu1 %4307  ;;  %v4299_v56 = vpop.xlane.xlu0 %4298 }
0x287a   :  { %10898 = vrcp.f32 %v4299_v56 }
0x287d   :  { %v4302_v49 = vpop.xlane.xlu1 %4301 }
0x287e   :  { %10900 = vrcp.f32 %v4302_v49 }
0x287f   :  { %10902 = vrcp.f32 %v4308_v41  ;;  %v10555_v41 = vld [vmem:[%s14243_s2 + $0x58] sm:$0xff]  }
0x2880   :  { %10904 = vrcp.f32 %v4305_v1 }
0x2881   :  { %v4317_v51 = vpop.xlane.xlu0 %4316  ;;  %v4348_v43 = vpop.permute.xlu1 %4347 }
0x2884   :  { %v10899_v31 = vpop.eup %10898 }
0x2885   :  { %v4311_v9 = vpop.xlane.xlu0 %4310  ;;  %v4329_v46 = vmul.f32 %v10899_v31, %v10885_v24  ;;  %v4350_v32 = vpop.permute.xlu1 %4349 }
0x2888   :  { %v10901_v28 = vpop.eup %10900 }
0x2889   :  { %v4346_v22 = vpop.permute.xlu0 %4345  ;;  %v4330_v45 = vmul.f32 %v10901_v28, %v10889_v17  ;;  %v10903_v20 = vpop.eup %10902 }
0x288a   :  { %9432 = vmatprep.subr.bf16.mxu0 %v4346_v22  ;;  %v10905_v24 = vpop.eup %10904  ;;  %v4332_v19 = vmul.f32 %v10903_v20, %v12966_v62 }
0x288b   :  { %9433 = vmatpush3.bf16.msra.mxu0 %v4346_v22  ;;  %v4337_v12 = vpack.c.bf16 %v4330_v45, %v4329_v46  ;;  %v4331_v52 = vmul.f32 %v10905_v24, %v12962_v37  ;;  %v10552_v37 = vld [vmem:[%s14243_s2 + $0x40] sm:$0xff]  }
0x288c   :  { %9434 = vmatprep.subr.bf16.mxu0 %v4348_v43 }
0x288d   :  { %9440 = vmatprep.mubr.msk.bf16.mxu0 %vm120_vm0, %v4337_v12  ;;  %v4338_v0 = vpack.c.bf16 %v4332_v19, %v4331_v52 }
0x288f   :  { %9435 = vmatpush3.bf16.msra.mxu0 %v4348_v43 }
0x2890   :  { %9436 = vmatprep.subr.bf16.mxu0 %v4350_v32 }
0x2893   :  { %9437 = vmatpush3.bf16.msra.mxu0 %v4350_v32 }
0x28b6   :  { %v4320_v44 = vpop.xlane.xlu1 %4319 }
0x28b7   :  { %10906 = vrcp.f32 %v4320_v44 }
0x28b8   :  { %10908 = vrcp.f32 %v4311_v9 }
0x28b9   :  { %10910 = vrcp.f32 %v4317_v51 }
0x28ba   :  { %v4314_v36 = vpop.xlane.xlu1 %4313 }
0x28bb   :  { %10912 = vrcp.f32 %v4314_v36 }
0x28be   :  { %v4352_v17 = vpop.permute.xlu1 %4351 }
0x28bf   :  { %9438 = vmatprep.subr.bf16.mxu0 %v4352_v17 }
0x28c0   :  { %9439 = vmatpush3.bf16.msra.mxu0 %v4352_v17 }
0x28c1   :  { %9448 = vmatprep.subr.bf16.mxu0 %v11180_v2  ;;  %v10907_v38 = vpop.eup %10906 }
0x28c2   :  { %v10909_v48 = vpop.eup %10908  ;;  %v4336_v35 = vmul.f32 %v10907_v38, %v10895_v57 }
0x28c3   :  { %9441 = vmatmul.mubr.msk.bf16.vlgmr.msra.gmra.mrb[80].mxu0 %vm120_vm0, %v4338_v0  ;;  %v10911_v11 = vpop.eup %10910  ;;  %v4333_v47 = vmul.f32 %v10909_v48, %v12976_v14  ;;  %v10554_v14 = vld [vmem:[%s14243_s2 + $0x50] sm:$0xff]  }
0x28c4   :  { %v4335_v62 = vmul.f32 %v10911_v11, %v12972_v27  ;;  %9449 = vmatpush3.bf16.msra.mxu0 %v10552_v37  ;;  %v10553_v27 = vld [vmem:[%s14243_s2 + $0x48] sm:$0xff]  }
0x28c5   :  { %v10913_v53 = vpop.eup %10912  ;;  %9450 = vmatprep.subr.bf16.mxu0 %v11180_v2 }
0x28c6   :  { %v4334_v59 = vmul.f32 %v10913_v53, %v10897_v13  ;;  %v4340_v25 = vpack.c.bf16 %v4336_v35, %v4335_v62  ;;  %v10556_v53 = vld [vmem:[%s14239_s1 + $0x60] sm:$0xff]   ;;  %v10559_v62 = vld [vmem:[%s14239_s1 + $0x78] sm:$0xff]  }
0x28c8   :  { %v4339_v23 = vpack.c.bf16 %v4334_v59, %v4333_v47  ;;  %9451 = vmatpush3.bf16.msra.mxu0 %v10553_v27  ;;  %v10557_v47 = vld [vmem:[%s14239_s1 + $0x68] sm:$0xff]   ;;  %v10558_v59 = vld [vmem:[%s14239_s1 + $0x70] sm:$0xff]  }
0x28c9   :  { %9452 = vmatprep.subr.bf16.mxu0 %v11180_v2 }
0x28ca   :  { %9444 = vmatprep.mubr.msk.bf16.mxu0 %vm120_vm0, %v4339_v23 }
0x28cb   :  { %9445 = vmatmul.mubr.msk.bf16.gmra.mrb[84].mxu0 %vm120_vm0, %v4340_v25 }
0x28cc   :  { %9456 = vmatprep.mubr.msk.bf16.mxu0 %vm11181_vm4, %v11180_v2  ;;  %9453 = vmatpush3.bf16.msra.mxu0 %v10554_v14  ;;  %v4690_v14 = vrot.slane %v12811_v16, %v11699_v34 }
0x28cd   :  { %9454 = vmatprep.subr.bf16.mxu0 %v11180_v2 }
0x28d0   :  { %9455 = vmatpush3.bf16.msra.mxu0 %v10555_v41 }
0x28d1   :  { %9472 = vmatprep.subr.bf16.mxu0 %v11180_v2 }
0x2996   :  { %v9442_v57 = vpop.f32.mrb[80].mxu0 }
0x2997   :  { %v4403_v13 = vpop.f32.mrb[81].mxu0 }
0x2998   :  { %v9443_v1 = vpop.f32.mrb[82].mxu0 }
0x2999   :  { %v10186_v56 = vpack.i.bf16 %v9443_v1, %v9442_v57  ;;  %v4406_v49 = vpop.f32.mrb[83].mxu0 }
0x299b   :  { %10187 = vrot.lane.b32.xlu0 %v10186_v56, %s14307_s22 }
0x299e   :  { %v9446_v51 = vpop.f32.mrb[84].mxu0 }
0x299f   :  { %v4419_v9 = vpop.f32.mrb[85].mxu0 }
0x29a0   :  { %v9447_v31 = vpop.f32.mrb[86].mxu0 }
0x29a1   :  { %v10196_v28 = vpack.i.bf16 %v9447_v31, %v9446_v51  ;;  %v4422_v43 = vpop.f32.mrb[87].mxu0 }
0x29a2   :  { %v10191_v22 = vpack.i.bf16 %v4422_v43, %v4419_v9 }
0x29a3   :  { %10197 = vrot.lane.b32.xlu0 %v10196_v28, %s14309_s6 }
0x29a4   :  { %10192 = vrot.lane.b32.xlu1 %v10191_v22, %s14308_s12 }
0x2a0d   :  { %v10188_v46 = vpop.permute.xlu0 %10187 }
0x2a0e   :  { %v10190_v45 = vunpack.i.h.bf16 %v10188_v46  ;;  %v10189_v12 = vunpack.i.l.bf16 %v10188_v46 }
0x2a10   :  { %v4458_v24 = vsel %vm508_vm1, %v4403_v13, %v10189_v12  ;;  %v4459_v19 = vsel %vm508_vm1, %v4406_v49, %v10190_v45 }
0x2a15   :  { %v10198_v32 = vpop.permute.xlu0 %10197 }
0x2a16   :  { %v10193_v44 = vpop.permute.xlu1 %10192  ;;  %v10200_v17 = vunpack.i.h.bf16 %v10198_v32  ;;  %v10199_v52 = vunpack.i.l.bf16 %v10198_v32 }
0x2a17   :  { %v10195_v20 = vunpack.i.h.bf16 %v10193_v44  ;;  %v10194_v36 = vunpack.i.l.bf16 %v10193_v44 }
0x2a19   :  { %v4461_v0 = vsel %vm955_vm2, %v4459_v19, %v10195_v20  ;;  %v4460_v38 = vsel %vm955_vm2, %v4458_v24, %v10194_v36 }
0x2a1a   :  { %v4463_v48 = vsel %vm960_vm3, %v4461_v0, %v10200_v17  ;;  %v4462_v11 = vsel %vm960_vm3, %v4460_v38, %v10199_v52 }
0x2a1b   :  { %v4464_v35 = vpack.c.bf16 %v4463_v48, %v4462_v11 }
0x2a1d   :  { %9457 = vmatmul.mubr.msk.bf16.vlgmr.msra.gmra.mrb[88].mxu0 %vm120_vm0, %v4464_v35 }
0x2a1e   :  { %9473 = vmatpush3.bf16.msra.mxu0 %v10556_v53  ;;  %9480 = vmatprep.mubr.msk.bf16.mxu0 %vm11181_vm4, %v11180_v2 }
0x2a1f   :  { %9474 = vmatprep.subr.bf16.mxu0 %v11180_v2 }
0x2a22   :  { %9475 = vmatpush3.bf16.msra.mxu0 %v10557_v47 }
0x2a23   :  { %9476 = vmatprep.subr.bf16.mxu0 %v11180_v2 }
0x2a26   :  { %9477 = vmatpush3.bf16.msra.mxu0 %v10558_v59 }
0x2a27   :  { %9478 = vmatprep.subr.bf16.mxu0 %v11180_v2 }
0x2a2a   :  { %9479 = vmatpush3.bf16.msra.mxu0 %v10559_v62 }
0x2a2d   :  { %9481 = vmatmul.mubr.msk.bf16.vlgmr.msra.gmra.mrb[92].mxu0 %vm120_vm0, %v4686_v3 }
0x2af0   :  { %v13050_v23 = vpop.f32.mrb[88].mxu0 }
0x2af1   :  { %v9458_v25 = vpop.f32.mrb[89].mxu0 }
0x2af2   :  { %v13052_v37 = vpop.f32.mrb[90].mxu0 }
0x2af3   :  { %v9459_v27 = vpop.f32.mrb[91].mxu0 }
0x2b00   :  { %v4752_v57 = vpop.f32.mrb[92].mxu0 }
0x2b01   :  { %v9482_v13 = vpop.f32.mrb[93].mxu0  ;;  %v4753_v41 = vadd.f32 %v4752_v57, %v4690_v14 }
0x2b02   :  { %v4755_v1 = vpop.f32.mrb[94].mxu0 }
0x2b03   :  { %v4756_v56 = vadd.f32 %v4755_v1, %v4690_v14  ;;  %v9483_v49 = vpop.f32.mrb[95].mxu0 }
0x2b05   :  { %v10206_v51 = vpack.i.bf16 %v4756_v56, %v4753_v41  ;;  %v13056_v9 = vpack.c.bf16 %v4756_v56, %v4753_v41 }
0x2b07   :  { %10207 = vrot.lane.b32.xlu0 %v10206_v51, %s14306_s30  ;;  %10202 = vrot.lane.b32.xlu1 %v10206_v51, %s14303_s27  ;;  %v4829_v29 = vsel %vm508_vm1, %v13056_v9, 0 }
0x2b08   :  { %9856 = vmatprep.subr.msk.bf16.mxu1 %vm508_vm1, %v13056_v9 }
0x2b09   :  { %9485 = vmatpush3.bf16.xpose.msra.mxu1 %v4829_v29 }
0x2b0b   :  { %10217 = vrot.lane.b32.xlu0 %v12959_v40, %s14303_s27  ;;  %10212 = vrot.lane.b32.xlu1 %v10206_v51, %s14304_s7 }
0x2b0f   :  { %10227 = vrot.lane.b32.xlu0 %v12959_v40, %s14304_s7  ;;  %10222 = vrot.lane.b32.xlu1 %v12959_v40, %s14306_s30 }
0x2b79   :  { %v10208_v16 = vpop.permute.xlu0 %10207  ;;  %v10203_v6 = vpop.permute.xlu1 %10202 }
0x2b7a   :  { %v10205_v3 = vunpack.i.h.bf16 %v10203_v6  ;;  %v10204_v31 = vunpack.i.l.bf16 %v10203_v6  ;;  %v10210_v28 = vunpack.i.h.bf16 %v10208_v16  ;;  %v10209_v43 = vunpack.i.l.bf16 %v10208_v16 }
0x2b7c   :  { %v13071_v22 = vpack.c.bf16 %v10205_v3, %v10204_v31  ;;  %v13075_v46 = vpack.c.bf16 %v10210_v28, %v10209_v43 }
0x2b7d   :  { %v10213_v12 = vpop.permute.xlu1 %10212  ;;  %v10218_v36 = vpop.permute.xlu0 %10217 }
0x2b7e   :  { %9857 = vmatprep.subr.msk.bf16.mxu1 %vm508_vm1, %v13071_v22  ;;  %v4832_v45 = vsel %vm508_vm1, %v13071_v22, 0  ;;  %v10215_v40 = vunpack.i.h.bf16 %v10213_v12  ;;  %v10214_v32 = vunpack.i.l.bf16 %v10213_v12  ;;  %v4835_v20 = vsel %vm508_vm1, %v13075_v46, 0 }
0x2b7f   :  { %9487 = vmatpush3.bf16.xpose.msra.mxu1 %v4832_v45  ;;  %v10220_v17 = vunpack.i.h.bf16 %v10218_v36  ;;  %v10219_v52 = vunpack.i.l.bf16 %v10218_v36 }
0x2b80   :  { %9858 = vmatprep.subr.msk.bf16.mxu1 %vm508_vm1, %v13075_v46  ;;  %v13081_v44 = vpack.c.bf16 %v10215_v40, %v10214_v32 }
0x2b81   :  { %v10223_v24 = vpop.permute.xlu1 %10222  ;;  %v4789_v48 = vpack.c.bf16 %v10220_v17, %v10219_v52  ;;  %v10228_v11 = vpop.permute.xlu0 %10227 }
0x2b82   :  { %v4838_v19 = vsel %vm508_vm1, %v13081_v44, 0  ;;  %v10225_v0 = vunpack.i.h.bf16 %v10223_v24  ;;  %v10224_v38 = vunpack.i.l.bf16 %v10223_v24  ;;  %v10230_v35 = vunpack.i.h.bf16 %v10228_v11 }
0x2b83   :  { %v10229_v47 = vunpack.i.l.bf16 %v10228_v11 }
0x2b84   :  { %v4790_v53 = vpack.c.bf16 %v10225_v0, %v10224_v38 }
0x2b85   :  { %v4791_v59 = vpack.c.bf16 %v10230_v35, %v10229_v47 }
0x2b87   :  { %9489 = vmatpush3.bf16.xpose.msra.mxu1 %v4835_v20 }
0x2b88   :  { %9859 = vmatprep.subr.msk.bf16.mxu1 %vm508_vm1, %v13081_v44 }
0x2b8f   :  { %9491 = vmatpush3.bf16.xpose.msra.mxu1 %v4838_v19 }
0x2b96   :  { %9493 = vmatmul.mubr.msk.bf16.vlgmr.msra.gmra.mrb[104].mxu1 %vm508_vm1, %v4789_v48 }
0x2b97   :  { %9496 = vmatprep.mubr.msk.bf16.mxu1 %vm508_vm1, %v4790_v53 }
0x2b9e   :  { %9497 = vmatmul.mubr.msk.bf16.gmra.mrb[108].mxu1 %vm508_vm1, %v4791_v59 }
0x2b9f   :  { %5401 = vmatprep.mubr.bf16.mxu1 %v11172_v50 }
0x2c69   :  { %v9494_v62 = vpop.f32.mrb[104].mxu1 }
0x2c6a   :  { %v4883_v25 = vadd.f32 %v12904_v15, %v9494_v62  ;;  %v4874_v27 = vpop.f32.mrb[105].mxu1 }
0x2c6b   :  { %v4875_v14 = vadd.f32 %v12898_v63, %v4874_v27  ;;  %v9495_v57 = vpop.f32.mrb[106].mxu1 }
0x2c6c   :  { %v4877_v13 = vpop.f32.mrb[107].mxu1  ;;  %v4911_v1 = vsel %vm120_vm0, %v4883_v25, -inf  ;;  %v4886_v51 = vadd.f32 %v12918_v18, %v9495_v57 }
0x2c6d   :  { %v4878_v41 = vadd.f32 %v12910_v55, %v4877_v13  ;;  %4912 = vmax.xlane.f32.xlu0 %v4911_v1  ;;  %v4905_v56 = vsel %vm120_vm0, %v4875_v14, -inf }
0x2c6e   :  { %4906 = vmax.xlane.f32.xlu1 %v4905_v56  ;;  %v4914_v3 = vsel %vm120_vm0, %v4886_v51, -inf }
0x2c6f   :  { %v4908_v49 = vsel %vm120_vm0, %v4878_v41, -inf }
0x2c71   :  { %v9498_v29 = vpop.f32.mrb[108].mxu1  ;;  %4909 = vmax.xlane.f32.xlu0 %v4908_v49 }
0x2c72   :  { %v4890_v15 = vpop.f32.mrb[109].mxu1  ;;  %v4899_v31 = vadd.f32 %v12952_v61, %v9498_v29 }
0x2c73   :  { %v4891_v16 = vadd.f32 %v12925_v54, %v4890_v15  ;;  %v9499_v63 = vpop.f32.mrb[110].mxu1 }
0x2c74   :  { %v4893_v6 = vpop.f32.mrb[111].mxu1  ;;  %v4902_v18 = vadd.f32 %v12940_v26, %v9499_v63  ;;  %v4923_v45 = vsel %vm120_vm0, %v4899_v31, -inf }
0x2c75   :  { %v4894_v55 = vadd.f32 %v12931_v58, %v4893_v6  ;;  %4915 = vmax.xlane.f32.xlu0 %v4914_v3  ;;  %v4917_v28 = vsel %vm120_vm0, %v4891_v16, -inf }
0x2c76   :  { %4918 = vmax.xlane.f32.xlu1 %v4917_v28  ;;  %v4926_v54 = vsel %vm120_vm0, %v4902_v18, -inf }
0x2c77   :  { %v4920_v43 = vsel %vm120_vm0, %v4894_v55, -inf }
0x2c79   :  { %4921 = vmax.xlane.f32.xlu0 %v4920_v43 }
0x2c7a   :  { %4924 = vmax.xlane.f32.xlu1 %v4923_v45 }
0x2c7d   :  { %4927 = vmax.xlane.f32.xlu0 %v4926_v54 }
0x2c8b   :  { %5001 = vrot.lane.b32.xlu1 %v13056_v9, %s14305_s21 }
0x2cfa   :  { %v4913_v61 = vpop.xlane.xlu0 %4912 }
0x2cfb   :  { %v4931_v58 = vsub.f32 %v4883_v25, %v4913_v61  ;;  %v4907_v12 = vpop.xlane.xlu1 %4906 }
0x2cfc   :  { %v4929_v40 = vsub.f32 %v4875_v14, %v4907_v12 }
0x2cfd   :  { %v4941_v32 = vmul.f32 1.442695, %v4931_v58 }
0x2cfe   :  { %v4937_v20 = vmul.f32 1.442695, %v4929_v40  ;;  %v4910_v36 = vpop.xlane.xlu0 %4909 }
0x2cff   :  { %10914 = vpow2.f32 %v4941_v32  ;;  %v4930_v26 = vsub.f32 %v4878_v41, %v4910_v36 }
0x2d00   :  { %10916 = vpow2.f32 %v4937_v20 }
0x2d01   :  { %v4939_v52 = vmul.f32 1.442695, %v4930_v26 }
0x2d02   :  { %v4916_v24 = vpop.xlane.xlu0 %4915 }
0x2d03   :  { %v4932_v19 = vsub.f32 %v4886_v51, %v4916_v24  ;;  %v4919_v17 = vpop.xlane.xlu1 %4918 }
0x2d04   :  { %v4933_v38 = vsub.f32 %v4891_v16, %v4919_v17 }
0x2d05   :  { %v4943_v0 = vmul.f32 1.442695, %v4932_v19 }
0x2d06   :  { %v4922_v48 = vpop.xlane.xlu0 %4921  ;;  %v4945_v47 = vmul.f32 1.442695, %v4933_v38 }
0x2d07   :  { %10918 = vpow2.f32 %v4943_v0  ;;  %v4925_v11 = vpop.xlane.xlu1 %4924  ;;  %v4934_v35 = vsub.f32 %v4894_v55, %v4922_v48 }
0x2d08   :  { %v4935_v9 = vsub.f32 %v4899_v31, %v4925_v11  ;;  %10920 = vpow2.f32 %v4939_v52 }
0x2d09   :  { %v13111_v53 = vpop.eup %10914  ;;  %v4947_v13 = vmul.f32 1.442695, %v4934_v35 }
0x2d0a   :  { %v4949_v59 = vmul.f32 1.442695, %v4935_v9  ;;  %v4928_v62 = vpop.xlane.xlu0 %4927  ;;  %v4959_v25 = vsel %vm120_vm0, %v13111_v53, 0.0  ;;  %v10917_v27 = vpop.eup %10916 }
0x2d0b   :  { %v4936_v14 = vsub.f32 %v4902_v18, %v4928_v62  ;;  %4960 = vadd.xlane.f32.xlu1 %v4959_v25  ;;  %v5002_v57 = vpop.permute.xlu1 %5001  ;;  %v4953_v41 = vsel %vm120_vm0, %v10917_v27, 0.0 }
0x2d0c   :  { %10922 = vpow2.f32 %v4949_v59  ;;  %9500 = vmatprep.subr.bf16.mxu0 %v5002_v57 }
0x2d0d   :  { %v4951_v1 = vmul.f32 1.442695, %v4936_v14  ;;  %9501 = vmatpush3.bf16.msra.mxu0 %v5002_v57  ;;  %10924 = vpow2.f32 %v4945_v47  ;;  %v10561_v57 = vld [vmem:[%s14243_s2 + $0x68] sm:$0xff]  }
0x2d0f   :  { %10926 = vpow2.f32 %v4951_v1  ;;  %4954 = vadd.xlane.f32.xlu1 %v4953_v41 }
0x2d10   :  { %10928 = vpow2.f32 %v4947_v13  ;;  %v10562_v13 = vld [vmem:[%s14243_s2 + $0x70] sm:$0xff]  }
0x2d11   :  { %v10919_v56 = vpop.eup %10918 }
0x2d12   :  { %v4962_v49 = vsel %vm120_vm0, %v10919_v56, 0.0  ;;  %v10921_v51 = vpop.eup %10920 }
0x2d13   :  { %4963 = vadd.xlane.f32.xlu0 %v4962_v49  ;;  %v4956_v15 = vsel %vm120_vm0, %v10921_v51, 0.0  ;;  %v10563_v49 = vld [vmem:[%s14243_s2 + $0x78] sm:$0xff]  }
0x2d16   :  { %v13117_v29 = vpop.eup %10922 }
0x2d17   :  { %4957 = vadd.xlane.f32.xlu0 %v4956_v15  ;;  %v4971_v16 = vsel %vm120_vm0, %v13117_v29, 0.0  ;;  %v10925_v63 = vpop.eup %10924 }
0x2d18   :  { %4972 = vadd.xlane.f32.xlu1 %v4971_v16  ;;  %v4965_v55 = vsel %vm120_vm0, %v10925_v63, 0.0 }
0x2d19   :  { %v10927_v6 = vpop.eup %10926 }
0x2d1a   :  { %v4974_v3 = vsel %vm120_vm0, %v10927_v6, 0.0  ;;  %v10929_v31 = vpop.eup %10928 }
0x2d1b   :  { %4975 = vadd.xlane.f32.xlu0 %v4974_v3  ;;  %v4968_v28 = vsel %vm120_vm0, %v10929_v31, 0.0 }
0x2d1c   :  { %4966 = vadd.xlane.f32.xlu1 %v4965_v55  ;;  %v13161_v55 = vld [vmem:[%s14241_s0 + $0x10] sm:$0x7f] }
0x2d1f   :  { %4969 = vadd.xlane.f32.xlu0 %v4968_v28  ;;  %v4468_v28 = vrot.slane %v13161_v55, %v11806_v42 }
0x2d2d   :  { %5005 = vrot.lane.b32.xlu1 %v13075_v46, %s14305_s21 }
0x2d31   :  { %5007 = vrot.lane.b32.xlu1 %v13081_v44, %s14305_s21 }
0x2d35   :  { %5003 = vrot.lane.b32.xlu0 %v13071_v22, %s14305_s21 }
0x2d98   :  { %v4961_v43 = vpop.xlane.xlu1 %4960 }
0x2d9c   :  { %v4955_v18 = vpop.xlane.xlu1 %4954 }
0x2d9d   :  { %10930 = vrcp.f32 %v4955_v18 }
0x2da0   :  { %v4964_v45 = vpop.xlane.xlu0 %4963 }
0x2da4   :  { %v4958_v54 = vpop.xlane.xlu0 %4957 }
0x2da5   :  { %10932 = vrcp.f32 %v4958_v54  ;;  %v4973_v61 = vpop.xlane.xlu1 %4972 }
0x2da6   :  { %10934 = vrcp.f32 %v4964_v45  ;;  %v4534_v45 = vadd.f32 %v13052_v37, %v4468_v28 }
0x2da7   :  { %10936 = vrcp.f32 %v4961_v43  ;;  %v10931_v46 = vpop.eup %10930  ;;  %v4531_v43 = vadd.f32 %v13050_v23, %v4468_v28 }
0x2da8   :  { %v4976_v58 = vpop.xlane.xlu0 %4975  ;;  %v4985_v36 = vmul.f32 %v10931_v46, %v10917_v27  ;;  %v4538_v54 = vadd.f32 %v4534_v45, %v12747_v7 }
0x2da9   :  { %v4967_v12 = vpop.xlane.xlu1 %4966  ;;  %v4537_v18 = vadd.f32 %v4531_v43, %v12743_v39 }
0x2daa   :  { %10938 = vrcp.f32 %v4967_v12 }
0x2dac   :  { %v4970_v40 = vpop.xlane.xlu0 %4969 }
0x2dad   :  { %10940 = vrcp.f32 %v4970_v40  ;;  %v5006_v44 = vpop.permute.xlu1 %5005 }
0x2dae   :  { %10942 = vrcp.f32 %v4976_v58  ;;  %v4542_v58 = vsel %vm120_vm0, %v4538_v54, 0.0 }
0x2daf   :  { %v10933_v32 = vpop.eup %10932  ;;  %10944 = vrcp.f32 %v4973_v61  ;;  %v4539_v61 = vsel %vm120_vm0, %v4537_v18, 0.0 }
0x2db0   :  { %v5004_v20 = vpop.permute.xlu0 %5003  ;;  %v4986_v22 = vmul.f32 %v10933_v32, %v10921_v51  ;;  %v10935_v24 = vpop.eup %10934 }
0x2db1   :  { %9502 = vmatprep.subr.bf16.mxu0 %v5004_v20  ;;  %v10937_v19 = vpop.eup %10936  ;;  %v5008_v52 = vpop.permute.xlu1 %5007  ;;  %v4988_v38 = vmul.f32 %v10935_v24, %v10919_v56 }
0x2db2   :  { %9503 = vmatpush3.bf16.msra.mxu0 %v5004_v20  ;;  %v4993_v26 = vpack.c.bf16 %v4986_v22, %v4985_v36  ;;  %v4987_v11 = vmul.f32 %v10937_v19, %v13111_v53  ;;  %v10560_v53 = vld [vmem:[%s14243_s2 + $0x60] sm:$0xff]  }
0x2db3   :  { %9504 = vmatprep.subr.bf16.mxu0 %v5006_v44 }
0x2db4   :  { %9508 = vmatprep.mubr.msk.bf16.mxu0 %vm120_vm0, %v4993_v26  ;;  %v10939_v17 = vpop.eup %10938  ;;  %v4994_v35 = vpack.c.bf16 %v4988_v38, %v4987_v11 }
0x2db5   :  { %v4989_v9 = vmul.f32 %v10939_v17, %v10925_v63 }
0x2db6   :  { %9505 = vmatpush3.bf16.msra.mxu0 %v5006_v44 }
0x2db7   :  { %v10941_v0 = vpop.eup %10940  ;;  %9506 = vmatprep.subr.bf16.mxu0 %v5008_v52 }
0x2db8   :  { %v4990_v48 = vmul.f32 %v10941_v0, %v10929_v31  ;;  %v10943_v47 = vpop.eup %10942 }
0x2db9   :  { %v10945_v62 = vpop.eup %10944  ;;  %v4992_v25 = vmul.f32 %v10943_v47, %v10927_v6 }
0x2dba   :  { %9507 = vmatpush3.bf16.msra.mxu0 %v5008_v52  ;;  %v4995_v59 = vpack.c.bf16 %v4990_v48, %v4989_v9  ;;  %v4991_v27 = vmul.f32 %v10945_v62, %v13117_v29  ;;  %v13182_v9 = vld [vmem:[%s14241_s0 + $0x18] sm:$0x7f] }
0x2dbb   :  { %9516 = vmatprep.subr.bf16.mxu0 %v11180_v2 }
0x2dbc   :  { %v4996_v14 = vpack.c.bf16 %v4992_v25, %v4991_v27 }
0x2dbd   :  { %9509 = vmatmul.mubr.msk.bf16.vlgmr.msra.gmra.mrb[96].mxu0 %vm120_vm0, %v4994_v35  ;;  %v5124_v35 = vrot.slane %v13182_v9, %v11806_v42 }
0x2dbe   :  { %9512 = vmatprep.mubr.msk.bf16.mxu0 %vm120_vm0, %v4995_v59  ;;  %9517 = vmatpush3.bf16.msra.mxu0 %v10560_v53 }
0x2dbf   :  { %9518 = vmatprep.subr.bf16.mxu0 %v11180_v2 }
0x2dc2   :  { %9519 = vmatpush3.bf16.msra.mxu0 %v10561_v57 }
0x2dc3   :  { %9520 = vmatprep.subr.bf16.mxu0 %v11180_v2 }
0x2dc5   :  { %9513 = vmatmul.mubr.msk.bf16.gmra.mrb[100].mxu0 %vm120_vm0, %v4996_v14 }
0x2dc6   :  { %9524 = vmatprep.mubr.msk.bf16.mxu0 %vm11181_vm4, %v11180_v2  ;;  %9521 = vmatpush3.bf16.msra.mxu0 %v10562_v13 }
0x2dc7   :  { %9522 = vmatprep.subr.bf16.mxu0 %v11180_v2 }
0x2dca   :  { %9523 = vmatpush3.bf16.msra.mxu0 %v10563_v49 }
0x2e90   :  { %v9510_v1 = vpop.f32.mrb[96].mxu0 }
0x2e91   :  { %v5059_v41 = vpop.f32.mrb[97].mxu0 }
0x2e92   :  { %v9511_v56 = vpop.f32.mrb[98].mxu0 }
0x2e93   :  { %v10231_v51 = vpack.i.bf16 %v9511_v56, %v9510_v1  ;;  %v5062_v29 = vpop.f32.mrb[99].mxu0 }
0x2e95   :  { %10232 = vrot.lane.b32.xlu1 %v10231_v51, %s14307_s22 }
0x2e98   :  { %v9514_v15 = vpop.f32.mrb[100].mxu0 }
0x2e99   :  { %v5075_v16 = vpop.f32.mrb[101].mxu0 }
0x2e9a   :  { %v9515_v63 = vpop.f32.mrb[102].mxu0 }
0x2e9b   :  { %v10241_v6 = vpack.i.bf16 %v9515_v63, %v9514_v15  ;;  %v5078_v3 = vpop.f32.mrb[103].mxu0 }
0x2e9c   :  { %v10236_v31 = vpack.i.bf16 %v5078_v3, %v5075_v16 }
0x2e9d   :  { %10242 = vrot.lane.b32.xlu1 %v10241_v6, %s14309_s6 }
0x2e9e   :  { %10237 = vrot.lane.b32.xlu0 %v10236_v31, %s14308_s12 }
0x2ebd   :  { %4540 = vadd.xlane.f32.xlu0 %v4539_v61 }
0x2ec1   :  { %4543 = vadd.xlane.f32.xlu1 %v4542_v58 }
0x2f07   :  { %v10233_v12 = vpop.permute.xlu1 %10232 }
0x2f08   :  { %v10235_v40 = vunpack.i.h.bf16 %v10233_v12  ;;  %v10234_v46 = vunpack.i.l.bf16 %v10233_v12  ;;  %v4574_v12 = vrot.slane %v13161_v55, %v11788_v60 }
0x2f0a   :  { %v5114_v23 = vsel %vm508_vm1, %v5059_v41, %v10234_v46  ;;  %v5115_v39 = vsel %vm508_vm1, %v5062_v29, %v10235_v40 }
0x2f0f   :  { %v10243_v32 = vpop.permute.xlu1 %10242 }
0x2f10   :  { %v10238_v44 = vpop.permute.xlu0 %10237  ;;  %v10245_v37 = vunpack.i.h.bf16 %v10243_v32  ;;  %v10244_v22 = vunpack.i.l.bf16 %v10243_v32 }
0x2f11   :  { %v10240_v20 = vunpack.i.h.bf16 %v10238_v44  ;;  %v10239_v36 = vunpack.i.l.bf16 %v10238_v44 }
0x2f13   :  { %v5117_v7 = vsel %vm955_vm2, %v5115_v39, %v10240_v20  ;;  %v5116_v26 = vsel %vm955_vm2, %v5114_v23, %v10239_v36 }
0x2f14   :  { %v5119_v24 = vsel %vm960_vm3, %v5117_v7, %v10245_v37  ;;  %v5118_v19 = vsel %vm960_vm3, %v5116_v26, %v10244_v22 }
0x2f15   :  { %v5120_v17 = vpack.c.bf16 %v5119_v24, %v5118_v19 }
0x2f17   :  { %9525 = vmatmul.mubr.msk.bf16.vlgmr.msra.gmra.mrb[104].mxu0 %vm120_vm0, %v5120_v17 }
0x2f4a   :  { %v4541_v47 = vpop.xlane.xlu0 %4540 }
0x2f4b   :  { %v4545_v62 = vmul.f32 0.015625, %v4541_v47  ;;  %v5230_v47 = vrot.slane %v13182_v9, %v11788_v60 }
0x2f4d   :  { %v4547_v1 = vsub.f32 %v4537_v18, %v4545_v62 }
0x2f4e   :  { %v4544_v52 = vpop.xlane.xlu1 %4543 }
0x2f4f   :  { %v4546_v0 = vmul.f32 0.015625, %v4544_v52  ;;  %v4549_v51 = vmul.f32 %v4547_v1, %v4547_v1 }
0x2f51   :  { %v4548_v38 = vsub.f32 %v4538_v54, %v4546_v0  ;;  %v4551_v29 = vsel %vm120_vm0, %v4549_v51, 0.0 }
0x2f53   :  { %v4550_v48 = vmul.f32 %v4548_v38, %v4548_v38 }
0x2f55   :  { %v4554_v11 = vsel %vm120_vm0, %v4550_v48, 0.0 }
0x2f56   :  { %4555 = vadd.xlane.f32.xlu1 %v4554_v11 }
0x2fe3   :  { %v4556_v15 = vpop.xlane.xlu1 %4555 }
0x2fe4   :  { %v4558_v16 = vmul.f32 0.015625, %v4556_v15 }
0x2fe6   :  { %v4560_v63 = vadd.f32 1e-05, %v4558_v16 }
0x2fe8   :  { %10946 = vrsqrt.f32 %v4560_v63  ;;  %v10566_v63 = vld [vmem:[%s14297_s23 + $0x84] ss:$8 sps:$4 sm:$0xff]  }
0x2fe9   :  { %5369 = vmatprep.subr.bf16.mxu1 %v10566_v63 }
0x2fea   :  { %v5186_v59 = vpop.f32.mrb[104].mxu0 }
0x2feb   :  { %v5187_v25 = vadd.f32 %v5186_v59, %v5124_v35  ;;  %v9526_v27 = vpop.f32.mrb[105].mxu0 }
0x2fec   :  { %v5189_v14 = vpop.f32.mrb[106].mxu0 }
0x2fed   :  { %v5193_v53 = vadd.f32 %v5187_v25, %v12733_v8  ;;  %v5190_v57 = vadd.f32 %v5189_v14, %v5124_v35  ;;  %v9527_v13 = vpop.f32.mrb[107].mxu0 }
0x2fef   :  { %v5194_v41 = vadd.f32 %v5190_v57, %v12739_v4  ;;  %v5195_v56 = vsel %vm120_vm0, %v5193_v53, 0.0  ;;  %v4568_v4 = vrot.slane %v13161_v55, %v11783_v30 }
0x2ff0   :  { %5196 = vadd.xlane.f32.xlu0 %v5195_v56 }
0x2ff1   :  { %v5198_v49 = vsel %vm120_vm0, %v5194_v41, 0.0 }
0x2ff2   :  { %v10947_v8 = vpop.eup %10946 }
0x2ff3   :  { %v4564_v28 = vmul.f32 %v10947_v8, %v4548_v38  ;;  %v5224_v38 = vrot.slane %v13182_v9, %v11783_v30  ;;  %v10564_v8 = vld [vmem:[%s14297_s23 + $0x80] ss:$8 sps:$4 sm:$0xff]  }
0x2ff4   :  { %5199 = vadd.xlane.f32.xlu0 %v5198_v49  ;;  %5370 = vmatpush1.bf16.msra.mxu1 %v10564_v8  ;;  %v8464_v8 = vld [vmem:[%s14298_s28 + $0x28] sm:$0xff] }
0x2ff5   :  { %v4570_v58 = vmul.f32 %v4568_v4, %v4564_v28  ;;  %v10570_v28 = vld [vmem:[%s14297_s23 + $0xa0] ss:$8 sps:$4 sm:$0xff]  }
0x2ff7   :  { %v13197_v36 = vadd.f32 %v4574_v12, %v4570_v58 }
0x2ff8   :  { %4552 = vadd.xlane.f32.xlu0 %v4551_v29 }
0x2ff9   :  { %v5239_v23 = vsel %vm120_vm0, %v13197_v36, 0.0 }
0x307d   :  { %v5197_v6 = vpop.xlane.xlu0 %5196 }
0x307e   :  { %v5201_v3 = vmul.f32 0.015625, %v5197_v6  ;;  %v10569_v6 = vld [vmem:[%s14297_s23 + $0x94] ss:$8 sps:$4 sm:$0xff]  }
0x307f   :  { %5371 = vmatprep.subr.bf16.mxu1 %v10569_v6 }
0x3080   :  { %v5203_v31 = vsub.f32 %v5193_v53, %v5201_v3  ;;  %v10567_v3 = vld [vmem:[%s14297_s23 + $0x90] ss:$8 sps:$4 sm:$0xff]  }
0x3081   :  { %v5200_v43 = vpop.xlane.xlu0 %5199  ;;  %5372 = vmatpush1.bf16.msra.mxu1 %v10567_v3 }
0x3082   :  { %v5202_v18 = vmul.f32 0.015625, %v5200_v43  ;;  %v5205_v45 = vmul.f32 %v5203_v31, %v5203_v31  ;;  %v10573_v43 = vld [vmem:[%s14297_s23 + $0xb0] ss:$8 sps:$4 sm:$0xff]  }
0x3084   :  { %v5204_v54 = vsub.f32 %v5194_v41, %v5202_v18  ;;  %v5207_v61 = vsel %vm120_vm0, %v5205_v45, 0.0 }
0x3085   :  { %5208 = vadd.xlane.f32.xlu0 %v5207_v61  ;;  %v4553_v40 = vpop.xlane.xlu0 %4552 }
0x3086   :  { %v4557_v46 = vmul.f32 0.015625, %v4553_v40  ;;  %v5206_v32 = vmul.f32 %v5204_v54, %v5204_v54 }
0x3088   :  { %v4559_v44 = vadd.f32 1e-05, %v4557_v46  ;;  %v5210_v20 = vsel %vm120_vm0, %v5206_v32, 0.0 }
0x3089   :  { %5211 = vadd.xlane.f32.xlu1 %v5210_v20 }
0x308a   :  { %10948 = vrsqrt.f32 %v4559_v44 }
0x308d   :  { %5240 = vadd.xlane.f32.xlu1 %v5239_v23 }
0x3094   :  { %v10949_v39 = vpop.eup %10948 }
0x3095   :  { %v4563_v37 = vmul.f32 %v10949_v39, %v4547_v1 }
0x3097   :  { %v4569_v22 = vmul.f32 %v4568_v4, %v4563_v37  ;;  %v10575_v4 = vld [vmem:[%s14297_s23 + $0xb4] ss:$8 sps:$4 sm:$0xff]  }
0x3099   :  { %v13201_v7 = vadd.f32 %v4574_v12, %v4569_v22 }
0x309b   :  { %v5236_v55 = vsel %vm120_vm0, %v13201_v7, 0.0 }
0x309c   :  { %5237 = vadd.xlane.f32.xlu0 %v5236_v55 }
0x3112   :  { %v5209_v26 = vpop.xlane.xlu0 %5208 }
0x3113   :  { %v5213_v24 = vmul.f32 0.015625, %v5209_v26  ;;  %v13252_v26 = vld [vmem:[%s14298_s28 + $0x20] sm:$0xff] }
0x3114   :  { %v5318_v6 = vrot.slane %v13252_v26, %v11421_v33 }
0x3115   :  { %v5215_v19 = vadd.f32 1e-05, %v5213_v24  ;;  %v5291_v24 = vrot.slane %v13252_v26, %v11405_v5 }
0x3116   :  { %v5212_v17 = vpop.xlane.xlu1 %5211 }
0x3117   :  { %10950 = vrsqrt.f32 %v5215_v19  ;;  %v5214_v52 = vmul.f32 0.015625, %v5212_v17 }
0x3119   :  { %v5216_v0 = vadd.f32 1e-05, %v5214_v52  ;;  %v5299_v52 = vrot.slane %v13252_v26, %v11412_v10 }
0x311a   :  { %v5241_v11 = vpop.xlane.xlu1 %5240 }
0x311b   :  { %10952 = vrsqrt.f32 %v5216_v0  ;;  %v5249_v59 = vmul.f32 0.015625, %v5241_v11 }
0x311d   :  { %v5253_v53 = vsub.f32 %v13197_v36, %v5249_v59 }
0x311f   :  { %v5257_v51 = vmul.f32 %v5253_v53, %v5253_v53 }
0x3121   :  { %v10951_v48 = vpop.eup %10950  ;;  %v5263_v15 = vsel %vm120_vm0, %v5257_v51, 0.0 }
0x3122   :  { %v5219_v35 = vmul.f32 %v10951_v48, %v5203_v31  ;;  %v10572_v31 = vld [vmem:[%s14297_s23 + $0xa4] ss:$8 sps:$4 sm:$0xff]  }
0x3123   :  { %5373 = vmatprep.subr.bf16.mxu1 %v10572_v31  ;;  %v5322_v31 = vrot.slane %v8464_v8, %v11421_v33 }
0x3124   :  { %v5225_v62 = vmul.f32 %v5224_v38, %v5219_v35  ;;  %5374 = vmatpush1.bf16.msra.mxu1 %v10570_v28 }
0x3125   :  { %v10953_v25 = vpop.eup %10952  ;;  %5375 = vmatprep.subr.bf16.mxu1 %v10575_v4 }
0x3126   :  { %v13209_v27 = vadd.f32 %v5230_v47, %v5225_v62  ;;  %v5220_v14 = vmul.f32 %v10953_v25, %v5204_v54 }
0x3128   :  { %v5242_v57 = vsel %vm120_vm0, %v13209_v27, 0.0  ;;  %v5226_v13 = vmul.f32 %v5224_v38, %v5220_v14  ;;  %5376 = vmatpush1.bf16.msra.mxu1 %v10573_v43 }
0x3129   :  { %5243 = vadd.xlane.f32.xlu0 %v5242_v57  ;;  %v5238_v1 = vpop.xlane.xlu0 %5237 }
0x312a   :  { %v5248_v41 = vmul.f32 0.015625, %v5238_v1  ;;  %v13214_v56 = vadd.f32 %v5230_v47, %v5226_v13 }
0x312c   :  { %v5252_v49 = vsub.f32 %v13201_v7, %v5248_v41  ;;  %v5245_v9 = vsel %vm120_vm0, %v13214_v56, 0.0 }
0x312d   :  { %5246 = vadd.xlane.f32.xlu1 %v5245_v9 }
0x312e   :  { %v5256_v29 = vmul.f32 %v5252_v49, %v5252_v49 }
0x3130   :  { %v5260_v16 = vsel %vm120_vm0, %v5256_v29, 0.0 }
0x3131   :  { %5264 = vadd.xlane.f32.xlu1 %v5263_v15  ;;  %5261 = vadd.xlane.f32.xlu0 %v5260_v16 }
0x31b6   :  { %v5244_v18 = vpop.xlane.xlu0 %5243 }
0x31b7   :  { %v5250_v45 = vmul.f32 0.015625, %v5244_v18 }
0x31b9   :  { %v5254_v54 = vsub.f32 %v13209_v27, %v5250_v45 }
0x31ba   :  { %v5247_v61 = vpop.xlane.xlu1 %5246 }
0x31bb   :  { %v5251_v58 = vmul.f32 0.015625, %v5247_v61  ;;  %v5258_v12 = vmul.f32 %v5254_v54, %v5254_v54 }
0x31bd   :  { %v5255_v40 = vsub.f32 %v13214_v56, %v5251_v58  ;;  %v5266_v46 = vsel %vm120_vm0, %v5258_v12, 0.0 }
0x31be   :  { %v5265_v32 = vpop.xlane.xlu1 %5264  ;;  %5267 = vadd.xlane.f32.xlu0 %v5266_v46  ;;  %v5262_v44 = vpop.xlane.xlu0 %5261 }
0x31bf   :  { %v5273_v20 = vmul.f32 0.015625, %v5265_v32  ;;  %v5272_v23 = vmul.f32 0.015625, %v5262_v44  ;;  %v5259_v39 = vmul.f32 %v5255_v40, %v5255_v40 }
0x31c1   :  { %v5277_v37 = vadd.f32 1e-05, %v5273_v20  ;;  %v5276_v22 = vadd.f32 1e-05, %v5272_v23  ;;  %v5269_v55 = vsel %vm120_vm0, %v5259_v39, 0.0 }
0x31c2   :  { %5270 = vadd.xlane.f32.xlu1 %v5269_v55 }
0x31c3   :  { %10954 = vrsqrt.f32 %v5277_v37 }
0x31c4   :  { %10956 = vrsqrt.f32 %v5276_v22 }
0x31cd   :  { %v10955_v19 = vpop.eup %10954 }
0x31ce   :  { %v10957_v17 = vpop.eup %10956  ;;  %v5285_v0 = vmul.f32 %v10955_v19, %v5253_v53 }
0x31cf   :  { %v5284_v38 = vmul.f32 %v10957_v17, %v5252_v49 }
0x31d0   :  { %v5293_v48 = vmul.f32 %v5291_v24, %v5285_v0 }
0x31d1   :  { %v5292_v11 = vmul.f32 %v5291_v24, %v5284_v38 }
0x31d2   :  { %v5301_v35 = vadd.f32 %v5299_v52, %v5293_v48 }
0x31d3   :  { %v5300_v47 = vadd.f32 %v5299_v52, %v5292_v11 }
0x31d5   :  { %v5313_v59 = vpack.c.bf16 %v5301_v35, %v5300_v47 }
0x31d7   :  { %8481 = vmatmul.mubr.msk.bf16.vlgmr.msra.gmra.mrb[112].mxu1 %vm120_vm0, %v5313_v59 }
0x31d8   :  { %5411 = vmatprep.mubr.bf16.mxu1 %v11172_v50 }
0x324b   :  { %v5268_v62 = vpop.xlane.xlu0 %5267 }
0x324c   :  { %v5274_v25 = vmul.f32 0.015625, %v5268_v62 }
0x324e   :  { %v5278_v14 = vadd.f32 1e-05, %v5274_v25 }
0x324f   :  { %v5271_v57 = vpop.xlane.xlu1 %5270 }
0x3250   :  { %10958 = vrsqrt.f32 %v5278_v14  ;;  %v5275_v13 = vmul.f32 0.015625, %v5271_v57 }
0x3252   :  { %v5279_v1 = vadd.f32 1e-05, %v5275_v13 }
0x3254   :  { %10960 = vrsqrt.f32 %v5279_v1 }
0x325a   :  { %v10959_v41 = vpop.eup %10958 }
0x325b   :  { %v5286_v53 = vmul.f32 %v10959_v41, %v5254_v54 }
0x325d   :  { %v5294_v51 = vmul.f32 %v5291_v24, %v5286_v53 }
0x325e   :  { %v10961_v49 = vpop.eup %10960 }
0x325f   :  { %v5287_v9 = vmul.f32 %v10961_v49, %v5255_v40  ;;  %v5302_v15 = vadd.f32 %v5299_v52, %v5294_v51 }
0x3261   :  { %v5295_v29 = vmul.f32 %v5291_v24, %v5287_v9 }
0x3263   :  { %v5303_v16 = vadd.f32 %v5299_v52, %v5295_v29 }
0x3265   :  { %v5314_v63 = vpack.c.bf16 %v5303_v16, %v5302_v15 }
0x3267   :  { %8482 = vmatmul.mubr.msk.bf16.gmra.mrb[116].mxu1 %vm120_vm0, %v5314_v63 }
0x32aa   :  { %v5403_v3 = vpop.f32.mrb[112].mxu1 }
0x32ab   :  { %v5405_v28 = vpop.f32.mrb[113].mxu1  ;;  %v5404_v43 = vadd.f32 %v5403_v3, %v5318_v6 }
0x32ac   :  { %v5407_v4 = vpop.f32.mrb[114].mxu1  ;;  %v5406_v54 = vadd.f32 %v5405_v28, %v5322_v31 }
0x32ad   :  { %v5408_v18 = vadd.f32 %v5407_v4, %v5318_v6  ;;  %v5409_v45 = vpop.f32.mrb[115].mxu1 }
0x32ae   :  { %v5410_v61 = vadd.f32 %v5409_v45, %v5322_v31 }
0x32af   :  { %v10246_v58 = vpack.i.bf16 %v5408_v18, %v5404_v43  ;;  %v5471_v12 = vpack.c.bf16 %v5408_v18, %v5404_v43 }
0x32b0   :  { %v5519_v40 = vpack.c.bf16 %v5410_v61, %v5406_v54  ;;  %v13267_v46 = vpack.i.bf16 %v5410_v61, %v5406_v54 }
0x32b1   :  { %10247 = vrot.lane.b32.xlu0 %v10246_v58, %s14303_s27  ;;  %9544 = vmatprep.mubr.msk.bf16.mxu0 %vm508_vm1, %v5471_v12 }
0x32b2   :  { %9560 = vmatprep.subr.bf16.mxu1 %v5519_v40 }
0x32b3   :  { %9561 = vmatpush3.bf16.msra.mxu1 %v5519_v40 }
0x32b5   :  { %10267 = vrot.lane.b32.xlu0 %v10246_v58, %s14304_s7 }
0x32b9   :  { %5551 = vrot.lane.b32.xlu0 %v5471_v12, %s14305_s21 }
0x3323   :  { %v10248_v32 = vpop.permute.xlu0 %10247 }
0x3324   :  { %v10250_v44 = vunpack.i.h.bf16 %v10248_v32  ;;  %v10249_v20 = vunpack.i.l.bf16 %v10248_v32 }
0x3326   :  { %v13273_v23 = vpack.c.bf16 %v10250_v44, %v10249_v20 }
0x3327   :  { %v10268_v39 = vpop.permute.xlu0 %10267 }
0x3328   :  { %5555 = vrot.lane.b32.xlu0 %v13273_v23, %s14305_s21  ;;  %v10270_v53 = vunpack.i.h.bf16 %v10268_v39  ;;  %v10269_v49 = vunpack.i.l.bf16 %v10268_v39 }
0x332a   :  { %v5477_v16 = vpack.c.bf16 %v10270_v53, %v10269_v49 }
0x332b   :  { %v5552_v37 = vpop.permute.xlu0 %5551 }
0x332c   :  { %9860 = vmatprep.subr.msk.bf16.mxu0 %vm508_vm1, %v5552_v37  ;;  %v5592_v22 = vsel %vm508_vm1, %v5552_v37, 0 }
0x332d   :  { %9529 = vmatpush3.bf16.xpose.msra.mxu0 %v5592_v22 }
0x333a   :  { %v5413_v55 = vpop.f32.mrb[116].mxu1 }
0x333b   :  { %v5415_v24 = vpop.f32.mrb[117].mxu1  ;;  %v5414_v17 = vadd.f32 %v5413_v55, %v5318_v6 }
0x333c   :  { %v5417_v19 = vpop.f32.mrb[118].mxu1  ;;  %v5416_v38 = vadd.f32 %v5415_v24, %v5322_v31 }
0x333d   :  { %v5418_v52 = vadd.f32 %v5417_v19, %v5318_v6  ;;  %v5419_v0 = vpop.f32.mrb[119].mxu1 }
0x333e   :  { %v5420_v48 = vadd.f32 %v5419_v0, %v5322_v31 }
0x333f   :  { %v10251_v11 = vpack.i.bf16 %v5418_v52, %v5414_v17  ;;  %v13279_v35 = vpack.c.bf16 %v5418_v52, %v5414_v17 }
0x3340   :  { %v5520_v47 = vpack.c.bf16 %v5420_v48, %v5416_v38  ;;  %v13281_v59 = vpack.i.bf16 %v5420_v48, %v5416_v38  ;;  %v5529_v38 = vld [vmem:[%s14244_s14 + $0x10] sm:$0xff] }
0x3341   :  { %10252 = vrot.lane.b32.xlu1 %v10251_v11, %s14303_s27 }
0x3342   :  { %9562 = vmatprep.subr.bf16.mxu1 %v5520_v47 }
0x3343   :  { %9563 = vmatpush3.bf16.msra.mxu1 %v5520_v47  ;;  %v5527_v47 = vld [vmem:[%s14244_s14] sm:$0xff] }
0x3345   :  { %10257 = vrot.lane.b32.xlu1 %v10246_v58, %s14306_s30 }
0x3349   :  { %10262 = vrot.lane.b32.xlu1 %v10251_v11, %s14306_s30 }
0x334d   :  { %10272 = vrot.lane.b32.xlu1 %v10251_v11, %s14304_s7 }
0x3351   :  { %5553 = vrot.lane.b32.xlu1 %v13279_v35, %s14305_s21 }
0x339a   :  { %v5556_v43 = vpop.permute.xlu0 %5555 }
0x339b   :  { %v5598_v18 = vsel %vm508_vm1, %v5556_v43, 0 }
0x33b3   :  { %v10253_v62 = vpop.permute.xlu1 %10252 }
0x33b4   :  { %v10255_v25 = vunpack.i.h.bf16 %v10253_v62  ;;  %v10254_v14 = vunpack.i.l.bf16 %v10253_v62 }
0x33b6   :  { %v13289_v57 = vpack.c.bf16 %v10255_v25, %v10254_v14 }
0x33b7   :  { %v10258_v13 = vpop.permute.xlu1 %10257 }
0x33b8   :  { %v10260_v1 = vunpack.i.h.bf16 %v10258_v13  ;;  %v10259_v41 = vunpack.i.l.bf16 %v10258_v13  ;;  %5557 = vrot.lane.b32.xlu1 %v13289_v57, %s14305_s21  ;;  %v5530_v13 = vld [vmem:[%s14244_s14 + $0x18] sm:$0xff] }
0x33ba   :  { %v5475_v9 = vpack.c.bf16 %v10260_v1, %v10259_v41  ;;  %v5534_v41 = vld [vmem:[%s14244_s14 + $0x38] sm:$0xff] }
0x33bb   :  { %v10263_v51 = vpop.permute.xlu1 %10262 }
0x33bc   :  { %v10265_v29 = vunpack.i.h.bf16 %v10263_v51  ;;  %v10264_v15 = vunpack.i.l.bf16 %v10263_v51  ;;  %5559 = vrot.lane.b32.xlu0 %v5475_v9, %s14305_s21 }
0x33be   :  { %v5476_v63 = vpack.c.bf16 %v10265_v29, %v10264_v15 }
0x33bf   :  { %v10273_v8 = vpop.permute.xlu1 %10272 }
0x33c0   :  { %v10275_v6 = vunpack.i.h.bf16 %v10273_v8  ;;  %v10274_v3 = vunpack.i.l.bf16 %v10273_v8  ;;  %5561 = vrot.lane.b32.xlu1 %v5476_v63, %s14305_s21  ;;  %5563 = vrot.lane.b32.xlu0 %v5477_v16, %s14305_s21  ;;  %v5531_v8 = vld [vmem:[%s14244_s14 + $0x20] sm:$0xff] }
0x33c2   :  { %v5478_v31 = vpack.c.bf16 %v10275_v6, %v10274_v3 }
0x33c3   :  { %v5554_v28 = vpop.permute.xlu1 %5553 }
0x33c4   :  { %5565 = vrot.lane.b32.xlu1 %v5478_v31, %s14305_s21  ;;  %9861 = vmatprep.subr.msk.bf16.mxu0 %vm508_vm1, %v5554_v28  ;;  %v5595_v4 = vsel %vm508_vm1, %v5554_v28, 0 }
0x33c5   :  { %10277 = vrot.lane.b32.xlu0 %v13267_v46, %s14303_s27  ;;  %9531 = vmatpush3.bf16.xpose.msra.mxu0 %v5595_v4 }
0x33c6   :  { %9862 = vmatprep.subr.msk.bf16.mxu0 %vm508_vm1, %v5556_v43  ;;  %v5537_v43 = vld [vmem:[%s14244_s14 + $0x50] sm:$0xff] }
0x33c8   :  { %10282 = vrot.lane.b32.xlu1 %v13281_v59, %s14303_s27 }
0x33cd   :  { %9533 = vmatpush3.bf16.xpose.msra.mxu0 %v5598_v18 }
0x342a   :  { %v5558_v45 = vpop.permute.xlu1 %5557 }
0x342b   :  { %9863 = vmatprep.subr.msk.bf16.mxu0 %vm508_vm1, %v5558_v45  ;;  %v5601_v54 = vsel %vm508_vm1, %v5558_v45, 0 }
0x342c   :  { %9535 = vmatpush3.bf16.xpose.msra.mxu0 %v5601_v54 }
0x342e   :  { %v5560_v61 = vpop.permute.xlu0 %5559 }
0x342f   :  { %9864 = vmatprep.subr.msk.bf16.mxu0 %vm508_vm1, %v5560_v61  ;;  %v5604_v40 = vsel %vm508_vm1, %v5560_v61, 0  ;;  %v5536_v61 = vld [vmem:[%s14244_s14 + $0x48] sm:$0xff] }
0x3432   :  { %v5562_v58 = vpop.permute.xlu1 %5561  ;;  %v5564_v12 = vpop.permute.xlu0 %5563 }
0x3433   :  { %v5607_v19 = vsel %vm508_vm1, %v5562_v58, 0  ;;  %v5610_v52 = vsel %vm508_vm1, %v5564_v12, 0 }
0x3434   :  { %9537 = vmatpush3.bf16.xpose.msra.mxu0 %v5604_v40 }
0x3435   :  { %9865 = vmatprep.subr.msk.bf16.mxu0 %vm508_vm1, %v5562_v58 }
0x3436   :  { %v5566_v32 = vpop.permute.xlu1 %5565 }
0x3437   :  { %v10278_v44 = vpop.permute.xlu0 %10277  ;;  %v5613_v0 = vsel %vm508_vm1, %v5566_v32, 0 }
0x3438   :  { %v10280_v20 = vunpack.i.h.bf16 %v10278_v44  ;;  %v10279_v39 = vunpack.i.l.bf16 %v10278_v44  ;;  %v5542_v44 = vld [vmem:[%s14244_s14 + $0x78] sm:$0xff] }
0x343a   :  { %v10283_v37 = vpop.permute.xlu1 %10282  ;;  %v5521_v22 = vpack.c.bf16 %v10280_v20, %v10279_v39 }
0x343b   :  { %v10285_v55 = vunpack.i.h.bf16 %v10283_v37  ;;  %v10284_v24 = vunpack.i.l.bf16 %v10283_v37  ;;  %v5541_v37 = vld [vmem:[%s14244_s14 + $0x70] sm:$0xff] }
0x343c   :  { %9564 = vmatprep.subr.bf16.mxu1 %v5521_v22  ;;  %9539 = vmatpush3.bf16.xpose.msra.mxu0 %v5607_v19  ;;  %v5540_v19 = vld [vmem:[%s14244_s14 + $0x68] sm:$0xff] }
0x343d   :  { %9565 = vmatpush3.bf16.msra.mxu1 %v5521_v22  ;;  %9866 = vmatprep.subr.msk.bf16.mxu0 %vm508_vm1, %v5564_v12  ;;  %v5522_v17 = vpack.c.bf16 %v10285_v55, %v10284_v24  ;;  %v5535_v12 = vld [vmem:[%s14244_s14 + $0x40] sm:$0xff] }
0x343f   :  { %9566 = vmatprep.subr.bf16.mxu1 %v5522_v17 }
0x3441   :  { %9567 = vmatpush3.bf16.msra.mxu1 %v5522_v17 }
0x3444   :  { %9541 = vmatpush3.bf16.xpose.msra.mxu0 %v5610_v52  ;;  %v5539_v52 = vld [vmem:[%s14244_s14 + $0x60] sm:$0xff] }
0x3445   :  { %9867 = vmatprep.subr.msk.bf16.mxu0 %vm508_vm1, %v5566_v32 }
0x344c   :  { %9543 = vmatpush3.bf16.xpose.msra.mxu0 %v5613_v0 }
0x3453   :  { %9545 = vmatmul.mubr.msk.bf16.vlgmr.msra.gmra.mrb[108].mxu0 %vm508_vm1, %v13279_v35 }
0x3454   :  { %9548 = vmatprep.mubr.msk.bf16.mxu0 %vm508_vm1, %v13273_v23  ;;  %v5528_v23 = vld [vmem:[%s14244_s14 + $0x8] sm:$0xff] }
0x345b   :  { %9549 = vmatmul.mubr.msk.bf16.gmra.mrb[112].mxu0 %vm508_vm1, %v13289_v57 }
0x345c   :  { %9552 = vmatprep.mubr.msk.bf16.mxu0 %vm508_vm1, %v5475_v9  ;;  %v5533_v9 = vld [vmem:[%s14244_s14 + $0x30] sm:$0xff] }
0x3463   :  { %9553 = vmatmul.mubr.msk.bf16.gmra.mrb[116].mxu0 %vm508_vm1, %v5476_v63 }
0x3464   :  { %9556 = vmatprep.mubr.msk.bf16.mxu0 %vm508_vm1, %v5477_v16  ;;  %v5532_v16 = vld [vmem:[%s14244_s14 + $0x28] sm:$0xff] }
0x346b   :  { %9557 = vmatmul.mubr.msk.bf16.gmra.mrb[120].mxu0 %vm508_vm1, %v5478_v31  ;;  %v5538_v31 = vld [vmem:[%s14244_s14 + $0x58] sm:$0xff] }
0x3526   :  { %v9546_v48 = vpop.f32.mrb[108].mxu0 }
0x3527   :  { %v13328_v11 = vadd.f32 %v9546_v48, %v5529_v38  ;;  %v5649_v35 = vpop.f32.mrb[109].mxu0 }
0x3528   :  { %v9547_v62 = vpop.f32.mrb[110].mxu0  ;;  %v13339_v57 = vadd.f32 %v5649_v35, %v5527_v47 }
0x3529   :  { %5716 = vmax.xlane.f32.xlu0 %v13328_v11  ;;  %v5652_v25 = vpop.f32.mrb[111].mxu0  ;;  %v13349_v53 = vadd.f32 %v9547_v62, %v5530_v13 }
0x352a   :  { %v13337_v14 = vadd.f32 %v5652_v25, %v5528_v23 }
0x352c   :  { %5714 = vmax.xlane.f32.xlu1 %v13337_v14 }
0x352d   :  { %5712 = vmax.xlane.f32.xlu0 %v13339_v57 }
0x352e   :  { %v9550_v1 = vpop.f32.mrb[112].mxu0 }
0x352f   :  { %v5665_v49 = vpop.f32.mrb[113].mxu0  ;;  %v5674_v63 = vadd.f32 %v9550_v1, %v5533_v9 }
0x3530   :  { %v9551_v51 = vpop.f32.mrb[114].mxu0  ;;  %v13369_v28 = vadd.f32 %v5665_v49, %v5531_v8 }
0x3531   :  { %v13354_v29 = vadd.f32 %v9551_v51, %v5534_v41  ;;  %v5668_v15 = vpop.f32.mrb[115].mxu0  ;;  %5718 = vmax.xlane.f32.xlu0 %v13349_v53 }
0x3532   :  { %v13364_v6 = vadd.f32 %v5668_v15, %v5532_v16 }
0x3533   :  { %5726 = vmax.xlane.f32.xlu1 %v13354_v29 }
0x3535   :  { %5724 = vmax.xlane.f32.xlu0 %v5674_v63 }
0x3536   :  { %v9554_v3 = vpop.f32.mrb[116].mxu0 }
0x3537   :  { %v5681_v4 = vpop.f32.mrb[117].mxu0  ;;  %5722 = vmax.xlane.f32.xlu1 %v13364_v6  ;;  %v13381_v58 = vadd.f32 %v9554_v3, %v5537_v43 }
0x3538   :  { %v9555_v18 = vpop.f32.mrb[118].mxu0  ;;  %v13393_v20 = vadd.f32 %v5681_v4, %v5535_v12 }
0x3539   :  { %v13375_v45 = vadd.f32 %v9555_v18, %v5538_v31  ;;  %v5684_v54 = vpop.f32.mrb[119].mxu0  ;;  %5720 = vmax.xlane.f32.xlu0 %v13369_v28 }
0x353a   :  { %v13387_v40 = vadd.f32 %v5684_v54, %v5536_v61 }
0x353b   :  { %5734 = vmax.xlane.f32.xlu1 %v13375_v45 }
0x353d   :  { %5732 = vmax.xlane.f32.xlu0 %v13381_v58 }
0x353e   :  { %v9558_v32 = vpop.f32.mrb[120].mxu0 }
0x353f   :  { %v5697_v39 = vpop.f32.mrb[121].mxu0  ;;  %5730 = vmax.xlane.f32.xlu1 %v13387_v40  ;;  %v13405_v17 = vadd.f32 %v9558_v32, %v5541_v37 }
0x3540   :  { %v9559_v22 = vpop.f32.mrb[122].mxu0  ;;  %v13414_v38 = vadd.f32 %v5697_v39, %v5539_v52 }
0x3541   :  { %v13399_v55 = vadd.f32 %v9559_v22, %v5542_v44  ;;  %v5700_v24 = vpop.f32.mrb[123].mxu0  ;;  %5728 = vmax.xlane.f32.xlu0 %v13393_v20 }
0x3542   :  { %v13411_v0 = vadd.f32 %v5700_v24, %v5540_v19 }
0x3543   :  { %5742 = vmax.xlane.f32.xlu1 %v13399_v55 }
0x3545   :  { %5740 = vmax.xlane.f32.xlu0 %v13405_v17 }
0x3547   :  { %5738 = vmax.xlane.f32.xlu1 %v13411_v0 }
0x3549   :  { %5736 = vmax.xlane.f32.xlu0 %v13414_v38 }
0x3558   :  { %10292 = vrot.lane.b32.xlu1 %v13281_v59, %s14306_s30 }
0x355f   :  { %10287 = vrot.lane.b32.xlu0 %v13267_v46, %s14306_s30 }
0x35b6   :  { %v5717_v48 = vpop.xlane.xlu0 %5716 }
0x35b7   :  { %v5746_v35 = vsub.f32 %v13328_v11, %v5717_v48 }
0x35b9   :  { %v5764_v23 = vmul.f32 1.442695, %v5746_v35  ;;  %v5715_v62 = vpop.xlane.xlu1 %5714 }
0x35ba   :  { %v5713_v47 = vpop.xlane.xlu0 %5712  ;;  %v5745_v1 = vsub.f32 %v13337_v14, %v5715_v62 }
0x35bb   :  { %10962 = vpow2.f32 %v5764_v23  ;;  %v5744_v25 = vsub.f32 %v13339_v57, %v5713_v47 }
0x35bc   :  { %v5762_v15 = vmul.f32 1.442695, %v5745_v1 }
0x35bd   :  { %v5760_v13 = vmul.f32 1.442695, %v5744_v25 }
0x35be   :  { %v5719_v41 = vpop.xlane.xlu0 %5718 }
0x35bf   :  { %10964 = vpow2.f32 %v5760_v13  ;;  %v5747_v49 = vsub.f32 %v13349_v53, %v5719_v41 }
0x35c0   :  { %v5727_v9 = vpop.xlane.xlu1 %5726 }
0x35c1   :  { %v5766_v51 = vmul.f32 1.442695, %v5747_v49  ;;  %v5751_v57 = vsub.f32 %v13354_v29, %v5727_v9 }
0x35c2   :  { %v5725_v16 = vpop.xlane.xlu0 %5724 }
0x35c3   :  { %10966 = vpow2.f32 %v5766_v51  ;;  %v5750_v8 = vsub.f32 %v5674_v63, %v5725_v16  ;;  %v5774_v61 = vmul.f32 1.442695, %v5751_v57 }
0x35c4   :  { %v5723_v11 = vpop.xlane.xlu1 %5722  ;;  %10968 = vpow2.f32 %v5762_v15 }
0x35c5   :  { %v13426_v3 = vpop.eup %10962  ;;  %v5772_v31 = vmul.f32 1.442695, %v5750_v8  ;;  %v5749_v4 = vsub.f32 %v13364_v6, %v5723_v11 }
0x35c6   :  { %5796 = vadd.xlane.f32.xlu0 %v13426_v3  ;;  %v5721_v14 = vpop.xlane.xlu0 %5720 }
0x35c7   :  { %10970 = vpow2.f32 %v5772_v31  ;;  %v5770_v53 = vmul.f32 1.442695, %v5749_v4  ;;  %v5748_v43 = vsub.f32 %v13369_v28, %v5721_v14 }
0x35c8   :  { %v5735_v18 = vpop.xlane.xlu1 %5734 }
0x35c9   :  { %v13432_v54 = vpop.eup %10964  ;;  %v5768_v63 = vmul.f32 1.442695, %v5748_v43  ;;  %10972 = vpow2.f32 %v5770_v53  ;;  %v5755_v37 = vsub.f32 %v13375_v45, %v5735_v18 }
0x35ca   :  { %5792 = vadd.xlane.f32.xlu0 %v13432_v54  ;;  %v5733_v12 = vpop.xlane.xlu0 %5732 }
0x35cb   :  { %10974 = vpow2.f32 %v5768_v63  ;;  %v5754_v6 = vsub.f32 %v13381_v58, %v5733_v12  ;;  %v5782_v35 = vmul.f32 1.442695, %v5755_v37 }
0x35cc   :  { %v5731_v29 = vpop.xlane.xlu1 %5730  ;;  %10976 = vpow2.f32 %v5774_v61 }
0x35cd   :  { %v13436_v32 = vpop.eup %10966  ;;  %v5780_v44 = vmul.f32 1.442695, %v5754_v6  ;;  %v5753_v39 = vsub.f32 %v13387_v40, %v5731_v29 }
0x35ce   :  { %5798 = vadd.xlane.f32.xlu1 %v13436_v32  ;;  %v5729_v28 = vpop.xlane.xlu0 %5728  ;;  %v13442_v19 = vpop.eup %10968 }
0x35cf   :  { %10978 = vpow2.f32 %v5780_v44  ;;  %v5778_v22 = vmul.f32 1.442695, %v5753_v39  ;;  %v5752_v24 = vsub.f32 %v13393_v20, %v5729_v28 }
0x35d0   :  { %v5743_v52 = vpop.xlane.xlu1 %5742 }
0x35d1   :  { %v13444_v58 = vpop.eup %10970  ;;  %v5776_v48 = vmul.f32 1.442695, %v5752_v24  ;;  %10980 = vpow2.f32 %v5778_v22  ;;  %v5759_v18 = vsub.f32 %v13399_v55, %v5743_v52 }
0x35d2   :  { %5794 = vadd.xlane.f32.xlu1 %v13442_v19  ;;  %5804 = vadd.xlane.f32.xlu0 %v13444_v58  ;;  %v5741_v40 = vpop.xlane.xlu0 %5740 }
0x35d3   :  { %10982 = vpow2.f32 %v5776_v48  ;;  %v13448_v23 = vpop.eup %10972  ;;  %v5758_v57 = vsub.f32 %v13405_v17, %v5741_v40  ;;  %v5790_v61 = vmul.f32 1.442695, %v5759_v18 }
0x35d4   :  { %v5739_v45 = vpop.xlane.xlu1 %5738  ;;  %10984 = vpow2.f32 %v5782_v35 }
0x35d5   :  { %v13450_v47 = vpop.eup %10974  ;;  %v5757_v4 = vsub.f32 %v13411_v0, %v5739_v45  ;;  %v5788_v43 = vmul.f32 1.442695, %v5758_v57 }
0x35d6   :  { %5802 = vadd.xlane.f32.xlu0 %v13448_v23  ;;  %5800 = vadd.xlane.f32.xlu1 %v13450_v47  ;;  %v5737_v20 = vpop.xlane.xlu0 %5736  ;;  %v13454_v62 = vpop.eup %10976 }
0x35d7   :  { %v5786_v14 = vmul.f32 1.442695, %v5757_v4  ;;  %v5756_v53 = vsub.f32 %v13414_v38, %v5737_v20 }
0x35d8   :  { %v10293_v25 = vpop.permute.xlu1 %10292 }
0x35d9   :  { %v13456_v13 = vpop.eup %10978  ;;  %v10295_v41 = vunpack.i.h.bf16 %v10293_v25  ;;  %v10294_v49 = vunpack.i.l.bf16 %v10293_v25  ;;  %10986 = vpow2.f32 %v5786_v14  ;;  %v5784_v63 = vmul.f32 1.442695, %v5756_v53 }
0x35da   :  { %5806 = vadd.xlane.f32.xlu1 %v13454_v62  ;;  %5812 = vadd.xlane.f32.xlu0 %v13456_v13  ;;  %v10288_v1 = vpop.permute.xlu0 %10287  ;;  %10988 = vpow2.f32 %v5788_v43 }
0x35db   :  { %v10290_v9 = vunpack.i.h.bf16 %v10288_v1  ;;  %v10289_v51 = vunpack.i.l.bf16 %v10288_v1  ;;  %v13460_v15 = vpop.eup %10980  ;;  %v5524_v11 = vpack.c.bf16 %v10295_v41, %v10294_v49  ;;  %10990 = vpow2.f32 %v5784_v63 }
0x35dc   :  { %10992 = vpow2.f32 %v5790_v61 }
0x35dd   :  { %v13462_v16 = vpop.eup %10982  ;;  %v5523_v8 = vpack.c.bf16 %v10290_v9, %v10289_v51 }
0x35de   :  { %5810 = vadd.xlane.f32.xlu0 %v13460_v15  ;;  %5808 = vadd.xlane.f32.xlu1 %v13462_v16  ;;  %v13466_v31 = vpop.eup %10984 }
0x35df   :  { %9568 = vmatprep.subr.bf16.mxu1 %v5523_v8 }
0x35e0   :  { %9569 = vmatpush3.bf16.msra.mxu1 %v5523_v8 }
0x35e1   :  { %9570 = vmatprep.subr.bf16.mxu1 %v5524_v11 }
0x35e2   :  { %5814 = vadd.xlane.f32.xlu1 %v13466_v31 }
0x35e4   :  { %9571 = vmatpush3.bf16.msra.mxu1 %v5524_v11 }
0x35f3   :  { %10302 = vrot.lane.b32.xlu1 %v13281_v59, %s14304_s7  ;;  %v13477_v59 = vpop.eup %10986 }
0x35f4   :  { %10297 = vrot.lane.b32.xlu0 %v13267_v46, %s14304_s7  ;;  %v13480_v46 = vpop.eup %10988 }
0x35f5   :  { %v13482_v0 = vpop.eup %10990 }
0x35f6   :  { %v13486_v17 = vpop.eup %10992 }
0x3613   :  { %5818 = vadd.xlane.f32.xlu0 %v13477_v59 }
0x3617   :  { %5820 = vadd.xlane.f32.xlu0 %v13480_v46  ;;  %5816 = vadd.xlane.f32.xlu1 %v13482_v0 }
0x361b   :  { %5822 = vadd.xlane.f32.xlu1 %v13486_v17 }
0x3653   :  { %v5797_v55 = vpop.xlane.xlu0 %5796 }
0x3657   :  { %v5793_v38 = vpop.xlane.xlu0 %5792 }
0x3658   :  { %10994 = vrcp.f32 %v5793_v38 }
0x365b   :  { %v5799_v12 = vpop.xlane.xlu1 %5798 }
0x365f   :  { %v5795_v6 = vpop.xlane.xlu1 %5794  ;;  %v5805_v29 = vpop.xlane.xlu0 %5804 }
0x3660   :  { %10996 = vrcp.f32 %v5795_v6 }
0x3661   :  { %10998 = vrcp.f32 %v5799_v12 }
0x3662   :  { %v10995_v22 = vpop.eup %10994 }
0x3663   :  { %v5801_v44 = vpop.xlane.xlu1 %5800  ;;  %v5803_v39 = vpop.xlane.xlu0 %5802  ;;  %v5840_v40 = vmul.f32 %v10995_v22, %v13432_v54 }
0x3664   :  { %11000 = vrcp.f32 %v5801_v44 }
0x3665   :  { %11002 = vrcp.f32 %v5803_v39 }
0x3666   :  { %11004 = vrcp.f32 %v5797_v55 }
0x3667   :  { %v5807_v28 = vpop.xlane.xlu1 %5806  ;;  %v5813_v37 = vpop.xlane.xlu0 %5812 }
0x3668   :  { %11006 = vrcp.f32 %v5807_v28 }
0x366a   :  { %v10997_v24 = vpop.eup %10996 }
0x366b   :  { %v5809_v52 = vpop.xlane.xlu1 %5808  ;;  %v5811_v48 = vpop.xlane.xlu0 %5810  ;;  %v5841_v35 = vmul.f32 %v10997_v24, %v13442_v19 }
0x366c   :  { %11008 = vrcp.f32 %v5809_v52  ;;  %v10999_v49 = vpop.eup %10998 }
0x366d   :  { %v5856_v45 = vpack.c.bf16 %v5841_v35, %v5840_v40  ;;  %11010 = vrcp.f32 %v5811_v48  ;;  %v5843_v19 = vmul.f32 %v10999_v49, %v13436_v32 }
0x366e   :  { %v11001_v51 = vpop.eup %11000  ;;  %11012 = vrcp.f32 %v5805_v29 }
0x366f   :  { %v5815_v20 = vpop.xlane.xlu1 %5814  ;;  %9576 = vmatprep.mubr.bf16.mxu1 %v5856_v45  ;;  %v10298_v25 = vpop.permute.xlu0 %10297  ;;  %v5844_v53 = vmul.f32 %v11001_v51, %v13450_v47 }
0x3670   :  { %v10300_v1 = vunpack.i.h.bf16 %v10298_v25  ;;  %v10299_v41 = vunpack.i.l.bf16 %v10298_v25  ;;  %v11003_v11 = vpop.eup %11002  ;;  %11014 = vrcp.f32 %v5815_v20 }
0x3671   :  { %v11005_v54 = vpop.eup %11004  ;;  %v5845_v43 = vmul.f32 %v11003_v11, %v13448_v23  ;;  %11016 = vrcp.f32 %v5813_v37 }
0x3672   :  { %v5525_v9 = vpack.c.bf16 %v10300_v1, %v10299_v41  ;;  %v5842_v18 = vmul.f32 %v11005_v54, %v13426_v3  ;;  %v11007_v63 = vpop.eup %11006 }
0x3673   :  { %v10303_v8 = vpop.permute.xlu1 %10302  ;;  %v5858_v38 = vpack.c.bf16 %v5845_v43, %v5844_v53  ;;  %v5847_v32 = vmul.f32 %v11007_v63, %v13454_v62  ;;  %v10578_v53 = vld [vmem:[%s14300_s4 + $0x50] sm:$0xff]  }
0x3674   :  { %v10305_v4 = vunpack.i.h.bf16 %v10303_v8  ;;  %v10304_v57 = vunpack.i.l.bf16 %v10303_v8  ;;  %9572 = vmatprep.subr.bf16.mxu1 %v5525_v9  ;;  %v5857_v61 = vpack.c.bf16 %v5843_v19, %v5842_v18 }
0x3675   :  { %9573 = vmatpush3.bf16.msra.mxu1 %v5525_v9 }
0x3676   :  { %v5526_v14 = vpack.c.bf16 %v10305_v4, %v10304_v57  ;;  %v11009_v55 = vpop.eup %11008 }
0x3677   :  { %v11011_v12 = vpop.eup %11010  ;;  %v5848_v47 = vmul.f32 %v11009_v55, %v13462_v16 }
0x3678   :  { %9574 = vmatprep.subr.bf16.mxu1 %v5526_v14  ;;  %v11013_v6 = vpop.eup %11012  ;;  %v5849_v23 = vmul.f32 %v11011_v12, %v13460_v15 }
0x3679   :  { %9575 = vmatpush3.bf16.msra.mxu1 %v5526_v14  ;;  %v5846_v3 = vmul.f32 %v11013_v6, %v13444_v58 }
0x367a   :  { %v11015_v44 = vpop.eup %11014  ;;  %v5860_v39 = vpack.c.bf16 %v5849_v23, %v5848_v47 }
0x367b   :  { %v5859_v29 = vpack.c.bf16 %v5847_v32, %v5846_v3  ;;  %v11017_v28 = vpop.eup %11016  ;;  %v5851_v37 = vmul.f32 %v11015_v44, %v13466_v31 }
0x367c   :  { %9577 = vmatmul.mubr.bf16.vlgmr.msra.gmra.mrb[120].mxu1 %v5857_v61  ;;  %v5850_v22 = vmul.f32 %v11017_v28, %v13456_v13  ;;  %v10579_v61 = vld [vmem:[%s14300_s4 + $0x58] sm:$0xff]  }
0x367d   :  { %9580 = vmatprep.mubr.bf16.mxu1 %v5858_v38 }
0x367e   :  { %v5861_v24 = vpack.c.bf16 %v5851_v37, %v5850_v22 }
0x3684   :  { %9581 = vmatmul.mubr.bf16.gmra.mrb[124].mxu1 %v5859_v29 }
0x3685   :  { %9584 = vmatprep.mubr.bf16.mxu1 %v5860_v39 }
0x368c   :  { %9585 = vmatmul.mubr.bf16.gmra.mrb[128].mxu1 %v5861_v24 }
0x36a0   :  { %v5819_v52 = vpop.xlane.xlu0 %5818 }
0x36a1   :  { %11018 = vrcp.f32 %v5819_v52 }
0x36a4   :  { %v5817_v62 = vpop.xlane.xlu1 %5816  ;;  %v5821_v16 = vpop.xlane.xlu0 %5820 }
0x36a5   :  { %11020 = vrcp.f32 %v5817_v62 }
0x36a6   :  { %11022 = vrcp.f32 %v5821_v16 }
0x36a8   :  { %v5823_v15 = vpop.xlane.xlu1 %5822 }
0x36a9   :  { %11024 = vrcp.f32 %v5823_v15 }
0x36ab   :  { %v11019_v58 = vpop.eup %11018 }
0x36ac   :  { %v5853_v35 = vmul.f32 %v11019_v58, %v13477_v59 }
0x36af   :  { %v11021_v48 = vpop.eup %11020 }
0x36b0   :  { %v5852_v40 = vmul.f32 %v11021_v48, %v13482_v0  ;;  %v11023_v45 = vpop.eup %11022 }
0x36b1   :  { %v5854_v13 = vmul.f32 %v11023_v45, %v13480_v46  ;;  %v10576_v46 = vld [vmem:[%s14300_s4 + $0x40] sm:$0xff]  }
0x36b2   :  { %v5862_v31 = vpack.c.bf16 %v5853_v35, %v5852_v40  ;;  %9592 = vmatprep.subr.bf16.mxu1 %v10576_v46 }
0x36b3   :  { %v11025_v20 = vpop.eup %11024  ;;  %9593 = vmatpush3.bf16.msra.mxu1 %v10576_v46 }
0x36b4   :  { %9588 = vmatprep.mubr.bf16.mxu1 %v5862_v31  ;;  %v5855_v25 = vmul.f32 %v11025_v20, %v13486_v17  ;;  %v10577_v17 = vld [vmem:[%s14300_s4 + $0x48] sm:$0xff]  }
0x36b5   :  { %9594 = vmatprep.subr.bf16.mxu1 %v10577_v17 }
0x36b6   :  { %v5863_v1 = vpack.c.bf16 %v5855_v25, %v5854_v13 }
0x36b7   :  { %9595 = vmatpush3.bf16.msra.mxu1 %v10577_v17 }
0x36b8   :  { %9589 = vmatmul.mubr.bf16.gmra.mrb[132].mxu1 %v5863_v1  ;;  %9596 = vmatprep.subr.bf16.mxu1 %v10578_v53 }
0x36bb   :  { %9597 = vmatpush3.bf16.msra.mxu1 %v10578_v53 }
0x36bc   :  { %9598 = vmatprep.subr.bf16.mxu1 %v10579_v61 }
0x36bf   :  { %9599 = vmatpush3.bf16.msra.mxu1 %v10579_v61 }
0x374f   :  { %v9578_v41 = vpop.f32.mrb[120].mxu1 }
0x3750   :  { %v5898_v49 = vpop.f32.mrb[121].mxu1 }
0x3751   :  { %v9579_v9 = vpop.f32.mrb[122].mxu1 }
0x3752   :  { %v5901_v51 = vpop.f32.mrb[123].mxu1 }
0x3757   :  { %v9582_v8 = vpop.f32.mrb[124].mxu1 }
0x3758   :  { %v5914_v11 = vpop.f32.mrb[125].mxu1 }
0x3759   :  { %v9583_v4 = vpop.f32.mrb[126].mxu1 }
0x375a   :  { %v10306_v0 = vpack.i.bf16 %v9583_v4, %v9582_v8  ;;  %v5917_v57 = vpop.f32.mrb[127].mxu1 }
0x375b   :  { %v10311_v59 = vpack.i.bf16 %v5917_v57, %v5914_v11 }
0x375c   :  { %10307 = vrot.lane.b32.xlu1 %v10306_v0, %s14307_s22 }
0x375d   :  { %10312 = vrot.lane.b32.xlu0 %v10311_v59, %s14307_s22  ;;  %v6026_v59 = vrot.slane %v13252_v26, %v11699_v34 }
0x375f   :  { %v9586_v54 = vpop.f32.mrb[128].mxu1 }
0x3760   :  { %v5930_v19 = vpop.f32.mrb[129].mxu1 }
0x3761   :  { %v9587_v14 = vpop.f32.mrb[130].mxu1 }
0x3762   :  { %v10316_v43 = vpack.i.bf16 %v9587_v14, %v9586_v54  ;;  %v5933_v18 = vpop.f32.mrb[131].mxu1 }
0x3763   :  { %v10321_v63 = vpack.i.bf16 %v5933_v18, %v5930_v19 }
0x3764   :  { %10317 = vrot.lane.b32.xlu1 %v10316_v43, %s14308_s12 }
0x3768   :  { %10322 = vrot.lane.b32.xlu1 %v10321_v63, %s14308_s12 }
0x378b   :  { %v9590_v55 = vpop.f32.mrb[132].mxu1 }
0x378c   :  { %v5946_v38 = vpop.f32.mrb[133].mxu1 }
0x378d   :  { %v9591_v12 = vpop.f32.mrb[134].mxu1 }
0x378e   :  { %v10331_v6 = vpack.i.bf16 %v9591_v12, %v9590_v55  ;;  %v5949_v32 = vpop.f32.mrb[135].mxu1 }
0x378f   :  { %v10326_v47 = vpack.i.bf16 %v5949_v32, %v5946_v38 }
0x3790   :  { %10332 = vrot.lane.b32.xlu1 %v10331_v6, %s14309_s6 }
0x3791   :  { %10327 = vrot.lane.b32.xlu0 %v10326_v47, %s14309_s6 }
0x37ce   :  { %v10308_v23 = vpop.permute.xlu1 %10307 }
0x37cf   :  { %v10313_v29 = vpop.permute.xlu0 %10312  ;;  %v10310_v44 = vunpack.i.h.bf16 %v10308_v23  ;;  %v10309_v39 = vunpack.i.l.bf16 %v10308_v23 }
0x37d0   :  { %v10315_v37 = vunpack.i.h.bf16 %v10313_v29  ;;  %v10314_v22 = vunpack.i.l.bf16 %v10313_v29 }
0x37d1   :  { %v6012_v15 = vsel %vm508_vm1, %v9579_v9, %v10310_v44  ;;  %v6011_v58 = vsel %vm508_vm1, %v9578_v41, %v10309_v39 }
0x37d2   :  { %v6010_v40 = vsel %vm508_vm1, %v5901_v51, %v10315_v37  ;;  %v6009_v35 = vsel %vm508_vm1, %v5898_v49, %v10314_v22 }
0x37d6   :  { %v10318_v3 = vpop.permute.xlu1 %10317 }
0x37d7   :  { %v10320_v24 = vunpack.i.h.bf16 %v10318_v3  ;;  %v10319_v52 = vunpack.i.l.bf16 %v10318_v3 }
0x37d9   :  { %v6016_v13 = vsel %vm955_vm2, %v6012_v15, %v10320_v24  ;;  %v6015_v25 = vsel %vm955_vm2, %v6011_v58, %v10319_v52 }
0x37da   :  { %v10323_v28 = vpop.permute.xlu1 %10322 }
0x37db   :  { %v10325_v62 = vunpack.i.h.bf16 %v10323_v28  ;;  %v10324_v16 = vunpack.i.l.bf16 %v10323_v28 }
0x37dd   :  { %v6014_v11 = vsel %vm955_vm2, %v6010_v40, %v10325_v62  ;;  %v6013_v9 = vsel %vm955_vm2, %v6009_v35, %v10324_v16  ;;  %v10580_v40 = vld [vmem:[%s14301_s25 + $0x40] sm:$0xff]   ;;  %v10581_v35 = vld [vmem:[%s14301_s25 + $0x48] sm:$0xff]  }
0x37de   :  { %9604 = vmatprep.subr.bf16.mxu1 %v10580_v40 }
0x3802   :  { %v10333_v48 = vpop.permute.xlu1 %10332 }
0x3803   :  { %v10335_v45 = vunpack.i.h.bf16 %v10333_v48  ;;  %v10334_v31 = vunpack.i.l.bf16 %v10333_v48  ;;  %v10328_v20 = vpop.permute.xlu0 %10327 }
0x3804   :  { %v10330_v1 = vunpack.i.h.bf16 %v10328_v20  ;;  %v10329_v8 = vunpack.i.l.bf16 %v10328_v20  ;;  %v10584_v20 = vld [vmem:[%s14302_s29 + $0x80] sm:$0xff]  }
0x3805   :  { %v6020_v41 = vsel %vm960_vm3, %v6016_v13, %v10335_v45  ;;  %v6019_v4 = vsel %vm960_vm3, %v6015_v25, %v10334_v31  ;;  %v10582_v45 = vld [vmem:[%s14301_s25 + $0x50] sm:$0xff]   ;;  %v10583_v31 = vld [vmem:[%s14301_s25 + $0x58] sm:$0xff]   ;;  %v10585_v13 = vld [vmem:[%s14302_s29 + $0x88] sm:$0xff]   ;;  %9616 = vmatprep.subr.bf16.mxu0 %v10584_v20 }
0x3806   :  { %v6022_v51 = vpack.c.bf16 %v6020_v41, %v6019_v4  ;;  %v6018_v49 = vsel %vm960_vm3, %v6014_v11, %v10330_v1  ;;  %v6017_v0 = vsel %vm960_vm3, %v6013_v9, %v10329_v8  ;;  %9617 = vmatpush3.bf16.msra.mxu0 %v10584_v20  ;;  %v10586_v25 = vld [vmem:[%s14302_s29 + $0x90] sm:$0xff]   ;;  %v10587_v1 = vld [vmem:[%s14302_s29 + $0x98] sm:$0xff]   ;;  %v10588_v8 = vld [vmem:[%s14302_s29 + $0xa0] sm:$0xff]  }
0x3807   :  { %v6021_v57 = vpack.c.bf16 %v6018_v49, %v6017_v0  ;;  %9618 = vmatprep.subr.bf16.mxu0 %v10585_v13  ;;  %v10589_v11 = vld [vmem:[%s14302_s29 + $0xa8] sm:$0xff]  }
0x3809   :  { %9600 = vmatprep.mubr.msk.bf16.mxu1 %vm120_vm0, %v6021_v57 }
0x380a   :  { %9601 = vmatmul.mubr.msk.bf16.vlgmr.msra.gmra.mrb[136].mxu1 %vm120_vm0, %v6022_v51  ;;  %9619 = vmatpush3.bf16.msra.mxu0 %v10585_v13 }
0x380b   :  { %9605 = vmatpush3.bf16.msra.mxu1 %v10580_v40  ;;  %9620 = vmatprep.subr.bf16.mxu0 %v10586_v25 }
0x380c   :  { %9606 = vmatprep.subr.bf16.mxu1 %v10581_v35 }
0x380e   :  { %9621 = vmatpush3.bf16.msra.mxu0 %v10586_v25 }
0x380f   :  { %9607 = vmatpush3.bf16.msra.mxu1 %v10581_v35  ;;  %9622 = vmatprep.subr.bf16.mxu0 %v10587_v1 }
0x3810   :  { %9608 = vmatprep.subr.bf16.mxu1 %v10582_v45 }
0x3812   :  { %9623 = vmatpush3.bf16.msra.mxu0 %v10587_v1 }
0x3813   :  { %9609 = vmatpush3.bf16.msra.mxu1 %v10582_v45  ;;  %9624 = vmatprep.subr.bf16.mxu0 %v10588_v8 }
0x3814   :  { %9610 = vmatprep.subr.bf16.mxu1 %v10583_v31 }
0x3816   :  { %9625 = vmatpush3.bf16.msra.mxu0 %v10588_v8 }
0x3817   :  { %9611 = vmatpush3.bf16.msra.mxu1 %v10583_v31  ;;  %9626 = vmatprep.subr.bf16.mxu0 %v10589_v11 }
0x381a   :  { %9627 = vmatpush3.bf16.msra.mxu0 %v10589_v11 }
0x38dd   :  { %v9602_v46 = vpop.f32.mrb[136].mxu1 }
0x38de   :  { %v6091_v17 = vpop.f32.mrb[137].mxu1  ;;  %v6100_v54 = vadd.f32 %v9602_v46, %v6026_v59 }
0x38df   :  { %v6092_v19 = vadd.f32 %v6091_v17, %v6026_v59  ;;  %v9603_v14 = vpop.f32.mrb[138].mxu1 }
0x38e0   :  { %v6094_v53 = vpop.f32.mrb[139].mxu1  ;;  %v13543_v63 = vadd.f32 %v6100_v54, %v13209_v27  ;;  %v6103_v61 = vadd.f32 %v9603_v14, %v6026_v59  ;;  %v11154_v14 = vld [vmem:[%s14298_s28 + $0x20] sm:$0xff] }
0x38e1   :  { %v13540_v43 = vadd.f32 %v6092_v19, %v13201_v7  ;;  %v6095_v18 = vadd.f32 %v6094_v53, %v6026_v59  ;;  %v6165_v53 = vrot.slane %v11154_v14, %v11783_v30 }
0x38e2   :  { %v13553_v12 = vadd.f32 %v6103_v61, %v13214_v56  ;;  %v6116_v7 = vsel %vm120_vm0, %v13543_v63, 0.0 }
0x38e3   :  { %v13546_v55 = vadd.f32 %v6095_v18, %v13197_v36  ;;  %v6110_v26 = vsel %vm120_vm0, %v13540_v43, 0.0 }
0x38e4   :  { %6111 = vadd.xlane.f32.xlu0 %v6110_v26  ;;  %v6119_v27 = vsel %vm120_vm0, %v13553_v12, 0.0 }
0x38e5   :  { %v6113_v38 = vsel %vm120_vm0, %v13546_v55, 0.0 }
0x38e6   :  { %6114 = vadd.xlane.f32.xlu1 %v6113_v38 }
0x38e8   :  { %6117 = vadd.xlane.f32.xlu0 %v6116_v7 }
0x38ec   :  { %6120 = vadd.xlane.f32.xlu0 %v6119_v27  ;;  %v6173_v27 = vrot.slane %v11154_v14, %v11788_v60 }
0x3971   :  { %v6112_v36 = vpop.xlane.xlu0 %6111 }
0x3972   :  { %v6122_v6 = vmul.f32 0.015625, %v6112_v36 }
0x3973   :  { %v6115_v32 = vpop.xlane.xlu1 %6114 }
0x3974   :  { %v13560_v47 = vsub.f32 %v13540_v43, %v6122_v6  ;;  %v6123_v23 = vmul.f32 0.015625, %v6115_v32 }
0x3975   :  { %v6118_v3 = vpop.xlane.xlu0 %6117 }
0x3976   :  { %v13563_v29 = vsub.f32 %v13546_v55, %v6123_v23  ;;  %v6124_v56 = vmul.f32 0.015625, %v6118_v3  ;;  %v6130_v44 = vmul.f32 %v13560_v47, %v13560_v47 }
0x3978   :  { %v13568_v39 = vsub.f32 %v13543_v63, %v6124_v56  ;;  %v6134_v28 = vsel %vm120_vm0, %v6130_v44, 0.0  ;;  %v6131_v37 = vmul.f32 %v13563_v29, %v13563_v29 }
0x3979   :  { %6135 = vadd.xlane.f32.xlu0 %v6134_v28  ;;  %v6121_v22 = vpop.xlane.xlu0 %6120 }
0x397a   :  { %v6125_v24 = vmul.f32 0.015625, %v6121_v22  ;;  %v6137_v52 = vsel %vm120_vm0, %v6131_v37, 0.0  ;;  %v6132_v62 = vmul.f32 %v13568_v39, %v13568_v39 }
0x397b   :  { %6138 = vadd.xlane.f32.xlu1 %v6137_v52  ;;  %v10591_v52 = vld [vmem:[%s14302_s29 + $0xb8] sm:$0xff]  }
0x397c   :  { %v13577_v16 = vsub.f32 %v13553_v12, %v6125_v24  ;;  %v6140_v15 = vsel %vm120_vm0, %v6132_v62, 0.0  ;;  %v6192_v62 = vrot.slane %v11154_v14, %v11806_v42 }
0x397d   :  { %6141 = vadd.xlane.f32.xlu0 %v6140_v15 }
0x397e   :  { %v6133_v58 = vmul.f32 %v13577_v16, %v13577_v16 }
0x3980   :  { %v6143_v48 = vsel %vm120_vm0, %v6133_v58, 0.0 }
0x3981   :  { %6144 = vadd.xlane.f32.xlu1 %v6143_v48 }
0x3a06   :  { %v6136_v9 = vpop.xlane.xlu0 %6135 }
0x3a07   :  { %v6146_v41 = vmul.f32 0.015625, %v6136_v9 }
0x3a08   :  { %v6139_v4 = vpop.xlane.xlu1 %6138 }
0x3a09   :  { %v6150_v51 = vadd.f32 1e-05, %v6146_v41  ;;  %v6147_v49 = vmul.f32 0.015625, %v6139_v4  ;;  %v6399_v41 = vrot.slane %v11154_v14, %v11811_v21 }
0x3a0a   :  { %v6142_v0 = vpop.xlane.xlu0 %6141 }
0x3a0b   :  { %11026 = vrsqrt.f32 %v6150_v51  ;;  %v6151_v57 = vadd.f32 1e-05, %v6147_v49  ;;  %v6148_v59 = vmul.f32 0.015625, %v6142_v0 }
0x3a0d   :  { %11028 = vrsqrt.f32 %v6151_v57  ;;  %v6152_v46 = vadd.f32 1e-05, %v6148_v59 }
0x3a0e   :  { %v6145_v17 = vpop.xlane.xlu1 %6144 }
0x3a0f   :  { %11030 = vrsqrt.f32 %v6152_v46  ;;  %v6149_v54 = vmul.f32 0.015625, %v6145_v17 }
0x3a11   :  { %v6153_v19 = vadd.f32 1e-05, %v6149_v54 }
0x3a13   :  { %11032 = vrsqrt.f32 %v6153_v19 }
0x3a15   :  { %v11027_v18 = vpop.eup %11026 }
0x3a16   :  { %v6158_v61 = vmul.f32 %v11027_v18, %v13560_v47 }
0x3a17   :  { %v11029_v26 = vpop.eup %11028 }
0x3a18   :  { %v6159_v38 = vmul.f32 %v11029_v26, %v13563_v29  ;;  %v6166_v7 = vmul.f32 %v6165_v53, %v6158_v61 }
0x3a19   :  { %v11031_v36 = vpop.eup %11030 }
0x3a1a   :  { %v6160_v6 = vmul.f32 %v11031_v36, %v13568_v39  ;;  %v6167_v32 = vmul.f32 %v6165_v53, %v6159_v38  ;;  %v6174_v23 = vadd.f32 %v6173_v27, %v6166_v7  ;;  %v10590_v39 = vld [vmem:[%s14302_s29 + $0xb0] sm:$0xff]  }
0x3a1b   :  { %9628 = vmatprep.subr.bf16.mxu0 %v10590_v39 }
0x3a1c   :  { %v6175_v3 = vadd.f32 %v6173_v27, %v6167_v32  ;;  %v6168_v44 = vmul.f32 %v6165_v53, %v6160_v6  ;;  %9629 = vmatpush3.bf16.msra.mxu0 %v10590_v39  ;;  %v10594_v39 = vld [vmem:[%s14297_s23 + $0xc4] ss:$8 sps:$4 sm:$0xff]  }
0x3a1d   :  { %v11033_v56 = vpop.eup %11032  ;;  %9630 = vmatprep.subr.bf16.mxu0 %v10591_v52  ;;  %6540 = vmatprep.subr.bf16.mxu1 %v10594_v39 }
0x3a1e   :  { %v6161_v28 = vmul.f32 %v11033_v56, %v13577_v16  ;;  %v6187_v37 = vpack.c.bf16 %v6175_v3, %v6174_v23  ;;  %v6176_v47 = vadd.f32 %v6173_v27, %v6168_v44 }
0x3a20   :  { %v6169_v22 = vmul.f32 %v6165_v53, %v6161_v28  ;;  %9612 = vmatprep.mubr.msk.bf16.mxu1 %vm120_vm0, %v6187_v37  ;;  %9631 = vmatpush3.bf16.msra.mxu0 %v10591_v52  ;;  %v10592_v52 = vld [vmem:[%s14297_s23 + $0xc0] ss:$8 sps:$4 sm:$0xff]  }
0x3a22   :  { %v6177_v24 = vadd.f32 %v6173_v27, %v6169_v22 }
0x3a24   :  { %v6188_v29 = vpack.c.bf16 %v6177_v24, %v6176_v47 }
0x3a26   :  { %9613 = vmatmul.mubr.msk.bf16.vlgmr.msra.gmra.mrb[140].mxu1 %vm120_vm0, %v6188_v29 }
0x3a27   :  { %6572 = vmatprep.mubr.bf16.mxu1 %v11172_v50  ;;  %6541 = vmatpush1.bf16.msra.mxu1 %v10592_v52 }
0x3af9   :  { %v9614_v16 = vpop.f32.mrb[140].mxu1 }
0x3afa   :  { %v6266_v15 = vadd.f32 %v9614_v16, %v6192_v62  ;;  %v6257_v58 = vpop.f32.mrb[141].mxu1  ;;  %v10595_v16 = vld [vmem:[%s14297_s23 + $0xd0] ss:$8 sps:$4 sm:$0xff]  }
0x3afb   :  { %v6258_v48 = vadd.f32 %v6257_v58, %v6192_v62  ;;  %v9615_v40 = vpop.f32.mrb[142].mxu1  ;;  %v10598_v58 = vld [vmem:[%s14297_s23 + $0xe0] ss:$8 sps:$4 sm:$0xff]  }
0x3afc   :  { %v6269_v35 = vadd.f32 %v9615_v40, %v6192_v62  ;;  %v6260_v45 = vpop.f32.mrb[143].mxu1  ;;  %v6274_v20 = vmax.f32 %v6266_v15, 0.0  ;;  %v10600_v15 = vld [vmem:[%s14297_s23 + $0xe4] ss:$8 sps:$4 sm:$0xff]   ;;  %v10601_v40 = vld [vmem:[%s14297_s23 + $0xf0] ss:$8 sps:$4 sm:$0xff]  }
0x3afd   :  { %v6261_v31 = vadd.f32 %v6260_v45, %v6192_v62  ;;  %v6272_v25 = vmax.f32 %v6258_v48, 0.0  ;;  %v10597_v62 = vld [vmem:[%s14297_s23 + $0xd4] ss:$8 sps:$4 sm:$0xff]  }
0x3afe   :  { %v6275_v13 = vmax.f32 %v6269_v35, 0.0  ;;  %6542 = vmatprep.subr.bf16.mxu1 %v10597_v62  ;;  %v10603_v48 = vld [vmem:[%s14297_s23 + $0xf4] ss:$8 sps:$4 sm:$0xff]  }
0x3aff   :  { %v6273_v1 = vmax.f32 %v6261_v31, 0.0  ;;  %6543 = vmatpush1.bf16.msra.mxu1 %v10595_v16 }
0x3b00   :  { %v6294_v8 = vpack.c.bf16 %v6275_v13, %v6274_v20  ;;  %6544 = vmatprep.subr.bf16.mxu1 %v10600_v15 }
0x3b01   :  { %v6293_v11 = vpack.c.bf16 %v6273_v1, %v6272_v25 }
0x3b03   :  { %9632 = vmatprep.mubr.bf16.mxu0 %v6293_v11  ;;  %6545 = vmatpush1.bf16.msra.mxu1 %v10598_v58 }
0x3b04   :  { %9633 = vmatmul.mubr.bf16.vlgmr.msra.gmra.mrb[124].mxu0 %v6294_v8  ;;  %6546 = vmatprep.subr.bf16.mxu1 %v10603_v48 }
0x3b07   :  { %6547 = vmatpush1.bf16.msra.mxu1 %v10601_v40 }
0x3bd7   :  { %v9634_v9 = vpop.f32.mrb[124].mxu0 }
0x3bd8   :  { %v6377_v4 = vpop.f32.mrb[125].mxu0  ;;  %v6394_v51 = vadd.f32 %v9634_v9, %v13543_v63 }
0x3bd9   :  { %v6392_v49 = vadd.f32 %v6377_v4, %v13540_v43  ;;  %v9635_v0 = vpop.f32.mrb[126].mxu0 }
0x3bda   :  { %v6380_v57 = vpop.f32.mrb[127].mxu0  ;;  %v6395_v46 = vadd.f32 %v9635_v0, %v13553_v12  ;;  %v13639_v54 = vadd.f32 %v6399_v41, %v6394_v51  ;;  %v13688_v51 = vld [vmem:[%s14298_s28 + $0x30] sm:$0xff] }
0x3bdb   :  { %v13635_v59 = vadd.f32 %v6399_v41, %v6392_v49  ;;  %v6393_v17 = vadd.f32 %v6380_v57, %v13546_v55  ;;  %v6462_v49 = vrot.slane %v13688_v51, %v11405_v5 }
0x3bdc   :  { %v13645_v53 = vadd.f32 %v6399_v41, %v6395_v46  ;;  %v6413_v63 = vsel %vm120_vm0, %v13639_v54, 0.0 }
0x3bdd   :  { %v13641_v19 = vadd.f32 %v6399_v41, %v6393_v17  ;;  %v6407_v14 = vsel %vm120_vm0, %v13635_v59, 0.0 }
0x3bde   :  { %6408 = vadd.xlane.f32.xlu0 %v6407_v14  ;;  %v6416_v55 = vsel %vm120_vm0, %v13645_v53, 0.0 }
0x3bdf   :  { %v6410_v43 = vsel %vm120_vm0, %v13641_v19, 0.0 }
0x3be0   :  { %6411 = vadd.xlane.f32.xlu1 %v6410_v43  ;;  %v6470_v43 = vrot.slane %v13688_v51, %v11412_v10 }
0x3be2   :  { %6414 = vadd.xlane.f32.xlu0 %v6413_v63 }
0x3be4   :  { %6417 = vadd.xlane.f32.xlu1 %v6416_v55 }
0x3c6b   :  { %v6409_v12 = vpop.xlane.xlu0 %6408 }
0x3c6c   :  { %v6419_v18 = vmul.f32 0.015625, %v6409_v12 }
0x3c6d   :  { %v6412_v61 = vpop.xlane.xlu1 %6411 }
0x3c6e   :  { %v6423_v26 = vsub.f32 %v13635_v59, %v6419_v18  ;;  %v6420_v38 = vmul.f32 0.015625, %v6412_v61 }
0x3c6f   :  { %v6415_v7 = vpop.xlane.xlu0 %6414 }
0x3c70   :  { %v6424_v27 = vsub.f32 %v13641_v19, %v6420_v38  ;;  %v6421_v36 = vmul.f32 0.015625, %v6415_v7  ;;  %v6427_v6 = vmul.f32 %v6423_v26, %v6423_v26 }
0x3c71   :  { %v6418_v32 = vpop.xlane.xlu1 %6417 }
0x3c72   :  { %v6425_v23 = vsub.f32 %v13639_v54, %v6421_v36  ;;  %v6422_v3 = vmul.f32 0.015625, %v6418_v32  ;;  %v6431_v56 = vsel %vm120_vm0, %v6427_v6, 0.0  ;;  %v6428_v44 = vmul.f32 %v6424_v27, %v6424_v27 }
0x3c73   :  { %6432 = vadd.xlane.f32.xlu0 %v6431_v56  ;;  %v8544_v56 = vld [vmem:[%s14298_s28 + $0x38] sm:$0xff] }
0x3c74   :  { %v6426_v28 = vsub.f32 %v13645_v53, %v6422_v3  ;;  %v6434_v37 = vsel %vm120_vm0, %v6428_v44, 0.0  ;;  %v6429_v22 = vmul.f32 %v6425_v23, %v6425_v23 }
0x3c75   :  { %6435 = vadd.xlane.f32.xlu1 %v6434_v37 }
0x3c76   :  { %v6437_v47 = vsel %vm120_vm0, %v6429_v22, 0.0  ;;  %v6430_v24 = vmul.f32 %v6426_v28, %v6426_v28 }
0x3c77   :  { %6438 = vadd.xlane.f32.xlu0 %v6437_v47 }
0x3c78   :  { %v6440_v29 = vsel %vm120_vm0, %v6430_v24, 0.0 }
0x3c79   :  { %6441 = vadd.xlane.f32.xlu1 %v6440_v29 }
0x3d00   :  { %v6433_v35 = vpop.xlane.xlu0 %6432 }
0x3d01   :  { %v6443_v45 = vmul.f32 0.015625, %v6433_v35 }
0x3d02   :  { %v6436_v31 = vpop.xlane.xlu1 %6435 }
0x3d03   :  { %v6447_v20 = vadd.f32 1e-05, %v6443_v45  ;;  %v6444_v13 = vmul.f32 0.015625, %v6436_v31 }
0x3d04   :  { %v6439_v25 = vpop.xlane.xlu0 %6438 }
0x3d05   :  { %11034 = vrsqrt.f32 %v6447_v20  ;;  %v6448_v1 = vadd.f32 1e-05, %v6444_v13  ;;  %v6445_v8 = vmul.f32 0.015625, %v6439_v25 }
0x3d06   :  { %v6442_v11 = vpop.xlane.xlu1 %6441 }
0x3d07   :  { %11036 = vrsqrt.f32 %v6448_v1  ;;  %v6449_v9 = vadd.f32 1e-05, %v6445_v8  ;;  %v6446_v41 = vmul.f32 0.015625, %v6442_v11 }
0x3d09   :  { %11038 = vrsqrt.f32 %v6449_v9  ;;  %v6450_v4 = vadd.f32 1e-05, %v6446_v41 }
0x3d0b   :  { %11040 = vrsqrt.f32 %v6450_v4 }
0x3d0f   :  { %v11035_v0 = vpop.eup %11034 }
0x3d10   :  { %v6455_v57 = vmul.f32 %v11035_v0, %v6423_v26 }
0x3d11   :  { %v11037_v46 = vpop.eup %11036 }
0x3d12   :  { %v6463_v17 = vmul.f32 %v6462_v49, %v6455_v57  ;;  %v6456_v14 = vmul.f32 %v11037_v46, %v6424_v27 }
0x3d13   :  { %v11039_v63 = vpop.eup %11038 }
0x3d14   :  { %v6464_v55 = vmul.f32 %v6462_v49, %v6456_v14  ;;  %v6457_v18 = vmul.f32 %v11039_v63, %v6425_v23  ;;  %v6471_v38 = vadd.f32 %v6470_v43, %v6463_v17  ;;  %v6489_v23 = vrot.slane %v13688_v51, %v11421_v33 }
0x3d15   :  { %v11041_v12 = vpop.eup %11040 }
0x3d16   :  { %v6458_v61 = vmul.f32 %v11041_v12, %v6426_v28  ;;  %v6472_v7 = vadd.f32 %v6470_v43, %v6464_v55  ;;  %v6465_v32 = vmul.f32 %v6462_v49, %v6457_v18  ;;  %v6493_v28 = vrot.slane %v8544_v56, %v11421_v33 }
0x3d18   :  { %v6484_v36 = vpack.c.bf16 %v6472_v7, %v6471_v38  ;;  %v6466_v6 = vmul.f32 %v6462_v49, %v6458_v61  ;;  %v6473_v3 = vadd.f32 %v6470_v43, %v6465_v32 }
0x3d1a   :  { %8561 = vmatmul.mubr.msk.bf16.vlgmr.msra.gmra.mrb[144].mxu1 %vm120_vm0, %v6484_v36  ;;  %v6474_v26 = vadd.f32 %v6470_v43, %v6466_v6 }
0x3d1b   :  { %6582 = vmatprep.mubr.bf16.mxu1 %v11172_v50 }
0x3d1c   :  { %v6485_v27 = vpack.c.bf16 %v6474_v26, %v6473_v3 }
0x3d22   :  { %8562 = vmatmul.mubr.msk.bf16.gmra.mrb[148].mxu1 %vm120_vm0, %v6485_v27 }
0x3ded   :  { %v6574_v44 = vpop.f32.mrb[144].mxu1 }
0x3dee   :  { %v6576_v37 = vpop.f32.mrb[145].mxu1  ;;  %v6575_v47 = vadd.f32 %v6574_v44, %v6489_v23 }
0x3def   :  { %v6578_v22 = vpop.f32.mrb[146].mxu1  ;;  %v6577_v29 = vadd.f32 %v6576_v37, %v6493_v28 }
0x3df0   :  { %v6579_v24 = vadd.f32 %v6578_v22, %v6489_v23  ;;  %v6580_v50 = vpop.f32.mrb[147].mxu1 }
0x3df1   :  { %v6581_v39 = vadd.f32 %v6580_v50, %v6493_v28 }
0x3df2   :  { %v10336_v52 = vpack.i.bf16 %v6579_v24, %v6575_v47  ;;  %v6642_v62 = vpack.c.bf16 %v6579_v24, %v6575_v47 }
0x3df3   :  { %v6690_v16 = vpack.c.bf16 %v6581_v39, %v6577_v29  ;;  %v13703_v15 = vpack.i.bf16 %v6581_v39, %v6577_v29 }
0x3df4   :  { %10337 = vrot.lane.b32.xlu0 %v10336_v52, %s14303_s27  ;;  %9652 = vmatprep.mubr.msk.bf16.mxu0 %vm508_vm1, %v6642_v62 }
0x3df5   :  { %v6584_v58 = vpop.f32.mrb[148].mxu1  ;;  %9668 = vmatprep.subr.bf16.mxu1 %v6690_v16 }
0x3df6   :  { %v6586_v48 = vpop.f32.mrb[149].mxu1  ;;  %9669 = vmatpush3.bf16.msra.mxu1 %v6690_v16  ;;  %v6585_v35 = vadd.f32 %v6584_v58, %v6489_v23 }
0x3df7   :  { %v6588_v40 = vpop.f32.mrb[150].mxu1  ;;  %v6587_v20 = vadd.f32 %v6586_v48, %v6493_v28 }
0x3df8   :  { %v6589_v45 = vadd.f32 %v6588_v40, %v6489_v23  ;;  %10357 = vrot.lane.b32.xlu0 %v10336_v52, %s14304_s7  ;;  %v6590_v31 = vpop.f32.mrb[151].mxu1 }
0x3df9   :  { %v6591_v13 = vadd.f32 %v6590_v31, %v6493_v28 }
0x3dfa   :  { %v10341_v25 = vpack.i.bf16 %v6589_v45, %v6585_v35  ;;  %v13708_v1 = vpack.c.bf16 %v6589_v45, %v6585_v35 }
0x3dfb   :  { %v6691_v8 = vpack.c.bf16 %v6591_v13, %v6587_v20  ;;  %v13710_v11 = vpack.i.bf16 %v6591_v13, %v6587_v20 }
0x3dfc   :  { %6706 = vrot.lane.b32.xlu0 %v6642_v62, %s14305_s21  ;;  %10342 = vrot.lane.b32.xlu1 %v10341_v25, %s14303_s27 }
0x3dfd   :  { %9670 = vmatprep.subr.bf16.mxu1 %v6691_v8 }
0x3dfe   :  { %9671 = vmatpush3.bf16.msra.mxu1 %v6691_v8 }
0x3e00   :  { %10347 = vrot.lane.b32.xlu1 %v10336_v52, %s14306_s30 }
0x3e04   :  { %10352 = vrot.lane.b32.xlu1 %v10341_v25, %s14306_s30 }
0x3e08   :  { %10362 = vrot.lane.b32.xlu1 %v10341_v25, %s14304_s7 }
0x3e0c   :  { %6708 = vrot.lane.b32.xlu1 %v13708_v1, %s14305_s21 }
0x3e66   :  { %v10338_v9 = vpop.permute.xlu0 %10337 }
0x3e67   :  { %v10340_v41 = vunpack.i.h.bf16 %v10338_v9  ;;  %v10339_v4 = vunpack.i.l.bf16 %v10338_v9 }
0x3e69   :  { %v13719_v49 = vpack.c.bf16 %v10340_v41, %v10339_v4  ;;  %v11155_v4 = vld [vmem:[%s14244_s14 + $0x10] sm:$0xff] }
0x3e6a   :  { %v10358_v0 = vpop.permute.xlu0 %10357 }
0x3e6b   :  { %6710 = vrot.lane.b32.xlu0 %v13719_v49, %s14305_s21  ;;  %v10360_v61 = vunpack.i.h.bf16 %v10358_v0  ;;  %v10359_v38 = vunpack.i.l.bf16 %v10358_v0 }
0x3e6d   :  { %v6648_v26 = vpack.c.bf16 %v10360_v61, %v10359_v38  ;;  %v11159_v38 = vld [vmem:[%s14244_s14 + $0x38] sm:$0xff] }
0x3e6e   :  { %v6707_v57 = vpop.permute.xlu0 %6706  ;;  %v10343_v46 = vpop.permute.xlu1 %10342 }
0x3e6f   :  { %v6747_v17 = vsel %vm508_vm1, %v6707_v57, 0  ;;  %v10345_v14 = vunpack.i.h.bf16 %v10343_v46  ;;  %v10344_v43 = vunpack.i.l.bf16 %v10343_v46  ;;  %9868 = vmatprep.subr.msk.bf16.mxu0 %vm508_vm1, %v6707_v57  ;;  %v11156_v46 = vld [vmem:[%s14244_s14 + $0x8] sm:$0xff] }
0x3e70   :  { %9637 = vmatpush3.bf16.xpose.msra.mxu0 %v6747_v17 }
0x3e71   :  { %v13725_v63 = vpack.c.bf16 %v10345_v14, %v10344_v43  ;;  %v11157_v14 = vld [vmem:[%s14244_s14] sm:$0xff] }
0x3e72   :  { %v10348_v55 = vpop.permute.xlu1 %10347 }
0x3e73   :  { %v10350_v12 = vunpack.i.h.bf16 %v10348_v55  ;;  %v10349_v18 = vunpack.i.l.bf16 %v10348_v55  ;;  %6712 = vrot.lane.b32.xlu1 %v13725_v63, %s14305_s21  ;;  %v11158_v55 = vld [vmem:[%s14244_s14 + $0x18] sm:$0xff] }
0x3e75   :  { %v6646_v7 = vpack.c.bf16 %v10350_v12, %v10349_v18 }
0x3e76   :  { %v10353_v36 = vpop.permute.xlu1 %10352 }
0x3e77   :  { %v10355_v6 = vunpack.i.h.bf16 %v10353_v36  ;;  %v10354_v32 = vunpack.i.l.bf16 %v10353_v36  ;;  %6714 = vrot.lane.b32.xlu0 %v6646_v7, %s14305_s21 }
0x3e79   :  { %v6647_v3 = vpack.c.bf16 %v10355_v6, %v10354_v32  ;;  %v11160_v6 = vld [vmem:[%s14244_s14 + $0x30] sm:$0xff] }
0x3e7a   :  { %v10363_v27 = vpop.permute.xlu1 %10362 }
0x3e7b   :  { %v10365_v56 = vunpack.i.h.bf16 %v10363_v27  ;;  %v10364_v23 = vunpack.i.l.bf16 %v10363_v27  ;;  %6718 = vrot.lane.b32.xlu0 %v6648_v26, %s14305_s21  ;;  %6716 = vrot.lane.b32.xlu1 %v6647_v3, %s14305_s21 }
0x3e7d   :  { %v6649_v44 = vpack.c.bf16 %v10365_v56, %v10364_v23  ;;  %v11162_v56 = vld [vmem:[%s14244_s14 + $0x20] sm:$0xff] }
0x3e7e   :  { %v6709_v28 = vpop.permute.xlu1 %6708 }
0x3e7f   :  { %v6750_v37 = vsel %vm508_vm1, %v6709_v28, 0  ;;  %10367 = vrot.lane.b32.xlu0 %v13703_v15, %s14303_s27  ;;  %6720 = vrot.lane.b32.xlu1 %v6649_v44, %s14305_s21 }
0x3e80   :  { %9869 = vmatprep.subr.msk.bf16.mxu0 %vm508_vm1, %v6709_v28 }
0x3e81   :  { %9639 = vmatpush3.bf16.xpose.msra.mxu0 %v6750_v37  ;;  %v11163_v37 = vld [vmem:[%s14244_s14 + $0x58] sm:$0xff] }
0x3e83   :  { %10372 = vrot.lane.b32.xlu1 %v13710_v11, %s14303_s27 }
0x3edd   :  { %v6711_v22 = vpop.permute.xlu0 %6710 }
0x3ede   :  { %v6753_v47 = vsel %vm508_vm1, %v6711_v22, 0  ;;  %9870 = vmatprep.subr.msk.bf16.mxu0 %vm508_vm1, %v6711_v22 }
0x3edf   :  { %9641 = vmatpush3.bf16.xpose.msra.mxu0 %v6753_v47 }
0x3ee5   :  { %v6713_v24 = vpop.permute.xlu1 %6712 }
0x3ee6   :  { %v6756_v50 = vsel %vm508_vm1, %v6713_v24, 0  ;;  %9871 = vmatprep.subr.msk.bf16.mxu0 %vm508_vm1, %v6713_v24  ;;  %v11164_v24 = vld [vmem:[%s14244_s14 + $0x50] sm:$0xff] }
0x3ee7   :  { %9643 = vmatpush3.bf16.xpose.msra.mxu0 %v6756_v50 }
0x3ee9   :  { %v6715_v29 = vpop.permute.xlu0 %6714 }
0x3eea   :  { %9872 = vmatprep.subr.msk.bf16.mxu0 %vm508_vm1, %v6715_v29  ;;  %v6759_v62 = vsel %vm508_vm1, %v6715_v29, 0  ;;  %v11165_v29 = vld [vmem:[%s14244_s14 + $0x48] sm:$0xff] }
0x3eed   :  { %v6719_v39 = vpop.permute.xlu0 %6718  ;;  %v6717_v52 = vpop.permute.xlu1 %6716 }
0x3eee   :  { %v6762_v31 = vsel %vm508_vm1, %v6717_v52, 0  ;;  %v6765_v8 = vsel %vm508_vm1, %v6719_v39, 0 }
0x3eef   :  { %9645 = vmatpush3.bf16.xpose.msra.mxu0 %v6759_v62  ;;  %v11166_v62 = vld [vmem:[%s14244_s14 + $0x40] sm:$0xff] }
0x3ef0   :  { %9873 = vmatprep.subr.msk.bf16.mxu0 %vm508_vm1, %v6717_v52 }
0x3ef1   :  { %v10368_v16 = vpop.permute.xlu0 %10367  ;;  %v6721_v58 = vpop.permute.xlu1 %6720 }
0x3ef2   :  { %v10370_v48 = vunpack.i.h.bf16 %v10368_v16  ;;  %v10369_v40 = vunpack.i.l.bf16 %v10368_v16  ;;  %v6768_v9 = vsel %vm508_vm1, %v6721_v58, 0 }
0x3ef4   :  { %v6692_v35 = vpack.c.bf16 %v10370_v48, %v10369_v40  ;;  %v11167_v40 = vld [vmem:[%s14244_s14 + $0x78] sm:$0xff] }
0x3ef5   :  { %v10373_v45 = vpop.permute.xlu1 %10372 }
0x3ef6   :  { %v10375_v20 = vunpack.i.h.bf16 %v10373_v45  ;;  %v10374_v13 = vunpack.i.l.bf16 %v10373_v45  ;;  %9672 = vmatprep.subr.bf16.mxu1 %v6692_v35 }
0x3ef7   :  { %9647 = vmatpush3.bf16.xpose.msra.mxu0 %v6762_v31  ;;  %9673 = vmatpush3.bf16.msra.mxu1 %v6692_v35  ;;  %v11168_v31 = vld [vmem:[%s14244_s14 + $0x70] sm:$0xff] }
0x3ef8   :  { %v6693_v25 = vpack.c.bf16 %v10375_v20, %v10374_v13  ;;  %9874 = vmatprep.subr.msk.bf16.mxu0 %vm508_vm1, %v6719_v39  ;;  %v11169_v13 = vld [vmem:[%s14244_s14 + $0x68] sm:$0xff] }
0x3efa   :  { %9674 = vmatprep.subr.bf16.mxu1 %v6693_v25 }
0x3efb   :  { %9675 = vmatpush3.bf16.msra.mxu1 %v6693_v25 }
0x3eff   :  { %9649 = vmatpush3.bf16.xpose.msra.mxu0 %v6765_v8  ;;  %v11170_v8 = vld [vmem:[%s14244_s14 + $0x60] sm:$0xff] }
0x3f00   :  { %9875 = vmatprep.subr.msk.bf16.mxu0 %vm508_vm1, %v6721_v58 }
0x3f07   :  { %9651 = vmatpush3.bf16.xpose.msra.mxu0 %v6768_v9 }
0x3f0e   :  { %9653 = vmatmul.mubr.msk.bf16.vlgmr.msra.gmra.mrb[128].mxu0 %vm508_vm1, %v13708_v1 }
0x3f0f   :  { %9656 = vmatprep.mubr.msk.bf16.mxu0 %vm508_vm1, %v13719_v49 }
0x3f16   :  { %9657 = vmatmul.mubr.msk.bf16.gmra.mrb[132].mxu0 %vm508_vm1, %v13725_v63 }
0x3f17   :  { %9660 = vmatprep.mubr.msk.bf16.mxu0 %vm508_vm1, %v6646_v7 }
0x3f1e   :  { %9661 = vmatmul.mubr.msk.bf16.gmra.mrb[136].mxu0 %vm508_vm1, %v6647_v3 }
0x3f1f   :  { %9664 = vmatprep.mubr.msk.bf16.mxu0 %vm508_vm1, %v6648_v26  ;;  %v11161_v26 = vld [vmem:[%s14244_s14 + $0x28] sm:$0xff] }
0x3f26   :  { %9665 = vmatmul.mubr.msk.bf16.gmra.mrb[140].mxu0 %vm508_vm1, %v6649_v44 }
0x3fe1   :  { %v9654_v41 = vpop.f32.mrb[128].mxu0 }
0x3fe2   :  { %v13764_v1 = vadd.f32 %v11155_v4, %v9654_v41  ;;  %v6804_v0 = vpop.f32.mrb[129].mxu0 }
0x3fe3   :  { %v9655_v49 = vpop.f32.mrb[130].mxu0  ;;  %v13775_v43 = vadd.f32 %v11157_v14, %v6804_v0 }
0x3fe4   :  { %6871 = vmax.xlane.f32.xlu0 %v13764_v1  ;;  %v6807_v57 = vpop.f32.mrb[131].mxu0  ;;  %v13782_v12 = vadd.f32 %v11158_v55, %v9655_v49 }
0x3fe5   :  { %v13770_v17 = vadd.f32 %v11156_v46, %v6807_v57 }
0x3fe7   :  { %6869 = vmax.xlane.f32.xlu1 %v13770_v17 }
0x3fe8   :  { %6867 = vmax.xlane.f32.xlu0 %v13775_v43 }
0x3fe9   :  { %v9658_v63 = vpop.f32.mrb[132].mxu0 }
0x3fea   :  { %v6820_v18 = vpop.f32.mrb[133].mxu0  ;;  %v13793_v32 = vadd.f32 %v11160_v6, %v9658_v63 }
0x3feb   :  { %v9659_v61 = vpop.f32.mrb[134].mxu0  ;;  %v13805_v23 = vadd.f32 %v11162_v56, %v6820_v18 }
0x3fec   :  { %v13787_v7 = vadd.f32 %v11159_v38, %v9659_v61  ;;  %v6823_v36 = vpop.f32.mrb[135].mxu0  ;;  %6873 = vmax.xlane.f32.xlu0 %v13782_v12 }
0x3fed   :  { %v13799_v3 = vadd.f32 %v11161_v26, %v6823_v36 }
0x3fee   :  { %6881 = vmax.xlane.f32.xlu1 %v13787_v7 }
0x3ff0   :  { %6879 = vmax.xlane.f32.xlu0 %v13793_v32 }
0x3ff1   :  { %v9662_v27 = vpop.f32.mrb[136].mxu0 }
0x3ff2   :  { %v6836_v44 = vpop.f32.mrb[137].mxu0  ;;  %6877 = vmax.xlane.f32.xlu1 %v13799_v3  ;;  %v13817_v50 = vadd.f32 %v11164_v24, %v9662_v27 }
0x3ff3   :  { %v9663_v28 = vpop.f32.mrb[138].mxu0  ;;  %v13829_v16 = vadd.f32 %v11166_v62, %v6836_v44 }
0x3ff4   :  { %v13811_v22 = vadd.f32 %v11163_v37, %v9663_v28  ;;  %v6839_v47 = vpop.f32.mrb[139].mxu0  ;;  %6875 = vmax.xlane.f32.xlu0 %v13805_v23 }
0x3ff5   :  { %v13823_v39 = vadd.f32 %v11165_v29, %v6839_v47 }
0x3ff6   :  { %6889 = vmax.xlane.f32.xlu1 %v13811_v22 }
0x3ff8   :  { %6887 = vmax.xlane.f32.xlu0 %v13817_v50 }
0x3ff9   :  { %v9666_v52 = vpop.f32.mrb[140].mxu0 }
0x3ffa   :  { %v6852_v58 = vpop.f32.mrb[141].mxu0  ;;  %6885 = vmax.xlane.f32.xlu1 %v13823_v39  ;;  %v13841_v20 = vadd.f32 %v11168_v31, %v9666_v52 }
0x3ffb   :  { %v9667_v48 = vpop.f32.mrb[142].mxu0  ;;  %v13853_v9 = vadd.f32 %v11170_v8, %v6852_v58 }
0x3ffc   :  { %v13835_v35 = vadd.f32 %v11167_v40, %v9667_v48  ;;  %v6855_v45 = vpop.f32.mrb[143].mxu0  ;;  %6883 = vmax.xlane.f32.xlu0 %v13829_v16 }
0x3ffd   :  { %v13847_v25 = vadd.f32 %v11169_v13, %v6855_v45 }
0x3ffe   :  { %6897 = vmax.xlane.f32.xlu1 %v13835_v35 }
0x4000   :  { %6895 = vmax.xlane.f32.xlu0 %v13841_v20 }
0x4002   :  { %6893 = vmax.xlane.f32.xlu1 %v13847_v25 }
0x4004   :  { %6891 = vmax.xlane.f32.xlu0 %v13853_v9 }
0x4013   :  { %10382 = vrot.lane.b32.xlu1 %v13710_v11, %s14306_s30 }
0x401a   :  { %10377 = vrot.lane.b32.xlu0 %v13703_v15, %s14306_s30 }
0x4071   :  { %v6872_v41 = vpop.xlane.xlu0 %6871 }
0x4072   :  { %v6901_v4 = vsub.f32 %v13764_v1, %v6872_v41 }
0x4074   :  { %v6919_v0 = vmul.f32 1.442695, %v6901_v4  ;;  %v6870_v57 = vpop.xlane.xlu1 %6869 }
0x4075   :  { %v6868_v49 = vpop.xlane.xlu0 %6867  ;;  %v6900_v63 = vsub.f32 %v13770_v17, %v6870_v57 }
0x4076   :  { %11042 = vpow2.f32 %v6919_v0  ;;  %v6899_v46 = vsub.f32 %v13775_v43, %v6868_v49 }
0x4077   :  { %v6917_v36 = vmul.f32 1.442695, %v6900_v63 }
0x4078   :  { %v6915_v14 = vmul.f32 1.442695, %v6899_v46 }
0x4079   :  { %v6874_v55 = vpop.xlane.xlu0 %6873 }
0x407a   :  { %11044 = vpow2.f32 %v6915_v14  ;;  %v6902_v18 = vsub.f32 %v13782_v12, %v6874_v55 }
0x407b   :  { %v6882_v61 = vpop.xlane.xlu1 %6881 }
0x407c   :  { %v6921_v38 = vmul.f32 1.442695, %v6902_v18  ;;  %v6906_v17 = vsub.f32 %v13787_v7, %v6882_v61 }
0x407d   :  { %v6880_v6 = vpop.xlane.xlu0 %6879 }
0x407e   :  { %11046 = vpow2.f32 %v6921_v38  ;;  %v6905_v1 = vsub.f32 %v13793_v32, %v6880_v6  ;;  %v6929_v24 = vmul.f32 1.442695, %v6906_v17 }
0x407f   :  { %v6878_v26 = vpop.xlane.xlu1 %6877  ;;  %11048 = vpow2.f32 %v6917_v36 }
0x4080   :  { %v13866_v27 = vpop.eup %11042  ;;  %v6927_v56 = vmul.f32 1.442695, %v6905_v1  ;;  %v6904_v43 = vsub.f32 %v13799_v3, %v6878_v26 }
0x4081   :  { %6951 = vadd.xlane.f32.xlu0 %v13866_v27  ;;  %v6876_v44 = vpop.xlane.xlu0 %6875 }
0x4082   :  { %11050 = vpow2.f32 %v6927_v56  ;;  %v6925_v12 = vmul.f32 1.442695, %v6904_v43  ;;  %v6903_v28 = vsub.f32 %v13805_v23, %v6876_v44 }
0x4083   :  { %v6890_v37 = vpop.xlane.xlu1 %6889 }
0x4084   :  { %v13872_v47 = vpop.eup %11044  ;;  %v6923_v32 = vmul.f32 1.442695, %v6903_v28  ;;  %11052 = vpow2.f32 %v6925_v12  ;;  %v6910_v48 = vsub.f32 %v13811_v22, %v6890_v37 }
0x4085   :  { %6947 = vadd.xlane.f32.xlu0 %v13872_v47  ;;  %v6888_v29 = vpop.xlane.xlu0 %6887 }
0x4086   :  { %11054 = vpow2.f32 %v6923_v32  ;;  %v6909_v3 = vsub.f32 %v13817_v50, %v6888_v29  ;;  %v6937_v41 = vmul.f32 1.442695, %v6910_v48 }
0x4087   :  { %v6886_v7 = vpop.xlane.xlu1 %6885  ;;  %11056 = vpow2.f32 %v6929_v24 }
0x4088   :  { %v13876_v52 = vpop.eup %11046  ;;  %v6935_v62 = vmul.f32 1.442695, %v6909_v3  ;;  %v6908_v58 = vsub.f32 %v13823_v39, %v6886_v7 }
0x4089   :  { %6953 = vadd.xlane.f32.xlu1 %v13876_v52  ;;  %v6884_v23 = vpop.xlane.xlu0 %6883  ;;  %v13882_v31 = vpop.eup %11048 }
0x408a   :  { %11058 = vpow2.f32 %v6935_v62  ;;  %v6933_v40 = vmul.f32 1.442695, %v6908_v58  ;;  %v6907_v45 = vsub.f32 %v13829_v16, %v6884_v23 }
0x408b   :  { %v6898_v13 = vpop.xlane.xlu1 %6897 }
0x408c   :  { %v13884_v50 = vpop.eup %11050  ;;  %v6931_v8 = vmul.f32 1.442695, %v6907_v45  ;;  %11060 = vpow2.f32 %v6933_v40  ;;  %v6914_v28 = vsub.f32 %v13835_v35, %v6898_v13 }
0x408d   :  { %6959 = vadd.xlane.f32.xlu0 %v13884_v50  ;;  %v6896_v39 = vpop.xlane.xlu0 %6895  ;;  %6949 = vadd.xlane.f32.xlu1 %v13882_v31 }
0x408e   :  { %11062 = vpow2.f32 %v6931_v8  ;;  %v13888_v4 = vpop.eup %11052  ;;  %v6913_v43 = vsub.f32 %v13841_v20, %v6896_v39  ;;  %v6945_v32 = vmul.f32 1.442695, %v6914_v28 }
0x408f   :  { %v6894_v22 = vpop.xlane.xlu1 %6893  ;;  %11064 = vpow2.f32 %v6937_v41 }
0x4090   :  { %v13890_v0 = vpop.eup %11054  ;;  %v6912_v56 = vsub.f32 %v13847_v25, %v6894_v22  ;;  %v6943_v12 = vmul.f32 1.442695, %v6913_v43 }
0x4091   :  { %v6892_v16 = vpop.xlane.xlu0 %6891  ;;  %6955 = vadd.xlane.f32.xlu1 %v13890_v0  ;;  %6957 = vadd.xlane.f32.xlu0 %v13888_v4  ;;  %v13894_v49 = vpop.eup %11056 }
0x4092   :  { %v6941_v17 = vmul.f32 1.442695, %v6912_v56  ;;  %v6911_v44 = vsub.f32 %v13853_v9, %v6892_v16 }
0x4093   :  { %v10383_v57 = vpop.permute.xlu1 %10382 }
0x4094   :  { %v13896_v46 = vpop.eup %11058  ;;  %v10385_v63 = vunpack.i.h.bf16 %v10383_v57  ;;  %v10384_v55 = vunpack.i.l.bf16 %v10383_v57  ;;  %11066 = vpow2.f32 %v6941_v17  ;;  %v6939_v37 = vmul.f32 1.442695, %v6911_v44 }
0x4095   :  { %v10378_v14 = vpop.permute.xlu0 %10377  ;;  %6961 = vadd.xlane.f32.xlu1 %v13894_v49  ;;  %6967 = vadd.xlane.f32.xlu0 %v13896_v46  ;;  %11068 = vpow2.f32 %v6943_v12 }
0x4096   :  { %v10380_v18 = vunpack.i.h.bf16 %v10378_v14  ;;  %v10379_v61 = vunpack.i.l.bf16 %v10378_v14  ;;  %v13900_v38 = vpop.eup %11060  ;;  %v6695_v1 = vpack.c.bf16 %v10385_v63, %v10384_v55  ;;  %11070 = vpow2.f32 %v6939_v37 }
0x4097   :  { %11072 = vpow2.f32 %v6945_v32 }
0x4098   :  { %v13902_v36 = vpop.eup %11062  ;;  %v6694_v6 = vpack.c.bf16 %v10380_v18, %v10379_v61 }
0x4099   :  { %6963 = vadd.xlane.f32.xlu1 %v13902_v36  ;;  %6965 = vadd.xlane.f32.xlu0 %v13900_v38  ;;  %v13906_v26 = vpop.eup %11064 }
0x409a   :  { %9676 = vmatprep.subr.bf16.mxu1 %v6694_v6 }
0x409b   :  { %9677 = vmatpush3.bf16.msra.mxu1 %v6694_v6 }
0x409c   :  { %9678 = vmatprep.subr.bf16.mxu1 %v6695_v1 }
0x409d   :  { %6969 = vadd.xlane.f32.xlu1 %v13906_v26 }
0x409f   :  { %9679 = vmatpush3.bf16.msra.mxu1 %v6695_v1 }
0x40ae   :  { %10392 = vrot.lane.b32.xlu1 %v13710_v11, %s14304_s7  ;;  %v13917_v11 = vpop.eup %11066 }
0x40af   :  { %10387 = vrot.lane.b32.xlu0 %v13703_v15, %s14304_s7  ;;  %v13920_v15 = vpop.eup %11068 }
0x40b0   :  { %v13922_v25 = vpop.eup %11070 }
0x40b1   :  { %v13926_v20 = vpop.eup %11072 }
0x40ce   :  { %6973 = vadd.xlane.f32.xlu0 %v13917_v11 }
0x40d2   :  { %6971 = vadd.xlane.f32.xlu1 %v13922_v25  ;;  %6975 = vadd.xlane.f32.xlu0 %v13920_v15 }
0x40d6   :  { %6977 = vadd.xlane.f32.xlu1 %v13926_v20 }
0x410e   :  { %v6952_v35 = vpop.xlane.xlu0 %6951 }
0x4112   :  { %v6948_v9 = vpop.xlane.xlu0 %6947 }
0x4113   :  { %11074 = vrcp.f32 %v6948_v9 }
0x4116   :  { %v6954_v24 = vpop.xlane.xlu1 %6953 }
0x411a   :  { %v6960_v29 = vpop.xlane.xlu0 %6959  ;;  %v6950_v3 = vpop.xlane.xlu1 %6949 }
0x411b   :  { %11076 = vrcp.f32 %v6950_v3 }
0x411c   :  { %11078 = vrcp.f32 %v6954_v24 }
0x411d   :  { %v11075_v48 = vpop.eup %11074 }
0x411e   :  { %v6958_v7 = vpop.xlane.xlu0 %6957  ;;  %v6956_v62 = vpop.xlane.xlu1 %6955  ;;  %v6995_v8 = vmul.f32 %v11075_v48, %v13872_v47 }
0x411f   :  { %11080 = vrcp.f32 %v6958_v7 }
0x4120   :  { %11082 = vrcp.f32 %v6956_v62 }
0x4121   :  { %11084 = vrcp.f32 %v6952_v35 }
0x4122   :  { %v6968_v58 = vpop.xlane.xlu0 %6967  ;;  %v6962_v23 = vpop.xlane.xlu1 %6961 }
0x4123   :  { %11086 = vrcp.f32 %v6962_v23 }
0x4125   :  { %v11077_v40 = vpop.eup %11076 }
0x4126   :  { %v6966_v45 = vpop.xlane.xlu0 %6965  ;;  %v6964_v13 = vpop.xlane.xlu1 %6963  ;;  %v6996_v39 = vmul.f32 %v11077_v40, %v13882_v31 }
0x4127   :  { %11088 = vrcp.f32 %v6966_v45  ;;  %v11079_v63 = vpop.eup %11078 }
0x4128   :  { %v7011_v41 = vpack.c.bf16 %v6996_v39, %v6995_v8  ;;  %11090 = vrcp.f32 %v6964_v13  ;;  %v6998_v31 = vmul.f32 %v11079_v63, %v13876_v52 }
0x4129   :  { %v11081_v18 = vpop.eup %11080  ;;  %11092 = vrcp.f32 %v6960_v29 }
0x412a   :  { %v10388_v22 = vpop.permute.xlu0 %10387  ;;  %v6970_v16 = vpop.xlane.xlu1 %6969  ;;  %9684 = vmatprep.mubr.bf16.mxu1 %v7011_v41  ;;  %v7000_v44 = vmul.f32 %v11081_v18, %v13888_v4 }
0x412b   :  { %v10390_v57 = vunpack.i.h.bf16 %v10388_v22  ;;  %v10389_v14 = vunpack.i.l.bf16 %v10388_v22  ;;  %v11083_v6 = vpop.eup %11082  ;;  %11094 = vrcp.f32 %v6970_v16 }
0x412c   :  { %v11085_v47 = vpop.eup %11084  ;;  %v6999_v17 = vmul.f32 %v11083_v6, %v13890_v0  ;;  %11096 = vrcp.f32 %v6968_v58 }
0x412d   :  { %v6696_v55 = vpack.c.bf16 %v10390_v57, %v10389_v14  ;;  %v6997_v12 = vmul.f32 %v11085_v47, %v13866_v27  ;;  %v11087_v28 = vpop.eup %11086 }
0x412e   :  { %v10393_v61 = vpop.permute.xlu1 %10392  ;;  %v7013_v35 = vpack.c.bf16 %v7000_v44, %v6999_v17  ;;  %v7002_v52 = vmul.f32 %v11087_v28, %v13894_v49  ;;  %v10607_v28 = vld [vmem:[%s14300_s4 + $0x78] sm:$0xff]  }
0x412f   :  { %v10395_v1 = vunpack.i.h.bf16 %v10393_v61  ;;  %v10394_v56 = vunpack.i.l.bf16 %v10393_v61  ;;  %9680 = vmatprep.subr.bf16.mxu1 %v6696_v55  ;;  %v7012_v37 = vpack.c.bf16 %v6998_v31, %v6997_v12 }
0x4130   :  { %9681 = vmatpush3.bf16.msra.mxu1 %v6696_v55 }
0x4131   :  { %v6697_v43 = vpack.c.bf16 %v10395_v1, %v10394_v56  ;;  %v11089_v32 = vpop.eup %11088 }
0x4132   :  { %v11091_v9 = vpop.eup %11090  ;;  %v7004_v4 = vmul.f32 %v11089_v32, %v13900_v38 }
0x4133   :  { %9682 = vmatprep.subr.bf16.mxu1 %v6697_v43  ;;  %v11093_v24 = vpop.eup %11092  ;;  %v7003_v0 = vmul.f32 %v11091_v9, %v13902_v36 }
0x4134   :  { %9683 = vmatpush3.bf16.msra.mxu1 %v6697_v43  ;;  %v7001_v27 = vmul.f32 %v11093_v24, %v13884_v50  ;;  %v10606_v43 = vld [vmem:[%s14300_s4 + $0x70] sm:$0xff]  }
0x4135   :  { %v11095_v3 = vpop.eup %11094  ;;  %v7015_v7 = vpack.c.bf16 %v7004_v4, %v7003_v0 }
0x4136   :  { %v7014_v29 = vpack.c.bf16 %v7002_v52, %v7001_v27  ;;  %v11097_v62 = vpop.eup %11096  ;;  %v7006_v58 = vmul.f32 %v11095_v3, %v13906_v26 }
0x4137   :  { %9685 = vmatmul.mubr.bf16.vlgmr.msra.gmra.mrb[152].mxu1 %v7012_v37  ;;  %v7005_v23 = vmul.f32 %v11097_v62, %v13896_v46 }
0x4138   :  { %9688 = vmatprep.mubr.bf16.mxu1 %v7013_v35 }
0x4139   :  { %v7016_v48 = vpack.c.bf16 %v7006_v58, %v7005_v23 }
0x413f   :  { %9689 = vmatmul.mubr.bf16.gmra.mrb[156].mxu1 %v7014_v29 }
0x4140   :  { %9692 = vmatprep.mubr.bf16.mxu1 %v7015_v7 }
0x4147   :  { %9693 = vmatmul.mubr.bf16.gmra.mrb[160].mxu1 %v7016_v48 }
0x415b   :  { %v6974_v40 = vpop.xlane.xlu0 %6973 }
0x415c   :  { %11098 = vrcp.f32 %v6974_v40 }
0x415f   :  { %v6976_v49 = vpop.xlane.xlu0 %6975  ;;  %v6972_v36 = vpop.xlane.xlu1 %6971 }
0x4160   :  { %11100 = vrcp.f32 %v6972_v36 }
0x4161   :  { %11102 = vrcp.f32 %v6976_v49 }
0x4163   :  { %v6978_v38 = vpop.xlane.xlu1 %6977 }
0x4164   :  { %11104 = vrcp.f32 %v6978_v38 }
0x4166   :  { %v11099_v50 = vpop.eup %11098 }
0x4167   :  { %v7008_v39 = vmul.f32 %v11099_v50, %v13917_v11  ;;  %v10604_v11 = vld [vmem:[%s14300_s4 + $0x60] sm:$0xff]  }
0x4168   :  { %9700 = vmatprep.subr.bf16.mxu1 %v10604_v11 }
0x4169   :  { %9701 = vmatpush3.bf16.msra.mxu1 %v10604_v11 }
0x416a   :  { %v11101_v45 = vpop.eup %11100 }
0x416b   :  { %v11103_v13 = vpop.eup %11102  ;;  %v7007_v8 = vmul.f32 %v11101_v45, %v13922_v25 }
0x416c   :  { %v7009_v46 = vmul.f32 %v11103_v13, %v13920_v15  ;;  %v10605_v15 = vld [vmem:[%s14300_s4 + $0x68] sm:$0xff]  }
0x416d   :  { %v7017_v41 = vpack.c.bf16 %v7008_v39, %v7007_v8  ;;  %9702 = vmatprep.subr.bf16.mxu1 %v10605_v15 }
0x416e   :  { %v11105_v26 = vpop.eup %11104  ;;  %9703 = vmatpush3.bf16.msra.mxu1 %v10605_v15 }
0x416f   :  { %v7010_v22 = vmul.f32 %v11105_v26, %v13926_v20  ;;  %9696 = vmatprep.mubr.bf16.mxu1 %v7017_v41  ;;  %9704 = vmatprep.subr.bf16.mxu1 %v10606_v43 }
0x4171   :  { %v7018_v16 = vpack.c.bf16 %v7010_v22, %v7009_v46 }
0x4172   :  { %9705 = vmatpush3.bf16.msra.mxu1 %v10606_v43 }
0x4173   :  { %9697 = vmatmul.mubr.bf16.gmra.mrb[164].mxu1 %v7018_v16  ;;  %9706 = vmatprep.subr.bf16.mxu1 %v10607_v28 }
0x4176   :  { %9707 = vmatpush3.bf16.msra.mxu1 %v10607_v28 }
0x420a   :  { %v9686_v57 = vpop.f32.mrb[152].mxu1 }
0x420b   :  { %v7053_v14 = vpop.f32.mrb[153].mxu1 }
0x420c   :  { %v9687_v63 = vpop.f32.mrb[154].mxu1 }
0x420d   :  { %v7056_v55 = vpop.f32.mrb[155].mxu1 }
0x4212   :  { %v9690_v18 = vpop.f32.mrb[156].mxu1 }
0x4213   :  { %v7069_v61 = vpop.f32.mrb[157].mxu1 }
0x4214   :  { %v9691_v6 = vpop.f32.mrb[158].mxu1 }
0x4215   :  { %v10396_v1 = vpack.i.bf16 %v9691_v6, %v9690_v18  ;;  %v7072_v25 = vpop.f32.mrb[159].mxu1 }
0x4216   :  { %v10401_v56 = vpack.i.bf16 %v7072_v25, %v7069_v61  ;;  %v7181_v25 = vrot.slane %v13688_v51, %v11699_v34 }
0x4217   :  { %10397 = vrot.lane.b32.xlu1 %v10396_v1, %s14307_s22 }
0x4218   :  { %10402 = vrot.lane.b32.xlu0 %v10401_v56, %s14307_s22 }
0x421a   :  { %v9694_v20 = vpop.f32.mrb[160].mxu1 }
0x421b   :  { %v7085_v47 = vpop.f32.mrb[161].mxu1 }
0x421c   :  { %v9695_v31 = vpop.f32.mrb[162].mxu1 }
0x421d   :  { %v10406_v17 = vpack.i.bf16 %v9695_v31, %v9694_v20  ;;  %v7088_v44 = vpop.f32.mrb[163].mxu1 }
0x421e   :  { %v10411_v12 = vpack.i.bf16 %v7088_v44, %v7085_v47 }
0x421f   :  { %10407 = vrot.lane.b32.xlu1 %v10406_v17, %s14308_s12 }
0x4223   :  { %10412 = vrot.lane.b32.xlu1 %v10411_v12, %s14308_s12 }
0x4246   :  { %v9698_v37 = vpop.f32.mrb[164].mxu1 }
0x4247   :  { %v7101_v32 = vpop.f32.mrb[165].mxu1 }
0x4248   :  { %v9699_v35 = vpop.f32.mrb[166].mxu1 }
0x4249   :  { %v10421_v9 = vpack.i.bf16 %v9699_v35, %v9698_v37  ;;  %v7104_v24 = vpop.f32.mrb[167].mxu1 }
0x424a   :  { %v10416_v52 = vpack.i.bf16 %v7104_v24, %v7101_v32 }
0x424b   :  { %10422 = vrot.lane.b32.xlu1 %v10421_v9, %s14309_s6 }
0x424c   :  { %10417 = vrot.lane.b32.xlu0 %v10416_v52, %s14309_s6 }
0x4289   :  { %v10398_v0 = vpop.permute.xlu1 %10397 }
0x428a   :  { %v10403_v27 = vpop.permute.xlu0 %10402  ;;  %v10400_v29 = vunpack.i.h.bf16 %v10398_v0  ;;  %v10399_v3 = vunpack.i.l.bf16 %v10398_v0 }
0x428b   :  { %v10405_v62 = vunpack.i.h.bf16 %v10403_v27  ;;  %v10404_v58 = vunpack.i.l.bf16 %v10403_v27 }
0x428c   :  { %v7167_v36 = vsel %vm508_vm1, %v9687_v63, %v10400_v29  ;;  %v7166_v38 = vsel %vm508_vm1, %v9686_v57, %v10399_v3 }
0x428d   :  { %v7165_v45 = vsel %vm508_vm1, %v7056_v55, %v10405_v62  ;;  %v7164_v13 = vsel %vm508_vm1, %v7053_v14, %v10404_v58 }
0x4291   :  { %v10408_v4 = vpop.permute.xlu1 %10407 }
0x4292   :  { %v10410_v23 = vunpack.i.h.bf16 %v10408_v4  ;;  %v10409_v48 = vunpack.i.l.bf16 %v10408_v4 }
0x4294   :  { %v7171_v41 = vsel %vm955_vm2, %v7167_v36, %v10410_v23  ;;  %v7170_v46 = vsel %vm955_vm2, %v7166_v38, %v10409_v48  ;;  %v10608_v38 = vld [vmem:[%s14301_s25 + $0x60] sm:$0xff]  }
0x4295   :  { %v10413_v7 = vpop.permute.xlu1 %10412  ;;  %9712 = vmatprep.subr.bf16.mxu1 %v10608_v38 }
0x4296   :  { %v10415_v40 = vunpack.i.h.bf16 %v10413_v7  ;;  %v10414_v49 = vunpack.i.l.bf16 %v10413_v7 }
0x4298   :  { %v7169_v18 = vsel %vm955_vm2, %v7165_v45, %v10415_v40  ;;  %v7168_v63 = vsel %vm955_vm2, %v7164_v13, %v10414_v49  ;;  %v10610_v45 = vld [vmem:[%s14301_s25 + $0x70] sm:$0xff]   ;;  %v10611_v13 = vld [vmem:[%s14301_s25 + $0x78] sm:$0xff]  }
0x42bd   :  { %v10423_v50 = vpop.permute.xlu1 %10422 }
0x42be   :  { %v10425_v8 = vunpack.i.h.bf16 %v10423_v50  ;;  %v10424_v39 = vunpack.i.l.bf16 %v10423_v50  ;;  %v10418_v26 = vpop.permute.xlu0 %10417  ;;  %v10609_v50 = vld [vmem:[%s14301_s25 + $0x68] sm:$0xff]  }
0x42bf   :  { %v10420_v22 = vunpack.i.h.bf16 %v10418_v26  ;;  %v10419_v16 = vunpack.i.l.bf16 %v10418_v26  ;;  %v10614_v26 = vld [vmem:[%s14302_s29 + $0xd0] sm:$0xff]  }
0x42c0   :  { %v7175_v57 = vsel %vm960_vm3, %v7171_v41, %v10425_v8  ;;  %v7174_v61 = vsel %vm960_vm3, %v7170_v46, %v10424_v39  ;;  %v10612_v8 = vld [vmem:[%s14302_s29 + $0xc0] sm:$0xff]   ;;  %v10613_v39 = vld [vmem:[%s14302_s29 + $0xc8] sm:$0xff]   ;;  %v10615_v41 = vld [vmem:[%s14302_s29 + $0xd8] sm:$0xff]  }
0x42c1   :  { %v7177_v55 = vpack.c.bf16 %v7175_v57, %v7174_v61  ;;  %v7173_v14 = vsel %vm960_vm3, %v7169_v18, %v10420_v22  ;;  %v7172_v6 = vsel %vm960_vm3, %v7168_v63, %v10419_v16  ;;  %9724 = vmatprep.subr.bf16.mxu0 %v10612_v8  ;;  %v10616_v46 = vld [vmem:[%s14302_s29 + $0xe0] sm:$0xff]   ;;  %v10617_v22 = vld [vmem:[%s14302_s29 + $0xe8] sm:$0xff]  }
0x42c2   :  { %v7176_v1 = vpack.c.bf16 %v7173_v14, %v7172_v6  ;;  %9725 = vmatpush3.bf16.msra.mxu0 %v10612_v8 }
0x42c3   :  { %9726 = vmatprep.subr.bf16.mxu0 %v10613_v39 }
0x42c4   :  { %9708 = vmatprep.mubr.msk.bf16.mxu1 %vm120_vm0, %v7176_v1 }
0x42c5   :  { %9709 = vmatmul.mubr.msk.bf16.vlgmr.msra.gmra.mrb[168].mxu1 %vm120_vm0, %v7177_v55 }
0x42c6   :  { %9713 = vmatpush3.bf16.msra.mxu1 %v10608_v38  ;;  %9727 = vmatpush3.bf16.msra.mxu0 %v10613_v39 }
0x42c7   :  { %9714 = vmatprep.subr.bf16.mxu1 %v10609_v50  ;;  %9728 = vmatprep.subr.bf16.mxu0 %v10614_v26 }
0x42ca   :  { %9715 = vmatpush3.bf16.msra.mxu1 %v10609_v50  ;;  %9729 = vmatpush3.bf16.msra.mxu0 %v10614_v26 }
0x42cb   :  { %9716 = vmatprep.subr.bf16.mxu1 %v10610_v45  ;;  %9730 = vmatprep.subr.bf16.mxu0 %v10615_v41 }
0x42ce   :  { %9717 = vmatpush3.bf16.msra.mxu1 %v10610_v45  ;;  %9731 = vmatpush3.bf16.msra.mxu0 %v10615_v41 }
0x42cf   :  { %9718 = vmatprep.subr.bf16.mxu1 %v10611_v13  ;;  %9732 = vmatprep.subr.bf16.mxu0 %v10616_v46 }
0x42d2   :  { %9719 = vmatpush3.bf16.msra.mxu1 %v10611_v13  ;;  %9733 = vmatpush3.bf16.msra.mxu0 %v10616_v46 }
0x42d3   :  { %9734 = vmatprep.subr.bf16.mxu0 %v10617_v22 }
0x42d6   :  { %9735 = vmatpush3.bf16.msra.mxu0 %v10617_v22 }
0x4398   :  { %v9710_v56 = vpop.f32.mrb[168].mxu1 }
0x4399   :  { %v7246_v11 = vpop.f32.mrb[169].mxu1  ;;  %v7255_v15 = vadd.f32 %v9710_v56, %v7181_v25 }
0x439a   :  { %v7247_v20 = vadd.f32 %v7246_v11, %v7181_v25  ;;  %v9711_v47 = vpop.f32.mrb[170].mxu1 }
0x439b   :  { %v7249_v31 = vpop.f32.mrb[171].mxu1  ;;  %v13983_v44 = vadd.f32 %v7255_v15, %v13639_v54  ;;  %v7258_v12 = vadd.f32 %v9711_v47, %v7181_v25  ;;  %v14056_v15 = vld [vmem:[%s14298_s28 + $0x30] sm:$0xff] }
0x439c   :  { %v13980_v43 = vadd.f32 %v7247_v20, %v13635_v59  ;;  %v7250_v17 = vadd.f32 %v7249_v31, %v7181_v25  ;;  %v7320_v20 = vrot.slane %v14056_v15, %v11783_v30 }
0x439d   :  { %v13993_v37 = vadd.f32 %v7258_v12, %v13645_v53  ;;  %v7271_v59 = vsel %vm120_vm0, %v13983_v44, 0.0 }
0x439e   :  { %v13986_v28 = vadd.f32 %v7250_v17, %v13641_v19  ;;  %v7265_v34 = vsel %vm120_vm0, %v13980_v43, 0.0 }
0x439f   :  { %7266 = vadd.xlane.f32.xlu0 %v7265_v34  ;;  %v7274_v54 = vsel %vm120_vm0, %v13993_v37, 0.0 }
0x43a0   :  { %v7268_v51 = vsel %vm120_vm0, %v13986_v28, 0.0 }
0x43a1   :  { %7269 = vadd.xlane.f32.xlu1 %v7268_v51  ;;  %v7328_v51 = vrot.slane %v14056_v15, %v11788_v60 }
0x43a3   :  { %7272 = vadd.xlane.f32.xlu0 %v7271_v59 }
0x43a7   :  { %7275 = vadd.xlane.f32.xlu0 %v7274_v54 }
0x442c   :  { %v7267_v19 = vpop.xlane.xlu0 %7266 }
0x442d   :  { %v7277_v32 = vmul.f32 0.015625, %v7267_v19 }
0x442e   :  { %v7270_v35 = vpop.xlane.xlu1 %7269 }
0x442f   :  { %v14000_v9 = vsub.f32 %v13980_v43, %v7277_v32  ;;  %v7278_v24 = vmul.f32 0.015625, %v7270_v35 }
0x4430   :  { %v7273_v52 = vpop.xlane.xlu0 %7272 }
0x4431   :  { %v14003_v0 = vsub.f32 %v13986_v28, %v7278_v24  ;;  %v7279_v53 = vmul.f32 0.015625, %v7273_v52  ;;  %v7285_v4 = vmul.f32 %v14000_v9, %v14000_v9 }
0x4433   :  { %v14008_v27 = vsub.f32 %v13983_v44, %v7279_v53  ;;  %v7289_v29 = vsel %vm120_vm0, %v7285_v4, 0.0  ;;  %v7286_v3 = vmul.f32 %v14003_v0, %v14003_v0 }
0x4434   :  { %7290 = vadd.xlane.f32.xlu0 %v7289_v29  ;;  %v7276_v7 = vpop.xlane.xlu0 %7275 }
0x4435   :  { %v7280_v62 = vmul.f32 0.015625, %v7276_v7  ;;  %v7292_v58 = vsel %vm120_vm0, %v7286_v3, 0.0  ;;  %v7287_v23 = vmul.f32 %v14008_v27, %v14008_v27  ;;  %v10619_v7 = vld [vmem:[%s14302_s29 + $0xf8] sm:$0xff]  }
0x4436   :  { %7293 = vadd.xlane.f32.xlu1 %v7292_v58  ;;  %v10621_v58 = vld [vmem:[%s14245_s19 + $0x8] sm:$0xff]  }
0x4437   :  { %v14017_v48 = vsub.f32 %v13993_v37, %v7280_v62  ;;  %v7295_v40 = vsel %vm120_vm0, %v7287_v23, 0.0  ;;  %v10620_v62 = vld [vmem:[%s14245_s19] sm:$0xff]   ;;  %v7347_v23 = vrot.slane %v14056_v15, %v11806_v42  ;;  %v10622_v42 = vld [vmem:[%s14245_s19 + $0x10] sm:$0xff]  }
0x4438   :  { %7296 = vadd.xlane.f32.xlu0 %v7295_v40  ;;  %9744 = vmatprep.subr.bf16.mxu1 %v10620_v62 }
0x4439   :  { %v7288_v49 = vmul.f32 %v14017_v48, %v14017_v48 }
0x443b   :  { %v7298_v36 = vsel %vm120_vm0, %v7288_v49, 0.0 }
0x443c   :  { %7299 = vadd.xlane.f32.xlu1 %v7298_v36 }
0x44c1   :  { %v7291_v16 = vpop.xlane.xlu0 %7290 }
0x44c2   :  { %v7301_v18 = vmul.f32 0.015625, %v7291_v16  ;;  %v10623_v16 = vld [vmem:[%s14245_s19 + $0x18] sm:$0xff]  }
0x44c3   :  { %v7294_v63 = vpop.xlane.xlu1 %7293 }
0x44c4   :  { %v7305_v57 = vadd.f32 1e-05, %v7301_v18  ;;  %v7302_v61 = vmul.f32 0.015625, %v7294_v63 }
0x44c5   :  { %v7297_v55 = vpop.xlane.xlu0 %7296 }
0x44c6   :  { %11106 = vrsqrt.f32 %v7305_v57  ;;  %v7306_v14 = vadd.f32 1e-05, %v7302_v61  ;;  %v7303_v6 = vmul.f32 0.015625, %v7297_v55  ;;  %v7554_v57 = vrot.slane %v14056_v15, %v11811_v21  ;;  %v14105_v21 = vld [vmem:[%s14246_s18] sm:$0x3]  ;;  %s14313_s18 = sld [smem:[#allocation14_spill]] }
0x44c8   :  { %11108 = vrsqrt.f32 %v7306_v14  ;;  %v7307_v1 = vadd.f32 1e-05, %v7303_v6 }
0x44c9   :  { %v7300_v25 = vpop.xlane.xlu1 %7299 }
0x44ca   :  { %11110 = vrsqrt.f32 %v7307_v1  ;;  %v7304_v56 = vmul.f32 0.015625, %v7300_v25 }
0x44cc   :  { %v7308_v11 = vadd.f32 1e-05, %v7304_v56 }
0x44ce   :  { %11112 = vrsqrt.f32 %v7308_v11 }
0x44d0   :  { %v11107_v47 = vpop.eup %11106 }
0x44d1   :  { %v7313_v31 = vmul.f32 %v11107_v47, %v14000_v9 }
0x44d2   :  { %v11109_v17 = vpop.eup %11108 }
0x44d3   :  { %v7314_v12 = vmul.f32 %v11109_v17, %v14003_v0  ;;  %v7321_v34 = vmul.f32 %v7320_v20, %v7313_v31 }
0x44d4   :  { %v11111_v59 = vpop.eup %11110 }
0x44d5   :  { %v7315_v54 = vmul.f32 %v11111_v59, %v14008_v27  ;;  %v7322_v19 = vmul.f32 %v7320_v20, %v7314_v12  ;;  %v7329_v32 = vadd.f32 %v7328_v51, %v7321_v34  ;;  %v10618_v27 = vld [vmem:[%s14302_s29 + $0xf0] sm:$0xff]  }
0x44d6   :  { %9736 = vmatprep.subr.bf16.mxu0 %v10618_v27 }
0x44d7   :  { %v7330_v35 = vadd.f32 %v7328_v51, %v7322_v19  ;;  %v7323_v52 = vmul.f32 %v7320_v20, %v7315_v54  ;;  %9737 = vmatpush3.bf16.msra.mxu0 %v10618_v27 }
0x44d8   :  { %v11113_v24 = vpop.eup %11112  ;;  %9738 = vmatprep.subr.bf16.mxu0 %v10619_v7 }
0x44d9   :  { %v7316_v53 = vmul.f32 %v11113_v24, %v14017_v48  ;;  %v7342_v4 = vpack.c.bf16 %v7330_v35, %v7329_v32  ;;  %v7331_v9 = vadd.f32 %v7328_v51, %v7323_v52  ;;  %v8629_v52 = vld [vmem:[%s14247_s17] ss:$0 sm:$0xff] }
0x44db   :  { %v7324_v29 = vmul.f32 %v7320_v20, %v7316_v53  ;;  %9720 = vmatprep.mubr.msk.bf16.mxu1 %vm120_vm0, %v7342_v4  ;;  %9739 = vmatpush3.bf16.msra.mxu0 %v10619_v7 }
0x44dc   :  { %9756 = vmatprep.subr.bf16.mxu0 %v11180_v2 }
0x44dd   :  { %v7332_v0 = vadd.f32 %v7328_v51, %v7324_v29 }
0x44df   :  { %v7343_v3 = vpack.c.bf16 %v7332_v0, %v7331_v9 }
0x44e1   :  { %9721 = vmatmul.mubr.msk.bf16.vlgmr.msra.gmra.mrb[172].mxu1 %vm120_vm0, %v7343_v3 }
0x44e2   :  { %9745 = vmatpush3.bf16.msra.mxu1 %v10620_v62 }
0x44e3   :  { %9746 = vmatprep.subr.bf16.mxu1 %v10621_v58 }
0x44e6   :  { %9747 = vmatpush3.bf16.msra.mxu1 %v10621_v58 }
0x44e7   :  { %9748 = vmatprep.subr.bf16.mxu1 %v10622_v42 }
0x44ea   :  { %9749 = vmatpush3.bf16.msra.mxu1 %v10622_v42 }
0x44eb   :  { %9750 = vmatprep.subr.bf16.mxu1 %v10623_v16 }
0x44ee   :  { %9751 = vmatpush3.bf16.msra.mxu1 %v10623_v16 }
0x44ef   :  { %9776 = vmatprep.subr.bf16.mxu1 %v11180_v2 }
0x45b4   :  { %v9722_v48 = vpop.f32.mrb[172].mxu1 }
0x45b5   :  { %v7421_v40 = vadd.f32 %v9722_v48, %v7347_v23  ;;  %v7412_v49 = vpop.f32.mrb[173].mxu1 }
0x45b6   :  { %v7413_v36 = vadd.f32 %v7412_v49, %v7347_v23  ;;  %v9723_v38 = vpop.f32.mrb[174].mxu1 }
0x45b7   :  { %v7424_v50 = vadd.f32 %v9723_v38, %v7347_v23  ;;  %v7415_v45 = vpop.f32.mrb[175].mxu1  ;;  %v7429_v8 = vmax.f32 %v7421_v40, 0.0 }
0x45b8   :  { %v7416_v13 = vadd.f32 %v7415_v45, %v7347_v23  ;;  %v7427_v26 = vmax.f32 %v7413_v36, 0.0 }
0x45b9   :  { %v7430_v39 = vmax.f32 %v7424_v50, 0.0 }
0x45ba   :  { %v7428_v41 = vmax.f32 %v7416_v13, 0.0 }
0x45bb   :  { %v7449_v46 = vpack.c.bf16 %v7430_v39, %v7429_v8 }
0x45bc   :  { %v7448_v22 = vpack.c.bf16 %v7428_v41, %v7427_v26 }
0x45be   :  { %9740 = vmatprep.mubr.bf16.mxu0 %v7448_v22 }
0x45bf   :  { %9741 = vmatmul.mubr.bf16.vlgmr.msra.gmra.mrb[144].mxu0 %v7449_v46 }
0x45c0   :  { %9772 = vmatprep.mubr.msk.bf16.mxu0 %vm11181_vm4, %v11180_v2 }
0x4692   :  { %v9742_v18 = vpop.f32.mrb[144].mxu0 }
0x4693   :  { %v7549_v63 = vadd.f32 %v9742_v18, %v13983_v44  ;;  %v7532_v61 = vpop.f32.mrb[145].mxu0 }
0x4694   :  { %v7547_v55 = vadd.f32 %v7532_v61, %v13980_v43  ;;  %v9743_v14 = vpop.f32.mrb[146].mxu0  ;;  %v7573_v43 = vrot.slane %v14105_v21, %v11405_v5 }
0x4695   :  { %v7550_v6 = vadd.f32 %v9743_v14, %v13993_v37  ;;  %v7535_v1 = vpop.f32.mrb[147].mxu0  ;;  %v7557_v56 = vadd.f32 %v7554_v57, %v7549_v63 }
0x4696   :  { %v7548_v25 = vadd.f32 %v7535_v1, %v13986_v28  ;;  %v7555_v20 = vadd.f32 %v7554_v57, %v7547_v55 }
0x4697   :  { %v7558_v11 = vadd.f32 %v7554_v57, %v7550_v6 }
0x4698   :  { %v7556_v47 = vadd.f32 %v7554_v57, %v7548_v25 }
0x4699   :  { %v7569_v31 = vpack.c.bf16 %v7558_v11, %v7557_v56 }
0x469a   :  { %v7568_v17 = vpack.c.bf16 %v7556_v47, %v7555_v20 }
0x469c   :  { %9752 = vmatprep.mubr.msk.bf16.mxu1 %vm120_vm0, %v7568_v17 }
0x469d   :  { %9753 = vmatmul.mubr.msk.bf16.vlgmr.msra.gmra.mrb[176].mxu1 %vm120_vm0, %v7569_v31  ;;  %v7732_v31 = vld [vmem:[%s14248_s15] sm:$0xff] }
0x469e   :  { %9792 = vmatprep.mubr.msk.bf16.mxu1 %vm11181_vm4, %v11180_v2 }
0x4770   :  { %v9754_v44 = vpop.f32.mrb[176].mxu1 }
0x4771   :  { %v7638_v28 = vpop.f32.mrb[177].mxu1  ;;  %v7647_v15 = vadd.f32 %v9754_v44, %v7573_v43 }
0x4772   :  { %v9755_v37 = vpop.f32.mrb[178].mxu1  ;;  %v7639_v51 = vadd.f32 %v7638_v28, %v7573_v43 }
0x4773   :  { %v7650_v12 = vadd.f32 %v9755_v37, %v7573_v43  ;;  %v7641_v34 = vpop.f32.mrb[179].mxu1 }
0x4774   :  { %v7642_v59 = vadd.f32 %v7641_v34, %v7573_v43 }
0x4775   :  { %v10431_v54 = vpack.i.bf16 %v7650_v12, %v7647_v15  ;;  %v7725_v19 = vpack.c.bf16 %v7650_v12, %v7647_v15 }
0x4776   :  { %v10426_v32 = vpack.i.bf16 %v7642_v59, %v7639_v51  ;;  %v7724_v35 = vpack.c.bf16 %v7642_v59, %v7639_v51 }
0x4777   :  { %10432 = vrot.lane.b32.xlu1 %v10431_v54, %s14303_s27  ;;  %v7740_v53 = vsel %vm508_vm1, %v7725_v19, 0 }
0x4778   :  { %10427 = vrot.lane.b32.xlu0 %v10426_v32, %s14303_s27  ;;  %v7737_v24 = vsel %vm508_vm1, %v7724_v35, 0 }
0x4779   :  { %9757 = vmatpush3.bf16.xpose.msra.mxu0 %v7737_v24 }
0x477a   :  { %9758 = vmatprep.subr.bf16.mxu0 %v11180_v2 }
0x477b   :  { %10437 = vrot.lane.b32.xlu1 %v10426_v32, %s14306_s30 }
0x477c   :  { %10447 = vrot.lane.b32.xlu0 %v10426_v32, %s14304_s7 }
0x477f   :  { %10442 = vrot.lane.b32.xlu1 %v10431_v54, %s14306_s30 }
0x4780   :  { %7668 = vrot.lane.b32.xlu0 %v8629_v52, %s14303_s27  ;;  %s14314_s27 = sld [smem:[#allocation15_spill]] }
0x4781   :  { %9759 = vmatpush3.bf16.xpose.msra.mxu0 %v7740_v53 }
0x4782   :  { %9760 = vmatprep.subr.bf16.mxu0 %v11180_v2 }
0x4783   :  { %10452 = vrot.lane.b32.xlu1 %v10431_v54, %s14304_s7 }
0x4784   :  { %7674 = vrot.lane.b32.xlu0 %v8629_v52, %s14304_s7 }
0x4787   :  { %7671 = vrot.lane.b32.xlu1 %v8629_v52, %s14306_s30 }
0x4788   :  { %7818 = vrot.lane.b32.xlu0 %v7724_v35, %s14305_s21 }
0x478c   :  { %7820 = vrot.lane.b32.xlu0 %v7725_v19, %s14305_s21 }
0x47e9   :  { %v10433_v4 = vpop.permute.xlu1 %10432 }
0x47ea   :  { %v10428_v29 = vpop.permute.xlu0 %10427  ;;  %v10435_v62 = vunpack.i.h.bf16 %v10433_v4  ;;  %v10434_v58 = vunpack.i.l.bf16 %v10433_v4 }
0x47eb   :  { %v10430_v9 = vunpack.i.h.bf16 %v10428_v29  ;;  %v10429_v0 = vunpack.i.l.bf16 %v10428_v29 }
0x47ec   :  { %v7727_v38 = vpack.c.bf16 %v10435_v62, %v10434_v58 }
0x47ed   :  { %v14127_v3 = vpack.c.bf16 %v10430_v9, %v10429_v0  ;;  %v10438_v27 = vpop.permute.xlu1 %10437  ;;  %v10624_v9 = vld [vmem:[%s14249_s20] sm:$0xff]   ;;  %v10625_v0 = vld [vmem:[%s14249_s20 + $0x8] sm:$0xff]  }
0x47ee   :  { %v10448_v7 = vpop.permute.xlu0 %10447  ;;  %v10440_v13 = vunpack.i.h.bf16 %v10438_v27  ;;  %v10439_v8 = vunpack.i.l.bf16 %v10438_v27  ;;  %v7746_v39 = vsel %vm508_vm1, %v7727_v38, 0  ;;  %v10627_v27 = vld [vmem:[%s14249_s20 + $0x18] sm:$0xff]  }
0x47ef   :  { %v7743_v23 = vsel %vm508_vm1, %v14127_v3, 0  ;;  %v10450_v42 = vunpack.i.h.bf16 %v10448_v7  ;;  %v10449_v16 = vunpack.i.l.bf16 %v10448_v7 }
0x47f0   :  { %9761 = vmatpush3.bf16.xpose.msra.mxu0 %v7743_v23  ;;  %v7728_v41 = vpack.c.bf16 %v10440_v13, %v10439_v8 }
0x47f1   :  { %v10443_v48 = vpop.permute.xlu1 %10442  ;;  %9762 = vmatprep.subr.bf16.mxu0 %v11180_v2  ;;  %v7730_v63 = vpack.c.bf16 %v10450_v42, %v10449_v16 }
0x47f2   :  { %v10445_v40 = vunpack.i.h.bf16 %v10443_v48  ;;  %v10444_v49 = vunpack.i.l.bf16 %v10443_v48  ;;  %v7669_v36 = vpop.permute.xlu0 %7668  ;;  %v7749_v22 = vsel %vm508_vm1, %v7728_v41, 0 }
0x47f3   :  { %v7755_v14 = vsel %vm508_vm1, %v7730_v63, 0  ;;  %v7678_v1 = vsel %vm7677_vm5, %v8629_v52, %v7669_v36 }
0x47f4   :  { %v7729_v50 = vpack.c.bf16 %v10445_v40, %v10444_v49 }
0x47f5   :  { %v10453_v57 = vpop.permute.xlu1 %10452 }
0x47f6   :  { %v7675_v45 = vpop.permute.xlu0 %7674  ;;  %7828 = vrot.lane.b32.xlu0 %v7729_v50, %s14305_s21  ;;  %v7752_v18 = vsel %vm508_vm1, %v7729_v50, 0  ;;  %v10455_v61 = vunpack.i.h.bf16 %v10453_v57  ;;  %v10454_v55 = vunpack.i.l.bf16 %v10453_v57 }
0x47f8   :  { %9763 = vmatpush3.bf16.xpose.msra.mxu0 %v7746_v39  ;;  %v7731_v6 = vpack.c.bf16 %v10455_v61, %v10454_v55 }
0x47f9   :  { %9764 = vmatprep.subr.bf16.mxu0 %v11180_v2  ;;  %v7672_v25 = vpop.permute.xlu1 %7671 }
0x47fa   :  { %v7819_v26 = vpop.permute.xlu0 %7818  ;;  %v7680_v56 = vsel %vm7679_vm6, %v7678_v1, %v7672_v25  ;;  %v7758_v11 = vsel %vm508_vm1, %v7731_v6, 0 }
0x47fb   :  { %9777 = vmatpush3.bf16.msra.mxu1 %v7819_v26  ;;  %v7682_v20 = vsel %vm7681_vm7, %v7680_v56, %v7675_v45  ;;  %v7902_v26 = vrot.slane %v14105_v21, %v11412_v10 }
0x47fc   :  { %9778 = vmatprep.subr.bf16.mxu1 %v11180_v2  ;;  %v7683_v47 = vpack.c.bf16 %v7682_v20, %v7682_v20 }
0x47fe   :  { %v7821_v46 = vpop.permute.xlu0 %7820 }
0x47ff   :  { %9779 = vmatpush3.bf16.msra.mxu1 %v7821_v46 }
0x4800   :  { %9765 = vmatpush3.bf16.xpose.msra.mxu0 %v7749_v22  ;;  %9780 = vmatprep.subr.bf16.mxu1 %v11180_v2 }
0x4801   :  { %9766 = vmatprep.subr.bf16.mxu0 %v11180_v2 }
0x4808   :  { %9767 = vmatpush3.bf16.xpose.msra.mxu0 %v7752_v18 }
0x4809   :  { %9768 = vmatprep.subr.bf16.mxu0 %v11180_v2 }
0x4810   :  { %9769 = vmatpush3.bf16.xpose.msra.mxu0 %v7755_v14 }
0x4811   :  { %9770 = vmatprep.subr.bf16.mxu0 %v11180_v2 }
0x4818   :  { %9771 = vmatpush3.bf16.xpose.msra.mxu0 %v7758_v11 }
0x4819   :  { %9820 = vmatprep.subr.bf16.mxu0 %v11180_v2 }
0x481f   :  { %9773 = vmatmul.mubr.msk.bf16.vlgmr.msra.gmra.mrb[148].mxu0 %vm508_vm1, %v7683_v47  ;;  %v7970_v47 = vld [vmem:[%s14311_s13] sm:$0x1f] }
0x4820   :  { %9824 = vmatprep.mubr.msk.bf16.mxu0 %vm11181_vm4, %v11180_v2 }
0x4868   :  { %v7829_v32 = vpop.permute.xlu0 %7828 }
0x48f2   :  { %v7794_v17 = vpop.f32.mrb[148].mxu0 }
0x48f3   :  { %v7795_v43 = vadd.f32 %v7794_v17, %v7732_v31  ;;  %v9774_v44 = vpop.f32.mrb[149].mxu0  ;;  %v7988_v31 = vrot.slane %v7970_v47, %v11405_v5  ;;  %v10633_v5 = vld [vmem:[%s14312_s8 + $0x8] sm:$0xff]  }
0x48f4   :  { %v7797_v28 = vpop.f32.mrb[150].mxu0  ;;  %v7993_v44 = vrot.slane %v7970_v47, %v11412_v10 }
0x48f5   :  { %7800 = vmax.xlane.f32.xlu1 %v7795_v43  ;;  %v9775_v37 = vpop.f32.mrb[151].mxu0 }
0x4906   :  { %7822 = vrot.lane.b32.xlu1 %v14127_v3, %s14305_s21  ;;  %v10626_v3 = vld [vmem:[%s14249_s20 + $0x10] sm:$0xff]  }
0x490a   :  { %7824 = vrot.lane.b32.xlu1 %v7727_v38, %s14305_s21 }
0x490e   :  { %7826 = vrot.lane.b32.xlu1 %v7728_v41, %s14305_s21 }
0x4912   :  { %7830 = vrot.lane.b32.xlu1 %v7730_v63, %s14305_s21 }
0x4982   :  { %v7801_v15 = vpop.xlane.xlu1 %7800 }
0x4983   :  { %v7802_v12 = vsub.f32 %v7795_v43, %v7801_v15 }
0x4985   :  { %v7803_v34 = vmul.f32 1.442695, %v7802_v12  ;;  %v10632_v12 = vld [vmem:[%s14312_s8] sm:$0xff]  }
0x4986   :  { %v7823_v51 = vpop.permute.xlu1 %7822  ;;  %9821 = vmatpush3.bf16.msra.mxu0 %v10632_v12 }
0x4987   :  { %11114 = vpow2.f32 %v7803_v34  ;;  %9781 = vmatpush3.bf16.msra.mxu1 %v7823_v51  ;;  %9822 = vmatprep.subr.bf16.mxu0 %v11180_v2  ;;  %v8007_v34 = vrot.slane %v7970_v47, %v11783_v30 }
0x4988   :  { %9782 = vmatprep.subr.bf16.mxu1 %v11180_v2 }
0x498a   :  { %v7825_v59 = vpop.permute.xlu1 %7824  ;;  %9823 = vmatpush3.bf16.msra.mxu0 %v10633_v5 }
0x498b   :  { %9783 = vmatpush3.bf16.msra.mxu1 %v7825_v59 }
0x498c   :  { %9784 = vmatprep.subr.bf16.mxu1 %v11180_v2 }
0x498e   :  { %v7827_v54 = vpop.permute.xlu1 %7826 }
0x498f   :  { %9785 = vmatpush3.bf16.msra.mxu1 %v7827_v54 }
0x4990   :  { %9786 = vmatprep.subr.bf16.mxu1 %v11180_v2 }
0x4991   :  { %v11115_v19 = vpop.eup %11114 }
0x4992   :  { %7805 = vadd.xlane.f32.xlu0 %v11115_v19  ;;  %v7831_v35 = vpop.permute.xlu1 %7830 }
0x4993   :  { %9787 = vmatpush3.bf16.msra.mxu1 %v7829_v32 }
0x4994   :  { %9788 = vmatprep.subr.bf16.mxu1 %v11180_v2 }
0x4997   :  { %9789 = vmatpush3.bf16.msra.mxu1 %v7831_v35 }
0x4998   :  { %9790 = vmatprep.subr.bf16.mxu1 %v11180_v2 }
0x49a8   :  { %7832 = vrot.lane.b32.xlu0 %v7731_v6, %s14305_s21 }
0x4a1f   :  { %v7806_v24 = vpop.xlane.xlu0 %7805 }
0x4a20   :  { %11116 = vrcp.f32 %v7806_v24 }
0x4a23   :  { %v7833_v52 = vpop.permute.xlu0 %7832 }
0x4a24   :  { %9791 = vmatpush3.bf16.msra.mxu1 %v7833_v52 }
0x4a25   :  { %9796 = vmatprep.subr.bf16.mxu1 %v11180_v2 }
0x4a2a   :  { %v11117_v53 = vpop.eup %11116 }
0x4a2b   :  { %v7808_v4 = vmul.f32 %v11117_v53, %v11115_v19 }
0x4a2d   :  { %v7809_v29 = vpack.c.bf16 %v7808_v4, %v7808_v4 }
0x4a2f   :  { %9793 = vmatmul.mubr.bf16.vlgmr.msra.gmra.mrb[180].mxu1 %v7809_v29 }
0x4a30   :  { %9804 = vmatprep.mubr.msk.bf16.mxu1 %vm11181_vm4, %v11180_v2  ;;  %9797 = vmatpush3.bf16.msra.mxu1 %v10624_v9 }
0x4a31   :  { %9798 = vmatprep.subr.bf16.mxu1 %v11180_v2 }
0x4a34   :  { %9799 = vmatpush3.bf16.msra.mxu1 %v10625_v0 }
0x4a35   :  { %9800 = vmatprep.subr.bf16.mxu1 %v11180_v2 }
0x4a38   :  { %9801 = vmatpush3.bf16.msra.mxu1 %v10626_v3 }
0x4a39   :  { %9802 = vmatprep.subr.bf16.mxu1 %v11180_v2 }
0x4a3c   :  { %9803 = vmatpush3.bf16.msra.mxu1 %v10627_v27 }
0x4a3d   :  { %9808 = vmatprep.subr.bf16.mxu1 %v11180_v2 }
0x4b02   :  { %v7876_v7 = vpop.f32.mrb[180].mxu1 }
0x4b03   :  { %v7883_v62 = vrot.slane %v7876_v7, 2  ;;  %v7887_v58 = vrot.slane %v7876_v7, 4  ;;  %v9794_v23 = vpop.f32.mrb[181].mxu1  ;;  %v7891_v49 = vrot.slane %v7876_v7, 6 }
0x4b04   :  { %v7879_v48 = vpop.f32.mrb[182].mxu1  ;;  %v8644_v23 = vld [vmem:[%s14313_s18] ss:$0 sm:$0xff] }
0x4b05   :  { %7888 = vrot.lane.b32.xlu0 %v7887_v58, %s14308_s12  ;;  %7884 = vrot.lane.b32.xlu1 %v7883_v62, %s14307_s22  ;;  %v9795_v40 = vpop.f32.mrb[183].mxu1  ;;  %s14310_s22 = sld [smem:[#allocation11_spill]] }
0x4b09   :  { %7892 = vrot.lane.b32.xlu1 %v7891_v49, %s14309_s6 }
0x4b0b   :  { %v10628_v6 = vld [vmem:[%s14310_s22] sm:$0xff]   ;;  %v10629_v21 = vld [vmem:[%s14310_s22 + $0x8] sm:$0xff]   ;;  %v10630_v1 = vld [vmem:[%s14310_s22 + $0x10] sm:$0xff]  }
0x4b0c   :  { %v10631_v25 = vld [vmem:[%s14310_s22 + $0x18] sm:$0xff]  }
0x4b77   :  { %v7885_v36 = vpop.permute.xlu1 %7884  ;;  %v7889_v38 = vpop.permute.xlu0 %7888 }
0x4b78   :  { %v7895_v50 = vsel %vm508_vm1, %v7876_v7, %v7885_v36 }
0x4b79   :  { %v7896_v45 = vsel %vm955_vm2, %v7895_v50, %v7889_v38 }
0x4b7b   :  { %v7893_v13 = vpop.permute.xlu1 %7892 }
0x4b7c   :  { %v7897_v8 = vsel %vm960_vm3, %v7896_v45, %v7893_v13 }
0x4b7d   :  { %v7898_v39 = vpack.c.bf16 %v7897_v8, %v7897_v8 }
0x4b7f   :  { %9805 = vmatmul.mubr.msk.bf16.vlgmr.msra.gmra.mrb[184].mxu1 %vm120_vm0, %v7898_v39 }
0x4b80   :  { %9816 = vmatprep.mubr.msk.bf16.mxu1 %vm11181_vm4, %v11180_v2  ;;  %9809 = vmatpush3.bf16.msra.mxu1 %v10628_v6 }
0x4b81   :  { %9810 = vmatprep.subr.bf16.mxu1 %v11180_v2 }
0x4b84   :  { %9811 = vmatpush3.bf16.msra.mxu1 %v10629_v21 }
0x4b85   :  { %9812 = vmatprep.subr.bf16.mxu1 %v11180_v2 }
0x4b88   :  { %9813 = vmatpush3.bf16.msra.mxu1 %v10630_v1 }
0x4b89   :  { %9814 = vmatprep.subr.bf16.mxu1 %v11180_v2  ;;  %v8088_v2 = vrot.slane %v7970_v47, %v11788_v60  ;;  %v8164_v60 = vrot.slane %v7970_v47, %v11421_v33 }
0x4b8c   :  { %9815 = vmatpush3.bf16.msra.mxu1 %v10631_v25 }
0x4c52   :  { %v7964_v41 = vpop.f32.mrb[184].mxu1 }
0x4c53   :  { %v7965_v46 = vadd.f32 %v7964_v41, %v7902_v26  ;;  %v9806_v22 = vpop.f32.mrb[185].mxu1 }
0x4c54   :  { %v7967_v42 = vpop.f32.mrb[186].mxu1 }
0x4c55   :  { %v9807_v16 = vpop.f32.mrb[187].mxu1  ;;  %v7972_v18 = vsel %vm7971_vm8, %v7965_v46, 0.0 }
0x4c56   :  { %7973 = vadd.xlane.f32.xlu0 %v7972_v18 }
0x4ce3   :  { %v7974_v63 = vpop.xlane.xlu0 %7973 }
0x4ce4   :  { %v7975_v57 = vmul.f32 0.015625, %v7974_v63 }
0x4ce6   :  { %v7976_v61 = vsub.f32 %v7965_v46, %v7975_v57 }
0x4ce8   :  { %v7977_v55 = vmul.f32 %v7976_v61, %v7976_v61 }
0x4cea   :  { %v7978_v14 = vsel %vm7971_vm8, %v7977_v55, 0.0 }
0x4ceb   :  { %7979 = vadd.xlane.f32.xlu1 %v7978_v14 }
0x4d78   :  { %v7980_v56 = vpop.xlane.xlu1 %7979 }
0x4d79   :  { %v7981_v11 = vmul.f32 0.015625, %v7980_v56 }
0x4d7b   :  { %v7982_v20 = vadd.f32 1e-05, %v7981_v11 }
0x4d7d   :  { %11118 = vrsqrt.f32 %v7982_v20 }
0x4d87   :  { %v11119_v17 = vpop.eup %11118 }
0x4d88   :  { %v7984_v43 = vmul.f32 %v11119_v17, %v7976_v61 }
0x4d8a   :  { %v7989_v28 = vmul.f32 %v7988_v31, %v7984_v43 }
0x4d8c   :  { %v7994_v37 = vadd.f32 %v7993_v44, %v7989_v28 }
0x4d8e   :  { %v8003_v15 = vpack.c.bf16 %v7994_v37, %v7994_v37 }
0x4d90   :  { %9817 = vmatmul.mubr.msk.bf16.vlgmr.msra.gmra.mrb[188].mxu1 %vm120_vm0, %v8003_v15 }
0x4e63   :  { %v8069_v10 = vpop.f32.mrb[188].mxu1 }
0x4e64   :  { %v8070_v51 = vadd.f32 %v8069_v10, %v8007_v34  ;;  %v9818_v59 = vpop.f32.mrb[189].mxu1 }
0x4e65   :  { %v8072_v54 = vpop.f32.mrb[190].mxu1 }
0x4e66   :  { %v8076_v19 = vmul.f32 0.70710677, %v8070_v51  ;;  %v9819_v32 = vpop.f32.mrb[191].mxu1  ;;  %v8075_v24 = vmul.f32 0.5, %v8070_v51 }
0x4e68   :  { %11120 = verf.f32 %v8076_v19 }
0x4e72   :  { %v11121_v35 = vpop.eup %11120 }
0x4e73   :  { %v8078_v52 = vadd.f32 1.0, %v11121_v35 }
0x4e75   :  { %v8079_v53 = vmul.f32 %v8078_v52, %v8075_v24 }
0x4e77   :  { %v8084_v4 = vpack.c.bf16 %v8079_v53, %v8079_v53 }
0x4e79   :  { %9825 = vmatmul.mubr.msk.bf16.vlgmr.msra.gmra.mrb[152].mxu0 %vm955_vm2, %v8084_v4 }
0x4f4c   :  { %v8138_v29 = vpop.f32.mrb[152].mxu0 }
0x4f4d   :  { %v8139_v9 = vadd.f32 %v8138_v29, %v8088_v2  ;;  %v9826_v0 = vpop.f32.mrb[153].mxu0 }
0x4f4e   :  { %v8141_v30 = vpop.f32.mrb[154].mxu0 }
0x4f4f   :  { %v8145_v3 = vmul.f32 0.70710677, %v8139_v9  ;;  %v9827_v27 = vpop.f32.mrb[155].mxu0  ;;  %v8144_v62 = vmul.f32 0.5, %v8139_v9 }
0x4f51   :  { %11122 = verf.f32 %v8145_v3 }
0x4f5b   :  { %v11123_v7 = vpop.eup %11122 }
0x4f5c   :  { %v8147_v58 = vadd.f32 1.0, %v11123_v7 }
0x4f5e   :  { %v8148_v48 = vmul.f32 %v8147_v58, %v8144_v62 }
0x4f60   :  { %v8156_v40 = vmul.f32 %v8644_v23, %v8148_v48 }
0x4f62   :  { %v8158_v49 = vsel %vm8157_vm9, %v8156_v40, 0.0 }
0x4f63   :  { %8159 = vadd.xlane.f32.xlu0 %v8158_v49 }
0x4ff0   :  { %v8160_v36 = vpop.xlane.xlu0 %8159 }
0x4ff1   :  { %v8165_v38 = vadd.f32 %v8164_v60, %v8160_v36 }
0x4ff3   :  { %8167 = vst.msk [vmem:[%s14314_s27] sm:$0x3] %vm8166_vm10, %v8165_v38 }

</bundles_post_ra>
